<compile_context>
chip_gen: v6e
topology: v6e:2x2x1
jax: 0.10.0
libtpu: 0.0.40
codegen_flags: <defaults>
</compile_context>

<pallas_src>
import jax
import jax.numpy as jnp
from jax.experimental import pallas as pl
from jax.experimental.pallas import tpu as pltpu


# ----------------------------- static geometry ------------------------------
_LANES = 128
_K1 = 128          # conv1 im2col K (5*5*3 = 75 valid, zero padded)
_Y1_ROWS = 800     # conv1 output rows (28*28 = 784 valid), row = oh*28 + ow
_ZW1_ROWS = 796    # pool1: rows of max(Y1[r], Y1[r+1])
_ZHW1_ROWS = 768   # pool1: rows of 2x2 window maxima fed to the selection matmul
_A2_ROWS = 208     # pooled1 rows (14*14 = 196 valid), row = ph*14 + pw
_Y2_ROWS = 144     # conv2 output rows (rows 0..135 used), row = oh2*14 + ow2


# ------------------------------ fused kernel --------------------------------
def _cifarnet_kernel(x_ref, w1_ref, s1_ref, w2_ref, wf1_ref, wf2_ref, wf3_ref,
                     b_ref, o_ref, y1_ref):
    f32 = jnp.float32
    bf16 = jnp.bfloat16

    b1 = b_ref[0:1, :]
    b2 = b_ref[1:2, :]
    bf1 = b_ref[2:3, :]
    bf2 = b_ref[3:4, :]
    bf3 = b_ref[4:5, :]

    # ---- conv1: lane-dense im2col matmul + bias + ReLU, chunked so the f32
    #      accumulator stays inside the vreg file; result parked in VMEM scratch.
    for m0 in (0, 400):
        acc = jnp.dot(x_ref[0, m0:m0 + 400, :], w1_ref[...],
                      preferred_element_type=f32)
        y1_ref[m0:m0 + 400, :] = jnp.maximum(acc + b1, 0.0)

    # ---- pool1 (2x2 stride 2): shifted element-wise maxima, then a 0/1
    #      selection matmul gathers the 14x14 window anchors into dense rows
    #      (row = ph*14 + pw).  All on VPU/MXU, nothing leaves VMEM.
    zw1 = jnp.maximum(y1_ref[0:_ZW1_ROWS, :], y1_ref[1:_ZW1_ROWS + 1, :])
    zhw1 = jnp.maximum(zw1[0:_ZHW1_ROWS, :], zw1[28:28 + _ZHW1_ROWS, :])
    a2 = jnp.dot(s1_ref[...], zhw1.astype(bf16), preferred_element_type=f32)

    # ---- conv2: im2col fully in-kernel -- 25 shifted-row tap matmuls over the
    #      pooled activation (tap (ki, kj) -> row offset 14*ki + kj).
    y2 = jnp.zeros((_Y2_ROWS, _LANES), f32)
    for ki in range(5):
        for kj in range(5):
            off = 14 * ki + kj
            y2 = y2 + jnp.dot(a2[off:off + _Y2_ROWS, :].astype(bf16),
                              w2_ref[5 * ki + kj],
                              preferred_element_type=f32)
    y2 = jnp.maximum(y2 + b2, 0.0)

    # ---- pool2 (2x2 stride 2): shifted maxima; the stride-2 downsample is
    #      folded into fc1's anchor-row picks below (anchor = 28*p2h + 2*p2w).
    zw2 = jnp.maximum(y2[0:143, :], y2[1:144, :])
    zhw2 = jnp.maximum(zw2[0:128, :], zw2[14:142, :])

    # ---- fc1: contraction over the 25 pooled spatial positions; the weights
    #      were pre-permuted so PyTorch's channel-major flatten (c*25 + s) is
    #      preserved.  Rows processed 8-wide for aligned MXU tiles (only row 0
    #      of `h` is meaningful; the rest is discarded).
    h = jnp.zeros((8, _LANES), f32)
    for s in range(25):
        a = 28 * (s // 5) + 2 * (s % 5)
        h = h + jnp.dot(zhw2[a:a + 8, :].astype(bf16), wf1_ref[s],
                        preferred_element_type=f32)
    h1 = jnp.maximum(h + bf1, 0.0)
    # TODO(synk): F.dropout(training=self.training) is eval-mode identity here;
    # the training-mode RNG mask is not reproduced.

    h2 = jnp.maximum(
        jnp.dot(h1.astype(bf16), wf2_ref[...], preferred_element_type=f32) + bf2,
        0.0)
    z = jnp.dot(h2.astype(bf16), wf3_ref[...], preferred_element_type=f32) + bf3

    # ---- log_softmax over the 10 real classes; padded lanes masked to -1e30
    #      so they cannot leak into the log-sum-exp.
    lane = jax.lax.broadcasted_iota(jnp.int32, (8, _LANES), 1)
    zm = jnp.where(lane < 10, z, -1e30)
    m = jnp.max(zm, axis=-1, keepdims=True)
    lse = m + jnp.log(jnp.sum(jnp.exp(zm - m), axis=-1, keepdims=True))
    o_ref[0] = zm - lse


def _cifarnet_call(x1, w1p, s1, w2p, wf1p, wf2p, wf3p, b_all):
    n = x1.shape[0]
    return pl.pallas_call(
        _cifarnet_kernel,
        out_shape=jax.ShapeDtypeStruct((n, 8, _LANES), jnp.float32),
        grid=(n,),
        in_specs=[
            pl.BlockSpec((1, _Y1_ROWS, _K1), lambda i: (i, 0, 0)),   # im2col slab
            pl.BlockSpec((_K1, _LANES), lambda i: (0, 0)),           # conv1 W
            pl.BlockSpec((_A2_ROWS, _ZHW1_ROWS), lambda i: (0, 0)),  # pool1 select
            pl.BlockSpec((25, _LANES, _LANES), lambda i: (0, 0, 0)),  # conv2 taps
            pl.BlockSpec((25, _LANES, _LANES), lambda i: (0, 0, 0)),  # fc1 per-pos
            pl.BlockSpec((_LANES, _LANES), lambda i: (0, 0)),        # fc2 W
            pl.BlockSpec((_LANES, _LANES), lambda i: (0, 0)),        # fc3 W
            pl.BlockSpec((8, _LANES), lambda i: (0, 0)),             # biases
        ],
        out_specs=pl.BlockSpec((1, 8, _LANES), lambda i: (i, 0, 0)),
        scratch_shapes=[pltpu.VMEM((_Y1_ROWS, _LANES), jnp.float32)],
        compiler_params=pltpu.CompilerParams(
            dimension_semantics=("parallel",)),   # batch axis -> both v7x cores
    )(x1, w1p, s1, w2p, wf1p, wf2p, wf3p, b_all)


# ------------------------------ params & prep -------------------------------
def init_params(key):
    """Deterministic PyTorch-style init (uniform +-1/sqrt(fan_in))."""
    def u(k, shape, fan_in):
        bound = 1.0 / float(fan_in) ** 0.5
        return jax.random.uniform(k, shape, jnp.float32, -bound, bound)

    ks = jax.random.split(key, 10)
    p = {}
    p["w1"] = u(ks[0], (5, 5, 3, 6), 3 * 5 * 5)     # conv1, HWIO
    p["b1"] = u(ks[1], (6,), 3 * 5 * 5)
    p["w2"] = u(ks[2], (5, 5, 6, 16), 6 * 5 * 5)    # conv2, HWIO
    p["b2"] = u(ks[3], (16,), 6 * 5 * 5)
    p["wf1"] = u(ks[4], (400, 120), 400)            # fc1 [in, out]; in = c*25 + h*5 + w
    p["bf1"] = u(ks[5], (120,), 400)
    p["wf2"] = u(ks[6], (120, 84), 120)
    p["bf2"] = u(ks[7], (84,), 120)
    p["wf3"] = u(ks[8], (84, 10), 84)
    p["bf3"] = u(ks[9], (10,), 84)
    return p


def prepare_params(p):
    """One-time re-layout of weights into lane-dense, zero-padded bf16 blocks."""
    bf16 = jnp.bfloat16

    def pad2(a, rows, cols):
        out = jnp.zeros((rows, cols), jnp.float32)
        return out.at[:a.shape[0], :a.shape[1]].set(a)

    # conv1: im2col K order (ki, kj, ci); output channels on lanes.
    w1p = pad2(p["w1"].reshape(75, 6), _K1, _LANES).astype(bf16)

    # conv2: one [cin, cout] matrix per tap t = 5*ki + kj, zero padded.
    w2p = jnp.zeros((25, _LANES, _LANES), jnp.float32)
    w2p = w2p.at[:, :6, :16].set(p["w2"].reshape(25, 6, 16)).astype(bf16)

    # fc1: rows re-permuted from PyTorch's flatten order (c*25 + s) into one
    # [channel, out] matrix per pooled spatial position s = p2h*5 + p2w.
    wf1r = p["wf1"].reshape(16, 25, 120).transpose(1, 0, 2)       # [s, c, n]
    wf1p = jnp.zeros((25, _LANES, _LANES), jnp.float32)
    wf1p = wf1p.at[:, :16, :120].set(wf1r).astype(bf16)

    wf2p = pad2(p["wf2"], _LANES, _LANES).astype(bf16)
    wf3p = pad2(p["wf3"], _LANES, _LANES).astype(bf16)

    # biases stacked into one lane-padded f32 block (loaded once per image).
    b_all = jnp.zeros((8, _LANES), jnp.float32)
    for r, name in enumerate(("b1", "b2", "bf1", "bf2", "bf3")):
        b_all = b_all.at[r, :p[name].shape[0]].set(p[name])

    # pool1 selection matrix: row i = pooled position (ph, pw) = (i//14, i%14),
    # picking the 2x2 window-max anchored at conv1 row 56*ph + 2*pw.
    i = jnp.arange(_A2_ROWS)
    anchor = 56 * (i // 14) + 2 * (i % 14)
    s1 = ((jnp.arange(_ZHW1_ROWS)[None, :] == anchor[:, None])
          & (i[:, None] < 196)).astype(bf16)

    return {"w1": w1p, "w2": w2p, "wf1": wf1p, "wf2": wf2p, "wf3": wf3p,
            "b": b_all, "s1": s1}


# ------------------------------- JAX glue -----------------------------------
def _conv1_patches(x_nhwc):
    """[N,32,32,3] -> lane-dense conv1 im2col slab [N, 800, 128] bf16.

    Built once per forward and consumed directly by the fused kernel's
    BlockSpec (written + read exactly once, ~200 KB/image)."""
    n = x_nhwc.shape[0]
    cols = []
    for ki in range(5):
        for kj in range(5):
            cols.append(x_nhwc[:, ki:ki + 28, kj:kj + 28, :])
    pat = jnp.stack(cols, axis=3)                  # [N, 28, 28, 25, 3]
    pat = pat.reshape(n, 784, 75)                  # row = oh*28 + ow, K = (ki,kj,ci)
    pat = jnp.pad(pat, ((0, 0), (0, _Y1_ROWS - 784), (0, _K1 - 75)))
    return pat.astype(jnp.bfloat16)


def cifarnet_forward(x_nchw, prepped):
    """x_nchw: [N, 3, 32, 32] float32 (PyTorch layout) -> log-probs [N, 10]."""
    x = jnp.transpose(x_nchw, (0, 2, 3, 1)).astype(jnp.float32)   # NHWC
    x1 = _conv1_patches(x)
    out = _cifarnet_call(x1, prepped["w1"], prepped["s1"], prepped["w2"],
                         prepped["wf1"], prepped["wf2"], prepped["wf3"],
                         prepped["b"])
    return out[:, 0, :10]     # drop lane/row padding: [N, 10] log-probs


if __name__ == "__main__":
    key = jax.random.PRNGKey(0)
    kx, kp = jax.random.split(key)
    # CIFAR-shaped input required by the hard-coded 16*5*5 flatten: [2, 3, 32, 32]
    x = jax.random.normal(kx, (2, 3, 32, 32), dtype=jnp.float32)

    params = init_params(kp)
    prepped = prepare_params(params)          # weight re-layout done once

    fwd = jax.jit(cifarnet_forward)
    out = jax.block_until_ready(fwd(x, prepped))

    assert out.shape == (2, 10)
    assert bool(jnp.all(jnp.isfinite(out)))
    # log_softmax rows must exponentiate-sum to ~1
    assert jnp.allclose(jnp.sum(jnp.exp(out), axis=1), 1.0, atol=1e-3)
    print("KERNEL_OK")
</pallas_src>

<mosaic_0001>
module attributes {stable_mosaic.version = 11 : i64} {
  func.func @_cifarnet_kernel(%arg0: i32, %arg1: memref<1x800x128xbf16, #tpu.memory_space<vmem>>, %arg2: memref<128x128xbf16, #tpu.memory_space<vmem>>, %arg3: memref<208x768xbf16, #tpu.memory_space<vmem>>, %arg4: memref<25x128x128xbf16, #tpu.memory_space<vmem>>, %arg5: memref<25x128x128xbf16, #tpu.memory_space<vmem>>, %arg6: memref<128x128xbf16, #tpu.memory_space<vmem>>, %arg7: memref<128x128xbf16, #tpu.memory_space<vmem>>, %arg8: memref<8x128xf32, #tpu.memory_space<vmem>>, %arg9: memref<1x8x128xf32, #tpu.memory_space<vmem>>, %arg10: memref<800x128xf32, #tpu.memory_space<vmem>>) attributes {dimension_semantics = [#tpu.dimension_semantics<parallel>], iteration_bounds = array<i64: 2>, scalar_prefetch = 0 : i64, scratch_operands = 1 : i64, tpu.core_type = #tpu.core_type<tc>, window_params = [{transform_indices = @transform_0, window_bounds = array<i64: 1, 800, 128>}, {pipeline_mode = #tpu.pipeline_mode<synchronous>, transform_indices = @transform_1, window_bounds = array<i64: 128, 128>}, {pipeline_mode = #tpu.pipeline_mode<synchronous>, transform_indices = @transform_2, window_bounds = array<i64: 208, 768>}, {pipeline_mode = #tpu.pipeline_mode<synchronous>, transform_indices = @transform_3, window_bounds = array<i64: 25, 128, 128>}, {pipeline_mode = #tpu.pipeline_mode<synchronous>, transform_indices = @transform_4, window_bounds = array<i64: 25, 128, 128>}, {pipeline_mode = #tpu.pipeline_mode<synchronous>, transform_indices = @transform_5, window_bounds = array<i64: 128, 128>}, {pipeline_mode = #tpu.pipeline_mode<synchronous>, transform_indices = @transform_6, window_bounds = array<i64: 128, 128>}, {pipeline_mode = #tpu.pipeline_mode<synchronous>, transform_indices = @transform_7, window_bounds = array<i64: 8, 128>}, {transform_indices = @transform_8, window_bounds = array<i64: 1, 8, 128>}]} {
    %c0 = arith.constant 0 : index
    %c0_0 = arith.constant 0 : index
    %0 = vector.load %arg8[%c0, %c0_0] : memref<8x128xf32, #tpu.memory_space<vmem>>, vector<1x128xf32>
    %c1 = arith.constant 1 : index
    %c0_1 = arith.constant 0 : index
    %1 = vector.load %arg8[%c1, %c0_1] : memref<8x128xf32, #tpu.memory_space<vmem>>, vector<1x128xf32>
    %c2 = arith.constant 2 : index
    %c0_2 = arith.constant 0 : index
    %2 = vector.load %arg8[%c2, %c0_2] : memref<8x128xf32, #tpu.memory_space<vmem>>, vector<1x128xf32>
    %c3 = arith.constant 3 : index
    %c0_3 = arith.constant 0 : index
    %3 = vector.load %arg8[%c3, %c0_3] : memref<8x128xf32, #tpu.memory_space<vmem>>, vector<1x128xf32>
    %c4 = arith.constant 4 : index
    %c0_4 = arith.constant 0 : index
    %4 = vector.load %arg8[%c4, %c0_4] : memref<8x128xf32, #tpu.memory_space<vmem>>, vector<1x128xf32>
    %c0_5 = arith.constant 0 : index
    %c0_6 = arith.constant 0 : index
    %c0_7 = arith.constant 0 : index
    %5 = vector.load %arg1[%c0_5, %c0_6, %c0_7] : memref<1x800x128xbf16, #tpu.memory_space<vmem>>, vector<1x400x128xbf16>
    %6 = vector.shape_cast %5 : vector<1x400x128xbf16> to vector<400x128xbf16>
    %c0_8 = arith.constant 0 : index
    %c0_9 = arith.constant 0 : index
    %7 = vector.load %arg2[%c0_8, %c0_9] : memref<128x128xbf16, #tpu.memory_space<vmem>>, vector<128x128xbf16>
    %cst = arith.constant dense<0.000000e+00> : vector<400x128xf32>
    %8 = tpu.matmul %6, %7, %cst {dimension_numbers = #tpu.dot_dimension_numbers<[1], [0], [0], [1], [0, 0, 1, 1], [], []>} : vector<400x128xbf16>, vector<128x128xbf16>, vector<400x128xf32> -> vector<400x128xf32>
    %9 = vector.broadcast %0 : vector<1x128xf32> to vector<400x128xf32>
    %10 = arith.addf %8, %9 : vector<400x128xf32>
    %cst_10 = arith.constant 0.000000e+00 : f32
    %11 = vector.broadcast %cst_10 : f32 to vector<400x128xf32>
    %12 = arith.maximumf %10, %11 : vector<400x128xf32>
    %c0_11 = arith.constant 0 : index
    %c0_12 = arith.constant 0 : index
    %13 = vector.load %arg10[%c0_11, %c0_12] : memref<800x128xf32, #tpu.memory_space<vmem>>, vector<400x128xf32>
    tpu.vector_store %arg10[%c0_11, %c0_12], %12 {strides = array<i32>} : memref<800x128xf32, #tpu.memory_space<vmem>>, vector<400x128xf32>,
    %c0_13 = arith.constant 0 : index
    %c400 = arith.constant 400 : index
    %c0_14 = arith.constant 0 : index
    %14 = vector.load %arg1[%c0_13, %c400, %c0_14] : memref<1x800x128xbf16, #tpu.memory_space<vmem>>, vector<1x400x128xbf16>
    %15 = vector.shape_cast %14 : vector<1x400x128xbf16> to vector<400x128xbf16>
    %c0_15 = arith.constant 0 : index
    %c0_16 = arith.constant 0 : index
    %16 = vector.load %arg2[%c0_15, %c0_16] : memref<128x128xbf16, #tpu.memory_space<vmem>>, vector<128x128xbf16>
    %cst_17 = arith.constant dense<0.000000e+00> : vector<400x128xf32>
    %17 = tpu.matmul %15, %16, %cst_17 {dimension_numbers = #tpu.dot_dimension_numbers<[1], [0], [0], [1], [0, 0, 1, 1], [], []>} : vector<400x128xbf16>, vector<128x128xbf16>, vector<400x128xf32> -> vector<400x128xf32>
    %18 = vector.broadcast %0 : vector<1x128xf32> to vector<400x128xf32>
    %19 = arith.addf %17, %18 : vector<400x128xf32>
    %cst_18 = arith.constant 0.000000e+00 : f32
    %20 = vector.broadcast %cst_18 : f32 to vector<400x128xf32>
    %21 = arith.maximumf %19, %20 : vector<400x128xf32>
    %c400_19 = arith.constant 400 : index
    %c0_20 = arith.constant 0 : index
    %22 = vector.load %arg10[%c400_19, %c0_20] : memref<800x128xf32, #tpu.memory_space<vmem>>, vector<400x128xf32>
    tpu.vector_store %arg10[%c400_19, %c0_20], %21 {strides = array<i32>} : memref<800x128xf32, #tpu.memory_space<vmem>>, vector<400x128xf32>,
    %c0_21 = arith.constant 0 : index
    %c0_22 = arith.constant 0 : index
    %23 = vector.load %arg10[%c0_21, %c0_22] : memref<800x128xf32, #tpu.memory_space<vmem>>, vector<796x128xf32>
    %c1_23 = arith.constant 1 : index
    %c0_24 = arith.constant 0 : index
    %24 = vector.load %arg10[%c1_23, %c0_24] : memref<800x128xf32, #tpu.memory_space<vmem>>, vector<796x128xf32>
    %25 = arith.maximumf %23, %24 : vector<796x128xf32>
    %26 = vector.extract_strided_slice %25 {offsets = [0, 0], sizes = [768, 128], strides = [1, 1]} : vector<796x128xf32> to vector<768x128xf32>
    %27 = vector.extract_strided_slice %25 {offsets = [28, 0], sizes = [768, 128], strides = [1, 1]} : vector<796x128xf32> to vector<768x128xf32>
    %28 = arith.maximumf %26, %27 : vector<768x128xf32>
    %c0_25 = arith.constant 0 : index
    %c0_26 = arith.constant 0 : index
    %29 = vector.load %arg3[%c0_25, %c0_26] : memref<208x768xbf16, #tpu.memory_space<vmem>>, vector<208x768xbf16>
    %30 = arith.truncf %28 : vector<768x128xf32> to vector<768x128xbf16>
    %cst_27 = arith.constant dense<0.000000e+00> : vector<208x128xf32>
    %31 = tpu.matmul %29, %30, %cst_27 {dimension_numbers = #tpu.dot_dimension_numbers<[1], [0], [0], [1], [0, 0, 1, 1], [], []>} : vector<208x768xbf16>, vector<768x128xbf16>, vector<208x128xf32> -> vector<208x128xf32>
    %cst_28 = arith.constant 0.000000e+00 : f32
    %32 = vector.broadcast %cst_28 : f32 to vector<144x128xf32>
    %33 = vector.extract_strided_slice %31 {offsets = [0, 0], sizes = [144, 128], strides = [1, 1]} : vector<208x128xf32> to vector<144x128xf32>
    %34 = arith.truncf %33 : vector<144x128xf32> to vector<144x128xbf16>
    %c0_29 = arith.constant 0 : index
    %c0_30 = arith.constant 0 : index
    %c0_31 = arith.constant 0 : index
    %35 = vector.load %arg4[%c0_29, %c0_30, %c0_31] : memref<25x128x128xbf16, #tpu.memory_space<vmem>>, vector<1x128x128xbf16>
    %36 = vector.shape_cast %35 : vector<1x128x128xbf16> to vector<128x128xbf16>
    %cst_32 = arith.constant dense<0.000000e+00> : vector<144x128xf32>
    %37 = tpu.matmul %34, %36, %cst_32 {dimension_numbers = #tpu.dot_dimension_numbers<[1], [0], [0], [1], [0, 0, 1, 1], [], []>} : vector<144x128xbf16>, vector<128x128xbf16>, vector<144x128xf32> -> vector<144x128xf32>
    %38 = arith.addf %32, %37 : vector<144x128xf32>
    %39 = vector.extract_strided_slice %31 {offsets = [1, 0], sizes = [144, 128], strides = [1, 1]} : vector<208x128xf32> to vector<144x128xf32>
    %40 = arith.truncf %39 : vector<144x128xf32> to vector<144x128xbf16>
    %c1_33 = arith.constant 1 : index
    %c0_34 = arith.constant 0 : index
    %c0_35 = arith.constant 0 : index
    %41 = vector.load %arg4[%c1_33, %c0_34, %c0_35] : memref<25x128x128xbf16, #tpu.memory_space<vmem>>, vector<1x128x128xbf16>
    %42 = vector.shape_cast %41 : vector<1x128x128xbf16> to vector<128x128xbf16>
    %cst_36 = arith.constant dense<0.000000e+00> : vector<144x128xf32>
    %43 = tpu.matmul %40, %42, %cst_36 {dimension_numbers = #tpu.dot_dimension_numbers<[1], [0], [0], [1], [0, 0, 1, 1], [], []>} : vector<144x128xbf16>, vector<128x128xbf16>, vector<144x128xf32> -> vector<144x128xf32>
    %44 = arith.addf %38, %43 : vector<144x128xf32>
    %45 = vector.extract_strided_slice %31 {offsets = [2, 0], sizes = [144, 128], strides = [1, 1]} : vector<208x128xf32> to vector<144x128xf32>
    %46 = arith.truncf %45 : vector<144x128xf32> to vector<144x128xbf16>
    %c2_37 = arith.constant 2 : index
    %c0_38 = arith.constant 0 : index
    %c0_39 = arith.constant 0 : index
    %47 = vector.load %arg4[%c2_37, %c0_38, %c0_39] : memref<25x128x128xbf16, #tpu.memory_space<vmem>>, vector<1x128x128xbf16>
    %48 = vector.shape_cast %47 : vector<1x128x128xbf16> to vector<128x128xbf16>
    %cst_40 = arith.constant dense<0.000000e+00> : vector<144x128xf32>
    %49 = tpu.matmul %46, %48, %cst_40 {dimension_numbers = #tpu.dot_dimension_numbers<[1], [0], [0], [1], [0, 0, 1, 1], [], []>} : vector<144x128xbf16>, vector<128x128xbf16>, vector<144x128xf32> -> vector<144x128xf32>
    %50 = arith.addf %44, %49 : vector<144x128xf32>
    %51 = vector.extract_strided_slice %31 {offsets = [3, 0], sizes = [144, 128], strides = [1, 1]} : vector<208x128xf32> to vector<144x128xf32>
    %52 = arith.truncf %51 : vector<144x128xf32> to vector<144x128xbf16>
    %c3_41 = arith.constant 3 : index
    %c0_42 = arith.constant 0 : index
    %c0_43 = arith.constant 0 : index
    %53 = vector.load %arg4[%c3_41, %c0_42, %c0_43] : memref<25x128x128xbf16, #tpu.memory_space<vmem>>, vector<1x128x128xbf16>
    %54 = vector.shape_cast %53 : vector<1x128x128xbf16> to vector<128x128xbf16>
    %cst_44 = arith.constant dense<0.000000e+00> : vector<144x128xf32>
    %55 = tpu.matmul %52, %54, %cst_44 {dimension_numbers = #tpu.dot_dimension_numbers<[1], [0], [0], [1], [0, 0, 1, 1], [], []>} : vector<144x128xbf16>, vector<128x128xbf16>, vector<144x128xf32> -> vector<144x128xf32>
    %56 = arith.addf %50, %55 : vector<144x128xf32>
    %57 = vector.extract_strided_slice %31 {offsets = [4, 0], sizes = [144, 128], strides = [1, 1]} : vector<208x128xf32> to vector<144x128xf32>
    %58 = arith.truncf %57 : vector<144x128xf32> to vector<144x128xbf16>
    %c4_45 = arith.constant 4 : index
    %c0_46 = arith.constant 0 : index
    %c0_47 = arith.constant 0 : index
    %59 = vector.load %arg4[%c4_45, %c0_46, %c0_47] : memref<25x128x128xbf16, #tpu.memory_space<vmem>>, vector<1x128x128xbf16>
    %60 = vector.shape_cast %59 : vector<1x128x128xbf16> to vector<128x128xbf16>
    %cst_48 = arith.constant dense<0.000000e+00> : vector<144x128xf32>
    %61 = tpu.matmul %58, %60, %cst_48 {dimension_numbers = #tpu.dot_dimension_numbers<[1], [0], [0], [1], [0, 0, 1, 1], [], []>} : vector<144x128xbf16>, vector<128x128xbf16>, vector<144x128xf32> -> vector<144x128xf32>
    %62 = arith.addf %56, %61 : vector<144x128xf32>
    %63 = vector.extract_strided_slice %31 {offsets = [14, 0], sizes = [144, 128], strides = [1, 1]} : vector<208x128xf32> to vector<144x128xf32>
    %64 = arith.truncf %63 : vector<144x128xf32> to vector<144x128xbf16>
    %c5 = arith.constant 5 : index
    %c0_49 = arith.constant 0 : index
    %c0_50 = arith.constant 0 : index
    %65 = vector.load %arg4[%c5, %c0_49, %c0_50] : memref<25x128x128xbf16, #tpu.memory_space<vmem>>, vector<1x128x128xbf16>
    %66 = vector.shape_cast %65 : vector<1x128x128xbf16> to vector<128x128xbf16>
    %cst_51 = arith.constant dense<0.000000e+00> : vector<144x128xf32>
    %67 = tpu.matmul %64, %66, %cst_51 {dimension_numbers = #tpu.dot_dimension_numbers<[1], [0], [0], [1], [0, 0, 1, 1], [], []>} : vector<144x128xbf16>, vector<128x128xbf16>, vector<144x128xf32> -> vector<144x128xf32>
    %68 = arith.addf %62, %67 : vector<144x128xf32>
    %69 = vector.extract_strided_slice %31 {offsets = [15, 0], sizes = [144, 128], strides = [1, 1]} : vector<208x128xf32> to vector<144x128xf32>
    %70 = arith.truncf %69 : vector<144x128xf32> to vector<144x128xbf16>
    %c6 = arith.constant 6 : index
    %c0_52 = arith.constant 0 : index
    %c0_53 = arith.constant 0 : index
    %71 = vector.load %arg4[%c6, %c0_52, %c0_53] : memref<25x128x128xbf16, #tpu.memory_space<vmem>>, vector<1x128x128xbf16>
    %72 = vector.shape_cast %71 : vector<1x128x128xbf16> to vector<128x128xbf16>
    %cst_54 = arith.constant dense<0.000000e+00> : vector<144x128xf32>
    %73 = tpu.matmul %70, %72, %cst_54 {dimension_numbers = #tpu.dot_dimension_numbers<[1], [0], [0], [1], [0, 0, 1, 1], [], []>} : vector<144x128xbf16>, vector<128x128xbf16>, vector<144x128xf32> -> vector<144x128xf32>
    %74 = arith.addf %68, %73 : vector<144x128xf32>
    %75 = vector.extract_strided_slice %31 {offsets = [16, 0], sizes = [144, 128], strides = [1, 1]} : vector<208x128xf32> to vector<144x128xf32>
    %76 = arith.truncf %75 : vector<144x128xf32> to vector<144x128xbf16>
    %c7 = arith.constant 7 : index
    %c0_55 = arith.constant 0 : index
    %c0_56 = arith.constant 0 : index
    %77 = vector.load %arg4[%c7, %c0_55, %c0_56] : memref<25x128x128xbf16, #tpu.memory_space<vmem>>, vector<1x128x128xbf16>
    %78 = vector.shape_cast %77 : vector<1x128x128xbf16> to vector<128x128xbf16>
    %cst_57 = arith.constant dense<0.000000e+00> : vector<144x128xf32>
    %79 = tpu.matmul %76, %78, %cst_57 {dimension_numbers = #tpu.dot_dimension_numbers<[1], [0], [0], [1], [0, 0, 1, 1], [], []>} : vector<144x128xbf16>, vector<128x128xbf16>, vector<144x128xf32> -> vector<144x128xf32>
    %80 = arith.addf %74, %79 : vector<144x128xf32>
    %81 = vector.extract_strided_slice %31 {offsets = [17, 0], sizes = [144, 128], strides = [1, 1]} : vector<208x128xf32> to vector<144x128xf32>
    %82 = arith.truncf %81 : vector<144x128xf32> to vector<144x128xbf16>
    %c8 = arith.constant 8 : index
    %c0_58 = arith.constant 0 : index
    %c0_59 = arith.constant 0 : index
    %83 = vector.load %arg4[%c8, %c0_58, %c0_59] : memref<25x128x128xbf16, #tpu.memory_space<vmem>>, vector<1x128x128xbf16>
    %84 = vector.shape_cast %83 : vector<1x128x128xbf16> to vector<128x128xbf16>
    %cst_60 = arith.constant dense<0.000000e+00> : vector<144x128xf32>
    %85 = tpu.matmul %82, %84, %cst_60 {dimension_numbers = #tpu.dot_dimension_numbers<[1], [0], [0], [1], [0, 0, 1, 1], [], []>} : vector<144x128xbf16>, vector<128x128xbf16>, vector<144x128xf32> -> vector<144x128xf32>
    %86 = arith.addf %80, %85 : vector<144x128xf32>
    %87 = vector.extract_strided_slice %31 {offsets = [18, 0], sizes = [144, 128], strides = [1, 1]} : vector<208x128xf32> to vector<144x128xf32>
    %88 = arith.truncf %87 : vector<144x128xf32> to vector<144x128xbf16>
    %c9 = arith.constant 9 : index
    %c0_61 = arith.constant 0 : index
    %c0_62 = arith.constant 0 : index
    %89 = vector.load %arg4[%c9, %c0_61, %c0_62] : memref<25x128x128xbf16, #tpu.memory_space<vmem>>, vector<1x128x128xbf16>
    %90 = vector.shape_cast %89 : vector<1x128x128xbf16> to vector<128x128xbf16>
    %cst_63 = arith.constant dense<0.000000e+00> : vector<144x128xf32>
    %91 = tpu.matmul %88, %90, %cst_63 {dimension_numbers = #tpu.dot_dimension_numbers<[1], [0], [0], [1], [0, 0, 1, 1], [], []>} : vector<144x128xbf16>, vector<128x128xbf16>, vector<144x128xf32> -> vector<144x128xf32>
    %92 = arith.addf %86, %91 : vector<144x128xf32>
    %93 = vector.extract_strided_slice %31 {offsets = [28, 0], sizes = [144, 128], strides = [1, 1]} : vector<208x128xf32> to vector<144x128xf32>
    %94 = arith.truncf %93 : vector<144x128xf32> to vector<144x128xbf16>
    %c10 = arith.constant 10 : index
    %c0_64 = arith.constant 0 : index
    %c0_65 = arith.constant 0 : index
    %95 = vector.load %arg4[%c10, %c0_64, %c0_65] : memref<25x128x128xbf16, #tpu.memory_space<vmem>>, vector<1x128x128xbf16>
    %96 = vector.shape_cast %95 : vector<1x128x128xbf16> to vector<128x128xbf16>
    %cst_66 = arith.constant dense<0.000000e+00> : vector<144x128xf32>
    %97 = tpu.matmul %94, %96, %cst_66 {dimension_numbers = #tpu.dot_dimension_numbers<[1], [0], [0], [1], [0, 0, 1, 1], [], []>} : vector<144x128xbf16>, vector<128x128xbf16>, vector<144x128xf32> -> vector<144x128xf32>
    %98 = arith.addf %92, %97 : vector<144x128xf32>
    %99 = vector.extract_strided_slice %31 {offsets = [29, 0], sizes = [144, 128], strides = [1, 1]} : vector<208x128xf32> to vector<144x128xf32>
    %100 = arith.truncf %99 : vector<144x128xf32> to vector<144x128xbf16>
    %c11 = arith.constant 11 : index
    %c0_67 = arith.constant 0 : index
    %c0_68 = arith.constant 0 : index
    %101 = vector.load %arg4[%c11, %c0_67, %c0_68] : memref<25x128x128xbf16, #tpu.memory_space<vmem>>, vector<1x128x128xbf16>
    %102 = vector.shape_cast %101 : vector<1x128x128xbf16> to vector<128x128xbf16>
    %cst_69 = arith.constant dense<0.000000e+00> : vector<144x128xf32>
    %103 = tpu.matmul %100, %102, %cst_69 {dimension_numbers = #tpu.dot_dimension_numbers<[1], [0], [0], [1], [0, 0, 1, 1], [], []>} : vector<144x128xbf16>, vector<128x128xbf16>, vector<144x128xf32> -> vector<144x128xf32>
    %104 = arith.addf %98, %103 : vector<144x128xf32>
    %105 = vector.extract_strided_slice %31 {offsets = [30, 0], sizes = [144, 128], strides = [1, 1]} : vector<208x128xf32> to vector<144x128xf32>
    %106 = arith.truncf %105 : vector<144x128xf32> to vector<144x128xbf16>
    %c12 = arith.constant 12 : index
    %c0_70 = arith.constant 0 : index
    %c0_71 = arith.constant 0 : index
    %107 = vector.load %arg4[%c12, %c0_70, %c0_71] : memref<25x128x128xbf16, #tpu.memory_space<vmem>>, vector<1x128x128xbf16>
    %108 = vector.shape_cast %107 : vector<1x128x128xbf16> to vector<128x128xbf16>
    %cst_72 = arith.constant dense<0.000000e+00> : vector<144x128xf32>
    %109 = tpu.matmul %106, %108, %cst_72 {dimension_numbers = #tpu.dot_dimension_numbers<[1], [0], [0], [1], [0, 0, 1, 1], [], []>} : vector<144x128xbf16>, vector<128x128xbf16>, vector<144x128xf32> -> vector<144x128xf32>
    %110 = arith.addf %104, %109 : vector<144x128xf32>
    %111 = vector.extract_strided_slice %31 {offsets = [31, 0], sizes = [144, 128], strides = [1, 1]} : vector<208x128xf32> to vector<144x128xf32>
    %112 = arith.truncf %111 : vector<144x128xf32> to vector<144x128xbf16>
    %c13 = arith.constant 13 : index
    %c0_73 = arith.constant 0 : index
    %c0_74 = arith.constant 0 : index
    %113 = vector.load %arg4[%c13, %c0_73, %c0_74] : memref<25x128x128xbf16, #tpu.memory_space<vmem>>, vector<1x128x128xbf16>
    %114 = vector.shape_cast %113 : vector<1x128x128xbf16> to vector<128x128xbf16>
    %cst_75 = arith.constant dense<0.000000e+00> : vector<144x128xf32>
    %115 = tpu.matmul %112, %114, %cst_75 {dimension_numbers = #tpu.dot_dimension_numbers<[1], [0], [0], [1], [0, 0, 1, 1], [], []>} : vector<144x128xbf16>, vector<128x128xbf16>, vector<144x128xf32> -> vector<144x128xf32>
    %116 = arith.addf %110, %115 : vector<144x128xf32>
    %117 = vector.extract_strided_slice %31 {offsets = [32, 0], sizes = [144, 128], strides = [1, 1]} : vector<208x128xf32> to vector<144x128xf32>
    %118 = arith.truncf %117 : vector<144x128xf32> to vector<144x128xbf16>
    %c14 = arith.constant 14 : index
    %c0_76 = arith.constant 0 : index
    %c0_77 = arith.constant 0 : index
    %119 = vector.load %arg4[%c14, %c0_76, %c0_77] : memref<25x128x128xbf16, #tpu.memory_space<vmem>>, vector<1x128x128xbf16>
    %120 = vector.shape_cast %119 : vector<1x128x128xbf16> to vector<128x128xbf16>
    %cst_78 = arith.constant dense<0.000000e+00> : vector<144x128xf32>
    %121 = tpu.matmul %118, %120, %cst_78 {dimension_numbers = #tpu.dot_dimension_numbers<[1], [0], [0], [1], [0, 0, 1, 1], [], []>} : vector<144x128xbf16>, vector<128x128xbf16>, vector<144x128xf32> -> vector<144x128xf32>
    %122 = arith.addf %116, %121 : vector<144x128xf32>
    %123 = vector.extract_strided_slice %31 {offsets = [42, 0], sizes = [144, 128], strides = [1, 1]} : vector<208x128xf32> to vector<144x128xf32>
    %124 = arith.truncf %123 : vector<144x128xf32> to vector<144x128xbf16>
    %c15 = arith.constant 15 : index
    %c0_79 = arith.constant 0 : index
    %c0_80 = arith.constant 0 : index
    %125 = vector.load %arg4[%c15, %c0_79, %c0_80] : memref<25x128x128xbf16, #tpu.memory_space<vmem>>, vector<1x128x128xbf16>
    %126 = vector.shape_cast %125 : vector<1x128x128xbf16> to vector<128x128xbf16>
    %cst_81 = arith.constant dense<0.000000e+00> : vector<144x128xf32>
    %127 = tpu.matmul %124, %126, %cst_81 {dimension_numbers = #tpu.dot_dimension_numbers<[1], [0], [0], [1], [0, 0, 1, 1], [], []>} : vector<144x128xbf16>, vector<128x128xbf16>, vector<144x128xf32> -> vector<144x128xf32>
    %128 = arith.addf %122, %127 : vector<144x128xf32>
    %129 = vector.extract_strided_slice %31 {offsets = [43, 0], sizes = [144, 128], strides = [1, 1]} : vector<208x128xf32> to vector<144x128xf32>
    %130 = arith.truncf %129 : vector<144x128xf32> to vector<144x128xbf16>
    %c16 = arith.constant 16 : index
    %c0_82 = arith.constant 0 : index
    %c0_83 = arith.constant 0 : index
    %131 = vector.load %arg4[%c16, %c0_82, %c0_83] : memref<25x128x128xbf16, #tpu.memory_space<vmem>>, vector<1x128x128xbf16>
    %132 = vector.shape_cast %131 : vector<1x128x128xbf16> to vector<128x128xbf16>
    %cst_84 = arith.constant dense<0.000000e+00> : vector<144x128xf32>
    %133 = tpu.matmul %130, %132, %cst_84 {dimension_numbers = #tpu.dot_dimension_numbers<[1], [0], [0], [1], [0, 0, 1, 1], [], []>} : vector<144x128xbf16>, vector<128x128xbf16>, vector<144x128xf32> -> vector<144x128xf32>
    %134 = arith.addf %128, %133 : vector<144x128xf32>
    %135 = vector.extract_strided_slice %31 {offsets = [44, 0], sizes = [144, 128], strides = [1, 1]} : vector<208x128xf32> to vector<144x128xf32>
    %136 = arith.truncf %135 : vector<144x128xf32> to vector<144x128xbf16>
    %c17 = arith.constant 17 : index
    %c0_85 = arith.constant 0 : index
    %c0_86 = arith.constant 0 : index
    %137 = vector.load %arg4[%c17, %c0_85, %c0_86] : memref<25x128x128xbf16, #tpu.memory_space<vmem>>, vector<1x128x128xbf16>
    %138 = vector.shape_cast %137 : vector<1x128x128xbf16> to vector<128x128xbf16>
    %cst_87 = arith.constant dense<0.000000e+00> : vector<144x128xf32>
    %139 = tpu.matmul %136, %138, %cst_87 {dimension_numbers = #tpu.dot_dimension_numbers<[1], [0], [0], [1], [0, 0, 1, 1], [], []>} : vector<144x128xbf16>, vector<128x128xbf16>, vector<144x128xf32> -> vector<144x128xf32>
    %140 = arith.addf %134, %139 : vector<144x128xf32>
    %141 = vector.extract_strided_slice %31 {offsets = [45, 0], sizes = [144, 128], strides = [1, 1]} : vector<208x128xf32> to vector<144x128xf32>
    %142 = arith.truncf %141 : vector<144x128xf32> to vector<144x128xbf16>
    %c18 = arith.constant 18 : index
    %c0_88 = arith.constant 0 : index
    %c0_89 = arith.constant 0 : index
    %143 = vector.load %arg4[%c18, %c0_88, %c0_89] : memref<25x128x128xbf16, #tpu.memory_space<vmem>>, vector<1x128x128xbf16>
    %144 = vector.shape_cast %143 : vector<1x128x128xbf16> to vector<128x128xbf16>
    %cst_90 = arith.constant dense<0.000000e+00> : vector<144x128xf32>
    %145 = tpu.matmul %142, %144, %cst_90 {dimension_numbers = #tpu.dot_dimension_numbers<[1], [0], [0], [1], [0, 0, 1, 1], [], []>} : vector<144x128xbf16>, vector<128x128xbf16>, vector<144x128xf32> -> vector<144x128xf32>
    %146 = arith.addf %140, %145 : vector<144x128xf32>
    %147 = vector.extract_strided_slice %31 {offsets = [46, 0], sizes = [144, 128], strides = [1, 1]} : vector<208x128xf32> to vector<144x128xf32>
    %148 = arith.truncf %147 : vector<144x128xf32> to vector<144x128xbf16>
    %c19 = arith.constant 19 : index
    %c0_91 = arith.constant 0 : index
    %c0_92 = arith.constant 0 : index
    %149 = vector.load %arg4[%c19, %c0_91, %c0_92] : memref<25x128x128xbf16, #tpu.memory_space<vmem>>, vector<1x128x128xbf16>
    %150 = vector.shape_cast %149 : vector<1x128x128xbf16> to vector<128x128xbf16>
    %cst_93 = arith.constant dense<0.000000e+00> : vector<144x128xf32>
    %151 = tpu.matmul %148, %150, %cst_93 {dimension_numbers = #tpu.dot_dimension_numbers<[1], [0], [0], [1], [0, 0, 1, 1], [], []>} : vector<144x128xbf16>, vector<128x128xbf16>, vector<144x128xf32> -> vector<144x128xf32>
    %152 = arith.addf %146, %151 : vector<144x128xf32>
    %153 = vector.extract_strided_slice %31 {offsets = [56, 0], sizes = [144, 128], strides = [1, 1]} : vector<208x128xf32> to vector<144x128xf32>
    %154 = arith.truncf %153 : vector<144x128xf32> to vector<144x128xbf16>
    %c20 = arith.constant 20 : index
    %c0_94 = arith.constant 0 : index
    %c0_95 = arith.constant 0 : index
    %155 = vector.load %arg4[%c20, %c0_94, %c0_95] : memref<25x128x128xbf16, #tpu.memory_space<vmem>>, vector<1x128x128xbf16>
    %156 = vector.shape_cast %155 : vector<1x128x128xbf16> to vector<128x128xbf16>
    %cst_96 = arith.constant dense<0.000000e+00> : vector<144x128xf32>
    %157 = tpu.matmul %154, %156, %cst_96 {dimension_numbers = #tpu.dot_dimension_numbers<[1], [0], [0], [1], [0, 0, 1, 1], [], []>} : vector<144x128xbf16>, vector<128x128xbf16>, vector<144x128xf32> -> vector<144x128xf32>
    %158 = arith.addf %152, %157 : vector<144x128xf32>
    %159 = vector.extract_strided_slice %31 {offsets = [57, 0], sizes = [144, 128], strides = [1, 1]} : vector<208x128xf32> to vector<144x128xf32>
    %160 = arith.truncf %159 : vector<144x128xf32> to vector<144x128xbf16>
    %c21 = arith.constant 21 : index
    %c0_97 = arith.constant 0 : index
    %c0_98 = arith.constant 0 : index
    %161 = vector.load %arg4[%c21, %c0_97, %c0_98] : memref<25x128x128xbf16, #tpu.memory_space<vmem>>, vector<1x128x128xbf16>
    %162 = vector.shape_cast %161 : vector<1x128x128xbf16> to vector<128x128xbf16>
    %cst_99 = arith.constant dense<0.000000e+00> : vector<144x128xf32>
    %163 = tpu.matmul %160, %162, %cst_99 {dimension_numbers = #tpu.dot_dimension_numbers<[1], [0], [0], [1], [0, 0, 1, 1], [], []>} : vector<144x128xbf16>, vector<128x128xbf16>, vector<144x128xf32> -> vector<144x128xf32>
    %164 = arith.addf %158, %163 : vector<144x128xf32>
    %165 = vector.extract_strided_slice %31 {offsets = [58, 0], sizes = [144, 128], strides = [1, 1]} : vector<208x128xf32> to vector<144x128xf32>
    %166 = arith.truncf %165 : vector<144x128xf32> to vector<144x128xbf16>
    %c22 = arith.constant 22 : index
    %c0_100 = arith.constant 0 : index
    %c0_101 = arith.constant 0 : index
    %167 = vector.load %arg4[%c22, %c0_100, %c0_101] : memref<25x128x128xbf16, #tpu.memory_space<vmem>>, vector<1x128x128xbf16>
    %168 = vector.shape_cast %167 : vector<1x128x128xbf16> to vector<128x128xbf16>
    %cst_102 = arith.constant dense<0.000000e+00> : vector<144x128xf32>
    %169 = tpu.matmul %166, %168, %cst_102 {dimension_numbers = #tpu.dot_dimension_numbers<[1], [0], [0], [1], [0, 0, 1, 1], [], []>} : vector<144x128xbf16>, vector<128x128xbf16>, vector<144x128xf32> -> vector<144x128xf32>
    %170 = arith.addf %164, %169 : vector<144x128xf32>
    %171 = vector.extract_strided_slice %31 {offsets = [59, 0], sizes = [144, 128], strides = [1, 1]} : vector<208x128xf32> to vector<144x128xf32>
    %172 = arith.truncf %171 : vector<144x128xf32> to vector<144x128xbf16>
    %c23 = arith.constant 23 : index
    %c0_103 = arith.constant 0 : index
    %c0_104 = arith.constant 0 : index
    %173 = vector.load %arg4[%c23, %c0_103, %c0_104] : memref<25x128x128xbf16, #tpu.memory_space<vmem>>, vector<1x128x128xbf16>
    %174 = vector.shape_cast %173 : vector<1x128x128xbf16> to vector<128x128xbf16>
    %cst_105 = arith.constant dense<0.000000e+00> : vector<144x128xf32>
    %175 = tpu.matmul %172, %174, %cst_105 {dimension_numbers = #tpu.dot_dimension_numbers<[1], [0], [0], [1], [0, 0, 1, 1], [], []>} : vector<144x128xbf16>, vector<128x128xbf16>, vector<144x128xf32> -> vector<144x128xf32>
    %176 = arith.addf %170, %175 : vector<144x128xf32>
    %177 = vector.extract_strided_slice %31 {offsets = [60, 0], sizes = [144, 128], strides = [1, 1]} : vector<208x128xf32> to vector<144x128xf32>
    %178 = arith.truncf %177 : vector<144x128xf32> to vector<144x128xbf16>
    %c24 = arith.constant 24 : index
    %c0_106 = arith.constant 0 : index
    %c0_107 = arith.constant 0 : index
    %179 = vector.load %arg4[%c24, %c0_106, %c0_107] : memref<25x128x128xbf16, #tpu.memory_space<vmem>>, vector<1x128x128xbf16>
    %180 = vector.shape_cast %179 : vector<1x128x128xbf16> to vector<128x128xbf16>
    %cst_108 = arith.constant dense<0.000000e+00> : vector<144x128xf32>
    %181 = tpu.matmul %178, %180, %cst_108 {dimension_numbers = #tpu.dot_dimension_numbers<[1], [0], [0], [1], [0, 0, 1, 1], [], []>} : vector<144x128xbf16>, vector<128x128xbf16>, vector<144x128xf32> -> vector<144x128xf32>
    %182 = arith.addf %176, %181 : vector<144x128xf32>
    %183 = vector.broadcast %1 : vector<1x128xf32> to vector<144x128xf32>
    %184 = arith.addf %182, %183 : vector<144x128xf32>
    %cst_109 = arith.constant 0.000000e+00 : f32
    %185 = vector.broadcast %cst_109 : f32 to vector<144x128xf32>
    %186 = arith.maximumf %184, %185 : vector<144x128xf32>
    %187 = vector.extract_strided_slice %186 {offsets = [0, 0], sizes = [143, 128], strides = [1, 1]} : vector<144x128xf32> to vector<143x128xf32>
    %188 = vector.extract_strided_slice %186 {offsets = [1, 0], sizes = [143, 128], strides = [1, 1]} : vector<144x128xf32> to vector<143x128xf32>
    %189 = arith.maximumf %187, %188 : vector<143x128xf32>
    %190 = vector.extract_strided_slice %189 {offsets = [0, 0], sizes = [128, 128], strides = [1, 1]} : vector<143x128xf32> to vector<128x128xf32>
    %191 = vector.extract_strided_slice %189 {offsets = [14, 0], sizes = [128, 128], strides = [1, 1]} : vector<143x128xf32> to vector<128x128xf32>
    %192 = arith.maximumf %190, %191 : vector<128x128xf32>
    %cst_110 = arith.constant 0.000000e+00 : f32
    %193 = vector.broadcast %cst_110 : f32 to vector<8x128xf32>
    %194 = vector.extract_strided_slice %192 {offsets = [0, 0], sizes = [8, 128], strides = [1, 1]} : vector<128x128xf32> to vector<8x128xf32>
    %195 = arith.truncf %194 : vector<8x128xf32> to vector<8x128xbf16>
    %c0_111 = arith.constant 0 : index
    %c0_112 = arith.constant 0 : index
    %c0_113 = arith.constant 0 : index
    %196 = vector.load %arg5[%c0_111, %c0_112, %c0_113] : memref<25x128x128xbf16, #tpu.memory_space<vmem>>, vector<1x128x128xbf16>
    %197 = vector.shape_cast %196 : vector<1x128x128xbf16> to vector<128x128xbf16>
    %cst_114 = arith.constant dense<0.000000e+00> : vector<8x128xf32>
    %198 = tpu.matmul %195, %197, %cst_114 {dimension_numbers = #tpu.dot_dimension_numbers<[1], [0], [0], [1], [0, 0, 1, 1], [], []>} : vector<8x128xbf16>, vector<128x128xbf16>, vector<8x128xf32> -> vector<8x128xf32>
    %199 = arith.addf %193, %198 : vector<8x128xf32>
    %200 = vector.extract_strided_slice %192 {offsets = [2, 0], sizes = [8, 128], strides = [1, 1]} : vector<128x128xf32> to vector<8x128xf32>
    %201 = arith.truncf %200 : vector<8x128xf32> to vector<8x128xbf16>
    %c1_115 = arith.constant 1 : index
    %c0_116 = arith.constant 0 : index
    %c0_117 = arith.constant 0 : index
    %202 = vector.load %arg5[%c1_115, %c0_116, %c0_117] : memref<25x128x128xbf16, #tpu.memory_space<vmem>>, vector<1x128x128xbf16>
    %203 = vector.shape_cast %202 : vector<1x128x128xbf16> to vector<128x128xbf16>
    %cst_118 = arith.constant dense<0.000000e+00> : vector<8x128xf32>
    %204 = tpu.matmul %201, %203, %cst_118 {dimension_numbers = #tpu.dot_dimension_numbers<[1], [0], [0], [1], [0, 0, 1, 1], [], []>} : vector<8x128xbf16>, vector<128x128xbf16>, vector<8x128xf32> -> vector<8x128xf32>
    %205 = arith.addf %199, %204 : vector<8x128xf32>
    %206 = vector.extract_strided_slice %192 {offsets = [4, 0], sizes = [8, 128], strides = [1, 1]} : vector<128x128xf32> to vector<8x128xf32>
    %207 = arith.truncf %206 : vector<8x128xf32> to vector<8x128xbf16>
    %c2_119 = arith.constant 2 : index
    %c0_120 = arith.constant 0 : index
    %c0_121 = arith.constant 0 : index
    %208 = vector.load %arg5[%c2_119, %c0_120, %c0_121] : memref<25x128x128xbf16, #tpu.memory_space<vmem>>, vector<1x128x128xbf16>
    %209 = vector.shape_cast %208 : vector<1x128x128xbf16> to vector<128x128xbf16>
    %cst_122 = arith.constant dense<0.000000e+00> : vector<8x128xf32>
    %210 = tpu.matmul %207, %209, %cst_122 {dimension_numbers = #tpu.dot_dimension_numbers<[1], [0], [0], [1], [0, 0, 1, 1], [], []>} : vector<8x128xbf16>, vector<128x128xbf16>, vector<8x128xf32> -> vector<8x128xf32>
    %211 = arith.addf %205, %210 : vector<8x128xf32>
    %212 = vector.extract_strided_slice %192 {offsets = [6, 0], sizes = [8, 128], strides = [1, 1]} : vector<128x128xf32> to vector<8x128xf32>
    %213 = arith.truncf %212 : vector<8x128xf32> to vector<8x128xbf16>
    %c3_123 = arith.constant 3 : index
    %c0_124 = arith.constant 0 : index
    %c0_125 = arith.constant 0 : index
    %214 = vector.load %arg5[%c3_123, %c0_124, %c0_125] : memref<25x128x128xbf16, #tpu.memory_space<vmem>>, vector<1x128x128xbf16>
    %215 = vector.shape_cast %214 : vector<1x128x128xbf16> to vector<128x128xbf16>
    %cst_126 = arith.constant dense<0.000000e+00> : vector<8x128xf32>
    %216 = tpu.matmul %213, %215, %cst_126 {dimension_numbers = #tpu.dot_dimension_numbers<[1], [0], [0], [1], [0, 0, 1, 1], [], []>} : vector<8x128xbf16>, vector<128x128xbf16>, vector<8x128xf32> -> vector<8x128xf32>
    %217 = arith.addf %211, %216 : vector<8x128xf32>
    %218 = vector.extract_strided_slice %192 {offsets = [8, 0], sizes = [8, 128], strides = [1, 1]} : vector<128x128xf32> to vector<8x128xf32>
    %219 = arith.truncf %218 : vector<8x128xf32> to vector<8x128xbf16>
    %c4_127 = arith.constant 4 : index
    %c0_128 = arith.constant 0 : index
    %c0_129 = arith.constant 0 : index
    %220 = vector.load %arg5[%c4_127, %c0_128, %c0_129] : memref<25x128x128xbf16, #tpu.memory_space<vmem>>, vector<1x128x128xbf16>
    %221 = vector.shape_cast %220 : vector<1x128x128xbf16> to vector<128x128xbf16>
    %cst_130 = arith.constant dense<0.000000e+00> : vector<8x128xf32>
    %222 = tpu.matmul %219, %221, %cst_130 {dimension_numbers = #tpu.dot_dimension_numbers<[1], [0], [0], [1], [0, 0, 1, 1], [], []>} : vector<8x128xbf16>, vector<128x128xbf16>, vector<8x128xf32> -> vector<8x128xf32>
    %223 = arith.addf %217, %222 : vector<8x128xf32>
    %224 = vector.extract_strided_slice %192 {offsets = [28, 0], sizes = [8, 128], strides = [1, 1]} : vector<128x128xf32> to vector<8x128xf32>
    %225 = arith.truncf %224 : vector<8x128xf32> to vector<8x128xbf16>
    %c5_131 = arith.constant 5 : index
    %c0_132 = arith.constant 0 : index
    %c0_133 = arith.constant 0 : index
    %226 = vector.load %arg5[%c5_131, %c0_132, %c0_133] : memref<25x128x128xbf16, #tpu.memory_space<vmem>>, vector<1x128x128xbf16>
    %227 = vector.shape_cast %226 : vector<1x128x128xbf16> to vector<128x128xbf16>
    %cst_134 = arith.constant dense<0.000000e+00> : vector<8x128xf32>
    %228 = tpu.matmul %225, %227, %cst_134 {dimension_numbers = #tpu.dot_dimension_numbers<[1], [0], [0], [1], [0, 0, 1, 1], [], []>} : vector<8x128xbf16>, vector<128x128xbf16>, vector<8x128xf32> -> vector<8x128xf32>
    %229 = arith.addf %223, %228 : vector<8x128xf32>
    %230 = vector.extract_strided_slice %192 {offsets = [30, 0], sizes = [8, 128], strides = [1, 1]} : vector<128x128xf32> to vector<8x128xf32>
    %231 = arith.truncf %230 : vector<8x128xf32> to vector<8x128xbf16>
    %c6_135 = arith.constant 6 : index
    %c0_136 = arith.constant 0 : index
    %c0_137 = arith.constant 0 : index
    %232 = vector.load %arg5[%c6_135, %c0_136, %c0_137] : memref<25x128x128xbf16, #tpu.memory_space<vmem>>, vector<1x128x128xbf16>
    %233 = vector.shape_cast %232 : vector<1x128x128xbf16> to vector<128x128xbf16>
    %cst_138 = arith.constant dense<0.000000e+00> : vector<8x128xf32>
    %234 = tpu.matmul %231, %233, %cst_138 {dimension_numbers = #tpu.dot_dimension_numbers<[1], [0], [0], [1], [0, 0, 1, 1], [], []>} : vector<8x128xbf16>, vector<128x128xbf16>, vector<8x128xf32> -> vector<8x128xf32>
    %235 = arith.addf %229, %234 : vector<8x128xf32>
    %236 = vector.extract_strided_slice %192 {offsets = [32, 0], sizes = [8, 128], strides = [1, 1]} : vector<128x128xf32> to vector<8x128xf32>
    %237 = arith.truncf %236 : vector<8x128xf32> to vector<8x128xbf16>
    %c7_139 = arith.constant 7 : index
    %c0_140 = arith.constant 0 : index
    %c0_141 = arith.constant 0 : index
    %238 = vector.load %arg5[%c7_139, %c0_140, %c0_141] : memref<25x128x128xbf16, #tpu.memory_space<vmem>>, vector<1x128x128xbf16>
    %239 = vector.shape_cast %238 : vector<1x128x128xbf16> to vector<128x128xbf16>
    %cst_142 = arith.constant dense<0.000000e+00> : vector<8x128xf32>
    %240 = tpu.matmul %237, %239, %cst_142 {dimension_numbers = #tpu.dot_dimension_numbers<[1], [0], [0], [1], [0, 0, 1, 1], [], []>} : vector<8x128xbf16>, vector<128x128xbf16>, vector<8x128xf32> -> vector<8x128xf32>
    %241 = arith.addf %235, %240 : vector<8x128xf32>
    %242 = vector.extract_strided_slice %192 {offsets = [34, 0], sizes = [8, 128], strides = [1, 1]} : vector<128x128xf32> to vector<8x128xf32>
    %243 = arith.truncf %242 : vector<8x128xf32> to vector<8x128xbf16>
    %c8_143 = arith.constant 8 : index
    %c0_144 = arith.constant 0 : index
    %c0_145 = arith.constant 0 : index
    %244 = vector.load %arg5[%c8_143, %c0_144, %c0_145] : memref<25x128x128xbf16, #tpu.memory_space<vmem>>, vector<1x128x128xbf16>
    %245 = vector.shape_cast %244 : vector<1x128x128xbf16> to vector<128x128xbf16>
    %cst_146 = arith.constant dense<0.000000e+00> : vector<8x128xf32>
    %246 = tpu.matmul %243, %245, %cst_146 {dimension_numbers = #tpu.dot_dimension_numbers<[1], [0], [0], [1], [0, 0, 1, 1], [], []>} : vector<8x128xbf16>, vector<128x128xbf16>, vector<8x128xf32> -> vector<8x128xf32>
    %247 = arith.addf %241, %246 : vector<8x128xf32>
    %248 = vector.extract_strided_slice %192 {offsets = [36, 0], sizes = [8, 128], strides = [1, 1]} : vector<128x128xf32> to vector<8x128xf32>
    %249 = arith.truncf %248 : vector<8x128xf32> to vector<8x128xbf16>
    %c9_147 = arith.constant 9 : index
    %c0_148 = arith.constant 0 : index
    %c0_149 = arith.constant 0 : index
    %250 = vector.load %arg5[%c9_147, %c0_148, %c0_149] : memref<25x128x128xbf16, #tpu.memory_space<vmem>>, vector<1x128x128xbf16>
    %251 = vector.shape_cast %250 : vector<1x128x128xbf16> to vector<128x128xbf16>
    %cst_150 = arith.constant dense<0.000000e+00> : vector<8x128xf32>
    %252 = tpu.matmul %249, %251, %cst_150 {dimension_numbers = #tpu.dot_dimension_numbers<[1], [0], [0], [1], [0, 0, 1, 1], [], []>} : vector<8x128xbf16>, vector<128x128xbf16>, vector<8x128xf32> -> vector<8x128xf32>
    %253 = arith.addf %247, %252 : vector<8x128xf32>
    %254 = vector.extract_strided_slice %192 {offsets = [56, 0], sizes = [8, 128], strides = [1, 1]} : vector<128x128xf32> to vector<8x128xf32>
    %255 = arith.truncf %254 : vector<8x128xf32> to vector<8x128xbf16>
    %c10_151 = arith.constant 10 : index
    %c0_152 = arith.constant 0 : index
    %c0_153 = arith.constant 0 : index
    %256 = vector.load %arg5[%c10_151, %c0_152, %c0_153] : memref<25x128x128xbf16, #tpu.memory_space<vmem>>, vector<1x128x128xbf16>
    %257 = vector.shape_cast %256 : vector<1x128x128xbf16> to vector<128x128xbf16>
    %cst_154 = arith.constant dense<0.000000e+00> : vector<8x128xf32>
    %258 = tpu.matmul %255, %257, %cst_154 {dimension_numbers = #tpu.dot_dimension_numbers<[1], [0], [0], [1], [0, 0, 1, 1], [], []>} : vector<8x128xbf16>, vector<128x128xbf16>, vector<8x128xf32> -> vector<8x128xf32>
    %259 = arith.addf %253, %258 : vector<8x128xf32>
    %260 = vector.extract_strided_slice %192 {offsets = [58, 0], sizes = [8, 128], strides = [1, 1]} : vector<128x128xf32> to vector<8x128xf32>
    %261 = arith.truncf %260 : vector<8x128xf32> to vector<8x128xbf16>
    %c11_155 = arith.constant 11 : index
    %c0_156 = arith.constant 0 : index
    %c0_157 = arith.constant 0 : index
    %262 = vector.load %arg5[%c11_155, %c0_156, %c0_157] : memref<25x128x128xbf16, #tpu.memory_space<vmem>>, vector<1x128x128xbf16>
    %263 = vector.shape_cast %262 : vector<1x128x128xbf16> to vector<128x128xbf16>
    %cst_158 = arith.constant dense<0.000000e+00> : vector<8x128xf32>
    %264 = tpu.matmul %261, %263, %cst_158 {dimension_numbers = #tpu.dot_dimension_numbers<[1], [0], [0], [1], [0, 0, 1, 1], [], []>} : vector<8x128xbf16>, vector<128x128xbf16>, vector<8x128xf32> -> vector<8x128xf32>
    %265 = arith.addf %259, %264 : vector<8x128xf32>
    %266 = vector.extract_strided_slice %192 {offsets = [60, 0], sizes = [8, 128], strides = [1, 1]} : vector<128x128xf32> to vector<8x128xf32>
    %267 = arith.truncf %266 : vector<8x128xf32> to vector<8x128xbf16>
    %c12_159 = arith.constant 12 : index
    %c0_160 = arith.constant 0 : index
    %c0_161 = arith.constant 0 : index
    %268 = vector.load %arg5[%c12_159, %c0_160, %c0_161] : memref<25x128x128xbf16, #tpu.memory_space<vmem>>, vector<1x128x128xbf16>
    %269 = vector.shape_cast %268 : vector<1x128x128xbf16> to vector<128x128xbf16>
    %cst_162 = arith.constant dense<0.000000e+00> : vector<8x128xf32>
    %270 = tpu.matmul %267, %269, %cst_162 {dimension_numbers = #tpu.dot_dimension_numbers<[1], [0], [0], [1], [0, 0, 1, 1], [], []>} : vector<8x128xbf16>, vector<128x128xbf16>, vector<8x128xf32> -> vector<8x128xf32>
    %271 = arith.addf %265, %270 : vector<8x128xf32>
    %272 = vector.extract_strided_slice %192 {offsets = [62, 0], sizes = [8, 128], strides = [1, 1]} : vector<128x128xf32> to vector<8x128xf32>
    %273 = arith.truncf %272 : vector<8x128xf32> to vector<8x128xbf16>
    %c13_163 = arith.constant 13 : index
    %c0_164 = arith.constant 0 : index
    %c0_165 = arith.constant 0 : index
    %274 = vector.load %arg5[%c13_163, %c0_164, %c0_165] : memref<25x128x128xbf16, #tpu.memory_space<vmem>>, vector<1x128x128xbf16>
    %275 = vector.shape_cast %274 : vector<1x128x128xbf16> to vector<128x128xbf16>
    %cst_166 = arith.constant dense<0.000000e+00> : vector<8x128xf32>
    %276 = tpu.matmul %273, %275, %cst_166 {dimension_numbers = #tpu.dot_dimension_numbers<[1], [0], [0], [1], [0, 0, 1, 1], [], []>} : vector<8x128xbf16>, vector<128x128xbf16>, vector<8x128xf32> -> vector<8x128xf32>
    %277 = arith.addf %271, %276 : vector<8x128xf32>
    %278 = vector.extract_strided_slice %192 {offsets = [64, 0], sizes = [8, 128], strides = [1, 1]} : vector<128x128xf32> to vector<8x128xf32>
    %279 = arith.truncf %278 : vector<8x128xf32> to vector<8x128xbf16>
    %c14_167 = arith.constant 14 : index
    %c0_168 = arith.constant 0 : index
    %c0_169 = arith.constant 0 : index
    %280 = vector.load %arg5[%c14_167, %c0_168, %c0_169] : memref<25x128x128xbf16, #tpu.memory_space<vmem>>, vector<1x128x128xbf16>
    %281 = vector.shape_cast %280 : vector<1x128x128xbf16> to vector<128x128xbf16>
    %cst_170 = arith.constant dense<0.000000e+00> : vector<8x128xf32>
    %282 = tpu.matmul %279, %281, %cst_170 {dimension_numbers = #tpu.dot_dimension_numbers<[1], [0], [0], [1], [0, 0, 1, 1], [], []>} : vector<8x128xbf16>, vector<128x128xbf16>, vector<8x128xf32> -> vector<8x128xf32>
    %283 = arith.addf %277, %282 : vector<8x128xf32>
    %284 = vector.extract_strided_slice %192 {offsets = [84, 0], sizes = [8, 128], strides = [1, 1]} : vector<128x128xf32> to vector<8x128xf32>
    %285 = arith.truncf %284 : vector<8x128xf32> to vector<8x128xbf16>
    %c15_171 = arith.constant 15 : index
    %c0_172 = arith.constant 0 : index
    %c0_173 = arith.constant 0 : index
    %286 = vector.load %arg5[%c15_171, %c0_172, %c0_173] : memref<25x128x128xbf16, #tpu.memory_space<vmem>>, vector<1x128x128xbf16>
    %287 = vector.shape_cast %286 : vector<1x128x128xbf16> to vector<128x128xbf16>
    %cst_174 = arith.constant dense<0.000000e+00> : vector<8x128xf32>
    %288 = tpu.matmul %285, %287, %cst_174 {dimension_numbers = #tpu.dot_dimension_numbers<[1], [0], [0], [1], [0, 0, 1, 1], [], []>} : vector<8x128xbf16>, vector<128x128xbf16>, vector<8x128xf32> -> vector<8x128xf32>
    %289 = arith.addf %283, %288 : vector<8x128xf32>
    %290 = vector.extract_strided_slice %192 {offsets = [86, 0], sizes = [8, 128], strides = [1, 1]} : vector<128x128xf32> to vector<8x128xf32>
    %291 = arith.truncf %290 : vector<8x128xf32> to vector<8x128xbf16>
    %c16_175 = arith.constant 16 : index
    %c0_176 = arith.constant 0 : index
    %c0_177 = arith.constant 0 : index
    %292 = vector.load %arg5[%c16_175, %c0_176, %c0_177] : memref<25x128x128xbf16, #tpu.memory_space<vmem>>, vector<1x128x128xbf16>
    %293 = vector.shape_cast %292 : vector<1x128x128xbf16> to vector<128x128xbf16>
    %cst_178 = arith.constant dense<0.000000e+00> : vector<8x128xf32>
    %294 = tpu.matmul %291, %293, %cst_178 {dimension_numbers = #tpu.dot_dimension_numbers<[1], [0], [0], [1], [0, 0, 1, 1], [], []>} : vector<8x128xbf16>, vector<128x128xbf16>, vector<8x128xf32> -> vector<8x128xf32>
    %295 = arith.addf %289, %294 : vector<8x128xf32>
    %296 = vector.extract_strided_slice %192 {offsets = [88, 0], sizes = [8, 128], strides = [1, 1]} : vector<128x128xf32> to vector<8x128xf32>
    %297 = arith.truncf %296 : vector<8x128xf32> to vector<8x128xbf16>
    %c17_179 = arith.constant 17 : index
    %c0_180 = arith.constant 0 : index
    %c0_181 = arith.constant 0 : index
    %298 = vector.load %arg5[%c17_179, %c0_180, %c0_181] : memref<25x128x128xbf16, #tpu.memory_space<vmem>>, vector<1x128x128xbf16>
    %299 = vector.shape_cast %298 : vector<1x128x128xbf16> to vector<128x128xbf16>
    %cst_182 = arith.constant dense<0.000000e+00> : vector<8x128xf32>
    %300 = tpu.matmul %297, %299, %cst_182 {dimension_numbers = #tpu.dot_dimension_numbers<[1], [0], [0], [1], [0, 0, 1, 1], [], []>} : vector<8x128xbf16>, vector<128x128xbf16>, vector<8x128xf32> -> vector<8x128xf32>
    %301 = arith.addf %295, %300 : vector<8x128xf32>
    %302 = vector.extract_strided_slice %192 {offsets = [90, 0], sizes = [8, 128], strides = [1, 1]} : vector<128x128xf32> to vector<8x128xf32>
    %303 = arith.truncf %302 : vector<8x128xf32> to vector<8x128xbf16>
    %c18_183 = arith.constant 18 : index
    %c0_184 = arith.constant 0 : index
    %c0_185 = arith.constant 0 : index
    %304 = vector.load %arg5[%c18_183, %c0_184, %c0_185] : memref<25x128x128xbf16, #tpu.memory_space<vmem>>, vector<1x128x128xbf16>
    %305 = vector.shape_cast %304 : vector<1x128x128xbf16> to vector<128x128xbf16>
    %cst_186 = arith.constant dense<0.000000e+00> : vector<8x128xf32>
    %306 = tpu.matmul %303, %305, %cst_186 {dimension_numbers = #tpu.dot_dimension_numbers<[1], [0], [0], [1], [0, 0, 1, 1], [], []>} : vector<8x128xbf16>, vector<128x128xbf16>, vector<8x128xf32> -> vector<8x128xf32>
    %307 = arith.addf %301, %306 : vector<8x128xf32>
    %308 = vector.extract_strided_slice %192 {offsets = [92, 0], sizes = [8, 128], strides = [1, 1]} : vector<128x128xf32> to vector<8x128xf32>
    %309 = arith.truncf %308 : vector<8x128xf32> to vector<8x128xbf16>
    %c19_187 = arith.constant 19 : index
    %c0_188 = arith.constant 0 : index
    %c0_189 = arith.constant 0 : index
    %310 = vector.load %arg5[%c19_187, %c0_188, %c0_189] : memref<25x128x128xbf16, #tpu.memory_space<vmem>>, vector<1x128x128xbf16>
    %311 = vector.shape_cast %310 : vector<1x128x128xbf16> to vector<128x128xbf16>
    %cst_190 = arith.constant dense<0.000000e+00> : vector<8x128xf32>
    %312 = tpu.matmul %309, %311, %cst_190 {dimension_numbers = #tpu.dot_dimension_numbers<[1], [0], [0], [1], [0, 0, 1, 1], [], []>} : vector<8x128xbf16>, vector<128x128xbf16>, vector<8x128xf32> -> vector<8x128xf32>
    %313 = arith.addf %307, %312 : vector<8x128xf32>
    %314 = vector.extract_strided_slice %192 {offsets = [112, 0], sizes = [8, 128], strides = [1, 1]} : vector<128x128xf32> to vector<8x128xf32>
    %315 = arith.truncf %314 : vector<8x128xf32> to vector<8x128xbf16>
    %c20_191 = arith.constant 20 : index
    %c0_192 = arith.constant 0 : index
    %c0_193 = arith.constant 0 : index
    %316 = vector.load %arg5[%c20_191, %c0_192, %c0_193] : memref<25x128x128xbf16, #tpu.memory_space<vmem>>, vector<1x128x128xbf16>
    %317 = vector.shape_cast %316 : vector<1x128x128xbf16> to vector<128x128xbf16>
    %cst_194 = arith.constant dense<0.000000e+00> : vector<8x128xf32>
    %318 = tpu.matmul %315, %317, %cst_194 {dimension_numbers = #tpu.dot_dimension_numbers<[1], [0], [0], [1], [0, 0, 1, 1], [], []>} : vector<8x128xbf16>, vector<128x128xbf16>, vector<8x128xf32> -> vector<8x128xf32>
    %319 = arith.addf %313, %318 : vector<8x128xf32>
    %320 = vector.extract_strided_slice %192 {offsets = [114, 0], sizes = [8, 128], strides = [1, 1]} : vector<128x128xf32> to vector<8x128xf32>
    %321 = arith.truncf %320 : vector<8x128xf32> to vector<8x128xbf16>
    %c21_195 = arith.constant 21 : index
    %c0_196 = arith.constant 0 : index
    %c0_197 = arith.constant 0 : index
    %322 = vector.load %arg5[%c21_195, %c0_196, %c0_197] : memref<25x128x128xbf16, #tpu.memory_space<vmem>>, vector<1x128x128xbf16>
    %323 = vector.shape_cast %322 : vector<1x128x128xbf16> to vector<128x128xbf16>
    %cst_198 = arith.constant dense<0.000000e+00> : vector<8x128xf32>
    %324 = tpu.matmul %321, %323, %cst_198 {dimension_numbers = #tpu.dot_dimension_numbers<[1], [0], [0], [1], [0, 0, 1, 1], [], []>} : vector<8x128xbf16>, vector<128x128xbf16>, vector<8x128xf32> -> vector<8x128xf32>
    %325 = arith.addf %319, %324 : vector<8x128xf32>
    %326 = vector.extract_strided_slice %192 {offsets = [116, 0], sizes = [8, 128], strides = [1, 1]} : vector<128x128xf32> to vector<8x128xf32>
    %327 = arith.truncf %326 : vector<8x128xf32> to vector<8x128xbf16>
    %c22_199 = arith.constant 22 : index
    %c0_200 = arith.constant 0 : index
    %c0_201 = arith.constant 0 : index
    %328 = vector.load %arg5[%c22_199, %c0_200, %c0_201] : memref<25x128x128xbf16, #tpu.memory_space<vmem>>, vector<1x128x128xbf16>
    %329 = vector.shape_cast %328 : vector<1x128x128xbf16> to vector<128x128xbf16>
    %cst_202 = arith.constant dense<0.000000e+00> : vector<8x128xf32>
    %330 = tpu.matmul %327, %329, %cst_202 {dimension_numbers = #tpu.dot_dimension_numbers<[1], [0], [0], [1], [0, 0, 1, 1], [], []>} : vector<8x128xbf16>, vector<128x128xbf16>, vector<8x128xf32> -> vector<8x128xf32>
    %331 = arith.addf %325, %330 : vector<8x128xf32>
    %332 = vector.extract_strided_slice %192 {offsets = [118, 0], sizes = [8, 128], strides = [1, 1]} : vector<128x128xf32> to vector<8x128xf32>
    %333 = arith.truncf %332 : vector<8x128xf32> to vector<8x128xbf16>
    %c23_203 = arith.constant 23 : index
    %c0_204 = arith.constant 0 : index
    %c0_205 = arith.constant 0 : index
    %334 = vector.load %arg5[%c23_203, %c0_204, %c0_205] : memref<25x128x128xbf16, #tpu.memory_space<vmem>>, vector<1x128x128xbf16>
    %335 = vector.shape_cast %334 : vector<1x128x128xbf16> to vector<128x128xbf16>
    %cst_206 = arith.constant dense<0.000000e+00> : vector<8x128xf32>
    %336 = tpu.matmul %333, %335, %cst_206 {dimension_numbers = #tpu.dot_dimension_numbers<[1], [0], [0], [1], [0, 0, 1, 1], [], []>} : vector<8x128xbf16>, vector<128x128xbf16>, vector<8x128xf32> -> vector<8x128xf32>
    %337 = arith.addf %331, %336 : vector<8x128xf32>
    %338 = vector.extract_strided_slice %192 {offsets = [120, 0], sizes = [8, 128], strides = [1, 1]} : vector<128x128xf32> to vector<8x128xf32>
    %339 = arith.truncf %338 : vector<8x128xf32> to vector<8x128xbf16>
    %c24_207 = arith.constant 24 : index
    %c0_208 = arith.constant 0 : index
    %c0_209 = arith.constant 0 : index
    %340 = vector.load %arg5[%c24_207, %c0_208, %c0_209] : memref<25x128x128xbf16, #tpu.memory_space<vmem>>, vector<1x128x128xbf16>
    %341 = vector.shape_cast %340 : vector<1x128x128xbf16> to vector<128x128xbf16>
    %cst_210 = arith.constant dense<0.000000e+00> : vector<8x128xf32>
    %342 = tpu.matmul %339, %341, %cst_210 {dimension_numbers = #tpu.dot_dimension_numbers<[1], [0], [0], [1], [0, 0, 1, 1], [], []>} : vector<8x128xbf16>, vector<128x128xbf16>, vector<8x128xf32> -> vector<8x128xf32>
    %343 = arith.addf %337, %342 : vector<8x128xf32>
    %344 = vector.broadcast %2 : vector<1x128xf32> to vector<8x128xf32>
    %345 = arith.addf %343, %344 : vector<8x128xf32>
    %cst_211 = arith.constant 0.000000e+00 : f32
    %346 = vector.broadcast %cst_211 : f32 to vector<8x128xf32>
    %347 = arith.maximumf %345, %346 : vector<8x128xf32>
    %348 = arith.truncf %347 : vector<8x128xf32> to vector<8x128xbf16>
    %c0_212 = arith.constant 0 : index
    %c0_213 = arith.constant 0 : index
    %349 = vector.load %arg6[%c0_212, %c0_213] : memref<128x128xbf16, #tpu.memory_space<vmem>>, vector<128x128xbf16>
    %cst_214 = arith.constant dense<0.000000e+00> : vector<8x128xf32>
    %350 = tpu.matmul %348, %349, %cst_214 {dimension_numbers = #tpu.dot_dimension_numbers<[1], [0], [0], [1], [0, 0, 1, 1], [], []>} : vector<8x128xbf16>, vector<128x128xbf16>, vector<8x128xf32> -> vector<8x128xf32>
    %351 = vector.broadcast %3 : vector<1x128xf32> to vector<8x128xf32>
    %352 = arith.addf %350, %351 : vector<8x128xf32>
    %cst_215 = arith.constant 0.000000e+00 : f32
    %353 = vector.broadcast %cst_215 : f32 to vector<8x128xf32>
    %354 = arith.maximumf %352, %353 : vector<8x128xf32>
    %355 = arith.truncf %354 : vector<8x128xf32> to vector<8x128xbf16>
    %c0_216 = arith.constant 0 : index
    %c0_217 = arith.constant 0 : index
    %356 = vector.load %arg7[%c0_216, %c0_217] : memref<128x128xbf16, #tpu.memory_space<vmem>>, vector<128x128xbf16>
    %cst_218 = arith.constant dense<0.000000e+00> : vector<8x128xf32>
    %357 = tpu.matmul %355, %356, %cst_218 {dimension_numbers = #tpu.dot_dimension_numbers<[1], [0], [0], [1], [0, 0, 1, 1], [], []>} : vector<8x128xbf16>, vector<128x128xbf16>, vector<8x128xf32> -> vector<8x128xf32>
    %358 = vector.broadcast %4 : vector<1x128xf32> to vector<8x128xf32>
    %359 = arith.addf %357, %358 : vector<8x128xf32>
    %360 = tpu.iota {dimensions = array<i32: 1>} : vector<8x128xi32>
    %c10_i32 = arith.constant 10 : i32
    %361 = vector.broadcast %c10_i32 : i32 to vector<8x128xi32>
    %362 = arith.cmpi slt, %360, %361 : vector<8x128xi32>
    %cst_219 = arith.constant -1.000000e+30 : f32
    %363 = vector.broadcast %cst_219 : f32 to vector<8x128xf32>
    %364 = arith.select %362, %359, %363 : vector<8x128xi1>, vector<8x128xf32>
    %cst_220 = arith.constant dense<0xFF800000> : vector<8xf32>
    %365 = vector.multi_reduction <maximumf>, %364, %cst_220 [1] : vector<8x128xf32> to vector<8xf32>
    %366 = vector.shape_cast %365 : vector<8xf32> to vector<8x1xf32>
    %367 = vector.broadcast %366 : vector<8x1xf32> to vector<8x128xf32>
    %368 = arith.subf %364, %367 : vector<8x128xf32>
    %369 = math.exp %368 : vector<8x128xf32>
    %cst_221 = arith.constant dense<0.000000e+00> : vector<8xf32>
    %370 = vector.multi_reduction <add>, %369, %cst_221 [1] : vector<8x128xf32> to vector<8xf32>
    %371 = vector.shape_cast %370 : vector<8xf32> to vector<8x1xf32>
    %372 = math.log %371 : vector<8x1xf32>
    %373 = arith.addf %366, %372 : vector<8x1xf32>
    %374 = vector.broadcast %373 : vector<8x1xf32> to vector<8x128xf32>
    %375 = arith.subf %364, %374 : vector<8x128xf32>
    %c0_222 = arith.constant 0 : index
    %c0_223 = arith.constant 0 : index
    %c0_224 = arith.constant 0 : index
    %376 = vector.load %arg9[%c0_222, %c0_223, %c0_224] : memref<1x8x128xf32, #tpu.memory_space<vmem>>, vector<1x8x128xf32>
    %377 = vector.shape_cast %376 : vector<1x8x128xf32> to vector<8x128xf32>
    %378 = vector.shape_cast %375 : vector<8x128xf32> to vector<1x8x128xf32>
    tpu.vector_store %arg9[%c0_222, %c0_223, %c0_224], %378 {strides = array<i32>} : memref<1x8x128xf32, #tpu.memory_space<vmem>>, vector<1x8x128xf32>,
    return
  }
  func.func @transform_0(%arg0: i32) -> (i32, i32, i32) {
    %c0_i32 = arith.constant 0 : i32
    %c0_i32_0 = arith.constant 0 : i32
    %c0_i32_1 = arith.constant 0 : i32
    return %arg0, %c0_i32, %c0_i32_0 : i32, i32, i32
  }
  func.func @transform_1(%arg0: i32) -> (i32, i32) {
    %c0_i32 = arith.constant 0 : i32
    %c0_i32_0 = arith.constant 0 : i32
    %c0_i32_1 = arith.constant 0 : i32
    return %c0_i32, %c0_i32_0 : i32, i32
  }
  func.func @transform_2(%arg0: i32) -> (i32, i32) {
    %c0_i32 = arith.constant 0 : i32
    %c0_i32_0 = arith.constant 0 : i32
    %c0_i32_1 = arith.constant 0 : i32
    return %c0_i32, %c0_i32_0 : i32, i32
  }
  func.func @transform_3(%arg0: i32) -> (i32, i32, i32) {
    %c0_i32 = arith.constant 0 : i32
    %c0_i32_0 = arith.constant 0 : i32
    %c0_i32_1 = arith.constant 0 : i32
    %c0_i32_2 = arith.constant 0 : i32
    return %c0_i32, %c0_i32_0, %c0_i32_1 : i32, i32, i32
  }
  func.func @transform_4(%arg0: i32) -> (i32, i32, i32) {
    %c0_i32 = arith.constant 0 : i32
    %c0_i32_0 = arith.constant 0 : i32
    %c0_i32_1 = arith.constant 0 : i32
    %c0_i32_2 = arith.constant 0 : i32
    return %c0_i32, %c0_i32_0, %c0_i32_1 : i32, i32, i32
  }
  func.func @transform_5(%arg0: i32) -> (i32, i32) {
    %c0_i32 = arith.constant 0 : i32
    %c0_i32_0 = arith.constant 0 : i32
    %c0_i32_1 = arith.constant 0 : i32
    return %c0_i32, %c0_i32_0 : i32, i32
  }
  func.func @transform_6(%arg0: i32) -> (i32, i32) {
    %c0_i32 = arith.constant 0 : i32
    %c0_i32_0 = arith.constant 0 : i32
    %c0_i32_1 = arith.constant 0 : i32
    return %c0_i32, %c0_i32_0 : i32, i32
  }
  func.func @transform_7(%arg0: i32) -> (i32, i32) {
    %c0_i32 = arith.constant 0 : i32
    %c0_i32_0 = arith.constant 0 : i32
    %c0_i32_1 = arith.constant 0 : i32
    return %c0_i32, %c0_i32_0 : i32, i32
  }
  func.func @transform_8(%arg0: i32) -> (i32, i32, i32) {
    %c0_i32 = arith.constant 0 : i32
    %c0_i32_0 = arith.constant 0 : i32
    %c0_i32_1 = arith.constant 0 : i32
    return %arg0, %c0_i32, %c0_i32_0 : i32, i32, i32
  }
}

</mosaic_0001>

<bundles_post_ra>
// kernel: cifarnet_forward.1
= control target key start
LH: loop header
LB: loop body
LE: loop exit
PB: predicated region body
PF: predicated region fallthrough
CT: control target
= control target key end

     0   :  { %s16861_s27 = smov 0   ;;  %s23170_s0 = inlined_call_operand.vmem [shape: bf16[2,800,128], index: 0, kind: input, shape index: {}]   ;;  %s23171_s1 = inlined_call_operand.vmem [shape: bf16[128,128], index: 1, kind: input, shape index: {}]   ;;  %s23172_s2 = inlined_call_operand.vmem [shape: bf16[208,768], index: 2, kind: input, shape index: {}]   ;;  %s23173_s3 = inlined_call_operand.vmem [shape: bf16[25,128,128], index: 3, kind: input, shape index: {}]   ;;  %s23174_s4 = inlined_call_operand.vmem [shape: bf16[25,128,128], index: 4, kind: input, shape index: {}]   ;;  %s23175_s5 = inlined_call_operand.vmem [shape: bf16[128,128], index: 5, kind: input, shape index: {}]   ;;  %s23176_s6 = inlined_call_operand.vmem [shape: bf16[128,128], index: 6, kind: input, shape index: {}]   ;;  %s23177_s7 = inlined_call_operand.vmem [shape: f32[8,128], index: 7, kind: input, shape index: {}]   ;;  %s23178_s8 = inlined_call_operand.vmem [shape: f32[2,8,128], index: 8, kind: output, shape index: {}]  }
   0x1 LB: > { %s11760_s28 = sadd.s32 4294967295, %s16812_s27   ;;  %p11764_p0 = scmp.ge.s32.totalorder %s16812_s27, 1  ;;  %s16812_s27 = sphi %s16861_s27, %s18_s27  }
   0x2   : > { %p262_p1 = scmp.lt.s32.totalorder %s16812_s27, 3 }
   0x4   : > { %p263_p2 = pnand %p11764_p0, %p262_p1 }
   0x6   : > { %266 = sbr.rel (%p263_p2) target bundleno = 3154 (0xc52), region = 52 }
   0xb   : > { %v16201_v0 = vld [vmem:[%s23171_s1 + $0x38] sm:$0xff]   ;;  %v23179_v1 = vmov 0.0   ;;  %v16203_v3 = vld [vmem:[%s23171_s1 + $0x30] sm:$0xff]   ;;  %vm16815_vm0 = vmmov 0   ;;  %p295_p3 = scmp.lt.s32.totalorder %s11760_s28, 1  ;;  %v16205_v5 = vld [vmem:[%s23171_s1 + $0x28] sm:$0xff]  }
   0xc   : > { %14118 = vmatprep.subr.bf16.mxu0 %v23179_v1  ;;  %14234 = vmatprep.subr.bf16.mxu1 %v23179_v1  ;;  %v16202_v2 = vld [vmem:[%s23171_s1 + $0x38] sm:$0xff]   ;;  %v16204_v4 = vld [vmem:[%s23171_s1 + $0x30] sm:$0xff]   ;;  %v16206_v6 = vld [vmem:[%s23171_s1 + $0x28] sm:$0xff]   ;;  %vm1905_vm1 = vcmask 1043456   ;;  %vm3680_vm2 = vcmask 1046528   ;;  %vm4373_vm4 = vcmask 1044480  }
   0xd   : > { %14119 = vmatpush3.bf16.msra.mxu0 %v16201_v0  ;;  %14134 = vmatprep.mubr.msk.bf16.mxu0 %vm16815_vm0, %v23179_v1  ;;  %s23959_s28 = smov (!%p295_p3, %s11760_s28), 1  ;;  %v16207_v7 = vld [vmem:[%s23171_s1 + $0x20] sm:$0xff]   ;;  %v16209_v9 = vld [vmem:[%s23171_s1 + $0x18] sm:$0xff]   ;;  %v16211_v11 = vld [vmem:[%s23171_s1 + $0x10] sm:$0xff]   ;;  %vm3261_vm3 = vsmask.f32 7424 }
   0xe   : > { %14235 = vmatpush3.bf16.msra.mxu1 %v16202_v2  ;;  %14120 = vmatprep.subr.bf16.mxu0 %v23179_v1  ;;  %v16208_v8 = vld [vmem:[%s23171_s1 + $0x20] sm:$0xff]   ;;  %s16190_s23 = smul.u32 400, %s23959_s28  ;;  %v16210_v10 = vld [vmem:[%s23171_s1 + $0x18] sm:$0xff]   ;;  %v16212_v12 = vld [vmem:[%s23171_s1 + $0x10] sm:$0xff]   ;;  %vm4590_vm5 = vsmask.f32 4352 }
   0xf   : > { %14236 = vmatprep.subr.bf16.mxu1 %v23179_v1  ;;  %14250 = vmatprep.mubr.msk.bf16.mxu1 %vm16815_vm0, %v23179_v1  ;;  %v16213_v13 = vld [vmem:[%s23171_s1 + $0x8] sm:$0xff]   ;;  %v16215_v15 = vld [vmem:[%s23171_s1] sm:$0xff]   ;;  %vm3897_vm6 = vsmask.f32 6400  ;;  %vm4136_vm7 = vcmask 1045504   ;;  %vm8709_vm9 = vcmask 1041408  }
  0x10   : > { %s16918_s10 = scalar_lea.vmem %s23170_s0, %s16190_s23  ;;  %v16214_v14 = vld [vmem:[%s23171_s1 + $0x8] sm:$0xff]   ;;  %v16216_v16 = vld [vmem:[%s23171_s1] sm:$0xff]   ;;  %vm5686_vm8 = vsmask.f32 5376  ;;  %s11766_s25 = sshll.u32 %s23959_s28, 3 }
  0x11   : > { %14121 = vmatpush3.bf16.msra.mxu0 %v16203_v3  ;;  %v16217_v17 = vld [vmem:[%s16918_s10] sm:$0xff]   ;;  %v16218_v18 = vld [vmem:[%s16918_s10 + $0xc8] sm:$0xff]   ;;  %v16220_v20 = vld [vmem:[%s16918_s10 + $0xd0] sm:$0xff]   ;;  %s303_s30 = scalar_lea.vmem %s23178_s8, %s11766_s25 }
  0x12   : > { %14237 = vmatpush3.bf16.msra.mxu1 %v16204_v4  ;;  %14122 = vmatprep.subr.bf16.mxu0 %v23179_v1  ;;  %v16219_v19 = vld [vmem:[%s16918_s10 + $0x8] sm:$0xff]   ;;  %v16221_v21 = vld [vmem:[%s16918_s10 + $0x10] sm:$0xff]   ;;  %v16222_v22 = vld [vmem:[%s16918_s10 + $0xd8] sm:$0xff]  }
  0x13   : > { %14238 = vmatprep.subr.bf16.mxu1 %v23179_v1  ;;  %v16223_v23 = vld [vmem:[%s16918_s10 + $0x18] sm:$0xff]   ;;  %v16224_v24 = vld [vmem:[%s16918_s10 + $0xe0] sm:$0xff]   ;;  %v16226_v26 = vld [vmem:[%s16918_s10 + $0xe8] sm:$0xff]  }
  0x14   : > { %v16225_v25 = vld [vmem:[%s16918_s10 + $0x20] sm:$0xff]   ;;  %v16227_v27 = vld [vmem:[%s16918_s10 + $0x28] sm:$0xff]   ;;  %v16228_v28 = vld [vmem:[%s16918_s10 + $0xf0] sm:$0xff]  }
  0x15   : > { %14123 = vmatpush3.bf16.msra.mxu0 %v16205_v5  ;;  %v16229_v29 = vld [vmem:[%s16918_s10 + $0x30] sm:$0xff]   ;;  %v16230_v30 = vld [vmem:[%s16918_s10 + $0xf8] sm:$0xff]   ;;  %v16232_v32 = vld [vmem:[%s16918_s10 + $0x100] sm:$0xff]  }
  0x16   : > { %14239 = vmatpush3.bf16.msra.mxu1 %v16206_v6  ;;  %14124 = vmatprep.subr.bf16.mxu0 %v23179_v1  ;;  %v16231_v31 = vld [vmem:[%s16918_s10 + $0x38] sm:$0xff]   ;;  %v16233_v33 = vld [vmem:[%s16918_s10 + $0x40] sm:$0xff]   ;;  %v16234_v34 = vld [vmem:[%s16918_s10 + $0x108] sm:$0xff]  }
  0x17   : > { %14240 = vmatprep.subr.bf16.mxu1 %v23179_v1  ;;  %v16235_v35 = vld [vmem:[%s16918_s10 + $0x48] sm:$0xff]   ;;  %v16236_v36 = vld [vmem:[%s16918_s10 + $0x110] sm:$0xff]   ;;  %v16238_v38 = vld [vmem:[%s16918_s10 + $0x118] sm:$0xff]  }
  0x18   : > { %v16237_v37 = vld [vmem:[%s16918_s10 + $0x50] sm:$0xff]   ;;  %v16239_v39 = vld [vmem:[%s16918_s10 + $0x58] sm:$0xff]   ;;  %v16240_v40 = vld [vmem:[%s16918_s10 + $0x120] sm:$0xff]  }
  0x19   : > { %14125 = vmatpush3.bf16.msra.mxu0 %v16207_v7  ;;  %v16241_v41 = vld [vmem:[%s16918_s10 + $0x60] sm:$0xff]   ;;  %v16242_v42 = vld [vmem:[%s16918_s10 + $0x128] sm:$0xff]   ;;  %v16244_v44 = vld [vmem:[%s16918_s10 + $0x130] sm:$0xff]  }
  0x1a   : > { %14241 = vmatpush3.bf16.msra.mxu1 %v16208_v8  ;;  %14126 = vmatprep.subr.bf16.mxu0 %v23179_v1  ;;  %v16243_v43 = vld [vmem:[%s16918_s10 + $0x68] sm:$0xff]   ;;  %v16245_v45 = vld [vmem:[%s16918_s10 + $0x70] sm:$0xff]   ;;  %v16246_v46 = vld [vmem:[%s16918_s10 + $0x138] sm:$0xff]  }
  0x1b   : > { %14242 = vmatprep.subr.bf16.mxu1 %v23179_v1  ;;  %v16247_v47 = vld [vmem:[%s16918_s10 + $0x78] sm:$0xff]   ;;  %v16248_v48 = vld [vmem:[%s16918_s10 + $0x140] sm:$0xff]   ;;  %v16250_v50 = vld [vmem:[%s16918_s10 + $0x148] sm:$0xff]  }
  0x1c   : > { %v16249_v49 = vld [vmem:[%s16918_s10 + $0x80] sm:$0xff]   ;;  %v16251_v51 = vld [vmem:[%s16918_s10 + $0x88] sm:$0xff]   ;;  %v16252_v52 = vld [vmem:[%s16918_s10 + $0x150] sm:$0xff]  }
  0x1d   : > { %14127 = vmatpush3.bf16.msra.mxu0 %v16209_v9  ;;  %v16253_v53 = vld [vmem:[%s16918_s10 + $0x90] sm:$0xff]   ;;  %v16254_v54 = vld [vmem:[%s16918_s10 + $0x158] sm:$0xff]   ;;  %v16256_v56 = vld [vmem:[%s16918_s10 + $0x160] sm:$0xff]  }
  0x1e   : > { %14243 = vmatpush3.bf16.msra.mxu1 %v16210_v10  ;;  %14128 = vmatprep.subr.bf16.mxu0 %v23179_v1  ;;  %v16255_v55 = vld [vmem:[%s16918_s10 + $0x98] sm:$0xff]   ;;  %v16257_v57 = vld [vmem:[%s16918_s10 + $0xa0] sm:$0xff]   ;;  %v16258_v58 = vld [vmem:[%s16918_s10 + $0x168] sm:$0xff]  }
  0x1f   : > { %14244 = vmatprep.subr.bf16.mxu1 %v23179_v1  ;;  %v16259_v59 = vld [vmem:[%s16918_s10 + $0xa8] sm:$0xff]   ;;  %v16260_v60 = vld [vmem:[%s16918_s10 + $0x170] sm:$0xff]   ;;  %v16262_v62 = vld [vmem:[%s16918_s10 + $0x178] sm:$0xff]  }
  0x20   : > { %v16261_v61 = vld [vmem:[%s16918_s10 + $0xb0] sm:$0xff]   ;;  %v16263_v63 = vld [vmem:[%s16918_s10 + $0xb8] sm:$0xff]   ;;  %v16264_v0 = vld [vmem:[%s16918_s10 + $0x180] sm:$0xff]  }
  0x21   : > { %14129 = vmatpush3.bf16.msra.mxu0 %v16211_v11  ;;  %v16265_v2 = vld [vmem:[%s16918_s10 + $0xc0] sm:$0xff]   ;;  %v16266_v3 = vld [vmem:[%s16918_s10 + $0x188] sm:$0xff]  }
  0x22   : > { %14245 = vmatpush3.bf16.msra.mxu1 %v16212_v12  ;;  %14130 = vmatprep.subr.bf16.mxu0 %v23179_v1  ;;  %v17094_v4 = vld [vmem:[%s23177_s7] ss:$0 sm:$0xff] }
  0x23   : > { %14246 = vmatprep.subr.bf16.mxu1 %v23179_v1 }
  0x25   : > { %14131 = vmatpush3.bf16.msra.mxu0 %v16213_v13 }
  0x26   : > { %14247 = vmatpush3.bf16.msra.mxu1 %v16214_v14  ;;  %14132 = vmatprep.subr.bf16.mxu0 %v23179_v1 }
  0x27   : > { %14248 = vmatprep.subr.bf16.mxu1 %v23179_v1 }
  0x29   : > { %14133 = vmatpush3.bf16.msra.mxu0 %v16215_v15 }
  0x2a   : > { %14249 = vmatpush3.bf16.msra.mxu1 %v16216_v16 }
  0x2c   : > { %14135 = vmatmul.mubr.bf16.vlgmr.msra.gmra.mxu0 %v16217_v17 }
  0x2d   : > { %14251 = vmatmul.mubr.bf16.vlgmr.msra.gmra.mxu1 %v16218_v18  ;;  %14138 = vmatprep.mubr.msk.bf16.mxu0 %vm16815_vm0, %v23179_v1 }
  0x2e   : > { %14254 = vmatprep.mubr.msk.bf16.mxu1 %vm16815_vm0, %v23179_v1 }
  0x34   : > { %14139 = vmatmul.mubr.bf16.gmra.mxu0 %v16219_v19 }
  0x35   : > { %14255 = vmatmul.mubr.bf16.gmra.mxu1 %v16220_v20  ;;  %14142 = vmatprep.mubr.msk.bf16.mxu0 %vm16815_vm0, %v23179_v1 }
  0x36   : > { %14258 = vmatprep.mubr.msk.bf16.mxu1 %vm16815_vm0, %v23179_v1 }
  0x3c   : > { %14143 = vmatmul.mubr.bf16.gmra.mxu0 %v16221_v21 }
  0x3d   : > { %14259 = vmatmul.mubr.bf16.gmra.mxu1 %v16222_v22  ;;  %14146 = vmatprep.mubr.msk.bf16.mxu0 %vm16815_vm0, %v23179_v1 }
  0x3e   : > { %14262 = vmatprep.mubr.msk.bf16.mxu1 %vm16815_vm0, %v23179_v1 }
  0x44   : > { %14147 = vmatmul.mubr.bf16.gmra.mxu0 %v16223_v23 }
  0x45   : > { %14263 = vmatmul.mubr.bf16.gmra.mxu1 %v16224_v24  ;;  %14150 = vmatprep.mubr.msk.bf16.mxu0 %vm16815_vm0, %v23179_v1 }
  0x46   : > { %14266 = vmatprep.mubr.msk.bf16.mxu1 %vm16815_vm0, %v23179_v1 }
  0x4c   : > { %14151 = vmatmul.mubr.bf16.gmra.mxu0 %v16225_v25 }
  0x4d   : > { %14267 = vmatmul.mubr.bf16.gmra.mxu1 %v16226_v26  ;;  %14154 = vmatprep.mubr.msk.bf16.mxu0 %vm16815_vm0, %v23179_v1 }
  0x4e   : > { %14270 = vmatprep.mubr.msk.bf16.mxu1 %vm16815_vm0, %v23179_v1 }
  0x54   : > { %14155 = vmatmul.mubr.bf16.gmra.mxu0 %v16227_v27 }
  0x55   : > { %14271 = vmatmul.mubr.bf16.gmra.mxu1 %v16228_v28  ;;  %14158 = vmatprep.mubr.msk.bf16.mxu0 %vm16815_vm0, %v23179_v1 }
  0x56   : > { %14274 = vmatprep.mubr.msk.bf16.mxu1 %vm16815_vm0, %v23179_v1 }
  0x5c   : > { %14159 = vmatmul.mubr.bf16.gmra.mxu0 %v16229_v29 }
  0x5d   : > { %14275 = vmatmul.mubr.bf16.gmra.mxu1 %v16230_v30  ;;  %14162 = vmatprep.mubr.msk.bf16.mxu0 %vm16815_vm0, %v23179_v1 }
  0x5e   : > { %14278 = vmatprep.mubr.msk.bf16.mxu1 %vm16815_vm0, %v23179_v1 }
  0x64   : > { %14163 = vmatmul.mubr.bf16.gmra.mxu0 %v16231_v31 }
  0x65   : > { %14279 = vmatmul.mubr.bf16.gmra.mxu1 %v16232_v32  ;;  %14166 = vmatprep.mubr.msk.bf16.mxu0 %vm16815_vm0, %v23179_v1 }
  0x66   : > { %14282 = vmatprep.mubr.msk.bf16.mxu1 %vm16815_vm0, %v23179_v1 }
  0x6c   : > { %14167 = vmatmul.mubr.bf16.gmra.mxu0 %v16233_v33 }
  0x6d   : > { %14283 = vmatmul.mubr.bf16.gmra.mxu1 %v16234_v34  ;;  %14170 = vmatprep.mubr.msk.bf16.mxu0 %vm16815_vm0, %v23179_v1 }
  0x6e   : > { %14286 = vmatprep.mubr.msk.bf16.mxu1 %vm16815_vm0, %v23179_v1 }
  0x74   : > { %14171 = vmatmul.mubr.bf16.gmra.mxu0 %v16235_v35 }
  0x75   : > { %14287 = vmatmul.mubr.bf16.gmra.mxu1 %v16236_v36  ;;  %14174 = vmatprep.mubr.msk.bf16.mxu0 %vm16815_vm0, %v23179_v1 }
  0x76   : > { %14290 = vmatprep.mubr.msk.bf16.mxu1 %vm16815_vm0, %v23179_v1 }
  0x7c   : > { %14175 = vmatmul.mubr.bf16.gmra.mxu0 %v16237_v37 }
  0x7d   : > { %14291 = vmatmul.mubr.bf16.gmra.mxu1 %v16238_v38  ;;  %14178 = vmatprep.mubr.msk.bf16.mxu0 %vm16815_vm0, %v23179_v1 }
  0x7e   : > { %14294 = vmatprep.mubr.msk.bf16.mxu1 %vm16815_vm0, %v23179_v1 }
  0x84   : > { %14179 = vmatmul.mubr.bf16.gmra.mxu0 %v16239_v39 }
  0x85   : > { %14295 = vmatmul.mubr.bf16.gmra.mxu1 %v16240_v40  ;;  %14182 = vmatprep.mubr.msk.bf16.mxu0 %vm16815_vm0, %v23179_v1 }
  0x86   : > { %14298 = vmatprep.mubr.msk.bf16.mxu1 %vm16815_vm0, %v23179_v1 }
  0x8c   : > { %14183 = vmatmul.mubr.bf16.gmra.mxu0 %v16241_v41 }
  0x8d   : > { %14299 = vmatmul.mubr.bf16.gmra.mxu1 %v16242_v42  ;;  %14186 = vmatprep.mubr.msk.bf16.mxu0 %vm16815_vm0, %v23179_v1 }
  0x8e   : > { %14302 = vmatprep.mubr.msk.bf16.mxu1 %vm16815_vm0, %v23179_v1 }
  0x94   : > { %14187 = vmatmul.mubr.bf16.gmra.mxu0 %v16243_v43 }
  0x95   : > { %14303 = vmatmul.mubr.bf16.gmra.mxu1 %v16244_v44  ;;  %14190 = vmatprep.mubr.msk.bf16.mxu0 %vm16815_vm0, %v23179_v1 }
  0x96   : > { %14306 = vmatprep.mubr.msk.bf16.mxu1 %vm16815_vm0, %v23179_v1 }
  0x9c   : > { %14191 = vmatmul.mubr.bf16.gmra.mxu0 %v16245_v45 }
  0x9d   : > { %14307 = vmatmul.mubr.bf16.gmra.mxu1 %v16246_v46  ;;  %14194 = vmatprep.mubr.msk.bf16.mxu0 %vm16815_vm0, %v23179_v1 }
  0x9e   : > { %14310 = vmatprep.mubr.msk.bf16.mxu1 %vm16815_vm0, %v23179_v1 }
  0xa4   : > { %14195 = vmatmul.mubr.bf16.gmra.mxu0 %v16247_v47 }
  0xa5   : > { %14311 = vmatmul.mubr.bf16.gmra.mxu1 %v16248_v48  ;;  %14198 = vmatprep.mubr.msk.bf16.mxu0 %vm16815_vm0, %v23179_v1 }
  0xa6   : > { %14314 = vmatprep.mubr.msk.bf16.mxu1 %vm16815_vm0, %v23179_v1 }
  0xac   : > { %14199 = vmatmul.mubr.bf16.gmra.mxu0 %v16249_v49 }
  0xad   : > { %14315 = vmatmul.mubr.bf16.gmra.mxu1 %v16250_v50  ;;  %14202 = vmatprep.mubr.msk.bf16.mxu0 %vm16815_vm0, %v23179_v1 }
  0xae   : > { %14318 = vmatprep.mubr.msk.bf16.mxu1 %vm16815_vm0, %v23179_v1 }
  0xb4   : > { %14203 = vmatmul.mubr.bf16.gmra.mxu0 %v16251_v51 }
  0xb5   : > { %14319 = vmatmul.mubr.bf16.gmra.mxu1 %v16252_v52  ;;  %14206 = vmatprep.mubr.msk.bf16.mxu0 %vm16815_vm0, %v23179_v1 }
  0xb6   : > { %14322 = vmatprep.mubr.msk.bf16.mxu1 %vm16815_vm0, %v23179_v1 }
  0xbc   : > { %14207 = vmatmul.mubr.bf16.gmra.mxu0 %v16253_v53 }
  0xbd   : > { %14323 = vmatmul.mubr.bf16.gmra.mxu1 %v16254_v54  ;;  %14210 = vmatprep.mubr.msk.bf16.mxu0 %vm16815_vm0, %v23179_v1 }
  0xbe   : > { %14326 = vmatprep.mubr.msk.bf16.mxu1 %vm16815_vm0, %v23179_v1 }
  0xc4   : > { %14211 = vmatmul.mubr.bf16.gmra.mxu0 %v16255_v55 }
  0xc5   : > { %14327 = vmatmul.mubr.bf16.gmra.mxu1 %v16256_v56  ;;  %14214 = vmatprep.mubr.msk.bf16.mxu0 %vm16815_vm0, %v23179_v1 }
  0xc6   : > { %14330 = vmatprep.mubr.msk.bf16.mxu1 %vm16815_vm0, %v23179_v1 }
  0xcc   : > { %14215 = vmatmul.mubr.bf16.gmra.mxu0 %v16257_v57 }
  0xcd   : > { %14331 = vmatmul.mubr.bf16.gmra.mxu1 %v16258_v58  ;;  %14218 = vmatprep.mubr.msk.bf16.mxu0 %vm16815_vm0, %v23179_v1 }
  0xce   : > { %14334 = vmatprep.mubr.msk.bf16.mxu1 %vm16815_vm0, %v23179_v1 }
  0xd4   : > { %14219 = vmatmul.mubr.bf16.gmra.mxu0 %v16259_v59 }
  0xd5   : > { %14335 = vmatmul.mubr.bf16.gmra.mxu1 %v16260_v60  ;;  %14222 = vmatprep.mubr.msk.bf16.mxu0 %vm16815_vm0, %v23179_v1 }
  0xd6   : > { %14338 = vmatprep.mubr.msk.bf16.mxu1 %vm16815_vm0, %v23179_v1 }
  0xdc   : > { %14223 = vmatmul.mubr.bf16.gmra.mxu0 %v16261_v61 }
  0xdd   : > { %14339 = vmatmul.mubr.bf16.gmra.mxu1 %v16262_v62  ;;  %14226 = vmatprep.mubr.msk.bf16.mxu0 %vm16815_vm0, %v23179_v1 }
  0xde   : > { %14342 = vmatprep.mubr.msk.bf16.mxu1 %vm16815_vm0, %v23179_v1 }
  0xe4   : > { %14227 = vmatmul.mubr.bf16.gmra.mxu0 %v16263_v63 }
  0xe5   : > { %14343 = vmatmul.mubr.bf16.gmra.mxu1 %v16264_v0  ;;  %14230 = vmatprep.mubr.msk.bf16.mxu0 %vm16815_vm0, %v23179_v1 }
  0xe6   : > { %14346 = vmatprep.mubr.msk.bf16.mxu1 %vm16815_vm0, %v23179_v1 }
  0xec   : > { %v612_v5 = vpop.f32.mrf.mxu0  ;;  %14231 = vmatmul.mubr.bf16.gmra.mxu0 %v16265_v2 }
  0xed   : > { %v613_v6 = vadd.f32 %v17094_v4, %v612_v5  ;;  %v1209_v7 = vpop.f32.mrf.mxu1  ;;  %14347 = vmatmul.mubr.bf16.gmra.mxu1 %v16266_v3 }
  0xee   : > { %v1210_v8 = vadd.f32 %v17094_v4, %v1209_v7  ;;  %v14136_v9 = vpop.f32.mrf.mxu0 }
  0xef   : > { %v811_v10 = vmax.f32 %v613_v6, 0.0  ;;  %v14252_v11 = vpop.f32.mrf.mxu1 }
  0xf0   : > { %v1408_v12 = vmax.f32 %v1210_v8, 0.0  ;;  %v615_v13 = vpop.f32.mrf.mxu0 }
  0xf1   : > { %861 = vst [vmem:[#allocation2] sm:$0xff] %v811_v10  ;;  %v616_v14 = vadd.f32 %v17094_v4, %v615_v13  ;;  %v1212_v15 = vpop.f32.mrf.mxu1 }
  0xf2   : > { %1458 = vst [vmem:[#allocation2 + $0x190] sm:$0xff] %v1408_v12  ;;  %v1213_v16 = vadd.f32 %v17094_v4, %v1212_v15  ;;  %v14137_v17 = vpop.f32.mrf.mxu0 }
  0xf3   : > { %v812_v18 = vmax.f32 %v616_v14, 0.0  ;;  %v14253_v19 = vpop.f32.mrf.mxu1 }
  0xf4   : > { %v1409_v20 = vmax.f32 %v1213_v16, 0.0  ;;  %v620_v21 = vpop.f32.mrf.mxu0 }
  0xf5   : > { %862 = vst [vmem:[#allocation2 + $0x8] sm:$0xff] %v812_v18  ;;  %v621_v22 = vadd.f32 %v17094_v4, %v620_v21  ;;  %v1217_v23 = vpop.f32.mrf.mxu1 }
  0xf6   : > { %1459 = vst [vmem:[#allocation2 + $0x198] sm:$0xff] %v1409_v20  ;;  %v1218_v24 = vadd.f32 %v17094_v4, %v1217_v23  ;;  %v14140_v25 = vpop.f32.mrf.mxu0 }
  0xf7   : > { %v813_v26 = vmax.f32 %v621_v22, 0.0  ;;  %v14256_v27 = vpop.f32.mrf.mxu1 }
  0xf8   : > { %v1410_v28 = vmax.f32 %v1218_v24, 0.0  ;;  %v623_v29 = vpop.f32.mrf.mxu0 }
  0xf9   : > { %863 = vst [vmem:[#allocation2 + $0x10] sm:$0xff] %v813_v26  ;;  %v624_v30 = vadd.f32 %v17094_v4, %v623_v29  ;;  %v1220_v31 = vpop.f32.mrf.mxu1 }
  0xfa   : > { %1460 = vst [vmem:[#allocation2 + $0x1a0] sm:$0xff] %v1410_v28  ;;  %v1221_v32 = vadd.f32 %v17094_v4, %v1220_v31  ;;  %v14141_v33 = vpop.f32.mrf.mxu0 }
  0xfb   : > { %v814_v34 = vmax.f32 %v624_v30, 0.0  ;;  %v14257_v35 = vpop.f32.mrf.mxu1 }
  0xfc   : > { %v1411_v36 = vmax.f32 %v1221_v32, 0.0  ;;  %v628_v37 = vpop.f32.mrf.mxu0 }
  0xfd   : > { %864 = vst [vmem:[#allocation2 + $0x18] sm:$0xff] %v814_v34  ;;  %v629_v38 = vadd.f32 %v17094_v4, %v628_v37  ;;  %v1225_v39 = vpop.f32.mrf.mxu1 }
  0xfe   : > { %1461 = vst [vmem:[#allocation2 + $0x1a8] sm:$0xff] %v1411_v36  ;;  %v1226_v40 = vadd.f32 %v17094_v4, %v1225_v39  ;;  %v14144_v41 = vpop.f32.mrf.mxu0 }
  0xff   : > { %v815_v42 = vmax.f32 %v629_v38, 0.0  ;;  %v14260_v43 = vpop.f32.mrf.mxu1 }
 0x100   : > { %v1412_v44 = vmax.f32 %v1226_v40, 0.0  ;;  %v631_v45 = vpop.f32.mrf.mxu0 }
 0x101   : > { %865 = vst [vmem:[#allocation2 + $0x20] sm:$0xff] %v815_v42  ;;  %v632_v46 = vadd.f32 %v17094_v4, %v631_v45  ;;  %v1228_v47 = vpop.f32.mrf.mxu1 }
 0x102   : > { %1462 = vst [vmem:[#allocation2 + $0x1b0] sm:$0xff] %v1412_v44  ;;  %v1229_v48 = vadd.f32 %v17094_v4, %v1228_v47  ;;  %v14145_v49 = vpop.f32.mrf.mxu0 }
 0x103   : > { %v816_v50 = vmax.f32 %v632_v46, 0.0  ;;  %v14261_v51 = vpop.f32.mrf.mxu1 }
 0x104   : > { %v1413_v52 = vmax.f32 %v1229_v48, 0.0  ;;  %v636_v53 = vpop.f32.mrf.mxu0 }
 0x105   : > { %866 = vst [vmem:[#allocation2 + $0x28] sm:$0xff] %v816_v50  ;;  %v637_v54 = vadd.f32 %v17094_v4, %v636_v53  ;;  %v1233_v55 = vpop.f32.mrf.mxu1 }
 0x106   : > { %1463 = vst [vmem:[#allocation2 + $0x1b8] sm:$0xff] %v1413_v52  ;;  %v1234_v56 = vadd.f32 %v17094_v4, %v1233_v55  ;;  %v14148_v57 = vpop.f32.mrf.mxu0 }
 0x107   : > { %v817_v58 = vmax.f32 %v637_v54, 0.0  ;;  %v14264_v59 = vpop.f32.mrf.mxu1 }
 0x108   : > { %v1414_v60 = vmax.f32 %v1234_v56, 0.0  ;;  %v639_v61 = vpop.f32.mrf.mxu0  ;;  %v1512_v59 = vld [vmem:[#allocation2 + $0x20] sm:$0xff] }
 0x109   : > { %867 = vst [vmem:[#allocation2 + $0x30] sm:$0xff] %v817_v58  ;;  %v640_v62 = vadd.f32 %v17094_v4, %v639_v61  ;;  %v1236_v63 = vpop.f32.mrf.mxu1 }
 0x10a   : > { %1464 = vst [vmem:[#allocation2 + $0x1c0] sm:$0xff] %v1414_v60  ;;  %v1237_v0 = vadd.f32 %v17094_v4, %v1236_v63  ;;  %v14149_v2 = vpop.f32.mrf.mxu0 }
 0x10b   : > { %v818_v3 = vmax.f32 %v640_v62, 0.0  ;;  %v14265_v5 = vpop.f32.mrf.mxu1 }
 0x10c   : > { %v1415_v6 = vmax.f32 %v1237_v0, 0.0  ;;  %v644_v7 = vpop.f32.mrf.mxu0  ;;  %v1513_v60 = vld [vmem:[#allocation2 + $0x28] sm:$0xff] }
 0x10d   : > { %868 = vst [vmem:[#allocation2 + $0x38] sm:$0xff] %v818_v3  ;;  %v645_v8 = vadd.f32 %v17094_v4, %v644_v7  ;;  %v1241_v9 = vpop.f32.mrf.mxu1  ;;  %v1612_v61 = vld [vmem:[#allocation2 + $0x21] sm:$0xff] }
 0x10e   : > { %1465 = vst [vmem:[#allocation2 + $0x1c8] sm:$0xff] %v1415_v6  ;;  %v1242_v10 = vadd.f32 %v17094_v4, %v1241_v9  ;;  %v14152_v11 = vpop.f32.mrf.mxu0 }
 0x10f   : > { %v819_v12 = vmax.f32 %v645_v8, 0.0  ;;  %v14268_v13 = vpop.f32.mrf.mxu1 }
 0x110   : > { %v1416_v14 = vmax.f32 %v1242_v10, 0.0  ;;  %v647_v15 = vpop.f32.mrf.mxu0  ;;  %v1613_v62 = vld [vmem:[#allocation2 + $0x29] sm:$0xff]  ;;  %v17149_v10 = vmax.f32 %v1512_v59, %v1612_v61 }
 0x111   : > { %869 = vst [vmem:[#allocation2 + $0x40] sm:$0xff] %v819_v12  ;;  %v648_v16 = vadd.f32 %v17094_v4, %v647_v15  ;;  %v1244_v17 = vpop.f32.mrf.mxu1  ;;  %v17151_v11 = vmax.f32 %v1513_v60, %v1613_v62 }
 0x112   : > { %1466 = vst [vmem:[#allocation2 + $0x1d0] sm:$0xff] %v1416_v14  ;;  %v1245_v18 = vadd.f32 %v17094_v4, %v1244_v17  ;;  %v14153_v19 = vpop.f32.mrf.mxu0 }
 0x113   : > { %v820_v20 = vmax.f32 %v648_v16, 0.0  ;;  %v14269_v21 = vpop.f32.mrf.mxu1 }
 0x114   : > { %v1417_v22 = vmax.f32 %v1245_v18, 0.0  ;;  %v652_v23 = vpop.f32.mrf.mxu0  ;;  %v1515_v42 = vld [vmem:[#allocation2 + $0x38] sm:$0xff] }
 0x115   : > { %870 = vst [vmem:[#allocation2 + $0x48] sm:$0xff] %v820_v20  ;;  %v653_v24 = vadd.f32 %v17094_v4, %v652_v23  ;;  %v1249_v25 = vpop.f32.mrf.mxu1  ;;  %v1614_v23 = vld [vmem:[#allocation2 + $0x31] sm:$0xff] }
 0x116   : > { %1467 = vst [vmem:[#allocation2 + $0x1d8] sm:$0xff] %v1417_v22  ;;  %v1250_v26 = vadd.f32 %v17094_v4, %v1249_v25  ;;  %v14156_v27 = vpop.f32.mrf.mxu0 }
 0x117   : > { %v821_v28 = vmax.f32 %v653_v24, 0.0  ;;  %v14272_v29 = vpop.f32.mrf.mxu1 }
 0x118   : > { %v1418_v30 = vmax.f32 %v1250_v26, 0.0  ;;  %v655_v31 = vpop.f32.mrf.mxu0  ;;  %v1615_v34 = vld [vmem:[#allocation2 + $0x39] sm:$0xff] }
 0x119   : > { %871 = vst [vmem:[#allocation2 + $0x50] sm:$0xff] %v821_v28  ;;  %v17119_v32 = vadd.f32 %v17094_v4, %v655_v31  ;;  %v1252_v33 = vpop.f32.mrf.mxu1  ;;  %v17130_v46 = vmax.f32 %v1515_v42, %v1615_v34 }
 0x11a   : > { %1468 = vst [vmem:[#allocation2 + $0x1e0] sm:$0xff] %v1418_v30  ;;  %v1253_v35 = vadd.f32 %v17094_v4, %v1252_v33  ;;  %v14157_v36 = vpop.f32.mrf.mxu0  ;;  %v1514_v33 = vld [vmem:[#allocation2 + $0x30] sm:$0xff] }
 0x11b   : > { %v822_v37 = vmax.f32 %v17119_v32, 0.0  ;;  %v14273_v38 = vpop.f32.mrf.mxu1  ;;  %v23183_v58 = vrot.slane %v17130_v46, 4  ;;  %v17181_v32 = vmax.f32 %v1514_v33, %v1614_v23 }
 0x11c   : > { %v1419_v39 = vmax.f32 %v1253_v35, 0.0  ;;  %v660_v40 = vpop.f32.mrf.mxu0  ;;  %v1616_v41 = vld [vmem:[#allocation2 + $0x41] sm:$0xff] }
 0x11d   : > { %872 = vst [vmem:[#allocation2 + $0x58] sm:$0xff] %v822_v37  ;;  %v17126_v43 = vadd.f32 %v17094_v4, %v660_v40  ;;  %v1257_v44 = vpop.f32.mrf.mxu1  ;;  %v17128_v45 = vmax.f32 %v819_v12, %v1616_v41 }
 0x11e   : > { %1469 = vst [vmem:[#allocation2 + $0x1e8] sm:$0xff] %v1419_v39  ;;  %v1258_v47 = vadd.f32 %v17094_v4, %v1257_v44  ;;  %v14160_v48 = vpop.f32.mrf.mxu0 }
 0x11f   : > { %v823_v49 = vmax.f32 %v17126_v43, 0.0  ;;  %v14276_v50 = vpop.f32.mrf.mxu1  ;;  %v1915_v51 = vrot.slane %v17128_v45, 4 }
 0x120   : > { %v1420_v52 = vmax.f32 %v1258_v47, 0.0  ;;  %v663_v53 = vpop.f32.mrf.mxu0  ;;  %v1617_v54 = vld [vmem:[#allocation2 + $0x49] sm:$0xff] }
 0x121   : > { %873 = vst [vmem:[#allocation2 + $0x60] sm:$0xff] %v823_v49  ;;  %v17138_v55 = vadd.f32 %v17094_v4, %v663_v53  ;;  %v1260_v56 = vpop.f32.mrf.mxu1  ;;  %v17140_v57 = vmax.f32 %v820_v20, %v1617_v54  ;;  %v1916_v6 = vsel %vm1905_vm1, %v23183_v58, %v1915_v51 }
 0x122   : > { %1470 = vst [vmem:[#allocation2 + $0x1f0] sm:$0xff] %v1420_v52  ;;  %v1261_v63 = vadd.f32 %v17094_v4, %v1260_v56  ;;  %v14161_v0 = vpop.f32.mrf.mxu0  ;;  %v2199_v18 = vmax.f32 %v17149_v10, %v1916_v6  ;;  %v1567_v6 = vld [vmem:[#allocation2 + $0x1d8] sm:$0xff] }
 0x123   : > { %v824_v2 = vmax.f32 %v17138_v55, 0.0  ;;  %v14277_v3 = vpop.f32.mrf.mxu1  ;;  %v1917_v5 = vrot.slane %v17140_v57, 4  ;;  %v1566_v0 = vld [vmem:[#allocation2 + $0x1d0] sm:$0xff] }
 0x124   : > { %v1421_v7 = vmax.f32 %v1261_v63, 0.0  ;;  %v668_v8 = vpop.f32.mrf.mxu0  ;;  %v1618_v9 = vld [vmem:[#allocation2 + $0x51] sm:$0xff] }
 0x125   : > { %874 = vst [vmem:[#allocation2 + $0x68] sm:$0xff] %v824_v2  ;;  %v17156_v12 = vadd.f32 %v17094_v4, %v668_v8  ;;  %v1265_v13 = vpop.f32.mrf.mxu1  ;;  %v17158_v14 = vmax.f32 %v821_v28, %v1618_v9  ;;  %v1918_v15 = vsel %vm1905_vm1, %v1915_v51, %v1917_v5  ;;  %v1569_v28 = vld [vmem:[#allocation2 + $0x1e8] sm:$0xff]  ;;  %v1666_v3 = vld [vmem:[#allocation2 + $0x1d1] sm:$0xff] }
 0x126   : > { %1471 = vst [vmem:[#allocation2 + $0x1f8] sm:$0xff] %v1421_v7  ;;  %v1266_v16 = vadd.f32 %v17094_v4, %v1265_v13  ;;  %v14164_v17 = vpop.f32.mrf.mxu0  ;;  %v2200_v19 = vmax.f32 %v17151_v11, %v1918_v15  ;;  %v16269_v15 = vld [vmem:[%s23172_s2 + $0x4] ss:$24 sps:$4 sm:$0xff]  }
 0x127   : > { %v825_v20 = vmax.f32 %v17156_v12, 0.0  ;;  %v14280_v21 = vpop.f32.mrf.mxu1  ;;  %v1919_v22 = vrot.slane %v17158_v14, 4  ;;  %2839 = vmatprep.mubr.bf16.mxu0 %v16269_v15  ;;  %v1668_v15 = vld [vmem:[#allocation2 + $0x1e1] sm:$0xff] }
 0x128   : > { %v1422_v24 = vmax.f32 %v1266_v16, 0.0  ;;  %v671_v25 = vpop.f32.mrf.mxu0  ;;  %v1619_v26 = vld [vmem:[#allocation2 + $0x59] sm:$0xff]  ;;  %v17166_v27 = vpack.c.bf16 %v2200_v19, %v2199_v18 }
 0x129   : > { %875 = vst [vmem:[#allocation2 + $0x70] sm:$0xff] %v825_v20  ;;  %v17171_v29 = vadd.f32 %v17094_v4, %v671_v25  ;;  %v1268_v30 = vpop.f32.mrf.mxu1  ;;  %v17175_v31 = vmax.f32 %v822_v37, %v1619_v26  ;;  %v1920_v34 = vsel %vm1905_vm1, %v1917_v5, %v1919_v22  ;;  %v1570_v35 = vld [vmem:[#allocation2 + $0x1f0] sm:$0xff]  ;;  %v1667_v25 = vld [vmem:[#allocation2 + $0x1d9] sm:$0xff] }
 0x12a   : > { %v1669_v36 = vld [vmem:[#allocation2 + $0x1e9] sm:$0xff]  ;;  %1472 = vst [vmem:[#allocation2 + $0x200] sm:$0xff] %v1422_v24  ;;  %v1269_v38 = vadd.f32 %v17094_v4, %v1268_v30  ;;  %v14165_v39 = vpop.f32.mrf.mxu0  ;;  %v2201_v61 = vmax.f32 %v17181_v32, %v1920_v34 }
 0x12b   : > { %v826_v40 = vmax.f32 %v17171_v29, 0.0  ;;  %v14281_v41 = vpop.f32.mrf.mxu1  ;;  %v1921_v42 = vrot.slane %v17175_v31, 4  ;;  %v17183_v37 = vmax.f32 %v1569_v28, %v1669_v36  ;;  %v17228_v36 = vmax.f32 %v1566_v0, %v1666_v3 }
 0x12c   : > { %v1423_v44 = vmax.f32 %v1269_v38, 0.0  ;;  %v676_v47 = vpop.f32.mrf.mxu0  ;;  %v1620_v48 = vld [vmem:[#allocation2 + $0x61] sm:$0xff] }
 0x12d   : > { %876 = vst [vmem:[#allocation2 + $0x78] sm:$0xff] %v826_v40  ;;  %v17188_v50 = vadd.f32 %v17094_v4, %v676_v47  ;;  %v1273_v51 = vpop.f32.mrf.mxu1  ;;  %v17192_v52 = vmax.f32 %v823_v49, %v1620_v48  ;;  %v1922_v53 = vsel %vm1905_vm1, %v1919_v22, %v1921_v42  ;;  %v1571_v54 = vld [vmem:[#allocation2 + $0x1f8] sm:$0xff]  ;;  %v23182_v17 = vrot.slane %v17183_v37, 4 }
 0x12e   : > { %v1670_v56 = vld [vmem:[#allocation2 + $0x1f1] sm:$0xff]  ;;  %1473 = vst [vmem:[#allocation2 + $0x208] sm:$0xff] %v1423_v44  ;;  %v1274_v59 = vadd.f32 %v17094_v4, %v1273_v51  ;;  %v14168_v60 = vpop.f32.mrf.mxu0  ;;  %v2202_v62 = vmax.f32 %v17130_v46, %v1922_v53 }
 0x12f   : > { %v17198_v63 = vmax.f32 %v1570_v35, %v1670_v56  ;;  %v827_v43 = vmax.f32 %v17188_v50, 0.0  ;;  %v14284_v49 = vpop.f32.mrf.mxu1  ;;  %v1923_v5 = vrot.slane %v17192_v52, 4 }
 0x130   : > { %v1424_v7 = vmax.f32 %v1274_v59, 0.0  ;;  %v679_v8 = vpop.f32.mrf.mxu0  ;;  %v1621_v9 = vld [vmem:[#allocation2 + $0x69] sm:$0xff]  ;;  %v17202_v13 = vpack.c.bf16 %v2202_v62, %v2201_v61  ;;  %v1568_v62 = vld [vmem:[#allocation2 + $0x1e0] sm:$0xff] }
 0x131   : > { %v2023_v16 = vrot.slane %v17198_v63, 4  ;;  %877 = vst [vmem:[#allocation2 + $0x80] sm:$0xff] %v827_v43  ;;  %v17212_v18 = vadd.f32 %v17094_v4, %v679_v8  ;;  %v1276_v19 = vpop.f32.mrf.mxu1  ;;  %v17216_v21 = vmax.f32 %v824_v2, %v1621_v9  ;;  %v1924_v22 = vsel %vm1905_vm1, %v1921_v42, %v1923_v5  ;;  %v1671_v23 = vld [vmem:[#allocation2 + $0x1f9] sm:$0xff] }
 0x132   : > { %v1572_v24 = vld [vmem:[#allocation2 + $0x200] sm:$0xff]  ;;  %1474 = vst [vmem:[#allocation2 + $0x210] sm:$0xff] %v1424_v7  ;;  %v1277_v26 = vadd.f32 %v17094_v4, %v1276_v19  ;;  %v14169_v28 = vpop.f32.mrf.mxu0  ;;  %v2203_v30 = vmax.f32 %v17128_v45, %v1924_v22  ;;  %v17221_v33 = vmax.f32 %v1571_v54, %v1671_v23  ;;  %v17231_v45 = vmax.f32 %v1567_v6, %v1667_v25 }
 0x133   : > { %v2024_v55 = vsel %vm1905_vm1, %v23182_v17, %v2023_v16  ;;  %v828_v2 = vmax.f32 %v17212_v18, 0.0  ;;  %v14285_v34 = vpop.f32.mrf.mxu1  ;;  %v1925_v35 = vrot.slane %v17216_v21, 4 }
 0x134   : > { %v1425_v38 = vmax.f32 %v1277_v26, 0.0  ;;  %v684_v39 = vpop.f32.mrf.mxu0  ;;  %v1622_v41 = vld [vmem:[#allocation2 + $0x71] sm:$0xff]  ;;  %v2025_v42 = vrot.slane %v17221_v33, 4  ;;  %v2253_v54 = vmax.f32 %v17228_v36, %v2024_v55 }
 0x135   : > { %878 = vst [vmem:[#allocation2 + $0x88] sm:$0xff] %v828_v2  ;;  %v17236_v44 = vadd.f32 %v17094_v4, %v684_v39  ;;  %v1281_v47 = vpop.f32.mrf.mxu1  ;;  %v17240_v48 = vmax.f32 %v825_v20, %v1622_v41  ;;  %v1926_v51 = vsel %vm1905_vm1, %v1923_v5, %v1925_v35  ;;  %v1672_v53 = vld [vmem:[#allocation2 + $0x201] sm:$0xff] }
 0x136   : > { %1475 = vst [vmem:[#allocation2 + $0x218] sm:$0xff] %v1425_v38  ;;  %v1282_v56 = vadd.f32 %v17094_v4, %v1281_v47  ;;  %v14172_v59 = vpop.f32.mrf.mxu0  ;;  %v2204_v60 = vmax.f32 %v17140_v57, %v1926_v51  ;;  %v1573_v61 = vld [vmem:[#allocation2 + $0x208] sm:$0xff]  ;;  %v17246_v0 = vmax.f32 %v1572_v24, %v1672_v53  ;;  %v2026_v3 = vsel %vm1905_vm1, %v2023_v16, %v2025_v42 }
 0x137   : > { %v829_v12 = vmax.f32 %v17236_v44, 0.0  ;;  %v14288_v20 = vpop.f32.mrf.mxu1  ;;  %v1927_v49 = vrot.slane %v17240_v48, 4  ;;  %v2254_v5 = vmax.f32 %v17231_v45, %v2026_v3 }
 0x138   : > { %v1426_v6 = vmax.f32 %v1282_v56, 0.0  ;;  %v687_v7 = vpop.f32.mrf.mxu0  ;;  %v1623_v8 = vld [vmem:[#allocation2 + $0x79] sm:$0xff]  ;;  %v17252_v9 = vpack.c.bf16 %v2204_v60, %v2203_v30  ;;  %v2027_v57 = vrot.slane %v17246_v0, 4 }
 0x139   : > { %879 = vst [vmem:[#allocation2 + $0x90] sm:$0xff] %v829_v12  ;;  %v17258_v16 = vadd.f32 %v17094_v4, %v687_v7  ;;  %v1284_v19 = vpop.f32.mrf.mxu1  ;;  %v17262_v22 = vmax.f32 %v826_v40, %v1623_v8  ;;  %v1928_v23 = vsel %vm1905_vm1, %v1925_v35, %v1927_v49  ;;  %v1673_v24 = vld [vmem:[#allocation2 + $0x209] sm:$0xff]  ;;  %v17265_v25 = vpack.c.bf16 %v2254_v5, %v2253_v54 }
 0x13a   : > { %1476 = vst [vmem:[#allocation2 + $0x220] sm:$0xff] %v1426_v6  ;;  %v1285_v26 = vadd.f32 %v17094_v4, %v1284_v19  ;;  %v14173_v28 = vpop.f32.mrf.mxu0  ;;  %v2205_v30 = vmax.f32 %v17158_v14, %v1928_v23  ;;  %v17269_v55 = vmax.f32 %v1573_v61, %v1673_v24  ;;  %v2028_v34 = vsel %vm1905_vm1, %v2025_v42, %v2027_v57  ;;  %v1574_v39 = vld [vmem:[#allocation2 + $0x210] sm:$0xff] }
 0x13b   : > { %23368 = vst [vmem:[#allocation3_spill] sm:$0xff] %v17265_v25  ;;  %v830_v38 = vmax.f32 %v17258_v16, 0.0  ;;  %v14289_v29 = vpop.f32.mrf.mxu1  ;;  %v1929_v40 = vrot.slane %v17262_v22, 4  ;;  %v17274_v35 = vmax.f32 %v1568_v62, %v1668_v15 }
 0x13c   : > { %v1427_v41 = vmax.f32 %v1285_v26, 0.0  ;;  %v692_v47 = vpop.f32.mrf.mxu0  ;;  %v1624_v51 = vld [vmem:[#allocation2 + $0x81] sm:$0xff]  ;;  %v2029_v53 = vrot.slane %v17269_v55, 4 }
 0x13d   : > { %880 = vst [vmem:[#allocation2 + $0x98] sm:$0xff] %v830_v38  ;;  %v17280_v14 = vadd.f32 %v17094_v4, %v692_v47  ;;  %v1289_v42 = vpop.f32.mrf.mxu1  ;;  %v17284_v54 = vmax.f32 %v827_v43, %v1624_v51  ;;  %v1930_v56 = vsel %vm1905_vm1, %v1927_v49, %v1929_v40  ;;  %v1575_v59 = vld [vmem:[#allocation2 + $0x218] sm:$0xff]  ;;  %v2255_v61 = vmax.f32 %v17274_v35, %v2028_v34 }
 0x13e   : > { %v1674_v60 = vld [vmem:[#allocation2 + $0x211] sm:$0xff]  ;;  %1477 = vst [vmem:[#allocation2 + $0x228] sm:$0xff] %v1427_v41  ;;  %v1290_v62 = vadd.f32 %v17094_v4, %v1289_v42  ;;  %v14176_v3 = vpop.f32.mrf.mxu0  ;;  %v2206_v20 = vmax.f32 %v17175_v31, %v1930_v56  ;;  %v2030_v6 = vsel %vm1905_vm1, %v2027_v57, %v2029_v53 }
 0x13f   : > { %v17290_v5 = vmax.f32 %v1574_v39, %v1674_v60  ;;  %v831_v50 = vmax.f32 %v17280_v14, 0.0  ;;  %v14292_v43 = vpop.f32.mrf.mxu1  ;;  %v1931_v7 = vrot.slane %v17284_v54, 4  ;;  %v2256_v49 = vmax.f32 %v17183_v37, %v2030_v6 }
 0x140   : > { %v1428_v8 = vmax.f32 %v1290_v62, 0.0  ;;  %v695_v15 = vpop.f32.mrf.mxu0  ;;  %v1625_v19 = vld [vmem:[#allocation2 + $0x89] sm:$0xff]  ;;  %v17296_v23 = vpack.c.bf16 %v2206_v20, %v2205_v30 }
 0x141   : > { %v2031_v24 = vrot.slane %v17290_v5, 4  ;;  %881 = vst [vmem:[#allocation2 + $0xa0] sm:$0xff] %v831_v50  ;;  %v17302_v31 = vadd.f32 %v17094_v4, %v695_v15  ;;  %v1292_v57 = vpop.f32.mrf.mxu1  ;;  %v17306_v26 = vmax.f32 %v828_v2, %v1625_v19  ;;  %v1932_v28 = vsel %vm1905_vm1, %v1929_v40, %v1931_v7  ;;  %v1675_v34 = vld [vmem:[#allocation2 + $0x219] sm:$0xff] }
 0x142   : > { %v17309_v29 = vpack.c.bf16 %v2256_v49, %v2255_v61  ;;  %v1576_v30 = vld [vmem:[#allocation2 + $0x220] sm:$0xff]  ;;  %1478 = vst [vmem:[#allocation2 + $0x230] sm:$0xff] %v1428_v8  ;;  %v1293_v39 = vadd.f32 %v17094_v4, %v1292_v57  ;;  %v14177_v41 = vpop.f32.mrf.mxu0  ;;  %v2207_v47 = vmax.f32 %v17192_v52, %v1932_v28  ;;  %v17313_v51 = vmax.f32 %v1575_v59, %v1675_v34 }
 0x143   : > { %v2032_v42 = vsel %vm1905_vm1, %v2029_v53, %v2031_v24  ;;  %v832_v18 = vmax.f32 %v17302_v31, 0.0  ;;  %v14293_v2 = vpop.f32.mrf.mxu1  ;;  %v1933_v56 = vrot.slane %v17306_v26, 4  ;;  %v17324_v4 = vld [vmem:[%s23177_s7] ss:$0 sm:$0xff] }
 0x144   : > { %v1429_v40 = vmax.f32 %v1293_v39, 0.0  ;;  %v700_v60 = vpop.f32.mrf.mxu0  ;;  %v1626_v61 = vld [vmem:[#allocation2 + $0x91] sm:$0xff]  ;;  %v2033_v62 = vrot.slane %v17313_v51, 4  ;;  %v2257_v20 = vmax.f32 %v17198_v63, %v2032_v42 }
 0x145   : > { %882 = vst [vmem:[#allocation2 + $0xa8] sm:$0xff] %v832_v18  ;;  %v17327_v52 = vadd.f32 %v17324_v4, %v700_v60  ;;  %v1297_v53 = vpop.f32.mrf.mxu1  ;;  %v17331_v59 = vmax.f32 %v829_v12, %v1626_v61  ;;  %v1934_v3 = vsel %vm1905_vm1, %v1931_v7, %v1933_v56  ;;  %v1577_v6 = vld [vmem:[#allocation2 + $0x228] sm:$0xff] }
 0x146   : > { %v1676_v43 = vld [vmem:[#allocation2 + $0x221] sm:$0xff]  ;;  %1479 = vst [vmem:[#allocation2 + $0x238] sm:$0xff] %v1429_v40  ;;  %v1298_v49 = vadd.f32 %v17324_v4, %v1297_v53  ;;  %v14180_v8 = vpop.f32.mrf.mxu0  ;;  %v2208_v15 = vmax.f32 %v17216_v21, %v1934_v3  ;;  %v2034_v19 = vsel %vm1905_vm1, %v2031_v24, %v2033_v62 }
 0x147   : > { %v17338_v57 = vmax.f32 %v1576_v30, %v1676_v43  ;;  %v833_v44 = vmax.f32 %v17327_v52, 0.0  ;;  %v14296_v12 = vpop.f32.mrf.mxu1  ;;  %v1935_v28 = vrot.slane %v17331_v59, 4  ;;  %v2258_v7 = vmax.f32 %v17221_v33, %v2034_v19 }
 0x148   : > { %v1430_v63 = vmax.f32 %v1298_v49, 0.0  ;;  %v703_v34 = vpop.f32.mrf.mxu0  ;;  %v1627_v39 = vld [vmem:[#allocation2 + $0x99] sm:$0xff]  ;;  %v17343_v41 = vpack.c.bf16 %v2208_v15, %v2207_v47 }
 0x149   : > { %23369 = vst [vmem:[#allocation4_spill] sm:$0xff] %v17338_v57  ;;  %883 = vst [vmem:[#allocation2 + $0xb0] sm:$0xff] %v833_v44  ;;  %v17348_v21 = vadd.f32 %v17324_v4, %v703_v34  ;;  %v1300_v24 = vpop.f32.mrf.mxu1  ;;  %v17352_v30 = vmax.f32 %v830_v38, %v1627_v39  ;;  %v1936_v42 = vsel %vm1905_vm1, %v1933_v56, %v1935_v28  ;;  %v1677_v33 = vld [vmem:[#allocation2 + $0x229] sm:$0xff]  ;;  %v2035_v3 = vrot.slane %v17338_v57, 4 }
 0x14a   : > { %v2400_v2 = vpack.c.bf16 %v2258_v7, %v2257_v20  ;;  %1480 = vst [vmem:[#allocation2 + $0x240] sm:$0xff] %v1430_v63  ;;  %v1301_v40 = vadd.f32 %v17324_v4, %v1300_v24  ;;  %v14181_v47 = vpop.f32.mrf.mxu0  ;;  %v2209_v60 = vmax.f32 %v17240_v48, %v1936_v42  ;;  %v1578_v61 = vld [vmem:[#allocation2 + $0x230] sm:$0xff]  ;;  %v17357_v53 = vmax.f32 %v1577_v6, %v1677_v33 }
 0x14b   : > { %v834_v43 = vmax.f32 %v17348_v21, 0.0  ;;  %v14297_v16 = vpop.f32.mrf.mxu1  ;;  %v1937_v38 = vrot.slane %v17352_v30, 4  ;;  %v2036_v15 = vsel %vm1905_vm1, %v2033_v62, %v2035_v3 }
 0x14c   : > { %23370 = vst [vmem:[#allocation5_spill] sm:$0xff] %v17357_v53  ;;  %13262 = vmatprep.subr.bf16.mxu1 %v2400_v2  ;;  %v1431_v56 = vmax.f32 %v1301_v40, 0.0  ;;  %v708_v20 = vpop.f32.mrf.mxu0  ;;  %v1628_v49 = vld [vmem:[#allocation2 + $0xa1] sm:$0xff]  ;;  %v2037_v8 = vrot.slane %v17357_v53, 4  ;;  %v2259_v34 = vmax.f32 %v17246_v0, %v2036_v15 }
 0x14d   : > { %884 = vst [vmem:[#allocation2 + $0xb8] sm:$0xff] %v834_v43  ;;  %v17367_v48 = vadd.f32 %v17324_v4, %v708_v20  ;;  %v1305_v6 = vpop.f32.mrf.mxu1  ;;  %v1938_v19 = vsel %vm1905_vm1, %v1935_v28, %v1937_v38  ;;  %v17372_v12 = vmax.f32 %v831_v50, %v1628_v49  ;;  %v1579_v7 = vld [vmem:[#allocation2 + $0x238] sm:$0xff] }
 0x14e   : > { %v1678_v63 = vld [vmem:[#allocation2 + $0x231] sm:$0xff]  ;;  %1481 = vst [vmem:[#allocation2 + $0x248] sm:$0xff] %v1431_v56  ;;  %v1306_v62 = vadd.f32 %v17324_v4, %v1305_v6  ;;  %v14184_v39 = vpop.f32.mrf.mxu0  ;;  %v2210_v24 = vmax.f32 %v17262_v22, %v1938_v19  ;;  %v2038_v2 = vsel %vm1905_vm1, %v2035_v3, %v2037_v8 }
 0x14f   : > { %v17377_v42 = vmax.f32 %v1578_v61, %v1678_v63  ;;  %v835_v28 = vmax.f32 %v17367_v48, 0.0  ;;  %v14300_v33 = vpop.f32.mrf.mxu1  ;;  %v1939_v14 = vrot.slane %v17372_v12, 4  ;;  %v2260_v50 = vmax.f32 %v17269_v55, %v2038_v2 }
 0x150   : > { %v1432_v40 = vmax.f32 %v1306_v62, 0.0  ;;  %v711_v47 = vpop.f32.mrf.mxu0  ;;  %v17383_v0 = vpack.c.bf16 %v2210_v24, %v2209_v60  ;;  %v1629_v16 = vld [vmem:[#allocation2 + $0xa9] sm:$0xff] }
 0x151   : > { %23371 = vst [vmem:[#allocation6_spill] sm:$0xff] %v17377_v42  ;;  %885 = vst [vmem:[#allocation2 + $0xc0] sm:$0xff] %v835_v28  ;;  %v17388_v22 = vadd.f32 %v17324_v4, %v711_v47  ;;  %v1308_v61 = vpop.f32.mrf.mxu1  ;;  %v17392_v3 = vmax.f32 %v832_v18, %v1629_v16  ;;  %v1940_v56 = vsel %vm1905_vm1, %v1937_v38, %v1939_v14  ;;  %v1679_v20 = vld [vmem:[#allocation2 + $0x239] sm:$0xff]  ;;  %v2039_v55 = vrot.slane %v17377_v42, 4 }
 0x152   : > { %1482 = vst [vmem:[#allocation2 + $0x250] sm:$0xff] %v1432_v40  ;;  %v1309_v60 = vadd.f32 %v17324_v4, %v1308_v61  ;;  %v14185_v49 = vpop.f32.mrf.mxu0  ;;  %v2211_v15 = vmax.f32 %v17284_v54, %v1940_v56  ;;  %v17398_v6 = vmax.f32 %v1579_v7, %v1679_v20  ;;  %v17400_v19 = vpack.c.bf16 %v2260_v50, %v2259_v34 }
 0x153   : > { %v836_v63 = vmax.f32 %v17388_v22, 0.0  ;;  %v14301_v31 = vpop.f32.mrf.mxu1  ;;  %v1941_v18 = vrot.slane %v17392_v3, 4  ;;  %v2040_v38 = vsel %vm1905_vm1, %v2037_v8, %v2039_v55 }
 0x154   : > { %23372 = vst [vmem:[#allocation7_spill] sm:$0xff] %v17398_v6  ;;  %23373 = vst [vmem:[#allocation8_spill] sm:$0xff] %v17400_v19  ;;  %v1433_v62 = vmax.f32 %v1309_v60, 0.0  ;;  %v716_v39 = vpop.f32.mrf.mxu0  ;;  %v1630_v24 = vld [vmem:[#allocation2 + $0xb1] sm:$0xff]  ;;  %v23181_v2 = vrot.slane %v17398_v6, 4  ;;  %v2261_v50 = vmax.f32 %v17290_v5, %v2040_v38 }
 0x155   : > { %886 = vst [vmem:[#allocation2 + $0xc8] sm:$0xff] %v836_v63  ;;  %v17407_v33 = vadd.f32 %v17324_v4, %v716_v39  ;;  %v1313_v54 = vpop.f32.mrf.mxu1  ;;  %v17411_v7 = vmax.f32 %v833_v44, %v1630_v24  ;;  %v1942_v34 = vsel %vm1905_vm1, %v1939_v14, %v1941_v18 }
 0x156   : > { %1483 = vst [vmem:[#allocation2 + $0x258] sm:$0xff] %v1433_v62  ;;  %v1314_v8 = vadd.f32 %v17324_v4, %v1313_v54  ;;  %v14188_v40 = vpop.f32.mrf.mxu0  ;;  %v2212_v47 = vmax.f32 %v17306_v26, %v1942_v34  ;;  %v2042_v16 = vsel %vm1905_vm1, %v2039_v55, %v23181_v2 }
 0x157   : > { %v837_v22 = vmax.f32 %v17407_v33, 0.0  ;;  %v14304_v61 = vpop.f32.mrf.mxu1  ;;  %v1943_v52 = vrot.slane %v17411_v7, 4  ;;  %v2262_v44 = vmax.f32 %v17313_v51, %v2042_v16 }
 0x158   : > { %v1434_v14 = vmax.f32 %v1314_v8, 0.0  ;;  %v719_v56 = vpop.f32.mrf.mxu0  ;;  %v1631_v5 = vld [vmem:[#allocation2 + $0xb9] sm:$0xff]  ;;  %v17423_v20 = vpack.c.bf16 %v2212_v47, %v2211_v15 }
 0x159   : > { %887 = vst [vmem:[#allocation2 + $0xd0] sm:$0xff] %v837_v22  ;;  %v17426_v60 = vadd.f32 %v17324_v4, %v719_v56  ;;  %v1316_v26 = vpop.f32.mrf.mxu1  ;;  %v17430_v55 = vmax.f32 %v834_v43, %v1631_v5  ;;  %v1944_v49 = vsel %vm1905_vm1, %v1941_v18, %v1943_v52  ;;  %v17433_v31 = vpack.c.bf16 %v2262_v44, %v2261_v50 }
 0x15a   : > { %1484 = vst [vmem:[#allocation2 + $0x260] sm:$0xff] %v1434_v14  ;;  %v1317_v51 = vadd.f32 %v17324_v4, %v1316_v26  ;;  %v14189_v38 = vpop.f32.mrf.mxu0  ;;  %v2213_v15 = vmax.f32 %v17331_v59, %v1944_v49 }
 0x15b   : > { %23374 = vst [vmem:[#allocation9_spill] sm:$0xff] %v17433_v31  ;;  %v838_v62 = vmax.f32 %v17426_v60, 0.0  ;;  %v14305_v39 = vpop.f32.mrf.mxu1  ;;  %v1945_v24 = vrot.slane %v17430_v55, 4  ;;  %v1561_v31 = vld [vmem:[#allocation2 + $0x1a8] sm:$0xff] }
 0x15c   : > { %v1435_v33 = vmax.f32 %v1317_v51, 0.0  ;;  %v724_v54 = vpop.f32.mrf.mxu0  ;;  %v1632_v21 = vld [vmem:[#allocation2 + $0xc1] sm:$0xff] }
 0x15d   : > { %888 = vst [vmem:[#allocation2 + $0xd8] sm:$0xff] %v838_v62  ;;  %v17440_v43 = vadd.f32 %v17324_v4, %v724_v54  ;;  %v1321_v18 = vpop.f32.mrf.mxu1  ;;  %v17444_v34 = vmax.f32 %v835_v28, %v1632_v21  ;;  %v1946_v50 = vsel %vm1905_vm1, %v1943_v52, %v1945_v24 }
 0x15e   : > { %1485 = vst [vmem:[#allocation2 + $0x268] sm:$0xff] %v1435_v33  ;;  %v1322_v59 = vadd.f32 %v17324_v4, %v1321_v18  ;;  %v14192_v8 = vpop.f32.mrf.mxu0  ;;  %v2214_v40 = vmax.f32 %v17352_v30, %v1946_v50 }
 0x15f   : > { %v839_v47 = vmax.f32 %v17440_v43, 0.0  ;;  %v14308_v16 = vpop.f32.mrf.mxu1  ;;  %v1947_v61 = vrot.slane %v17444_v34, 4 }
 0x160   : > { %v1436_v44 = vmax.f32 %v1322_v59, 0.0  ;;  %v727_v14 = vpop.f32.mrf.mxu0  ;;  %v1633_v56 = vld [vmem:[#allocation2 + $0xc9] sm:$0xff]  ;;  %v17451_v5 = vpack.c.bf16 %v2214_v40, %v2213_v15 }
 0x161   : > { %889 = vst [vmem:[#allocation2 + $0xe0] sm:$0xff] %v839_v47  ;;  %v17454_v48 = vadd.f32 %v17324_v4, %v727_v14  ;;  %v1324_v28 = vpop.f32.mrf.mxu1  ;;  %v17456_v52 = vmax.f32 %v836_v63, %v1633_v56  ;;  %v1948_v60 = vsel %vm1905_vm1, %v1945_v24, %v1947_v61  ;;  %v16308_v59 = vld [vmem:[%s23172_s2 + $0xc] ss:$24 sps:$4 sm:$0xff]  }
 0x162   : > { %1486 = vst [vmem:[#allocation2 + $0x270] sm:$0xff] %v1436_v44  ;;  %v1325_v30 = vadd.f32 %v17324_v4, %v1324_v28  ;;  %v14193_v26 = vpop.f32.mrf.mxu0  ;;  %v2215_v49 = vmax.f32 %v17372_v12, %v1948_v60  ;;  %2976 = vmatprep.mubr.bf16.mxu1 %v16308_v59 }
 0x163   : > { %v840_v51 = vmax.f32 %v17454_v48, 0.0  ;;  %v14309_v38 = vpop.f32.mrf.mxu1  ;;  %v1949_v15 = vrot.slane %v17456_v52, 4 }
 0x164   : > { %v1437_v39 = vmax.f32 %v1325_v30, 0.0  ;;  %v732_v33 = vpop.f32.mrf.mxu0  ;;  %v1634_v54 = vld [vmem:[#allocation2 + $0xd1] sm:$0xff] }
 0x165   : > { %890 = vst [vmem:[#allocation2 + $0xe8] sm:$0xff] %v840_v51  ;;  %v17464_v63 = vadd.f32 %v17324_v4, %v732_v33  ;;  %v1329_v21 = vpop.f32.mrf.mxu1  ;;  %v17466_v24 = vmax.f32 %v837_v22, %v1634_v54  ;;  %v1950_v43 = vsel %vm1905_vm1, %v1947_v61, %v1949_v15 }
 0x166   : > { %1487 = vst [vmem:[#allocation2 + $0x278] sm:$0xff] %v1437_v39  ;;  %v1330_v12 = vadd.f32 %v17324_v4, %v1329_v21  ;;  %v14196_v18 = vpop.f32.mrf.mxu0  ;;  %v2216_v50 = vmax.f32 %v17392_v3, %v1950_v43 }
 0x167   : > { %v841_v8 = vmax.f32 %v17464_v63, 0.0  ;;  %v14312_v40 = vpop.f32.mrf.mxu1  ;;  %v1951_v16 = vrot.slane %v17466_v24, 4 }
 0x168   : > { %v1438_v44 = vmax.f32 %v1330_v12, 0.0  ;;  %v735_v22 = vpop.f32.mrf.mxu0  ;;  %v1635_v14 = vld [vmem:[#allocation2 + $0xd9] sm:$0xff]  ;;  %v17476_v56 = vpack.c.bf16 %v2216_v50, %v2215_v49 }
 0x169   : > { %891 = vst [vmem:[#allocation2 + $0xf0] sm:$0xff] %v841_v8  ;;  %v17481_v3 = vadd.f32 %v17324_v4, %v735_v22  ;;  %v1332_v61 = vpop.f32.mrf.mxu1  ;;  %v17483_v48 = vmax.f32 %v838_v62, %v1635_v14  ;;  %v1952_v28 = vsel %vm1905_vm1, %v1949_v15, %v1951_v16 }
 0x16a   : > { %1488 = vst [vmem:[#allocation2 + $0x280] sm:$0xff] %v1438_v44  ;;  %v1333_v60 = vadd.f32 %v17324_v4, %v1332_v61  ;;  %v14197_v30 = vpop.f32.mrf.mxu0  ;;  %v2217_v26 = vmax.f32 %v17411_v7, %v1952_v28 }
 0x16b   : > { %v842_v49 = vmax.f32 %v17481_v3, 0.0  ;;  %v14313_v38 = vpop.f32.mrf.mxu1  ;;  %v1953_v39 = vrot.slane %v17483_v48, 4 }
 0x16c   : > { %v1439_v33 = vmax.f32 %v1333_v60, 0.0  ;;  %v740_v54 = vpop.f32.mrf.mxu0  ;;  %v1636_v21 = vld [vmem:[#allocation2 + $0xe1] sm:$0xff] }
 0x16d   : > { %892 = vst [vmem:[#allocation2 + $0xf8] sm:$0xff] %v842_v49  ;;  %v17493_v62 = vadd.f32 %v17324_v4, %v740_v54  ;;  %v1337_v15 = vpop.f32.mrf.mxu1  ;;  %v17495_v43 = vmax.f32 %v839_v47, %v1636_v21  ;;  %v1954_v12 = vsel %vm1905_vm1, %v1951_v16, %v1953_v39 }
 0x16e   : > { %1489 = vst [vmem:[#allocation2 + $0x288] sm:$0xff] %v1439_v33  ;;  %v1338_v7 = vadd.f32 %v17324_v4, %v1337_v15  ;;  %v14200_v18 = vpop.f32.mrf.mxu0  ;;  %v2218_v50 = vmax.f32 %v17430_v55, %v1954_v12 }
 0x16f   : > { %v843_v59 = vmax.f32 %v17493_v62, 0.0  ;;  %v14316_v40 = vpop.f32.mrf.mxu1  ;;  %v1955_v44 = vrot.slane %v17495_v43, 4 }
 0x170   : > { %v1440_v22 = vmax.f32 %v1338_v7, 0.0  ;;  %v743_v14 = vpop.f32.mrf.mxu0  ;;  %v1637_v61 = vld [vmem:[#allocation2 + $0xe9] sm:$0xff]  ;;  %v17502_v28 = vpack.c.bf16 %v2218_v50, %v2217_v26 }
 0x171   : > { %893 = vst [vmem:[#allocation2 + $0x100] sm:$0xff] %v843_v59  ;;  %v744_v47 = vadd.f32 %v17324_v4, %v743_v14  ;;  %v1340_v16 = vpop.f32.mrf.mxu1  ;;  %v17507_v60 = vmax.f32 %v840_v51, %v1637_v61  ;;  %v1956_v21 = vsel %vm1905_vm1, %v1953_v39, %v1955_v44 }
 0x172   : > { %1490 = vst [vmem:[#allocation2 + $0x290] sm:$0xff] %v1440_v22  ;;  %v1341_v55 = vadd.f32 %v17324_v4, %v1340_v16  ;;  %v14201_v30 = vpop.f32.mrf.mxu0  ;;  %v2219_v40 = vmax.f32 %v17444_v34, %v1956_v21 }
 0x173   : > { %v844_v38 = vmax.f32 %v744_v47, 0.0  ;;  %v14317_v33 = vpop.f32.mrf.mxu1  ;;  %v23184_v54 = vrot.slane %v17507_v60, 4 }
 0x174   : > { %v1441_v26 = vmax.f32 %v1341_v55, 0.0  ;;  %v748_v15 = vpop.f32.mrf.mxu0  ;;  %v1638_v1 = vld [vmem:[#allocation2 + $0xf1] sm:$0xff] }
 0x175   : > { %894 = vst [vmem:[#allocation2 + $0x108] sm:$0xff] %v844_v38  ;;  %v749_v12 = vadd.f32 %v17324_v4, %v748_v15  ;;  %v1345_v7 = vpop.f32.mrf.mxu1  ;;  %v1958_v51 = vsel %vm1905_vm1, %v1955_v44, %v23184_v54 }
 0x176   : > { %1491 = vst [vmem:[#allocation2 + $0x298] sm:$0xff] %v1441_v26  ;;  %v1346_v18 = vadd.f32 %v17324_v4, %v1345_v7  ;;  %v14204_v50 = vpop.f32.mrf.mxu0  ;;  %v2220_v22 = vmax.f32 %v17456_v52, %v1958_v51 }
 0x177   : > { %v845_v14 = vmax.f32 %v749_v12, 0.0  ;;  %v14320_v39 = vpop.f32.mrf.mxu1 }
 0x178   : > { %v1442_v61 = vmax.f32 %v1346_v18, 0.0  ;;  %v751_v47 = vpop.f32.mrf.mxu0  ;;  %v17519_v16 = vpack.c.bf16 %v2220_v22, %v2219_v40 }
 0x179   : > { %895 = vst [vmem:[#allocation2 + $0x110] sm:$0xff] %v845_v14  ;;  %v752_v55 = vadd.f32 %v17324_v4, %v751_v47  ;;  %v1348_v30 = vpop.f32.mrf.mxu1 }
 0x17a   : > { %1492 = vst [vmem:[#allocation2 + $0x2a0] sm:$0xff] %v1442_v61  ;;  %v1349_v44 = vadd.f32 %v17324_v4, %v1348_v30  ;;  %v14205_v33 = vpop.f32.mrf.mxu0  ;;  %v1558_v30 = vld [vmem:[#allocation2 + $0x190] sm:$0xff] }
 0x17b   : > { %v846_v26 = vmax.f32 %v752_v55, 0.0  ;;  %v14321_v15 = vpop.f32.mrf.mxu1 }
 0x17c   : > { %v1443_v7 = vmax.f32 %v1349_v44, 0.0  ;;  %v756_v34 = vpop.f32.mrf.mxu0  ;;  %v1640_v15 = vld [vmem:[#allocation2 + $0x101] sm:$0xff] }
 0x17d   : > { %896 = vst [vmem:[#allocation2 + $0x118] sm:$0xff] %v846_v26  ;;  %v757_v52 = vadd.f32 %v17324_v4, %v756_v34  ;;  %v1353_v21 = vpop.f32.mrf.mxu1 }
 0x17e   : > { %1493 = vst [vmem:[#allocation2 + $0x2a8] sm:$0xff] %v1443_v7  ;;  %v1354_v12 = vadd.f32 %v17324_v4, %v1353_v21  ;;  %v14208_v51 = vpop.f32.mrf.mxu0  ;;  %v1658_v7 = vld [vmem:[#allocation2 + $0x191] sm:$0xff] }
 0x17f   : > { %v847_v18 = vmax.f32 %v757_v52, 0.0  ;;  %v14324_v50 = vpop.f32.mrf.mxu1  ;;  %v1639_v52 = vld [vmem:[#allocation2 + $0xf9] sm:$0xff] }
 0x180   : > { %v1444_v40 = vmax.f32 %v1354_v12, 0.0  ;;  %v759_v22 = vpop.f32.mrf.mxu0  ;;  %v1641_v39 = vld [vmem:[#allocation2 + $0x109] sm:$0xff] }
 0x181   : > { %897 = vst [vmem:[#allocation2 + $0x120] sm:$0xff] %v847_v18  ;;  %v760_v61 = vadd.f32 %v17324_v4, %v759_v22  ;;  %v1356_v47 = vpop.f32.mrf.mxu1  ;;  %v17526_v55 = vmax.f32 %v844_v38, %v1641_v39  ;;  %v17535_v39 = vmax.f32 %v843_v59, %v1640_v15  ;;  %v1738_v59 = vmax.f32 %v841_v8, %v1638_v1 }
 0x182   : > { %1494 = vst [vmem:[#allocation2 + $0x2b0] sm:$0xff] %v1444_v40  ;;  %v1357_v44 = vadd.f32 %v17324_v4, %v1356_v47  ;;  %v14209_v33 = vpop.f32.mrf.mxu0  ;;  %v1559_v47 = vld [vmem:[#allocation2 + $0x198] sm:$0xff] }
 0x183   : > { %v848_v34 = vmax.f32 %v760_v61, 0.0  ;;  %v14325_v21 = vpop.f32.mrf.mxu1  ;;  %v1965_v40 = vrot.slane %v17526_v55, 4  ;;  %v1659_v61 = vld [vmem:[#allocation2 + $0x199] sm:$0xff] }
 0x184   : > { %v1445_v51 = vmax.f32 %v1357_v44, 0.0  ;;  %v764_v12 = vpop.f32.mrf.mxu0  ;;  %v1642_v50 = vld [vmem:[#allocation2 + $0x111] sm:$0xff]  ;;  %v17540_v21 = vmax.f32 %v1558_v30, %v1658_v7  ;;  %v17545_v15 = vmax.f32 %v1559_v47, %v1659_v61  ;;  %v1560_v30 = vld [vmem:[#allocation2 + $0x1a0] sm:$0xff] }
 0x185   : > { %898 = vst [vmem:[#allocation2 + $0x128] sm:$0xff] %v848_v34  ;;  %v765_v18 = vadd.f32 %v17324_v4, %v764_v12  ;;  %v1361_v22 = vpop.f32.mrf.mxu1  ;;  %v17530_v38 = vmax.f32 %v845_v14, %v1642_v50  ;;  %v1739_v34 = vmax.f32 %v842_v49, %v1639_v52  ;;  %v1963_v49 = vrot.slane %v17535_v39, 4  ;;  %v1660_v7 = vld [vmem:[#allocation2 + $0x1a1] sm:$0xff] }
 0x186   : > { %1495 = vst [vmem:[#allocation2 + $0x2b8] sm:$0xff] %v1445_v51  ;;  %v1362_v44 = vadd.f32 %v17324_v4, %v1361_v22  ;;  %v14212_v33 = vpop.f32.mrf.mxu0  ;;  %23375 = vst [vmem:[#allocation10_spill] sm:$0xff] %v17545_v15 }
 0x187   : > { %v849_v12 = vmax.f32 %v765_v18, 0.0  ;;  %v14328_v14 = vpop.f32.mrf.mxu1  ;;  %v1967_v50 = vrot.slane %v17530_v38, 4 }
 0x188   : > { %v1446_v2 = vmax.f32 %v1362_v44, 0.0  ;;  %v767_v17 = vpop.f32.mrf.mxu0  ;;  %v1643_v62 = vld [vmem:[#allocation2 + $0x119] sm:$0xff]  ;;  %v1961_v44 = vrot.slane %v1739_v34, 4 }
 0x189   : > { %899 = vst [vmem:[#allocation2 + $0x130] sm:$0xff] %v849_v12  ;;  %v768_v51 = vadd.f32 %v17324_v4, %v767_v17  ;;  %v1364_v22 = vpop.f32.mrf.mxu1  ;;  %v17548_v3 = vmax.f32 %v846_v26, %v1643_v62  ;;  %v1968_v47 = vsel %vm1905_vm1, %v1965_v40, %v1967_v50  ;;  %v1966_v26 = vsel %vm1905_vm1, %v1963_v49, %v1965_v40  ;;  %v1544_v62 = vld [vmem:[#allocation2 + $0x120] sm:$0xff] }
 0x18a   : > { %1496 = vst [vmem:[#allocation2 + $0x2c0] sm:$0xff] %v1446_v2  ;;  %v1365_v52 = vadd.f32 %v17324_v4, %v1364_v22  ;;  %v14213_v18 = vpop.f32.mrf.mxu0  ;;  %v1959_v12 = vrot.slane %v1738_v59, 4  ;;  %v17557_v2 = vmax.f32 %v1560_v30, %v1660_v7  ;;  %v1964_v58 = vsel %vm1905_vm1, %v1961_v44, %v1963_v49 }
 0x18b   : > { %v850_v1 = vmax.f32 %v768_v51, 0.0  ;;  %v14329_v8 = vpop.f32.mrf.mxu1  ;;  %v1969_v17 = vrot.slane %v17548_v3, 4  ;;  %v2225_v54 = vmax.f32 %v1738_v59, %v1968_v47  ;;  %v2224_v30 = vmax.f32 %v17507_v60, %v1966_v26  ;;  %v1511_v26 = vld [vmem:[#allocation2 + $0x18] sm:$0xff] }
 0x18c   : > { %v1447_v61 = vmax.f32 %v1365_v52, 0.0  ;;  %v772_v33 = vpop.f32.mrf.mxu0  ;;  %23376 = vst [vmem:[#allocation11_spill] sm:$0xff] %v17557_v2  ;;  %v1644_v22 = vld [vmem:[#allocation2 + $0x121] sm:$0xff] }
 0x18d   : > { %900 = vst [vmem:[#allocation2 + $0x138] sm:$0xff] %v850_v1  ;;  %v773_v18 = vadd.f32 %v17324_v4, %v772_v33  ;;  %v1369_v51 = vpop.f32.mrf.mxu1  ;;  %v1970_v8 = vsel %vm1905_vm1, %v1967_v50, %v1969_v17  ;;  %v17562_v63 = vmax.f32 %v1544_v62, %v1644_v22  ;;  %v1962_v1 = vsel %vm1905_vm1, %v1959_v12, %v1961_v44  ;;  %v1611_v33 = vld [vmem:[#allocation2 + $0x19] sm:$0xff] }
 0x18e   : > { %1497 = vst [vmem:[#allocation2 + $0x2c8] sm:$0xff] %v1447_v61  ;;  %v1370_v40 = vadd.f32 %v17324_v4, %v1369_v51  ;;  %v14216_v52 = vpop.f32.mrf.mxu0  ;;  %v2226_v14 = vmax.f32 %v1739_v34, %v1970_v8  ;;  %v2223_v61 = vmax.f32 %v17495_v43, %v1964_v58  ;;  %v1545_v51 = vld [vmem:[#allocation2 + $0x128] sm:$0xff] }
 0x18f   : > { %23377 = vst [vmem:[#allocation12_spill] sm:$0xff] %v17562_v63  ;;  %v851_v7 = vmax.f32 %v773_v18, 0.0  ;;  %v14332_v19 = vpop.f32.mrf.mxu1  ;;  %v1971_v50 = vrot.slane %v17562_v63, 4  ;;  %v1562_v18 = vld [vmem:[#allocation2 + $0x1b0] sm:$0xff]  ;;  %v2222_v52 = vmax.f32 %v17483_v48, %v1962_v1 }
 0x190   : > { %v1448_v53 = vmax.f32 %v1370_v40, 0.0  ;;  %v775_v49 = vpop.f32.mrf.mxu0  ;;  %v2384_v62 = vpack.c.bf16 %v2226_v14, %v2225_v54  ;;  %v1645_v59 = vld [vmem:[#allocation2 + $0x129] sm:$0xff]  ;;  %v23378_v19 = vrot.slane %v17507_v60, 4  ;;  %v2383_v14 = vpack.c.bf16 %v2224_v30, %v2223_v61  ;;  %v1564_v30 = vld [vmem:[#allocation2 + $0x1c0] sm:$0xff] }
 0x191   : > { %901 = vst [vmem:[#allocation2 + $0x140] sm:$0xff] %v851_v7  ;;  %v776_v34 = vadd.f32 %v17324_v4, %v775_v49  ;;  %v1372_v47 = vpop.f32.mrf.mxu1  ;;  %v1661_v8 = vld [vmem:[#allocation2 + $0x1a9] sm:$0xff]  ;;  %v17574_v40 = vmax.f32 %v1545_v51, %v1645_v59  ;;  %v1972_v54 = vsel %vm1905_vm1, %v1969_v17, %v1971_v50  ;;  %v1662_v7 = vld [vmem:[#allocation2 + $0x1b1] sm:$0xff]  ;;  %v1596_v2 = vld [vmem:[#allocation2 + $0x2c0] sm:$0xff] }
 0x192   : > { %v1960_v44 = vsel %vm1905_vm1, %v23378_v19, %v1959_v12  ;;  %1498 = vst [vmem:[#allocation2 + $0x2d0] sm:$0xff] %v1448_v53  ;;  %v1373_v58 = vadd.f32 %v17324_v4, %v1372_v47  ;;  %v14217_v43 = vpop.f32.mrf.mxu0  ;;  %13168 = vmatprep.subr.bf16.mxu0 %v2384_v62  ;;  %v1546_v49 = vld [vmem:[#allocation2 + $0x130] sm:$0xff]  ;;  %v2227_v60 = vmax.f32 %v17535_v39, %v1972_v54  ;;  %v1563_v62 = vld [vmem:[#allocation2 + $0x1b8] sm:$0xff]  ;;  %v1664_v54 = vld [vmem:[#allocation2 + $0x1c1] sm:$0xff] }
 0x193   : > { %23379 = vst [vmem:[#allocation13_spill] sm:$0xff] %v17574_v40  ;;  %v852_v12 = vmax.f32 %v776_v34, 0.0  ;;  %v14333_v19 = vpop.f32.mrf.mxu1  ;;  %13169 = vmatpush3.bf16.msra.mxu0 %v17383_v0  ;;  %v1973_v51 = vrot.slane %v17574_v40, 4  ;;  %v2221_v53 = vmax.f32 %v17466_v24, %v1960_v44  ;;  %v17583_v47 = vmax.f32 %v1511_v26, %v1611_v33  ;;  %v17591_v34 = vld [vmem:[#allocation2 + $0x1] sm:$0xff]  ;;  %v1590_v40 = vld [vmem:[#allocation2 + $0x290] sm:$0xff] }
 0x194   : > { %v1449_v59 = vmax.f32 %v1373_v58, 0.0  ;;  %v780_v17 = vpop.f32.mrf.mxu0  ;;  %13170 = vmatprep.subr.bf16.mxu0 %v2383_v14  ;;  %v1646_v48 = vld [vmem:[#allocation2 + $0x131] sm:$0xff]  ;;  %v17585_v1 = vmax.f32 %v1561_v31, %v1661_v8  ;;  %v1907_v0 = vrot.slane %v17149_v10, 4  ;;  %v1663_v58 = vld [vmem:[#allocation2 + $0x1b9] sm:$0xff]  ;;  %v17599_v8 = vmax.f32 %v1562_v18, %v1662_v7 }
 0x195   : > { %902 = vst [vmem:[#allocation2 + $0x148] sm:$0xff] %v852_v12  ;;  %v17588_v39 = vadd.f32 %v17324_v4, %v780_v17  ;;  %v1377_v61 = vpop.f32.mrf.mxu1  ;;  %v1547_v43 = vld [vmem:[#allocation2 + $0x138] sm:$0xff]  ;;  %v17593_v24 = vmax.f32 %v1546_v49, %v1646_v48  ;;  %v1974_v33 = vsel %vm1905_vm1, %v1971_v50, %v1973_v51  ;;  %v2382_v26 = vpack.c.bf16 %v2222_v52, %v2221_v53  ;;  %v1609_v17 = vld [vmem:[#allocation2 + $0x9] sm:$0xff]  ;;  %v1508_v53 = vld [vmem:[#allocation2] sm:$0xff] }
 0x196   : > { %23380 = vst [vmem:[#allocation14_spill] sm:$0xff] %v17585_v1  ;;  %1499 = vst [vmem:[#allocation2 + $0x2d8] sm:$0xff] %v1449_v59  ;;  %v17597_v31 = vadd.f32 %v17324_v4, %v1377_v61  ;;  %v14220_v44 = vpop.f32.mrf.mxu0  ;;  %v2228_v14 = vmax.f32 %v17526_v55, %v1974_v33  ;;  %v23189_v59 = vrot.slane %v17151_v11, 4  ;;  %v17607_v48 = vmax.f32 %v1563_v62, %v1663_v58  ;;  %v1509_v61 = vld [vmem:[#allocation2 + $0x8] sm:$0xff] }
 0x197   : > { %23381 = vst [vmem:[#allocation15_spill] sm:$0xff] %v17593_v24  ;;  %v23187_v10 = vmax.f32 %v17588_v39, 0.0  ;;  %v14336_v12 = vpop.f32.mrf.mxu1  ;;  %13171 = vmatpush3.bf16.msra.mxu0 %v17343_v41  ;;  %v1975_v49 = vrot.slane %v17593_v24, 4  ;;  %v1906_v7 = vrot.slane %v17583_v47, 4  ;;  %v17617_v33 = vmax.f32 %v1564_v30, %v1664_v54 }
 0x198   : > { %v23186_v19 = vmax.f32 %v17597_v31, 0.0  ;;  %v783_v50 = vpop.f32.mrf.mxu0  ;;  %13172 = vmatprep.subr.bf16.mxu0 %v2382_v26  ;;  %v1647_v18 = vld [vmem:[#allocation2 + $0x139] sm:$0xff]  ;;  %v17609_v52 = vpack.c.bf16 %v2228_v14, %v2227_v60  ;;  %v1708_v58 = vmax.f32 %v1508_v53, %v17591_v34  ;;  %v1565_v26 = vld [vmem:[#allocation2 + $0x1c8] sm:$0xff]  ;;  %v2007_v30 = vrot.slane %v17599_v8, 4  ;;  %v17640_v34 = vld [vmem:[#allocation2 + $0x11] sm:$0xff] }
 0x199   : > { %903 = vst [vmem:[#allocation2 + $0x150] sm:$0xff] %v23187_v10  ;;  %v17614_v55 = vadd.f32 %v17324_v4, %v783_v50  ;;  %v1380_v41 = vpop.f32.mrf.mxu1  ;;  %v17619_v44 = vmax.f32 %v1547_v43, %v1647_v18  ;;  %v17626_v60 = vld [vmem:[%s23177_s7] ss:$0 sm:$0xff]  ;;  %v1665_v14 = vld [vmem:[#allocation2 + $0x1c9] sm:$0xff]  ;;  %v1709_v50 = vmax.f32 %v1509_v61, %v1609_v17  ;;  %v1908_v53 = vsel %vm1905_vm1, %v1906_v7, %v1907_v0  ;;  %v1680_v7 = vld [vmem:[#allocation2 + $0x241] sm:$0xff] }
 0x19a   : > { %23382 = vst [vmem:[#allocation16_spill] sm:$0xff] %v17609_v52  ;;  %1500 = vst [vmem:[#allocation2 + $0x2e0] sm:$0xff] %v23186_v19  ;;  %v17629_v4 = vadd.f32 %v17626_v60, %v1380_v41  ;;  %v14221_v62 = vpop.f32.mrf.mxu0  ;;  %v1976_v41 = vsel %vm1905_vm1, %v1973_v51, %v1975_v49  ;;  %v1911_v61 = vrot.slane %v17181_v32, 4  ;;  %v1580_v10 = vld [vmem:[#allocation2 + $0x240] sm:$0xff]  ;;  %v17662_v54 = vmax.f32 %v1565_v26, %v1665_v14  ;;  %v1581_v14 = vld [vmem:[#allocation2 + $0x248] sm:$0xff] }
 0x19b   : > { %23383 = vst [vmem:[#allocation17_spill] sm:$0xff] %v17619_v44  ;;  %v23188_v43 = vmax.f32 %v17614_v55, 0.0  ;;  %v14337_v12 = vpop.f32.mrf.mxu1  ;;  %13173 = vmatpush3.bf16.msra.mxu0 %v17296_v23  ;;  %v23190_v18 = vrot.slane %v17619_v44, 4  ;;  %v2009_v23 = vrot.slane %v17607_v48, 4  ;;  %v2229_v32 = vmax.f32 %v17530_v38, %v1976_v41  ;;  %v1597_v44 = vld [vmem:[#allocation2 + $0x2c8] sm:$0xff] }
 0x19c   : > { %v23191_v62 = vmax.f32 %v17629_v4, 0.0  ;;  %v788_v22 = vpop.f32.mrf.mxu0  ;;  %13174 = vmatprep.subr.bf16.mxu0 %v17519_v16  ;;  %v1910_v12 = vsel %vm1905_vm1, %v1907_v0, %v23189_v59  ;;  %v1510_v16 = vld [vmem:[#allocation2 + $0x10] sm:$0xff]  ;;  %v17683_v41 = vmax.f32 %v1708_v58, %v1908_v53  ;;  %v17695_v58 = vmax.f32 %v1580_v10, %v1680_v7 }
 0x19d   : > { %904 = vst [vmem:[#allocation2 + $0x158] sm:$0xff] %v23188_v43  ;;  %v17650_v51 = vadd.f32 %v17626_v60, %v788_v22  ;;  %v1385_v17 = vpop.f32.mrf.mxu1  ;;  %v1978_v0 = vsel %vm1905_vm1, %v1975_v49, %v23190_v18  ;;  %v1710_v49 = vmax.f32 %v1510_v16, %v17640_v34  ;;  %v17669_v18 = vmax.f32 %v1709_v50, %v1910_v12  ;;  %v1582_v50 = vld [vmem:[#allocation2 + $0x250] sm:$0xff] }
 0x19e   : > { %1501 = vst [vmem:[#allocation2 + $0x2e8] sm:$0xff] %v23191_v62  ;;  %v17660_v43 = vadd.f32 %v17626_v60, %v1385_v17  ;;  %v14224_v22 = vpop.f32.mrf.mxu0  ;;  %v2230_v59 = vmax.f32 %v17548_v3, %v1978_v0  ;;  %v23384_v62 = vrot.slane %v17545_v15, 4  ;;  %v23385_v17 = vrot.slane %v17540_v21, 4  ;;  %v1682_v34 = vld [vmem:[#allocation2 + $0x251] sm:$0xff]  ;;  %v1681_v12 = vld [vmem:[#allocation2 + $0x249] sm:$0xff]  ;;  %23389 = vst [vmem:[#allocation19_spill] sm:$0xff] %v17695_v58 }
 0x19f   : > { %v23192_v19 = vmax.f32 %v17650_v51, 0.0  ;;  %v14340_v52 = vpop.f32.mrf.mxu1  ;;  %13175 = vmatpush3.bf16.msra.mxu0 %v17252_v9  ;;  %v1584_v22 = vld [vmem:[#allocation2 + $0x260] sm:$0xff]  ;;  %v23390_v53 = vrot.slane %v17585_v1, 4  ;;  %v17710_v10 = vsel %vm1905_vm1, %v2007_v30, %v2009_v23  ;;  %v1686_v7 = vld [vmem:[#allocation2 + $0x271] sm:$0xff] }
 0x1a0   : > { %v17676_v26 = vsel %vm1905_vm1, %v23385_v17, %v23384_v62  ;;  %v23193_v38 = vmax.f32 %v17660_v43, 0.0  ;;  %v791_v3 = vpop.f32.mrf.mxu0  ;;  %13176 = vmatprep.subr.bf16.mxu0 %v17502_v28  ;;  %v23386_v52 = vrot.slane %v17130_v46, 4  ;;  %v17685_v16 = vpack.c.bf16 %v2230_v59, %v2229_v32  ;;  %v1583_v17 = vld [vmem:[#allocation2 + $0x258] sm:$0xff]  ;;  %23392 = vst [vmem:[#allocation21_spill] sm:$0xff] %v17710_v10 }
 0x1a1   : > { %905 = vst [vmem:[#allocation2 + $0x160] sm:$0xff] %v23192_v19  ;;  %v17690_v62 = vadd.f32 %v17626_v60, %v791_v3  ;;  %v1388_v0 = vpop.f32.mrf.mxu1  ;;  %v23388_v28 = vrot.slane %v17151_v11, 4  ;;  %v17700_v59 = vsel %vm1905_vm1, %v23390_v53, %v2007_v30  ;;  %v1685_v11 = vld [vmem:[#allocation2 + $0x269] sm:$0xff]  ;;  %v1588_v30 = vld [vmem:[#allocation2 + $0x280] sm:$0xff]  ;;  %v1698_v24 = vld [vmem:[#allocation2 + $0x2d1] sm:$0xff] }
 0x1a2   : > { %v1914_v9 = vsel %vm1905_vm1, %v1911_v61, %v23386_v52  ;;  %23387 = vst [vmem:[#allocation18_spill] sm:$0xff] %v17685_v16  ;;  %23391 = vst [vmem:[#allocation20_spill] sm:$0xff] %v17700_v59  ;;  %v17705_v32 = vadd.f32 %v17626_v60, %v1388_v0  ;;  %v14225_v3 = vpop.f32.mrf.mxu0  ;;  %v1684_v52 = vld [vmem:[#allocation2 + $0x261] sm:$0xff]  ;;  %v23393_v16 = vrot.slane %v17617_v33, 4  ;;  %v17725_v0 = vmax.f32 %v1581_v14, %v1681_v12 }
 0x1a3   : > { %v1912_v46 = vsel %vm1905_vm1, %v23388_v28, %v1911_v61  ;;  %1502 = vst [vmem:[#allocation2 + $0x2f0] sm:$0xff] %v23193_v38  ;;  %v2013_v61 = vrot.slane %v17662_v54, 4  ;;  %v1683_v28 = vld [vmem:[#allocation2 + $0x259] sm:$0xff]  ;;  %v14341_v53 = vpop.f32.mrf.mxu1  ;;  %13177 = vmatpush3.bf16.msra.mxu0 %v17202_v13  ;;  %v2198_v19 = vmax.f32 %v17583_v47, %v1914_v9  ;;  %v1586_v3 = vld [vmem:[#allocation2 + $0x270] sm:$0xff]  ;;  %v1585_v38 = vld [vmem:[#allocation2 + $0x268] sm:$0xff]  ;;  %v23396_v15 = vmax.f32 %v17690_v62, 0.0 }
 0x1a4   : > { %v17720_v57 = vsel %vm1905_vm1, %v2009_v23, %v23393_v16  ;;  %v796_v63 = vpop.f32.mrf.mxu0  ;;  %13178 = vmatprep.subr.bf16.mxu0 %v17476_v56  ;;  %v2197_v53 = vmax.f32 %v1710_v49, %v1912_v46  ;;  %v1587_v13 = vld [vmem:[#allocation2 + $0x278] sm:$0xff]  ;;  %23395 = vst [vmem:[#allocation23_spill] sm:$0xff] %v17725_v0  ;;  %v1688_v59 = vld [vmem:[#allocation2 + $0x281] sm:$0xff]  ;;  %v17733_v56 = vmax.f32 %v1582_v50, %v1682_v34  ;;  %v23397_v46 = vmax.f32 %v17705_v32, 0.0 }
 0x1a5   : > { %23394 = vst [vmem:[#allocation22_spill] sm:$0xff] %v17720_v57  ;;  %v1687_v47 = vld [vmem:[#allocation2 + $0x279] sm:$0xff]  ;;  %906 = vst [vmem:[#allocation2 + $0x168] sm:$0xff] %v23396_v15  ;;  %v17730_v10 = vadd.f32 %v17626_v60, %v796_v63  ;;  %v1393_v23 = vpop.f32.mrf.mxu1  ;;  %v1589_v15 = vld [vmem:[#allocation2 + $0x288] sm:$0xff]  ;;  %v17741_v9 = vmax.f32 %v1584_v22, %v1684_v52  ;;  %v17743_v63 = vmax.f32 %v1583_v17, %v1683_v28  ;;  %v23399_v22 = vmov %v23393_v16 }
 0x1a6   : > { %1503 = vst [vmem:[#allocation2 + $0x2f8] sm:$0xff] %v23397_v46  ;;  %v17739_v14 = vadd.f32 %v17626_v60, %v1393_v23  ;;  %v14228_v12 = vpop.f32.mrf.mxu0  ;;  %v2370_v49 = vpack.c.bf16 %v2198_v19, %v2197_v53  ;;  %v1689_v46 = vld [vmem:[#allocation2 + $0x289] sm:$0xff]  ;;  %v23398_v23 = vrot.slane %v17228_v36, 4  ;;  %v17757_v17 = vsel %vm1905_vm1, %v23399_v22, %v2013_v61  ;;  %v1691_v19 = vld [vmem:[#allocation2 + $0x299] sm:$0xff] }
 0x1a7   : > { %v23202_v50 = vmax.f32 %v17730_v10, 0.0  ;;  %v14344_v34 = vpop.f32.mrf.mxu1  ;;  %13179 = vmatpush3.bf16.msra.mxu0 %v17166_v27  ;;  %23400 = vst [vmem:[#allocation24_spill] sm:$0xff] %v17757_v17  ;;  %v1690_v27 = vld [vmem:[#allocation2 + $0x291] sm:$0xff]  ;;  %v17761_v53 = vmax.f32 %v1586_v3, %v1686_v7  ;;  %v17763_v16 = vmax.f32 %v1585_v38, %v1685_v11  ;;  %v17771_v52 = vmax.f32 %v1587_v13, %v1687_v47  ;;  %v1696_v47 = vld [vmem:[#allocation2 + $0x2c1] sm:$0xff]  ;;  %v1699_v17 = vld [vmem:[#allocation2 + $0x2d9] sm:$0xff] }
 0x1a8   : > { %v17752_v12 = vsel %vm1905_vm1, %v2013_v61, %v23398_v23  ;;  %v799_v28 = vpop.f32.mrf.mxu0  ;;  %13180 = vmatprep.subr.bf16.mxu0 %v17451_v5  ;;  %v1591_v34 = vld [vmem:[#allocation2 + $0x298] sm:$0xff]  ;;  %v17773_v57 = vmax.f32 %v1588_v30, %v1688_v59  ;;  %v1594_v7 = vld [vmem:[#allocation2 + $0x2b0] sm:$0xff]  ;;  %v23402_v11 = vmax.f32 %v17739_v14, 0.0  ;;  %v17786_v6 = vmax.f32 %v1589_v15, %v1689_v46 }
 0x1a9   : > { %907 = vst [vmem:[#allocation2 + $0x170] sm:$0xff] %v23202_v50  ;;  %v17769_v61 = vadd.f32 %v17626_v60, %v799_v28  ;;  %v1396_v22 = vpop.f32.mrf.mxu1  ;;  %v1595_v3 = vld [vmem:[#allocation2 + $0x2b8] sm:$0xff]  ;;  %v2249_v13 = vmax.f32 %v17599_v8, %v17752_v12  ;;  %v1598_v46 = vld [vmem:[#allocation2 + $0x2d0] sm:$0xff]  ;;  %v17821_v58 = vmax.f32 %v1596_v2, %v1696_v47  ;;  %v23411_v15 = vpack.c.bf16 %v17669_v18, %v17683_v41 }
 0x1aa   : > { %23401 = vst [vmem:[#allocation25_spill] sm:$0xff] %v17773_v57  ;;  %v1694_v38 = vld [vmem:[#allocation2 + $0x2b1] sm:$0xff]  ;;  %1504 = vst [vmem:[#allocation2 + $0x300] sm:$0xff] %v23402_v11  ;;  %v17779_v23 = vadd.f32 %v17626_v60, %v1396_v22  ;;  %v14229_v50 = vpop.f32.mrf.mxu0  ;;  %v1695_v59 = vld [vmem:[#allocation2 + $0x2b9] sm:$0xff]  ;;  %v23404_v22 = vrot.slane %v17231_v45, 4 }
 0x1ab   : > { %v14345_v42 = vpop.f32.mrf.mxu1  ;;  %13181 = vmatpush3.bf16.msra.mxu0 %v2370_v49  ;;  %23403 = vst [vmem:[#allocation26_spill] sm:$0xff] %v17786_v6  ;;  %v1548_v11 = vld [vmem:[#allocation2 + $0x140] sm:$0xff]  ;;  %v23405_v50 = vrot.slane %v17228_v36, 4  ;;  %v17800_v49 = vmax.f32 %v1590_v40, %v1690_v27  ;;  %v1697_v5 = vld [vmem:[#allocation2 + $0x2c9] sm:$0xff]  ;;  %v23407_v8 = vmax.f32 %v17769_v61, 0.0  ;;  %v17812_v27 = vmax.f32 %v1591_v34, %v1691_v19 }
 0x1ac   : > { %v804_v30 = vpop.f32.mrf.mxu0  ;;  %13182 = vmatprep.subr.bf16.mxu0 %v17423_v20  ;;  %v16267_v42 = vld [vmem:[%s23172_s2] ss:$24 sps:$4 sm:$0xff]   ;;  %v16270_v40 = vld [vmem:[%s23172_s2 + $0x34] ss:$24 sps:$4 sm:$0xff]   ;;  %v23409_v1 = vmax.f32 %v17779_v23, 0.0  ;;  %v17823_v0 = vmax.f32 %v1594_v7, %v1694_v38  ;;  %v17825_v25 = vmax.f32 %v1595_v3, %v1695_v59  ;;  %v2061_v36 = vrot.slane %v17786_v6, 4 }
 0x1ad   : > { %v2018_v28 = vsel %vm1905_vm1, %v23405_v50, %v23404_v22  ;;  %23406 = vst [vmem:[#allocation27_spill] sm:$0xff] %v17800_v49  ;;  %v1599_v22 = vld [vmem:[#allocation2 + $0x2d8] sm:$0xff]  ;;  %v1648_v50 = vld [vmem:[#allocation2 + $0x141] sm:$0xff]  ;;  %908 = vst [vmem:[#allocation2 + $0x178] sm:$0xff] %v23407_v8  ;;  %v17807_v12 = vadd.f32 %v17626_v60, %v804_v30  ;;  %v1401_v20 = vpop.f32.mrf.mxu1  ;;  %v2063_v47 = vrot.slane %v17800_v49, 4  ;;  %v17844_v18 = vmax.f32 %v1597_v44, %v1697_v5 }
 0x1ae   : > { %23408 = vst [vmem:[#allocation28_spill] sm:$0xff] %v17812_v27  ;;  %1505 = vst [vmem:[#allocation2 + $0x308] sm:$0xff] %v23409_v1  ;;  %v17819_v8 = vadd.f32 %v17626_v60, %v1401_v20  ;;  %v14232_v30 = vpop.f32.mrf.mxu0  ;;  %v23412_v1 = vrot.slane %v17274_v35, 4  ;;  %v23413_v20 = vrot.slane %v17231_v45, 4  ;;  %v2250_v7 = vmax.f32 %v17607_v48, %v2018_v28  ;;  %v1650_v59 = vld [vmem:[#allocation2 + $0x151] sm:$0xff] }
 0x1af   : > { %23410 = vst [vmem:[#allocation29_spill] sm:$0xff] %v17825_v25  ;;  %v23218_v34 = vmax.f32 %v17807_v12, 0.0  ;;  %v14348_v19 = vpop.f32.mrf.mxu1  ;;  %13183 = vmatpush3.bf16.msra.mxu0 %v23411_v15  ;;  %v17842_v30 = vmax.f32 %v1548_v11, %v1648_v50  ;;  %v23217_v48 = vrot.slane %v17812_v27, 4  ;;  %v17852_v28 = vmax.f32 %v1598_v46, %v1698_v24  ;;  %v1700_v24 = vld [vmem:[#allocation2 + $0x2e1] sm:$0xff] }
 0x1b0   : > { %v17837_v2 = vsel %vm1905_vm1, %v23413_v20, %v23412_v1  ;;  %v23216_v3 = vmax.f32 %v17819_v8, 0.0  ;;  %v807_v38 = vpop.f32.mrf.mxu0  ;;  %v17854_v19 = vmax.f32 %v1599_v22, %v1699_v17  ;;  %v23414_v17 = vmax.f32 %v17588_v39, 0.0 }
 0x1b1   : > { %909 = vst [vmem:[#allocation2 + $0x180] sm:$0xff] %v23218_v34  ;;  %v17849_v45 = vadd.f32 %v17626_v60, %v807_v38  ;;  %v1404_v41 = vpop.f32.mrf.mxu1  ;;  %v1703_v15 = vld [vmem:[#allocation2 + $0x2f9] sm:$0xff]  ;;  %v23415_v22 = vrot.slane %v17183_v37, 4  ;;  %v17874_v38 = vpack.c.bf16 %v2250_v7, %v2249_v13  ;;  %v23418_v39 = vmax.f32 %v17705_v32, 0.0  ;;  %v1652_v7 = vld [vmem:[#allocation2 + $0x161] sm:$0xff] }
 0x1b2   : > { %1506 = vst [vmem:[#allocation2 + $0x310] sm:$0xff] %v23216_v3  ;;  %v1405_v44 = vadd.f32 %v17626_v60, %v1404_v41  ;;  %2840 = vmatmul.mubr.bf16.vlgmr.msra.gmra.mxu0 %v16267_v42  ;;  %v14233_v1 = vpop.f32.mrf.mxu0  ;;  %v17865_v46 = vmax.f32 %v23414_v17, %v1650_v59  ;;  %v23416_v60 = vrot.slane %v17274_v35, 4  ;;  %v16273_v13 = vld [vmem:[%s23172_s2 + $0x64] ss:$24 sps:$4 sm:$0xff]   ;;  %v17900_v37 = vsel %vm1905_vm1, %v2061_v36, %v2063_v47 }
 0x1b3   : > { %v860_v20 = vmax.f32 %v17849_v45, 0.0  ;;  %2847 = vmatprep.mubr.bf16.mxu0 %v16270_v40  ;;  %23417 = vst [vmem:[#allocation30_spill] sm:$0xff] %v17874_v38  ;;  %v14349_v41 = vpop.f32.mrf.mxu1  ;;  %v16272_v40 = vld [vmem:[%s23172_s2 + $0x30] ss:$24 sps:$4 sm:$0xff]   ;;  %v17881_v59 = vmax.f32 %v23418_v39, %v1703_v15  ;;  %v23421_v50 = vmax.f32 %v17597_v31, 0.0  ;;  %v23422_v35 = vmax.f32 %v17739_v14, 0.0 }
 0x1b4   : > { %v17872_v42 = vsel %vm1905_vm1, %v23416_v60, %v23415_v22  ;;  %v1457_v11 = vmax.f32 %v1405_v44, 0.0  ;;  %v1702_v45 = vld [vmem:[#allocation2 + $0x2f1] sm:$0xff]  ;;  %v1701_v1 = vld [vmem:[#allocation2 + $0x2e9] sm:$0xff]  ;;  %v23419_v22 = vrot.slane %v17773_v57, 4  ;;  %v23420_v60 = vrot.slane %v17771_v52, 4 }
 0x1b5   : > { %910 = vst [vmem:[#allocation2 + $0x188] sm:$0xff] %v860_v20  ;;  %v1653_v44 = vld [vmem:[#allocation2 + $0x169] sm:$0xff]  ;;  %v1704_v17 = vld [vmem:[#allocation2 + $0x301] sm:$0xff]  ;;  %v17904_v5 = vmax.f32 %v23421_v50, %v1700_v24  ;;  %v1654_v15 = vld [vmem:[#allocation2 + $0x171] sm:$0xff]  ;;  %v23423_v41 = vmax.f32 %v17629_v4, 0.0  ;;  %v23424_v50 = vrot.slane %v17761_v53, 4  ;;  %v17931_v4 = vsel %vm1905_vm1, %v2063_v47, %v23217_v48 }
 0x1b6   : > { %v17893_v32 = vsel %vm1905_vm1, %v23420_v60, %v23419_v22  ;;  %1507 = vst [vmem:[#allocation2 + $0x318] sm:$0xff] %v1457_v11  ;;  %v1804_v3 = vmax.f32 %v23422_v35, %v1704_v17  ;;  %v17911_v60 = vsel %vm1905_vm1, %v23419_v22, %v2061_v36  ;;  %v23425_v14 = vrot.slane %v17763_v16, 4 }
 0x1b7   : > { %v17915_v39 = vmax.f32 %v23423_v41, %v1701_v1  ;;  %v2089_v36 = vrot.slane %v17881_v59, 4  ;;  %v23426_v17 = vrot.slane %v17771_v52, 4  ;;  %v23427_v41 = vmov %v23424_v50 }
 0x1b8   : > { %v17925_v24 = vsel %vm1905_vm1, %v23425_v14, %v23424_v50  ;;  %v1655_v35 = vld [vmem:[#allocation2 + $0x179] sm:$0xff]  ;;  %v23428_v14 = vmax.f32 %v17660_v43, 0.0  ;;  %v2091_v47 = vrot.slane %v1804_v3, 4  ;;  %v23429_v1 = vmax.f32 %v17779_v23, 0.0 }
 0x1b9   : > { %v17940_v22 = vsel %vm1905_vm1, %v23427_v41, %v23426_v17  ;;  %v1705_v50 = vld [vmem:[#allocation2 + $0x309] sm:$0xff]  ;;  %v23430_v6 = vmax.f32 %v17650_v51, 0.0  ;;  %v23431_v41 = vmax.f32 %v17690_v62, 0.0  ;;  %v23432_v3 = vmax.f32 %v17769_v61, 0.0 }
 0x1ba   : > { %v17944_v11 = vmax.f32 %v23428_v14, %v1702_v45  ;;  %2848 = vmatmul.mubr.bf16.gmra.mxu0 %v16272_v40  ;;  %v1805_v34 = vmax.f32 %v23429_v1, %v1705_v50  ;;  %v2274_v23 = vmax.f32 %v17771_v52, %v17931_v4  ;;  %v23433_v62 = vmax.f32 %v17730_v10, 0.0  ;;  %v1651_v1 = vld [vmem:[#allocation2 + $0x159] sm:$0xff]  ;;  %v16278_v45 = vld [vmem:[%s23172_s2 + $0x94] ss:$24 sps:$4 sm:$0xff]  }
 0x1bb   : > { %v17954_v17 = vmax.f32 %v23430_v6, %v1652_v7  ;;  %v17958_v43 = vmax.f32 %v23431_v41, %v1653_v44  ;;  %2855 = vmatprep.mubr.bf16.mxu0 %v16273_v13  ;;  %v1755_v14 = vmax.f32 %v23432_v3, %v1655_v35  ;;  %v16275_v6 = vld [vmem:[%s23172_s2 + $0x60] ss:$24 sps:$4 sm:$0xff]   ;;  %v23434_v10 = vmax.f32 %v17807_v12, 0.0 }
 0x1bc   : > { %v2087_v48 = vrot.slane %v17944_v11, 4  ;;  %v1657_v51 = vld [vmem:[#allocation2 + $0x189] sm:$0xff]  ;;  %v1754_v7 = vmax.f32 %v23433_v62, %v1654_v15  ;;  %v2093_v44 = vrot.slane %v1805_v34, 4  ;;  %v1656_v13 = vld [vmem:[#allocation2 + $0x181] sm:$0xff]  ;;  %v2092_v34 = vsel %vm1905_vm1, %v2089_v36, %v2091_v47 }
 0x1bd   : > { %v1987_v61 = vrot.slane %v17954_v17, 4  ;;  %v1989_v35 = vrot.slane %v17958_v43, 4  ;;  %v17974_v50 = vmax.f32 %v860_v20, %v1657_v51  ;;  %v1993_v52 = vrot.slane %v1755_v14, 4  ;;  %v1607_v4 = vld [vmem:[#allocation2 + $0x318] sm:$0xf] }
 0x1be   : > { %v1706_v41 = vld [vmem:[#allocation2 + $0x311] sm:$0xff]  ;;  %v1707_v3 = vld [vmem:[#allocation2 + $0x319] sm:$0xf]  ;;  %v17981_v15 = vmax.f32 %v23434_v10, %v1656_v13  ;;  %v1991_v62 = vrot.slane %v1754_v7, 4  ;;  %v23435_v31 = vmax.f32 %v17819_v8, 0.0  ;;  %v2094_v51 = vsel %vm1905_vm1, %v2091_v47, %v2093_v44 }
 0x1bf   : > { %v1807_v20 = vmax.f32 %v1607_v4, %v1707_v3  ;;  %v1997_v57 = vrot.slane %v17974_v50, 4  ;;  %v23436_v49 = vmax.f32 %v17614_v55, 0.0  ;;  %v23437_v12 = vrot.slane %v17915_v39, 4 }
 0x1c0   : > { %v1806_v40 = vmax.f32 %v23435_v31, %v1706_v41  ;;  %v1995_v27 = vrot.slane %v17981_v15, 4  ;;  %v2287_v8 = vmax.f32 %v17904_v5, %v2092_v34  ;;  %v2090_v31 = vsel %vm1905_vm1, %v2087_v48, %v2089_v36 }
 0x1c1   : > { %v17991_v38 = vmax.f32 %v23436_v49, %v1651_v1  ;;  %v2088_v13 = vsel %vm1905_vm1, %v23437_v12, %v2087_v48  ;;  %v2097_v25 = vrot.slane %v1807_v20, 4  ;;  %v23438_v47 = vrot.slane %v17540_v21, 4  ;;  %v1549_v20 = vld [vmem:[#allocation2 + $0x148] sm:$0xff] }
 0x1c2   : > { %v2095_v10 = vrot.slane %v1806_v40, 4  ;;  %v1996_v41 = vsel %vm1905_vm1, %v1993_v52, %v1995_v27  ;;  %v1998_v55 = vsel %vm1905_vm1, %v1995_v27, %v1997_v57  ;;  %v2288_v49 = vmax.f32 %v17915_v39, %v2094_v51  ;;  %2856 = vmatmul.mubr.bf16.gmra.mxu0 %v16275_v6  ;;  %v1649_v48 = vld [vmem:[#allocation2 + $0x149] sm:$0xff] }
 0x1c3   : > { %v2000_v4 = vsel %vm1905_vm1, %v1997_v57, %v23438_v47  ;;  %v2242_v3 = vmax.f32 %v1755_v14, %v17676_v26  ;;  %2863 = vmatprep.mubr.bf16.mxu0 %v16278_v45  ;;  %v1992_v47 = vsel %vm1905_vm1, %v1989_v35, %v1991_v62  ;;  %v1994_v57 = vsel %vm1905_vm1, %v1991_v62, %v1993_v52  ;;  %v16276_v26 = vld [vmem:[%s23172_s2 + $0x90] ss:$24 sps:$4 sm:$0xff]  }
 0x1c4   : > { %v2241_v1 = vmax.f32 %v1754_v7, %v2000_v4  ;;  %v2096_v40 = vsel %vm1905_vm1, %v2093_v44, %v2095_v10  ;;  %v2098_v34 = vsel %vm1905_vm1, %v2095_v10, %v2097_v25  ;;  %v2239_v14 = vmax.f32 %v17954_v17, %v1996_v41  ;;  %v16281_v44 = vld [vmem:[%s23172_s2 + $0xc4] ss:$24 sps:$4 sm:$0xff]  }
 0x1c5   : > { %v2289_v36 = vmax.f32 %v17944_v11, %v2096_v40  ;;  %v2290_v12 = vmax.f32 %v17881_v59, %v2098_v34  ;;  %v2240_v25 = vmax.f32 %v17958_v43, %v1998_v55  ;;  %v1985_v6 = vrot.slane %v17991_v38, 4 }
 0x1c6   : > { %v2392_v27 = vpack.c.bf16 %v2242_v3, %v2241_v1  ;;  %v2415_v11 = vpack.c.bf16 %v2288_v49, %v2287_v8  ;;  %v2285_v59 = vmax.f32 %v17852_v28, %v2088_v13  ;;  %v2286_v45 = vmax.f32 %v17854_v19, %v2090_v31 }
 0x1c7   : > { %v2416_v7 = vpack.c.bf16 %v2290_v12, %v2289_v36  ;;  %v23439_v52 = vmax.f32 %v17761_v53, %v17900_v37  ;;  %v2237_v17 = vmax.f32 %v17865_v46, %v1992_v47  ;;  %v2238_v43 = vmax.f32 %v17991_v38, %v1994_v57  ;;  %v23450_v47 = vld [vmem:[#allocation3_spill] sm:$0xff] }
 0x1c8   : > { %13263 = vmatpush3.bf16.msra.mxu1 %v2392_v27  ;;  %v18027_v51 = vmax.f32 %v1549_v20, %v1649_v48  ;;  %v1988_v13 = vsel %vm1905_vm1, %v1985_v6, %v1987_v61  ;;  %v1990_v10 = vsel %vm1905_vm1, %v1987_v61, %v1989_v35  ;;  %v23440_v8 = vrot.slane %v17741_v9, 4  ;;  %v1592_v20 = vld [vmem:[#allocation2 + $0x2a0] sm:$0xff]  ;;  %v1593_v48 = vld [vmem:[#allocation2 + $0x2a8] sm:$0xff] }
 0x1c9   : > { %v2408_v62 = vpack.c.bf16 %v2274_v23, %v23439_v52  ;;  %13356 = vmatprep.subr.bf16.mxu0 %v2416_v7  ;;  %13264 = vmatprep.subr.bf16.mxu1 %v17309_v29  ;;  %v23441_v31 = vrot.slane %v17743_v63, 4  ;;  %v2391_v37 = vpack.c.bf16 %v2240_v25, %v2239_v14  ;;  %v23442_v23 = vrot.slane %v17904_v5, 4  ;;  %v16279_v14 = vld [vmem:[%s23172_s2 + $0xc0] ss:$24 sps:$4 sm:$0xff]  }
 0x1ca   : > { %v23443_v38 = vrot.slane %v17854_v19, 4  ;;  %v23444_v29 = vrot.slane %v17915_v39, 4  ;;  %v23446_v35 = vrot.slane %v17763_v16, 4  ;;  %v23447_v55 = vmov %v23440_v8  ;;  %2864 = vmatmul.mubr.bf16.gmra.mxu0 %v16276_v26 }
 0x1cb   : > { %v2052_v53 = vsel %vm1905_vm1, %v23441_v31, %v23440_v8  ;;  %13357 = vmatpush3.bf16.msra.mxu0 %v2408_v62  ;;  %v23445_v41 = vmov %v23442_v23  ;;  %v23448_v1 = vmax.f32 %v17741_v9, %v17893_v32  ;;  %v23449_v3 = vmax.f32 %v17763_v16, %v17911_v60  ;;  %v1692_v16 = vld [vmem:[#allocation2 + $0x2a1] sm:$0xff]  ;;  %v1693_v60 = vld [vmem:[#allocation2 + $0x2a9] sm:$0xff]  ;;  %2871 = vmatprep.mubr.bf16.mxu0 %v16281_v44 }
 0x1cc   : > { %v2084_v4 = vsel %vm1905_vm1, %v23443_v38, %v23442_v23  ;;  %v2086_v61 = vsel %vm1905_vm1, %v23445_v41, %v23444_v29  ;;  %v2054_v49 = vsel %vm1905_vm1, %v23447_v55, %v23446_v35  ;;  %13358 = vmatprep.subr.bf16.mxu0 %v2415_v11  ;;  %v2414_v34 = vpack.c.bf16 %v2286_v45, %v2285_v59  ;;  %v23458_v59 = vld [vmem:[#allocation23_spill] sm:$0xff]  ;;  %v23469_v55 = vld [vmem:[#allocation17_spill] sm:$0xff] }
 0x1cd   : > { %v2407_v40 = vpack.c.bf16 %v23449_v3, %v23448_v1  ;;  %v2269_v5 = vmax.f32 %v17733_v56, %v17925_v24  ;;  %v2270_v39 = vmax.f32 %v17743_v63, %v17940_v22  ;;  %13265 = vmatpush3.bf16.msra.mxu1 %v2391_v37  ;;  %v2390_v36 = vpack.c.bf16 %v2238_v43, %v2237_v17  ;;  %v23462_v43 = vld [vmem:[#allocation19_spill] sm:$0xff]  ;;  %v16284_v63 = vld [vmem:[%s23172_s2 + $0xf4] ss:$24 sps:$4 sm:$0xff]  }
 0x1ce   : > { %v1981_v12 = vrot.slane %v18027_v51, 4  ;;  %v2235_v9 = vmax.f32 %v17842_v30, %v1988_v13  ;;  %v2236_v32 = vmax.f32 %v18027_v51, %v1990_v10  ;;  %13266 = vmatprep.subr.bf16.mxu1 %v23450_v47  ;;  %v23451_v24 = vmax.f32 %v17617_v33, %v17837_v2 }
 0x1cf   : > { %v23452_v22 = vmax.f32 %v17662_v54, %v17872_v42  ;;  %v2283_v27 = vmax.f32 %v17821_v58, %v2084_v4  ;;  %v2284_v26 = vmax.f32 %v17844_v18, %v2086_v61  ;;  %13359 = vmatpush3.bf16.msra.mxu0 %v2407_v40  ;;  %v23453_v25 = vrot.slane %v17852_v28, 4  ;;  %v23465_v4 = vld [vmem:[#allocation29_spill] sm:$0xff]  ;;  %v23468_v61 = vld [vmem:[#allocation15_spill] sm:$0xff] }
 0x1d0   : > { %v23454_v7 = vrot.slane %v17844_v18, 4  ;;  %v23455_v2 = vmov %v23443_v38  ;;  %v23457_v11 = vrot.slane %v17733_v56, 4  ;;  %v23459_v45 = vrot.slane %v23458_v59, 4  ;;  %13360 = vmatprep.subr.bf16.mxu0 %v2414_v34 }
 0x1d1   : > { %v2397_v57 = vpack.c.bf16 %v23452_v22, %v23451_v24  ;;  %v23456_v54 = vmov %v23453_v25  ;;  %v23460_v52 = vmov %v23441_v31  ;;  %v2267_v51 = vmax.f32 %v23462_v43, %v2052_v53  ;;  %13267 = vmatpush3.bf16.msra.mxu1 %v2390_v36 }
 0x1d2   : > { %v2080_v33 = vsel %vm1905_vm1, %v23454_v7, %v23453_v25  ;;  %v2082_v42 = vsel %vm1905_vm1, %v23456_v54, %v23455_v2  ;;  %v2048_v44 = vsel %vm1905_vm1, %v23459_v45, %v23457_v11  ;;  %v23461_v62 = vmov %v23457_v11  ;;  %2872 = vmatmul.mubr.bf16.gmra.mxu0 %v16279_v14  ;;  %v16282_v14 = vld [vmem:[%s23172_s2 + $0xf0] ss:$24 sps:$4 sm:$0xff]  }
 0x1d3   : > { %v2050_v17 = vsel %vm1905_vm1, %v23461_v62, %v23460_v52  ;;  %v2268_v19 = vmax.f32 %v23458_v59, %v2054_v49  ;;  %v23463_v28 = vrot.slane %v17865_v46, 4  ;;  %v2406_v56 = vpack.c.bf16 %v2270_v39, %v2269_v5  ;;  %13268 = vmatprep.subr.bf16.mxu1 %v2397_v57  ;;  %v23473_v5 = vld [vmem:[#allocation7_spill] sm:$0xff]  ;;  %2879 = vmatprep.mubr.bf16.mxu0 %v16284_v63  ;;  %v23482_v54 = vld [vmem:[#allocation13_spill] sm:$0xff]  ;;  %v23487_v62 = vld [vmem:[#allocation22_spill] sm:$0xff] }
 0x1d4   : > { %v2389_v31 = vpack.c.bf16 %v2236_v32, %v2235_v9  ;;  %v1792_v37 = vmax.f32 %v1592_v20, %v1692_v16  ;;  %v1793_v23 = vmax.f32 %v1593_v48, %v1693_v60  ;;  %v2413_v53 = vpack.c.bf16 %v2284_v26, %v2283_v27  ;;  %v23475_v48 = vld [vmem:[#allocation6_spill] sm:$0xff]  ;;  %v23486_v52 = vld [vmem:[#allocation11_spill] sm:$0xff] }
 0x1d5   : > { %v1984_v13 = vsel %vm1905_vm1, %v1981_v12, %v23463_v28  ;;  %v23464_v10 = vmov %v23463_v28  ;;  %v2281_v38 = vmax.f32 %v17823_v0, %v2080_v33  ;;  %v2282_v29 = vmax.f32 %v23465_v4, %v2082_v42  ;;  %13361 = vmatpush3.bf16.msra.mxu0 %v2406_v56  ;;  %v23479_v27 = vld [vmem:[#allocation30_spill] sm:$0xff] }
 0x1d6   : > { %v1986_v8 = vsel %vm1905_vm1, %v23464_v10, %v1985_v6  ;;  %v23466_v41 = vrot.slane %v17821_v58, 4  ;;  %v23467_v46 = vrot.slane %v23465_v4, 4  ;;  %v2233_v35 = vmax.f32 %v23468_v61, %v1984_v13  ;;  %13362 = vmatprep.subr.bf16.mxu0 %v2413_v53  ;;  %13269 = vmatpush3.bf16.msra.mxu1 %v2389_v31  ;;  %v23492_v13 = vld [vmem:[#allocation20_spill] sm:$0xff]  ;;  %v23494_v63 = vld [vmem:[#allocation10_spill] sm:$0xff]  ;;  %v23497_v4 = vld [vmem:[#allocation5_spill] sm:$0xff] }
 0x1d7   : > { %v2234_v49 = vmax.f32 %v23469_v55, %v1986_v8  ;;  %v23470_v1 = vmov %v23454_v7  ;;  %v23472_v34 = vrot.slane %v23462_v43, 4  ;;  %v23474_v39 = vrot.slane %v23473_v5, 4  ;;  %13270 = vmatprep.subr.bf16.mxu1 %v23479_v27  ;;  %v23489_v43 = vld [vmem:[#allocation14_spill] sm:$0xff]  ;;  %v23493_v8 = vld [vmem:[#allocation21_spill] sm:$0xff]  ;;  %v23496_v53 = vld [vmem:[#allocation4_spill] sm:$0xff] }
 0x1d8   : > { %v2076_v6 = vsel %vm1905_vm1, %v23467_v46, %v23466_v41  ;;  %v23471_v3 = vmov %v23466_v41  ;;  %v2265_v36 = vmax.f32 %v23475_v48, %v2048_v44  ;;  %v2266_v9 = vmax.f32 %v23473_v5, %v2050_v17  ;;  %v16306_v27 = vld [vmem:[%s23172_s2 + $0x8] ss:$24 sps:$4 sm:$0xff]  }
 0x1d9   : > { %v2078_v40 = vsel %vm1905_vm1, %v23471_v3, %v23470_v1  ;;  %v2044_v20 = vsel %vm1905_vm1, %v23474_v39, %v23472_v34  ;;  %v23476_v32 = vrot.slane %v17842_v30, 4  ;;  %v23477_v18 = vmov %v23459_v45 }
 0x1da   : > { %v23478_v58 = vmov %v23472_v34  ;;  %v2405_v47 = vpack.c.bf16 %v2268_v19, %v2267_v51  ;;  %v2067_v24 = vrot.slane %v1792_v37, 4  ;;  %v2069_v22 = vrot.slane %v1793_v23, 4  ;;  %v23490_v51 = vld [vmem:[#allocation24_spill] sm:$0xff]  ;;  %2880 = vmatmul.mubr.bf16.gmra.mxu0 %v16282_v14  ;;  %v16293_v14 = vld [vmem:[%s23172_s2 + $0x184] ss:$24 sps:$4 sm:$0xff]  }
 0x1db   : > { %v1982_v16 = vsel %vm1905_vm1, %v23476_v32, %v1981_v12  ;;  %v2046_v60 = vsel %vm1905_vm1, %v23478_v58, %v23477_v18  ;;  %v2279_v57 = vmax.f32 %v1792_v37, %v2076_v6  ;;  %v2412_v26 = vpack.c.bf16 %v2282_v29, %v2281_v38  ;;  %v23495_v37 = vld [vmem:[#allocation12_spill] sm:$0xff]  ;;  %v23505_v18 = vld [vmem:[#allocation25_spill] sm:$0xff] }
 0x1dc   : > { %v23480_v25 = vmov %v23476_v32  ;;  %v23481_v12 = vrot.slane %v23469_v55, 4  ;;  %v2280_v33 = vmax.f32 %v1793_v23, %v2078_v40  ;;  %13363 = vmatpush3.bf16.msra.mxu0 %v2405_v47  ;;  %v2388_v2 = vpack.c.bf16 %v2234_v49, %v2233_v35 }
 0x1dd   : > { %v2232_v42 = vmax.f32 %v23482_v54, %v1982_v16  ;;  %v23483_v11 = vrot.slane %v17823_v0, 4  ;;  %v23484_v45 = vmov %v23467_v46  ;;  %13364 = vmatprep.subr.bf16.mxu0 %v2412_v26  ;;  %v23488_v17 = vmax.f32 %v23486_v52, %v23487_v62  ;;  %v16287_v0 = vld [vmem:[%s23172_s2 + $0x124] ss:$24 sps:$4 sm:$0xff]   ;;  %v23508_v26 = vld [vmem:[#allocation9_spill] sm:$0xff] }
 0x1de   : > { %v1980_v7 = vsel %vm1905_vm1, %v23481_v12, %v23480_v25  ;;  %v23491_v19 = vmax.f32 %v23489_v43, %v23490_v51  ;;  %v2245_v10 = vmax.f32 %v17540_v21, %v23492_v13  ;;  %v2246_v56 = vmax.f32 %v23494_v63, %v23493_v8  ;;  %13271 = vmatpush3.bf16.msra.mxu1 %v2388_v2  ;;  %v23498_v46 = vld [vmem:[#allocation27_spill] sm:$0xff]  ;;  %v23499_v21 = vld [vmem:[#allocation28_spill] sm:$0xff]  ;;  %v16312_v25 = vld [vmem:[%s23172_s2 + $0x3c] ss:$24 sps:$4 sm:$0xff]  }
 0x1df   : > { %v2072_v59 = vsel %vm1905_vm1, %v2069_v22, %v23483_v11  ;;  %v23485_v30 = vmov %v23483_v11  ;;  %v2404_v31 = vpack.c.bf16 %v2266_v9, %v2265_v36  ;;  %v2231_v23 = vmax.f32 %v23495_v37, %v1980_v7  ;;  %2887 = vmatprep.mubr.bf16.mxu0 %v16287_v0  ;;  %v23509_v12 = vld [vmem:[#allocation16_spill] sm:$0xff]  ;;  %v16314_v54 = vld [vmem:[%s23172_s2 + $0x38] ss:$24 sps:$4 sm:$0xff]   ;;  %v16350_v37 = vld [vmem:[%s23172_s2 + $0x15c] ss:$24 sps:$4 sm:$0xff]  }
 0x1e0   : > { %v2074_v44 = vsel %vm1905_vm1, %v23485_v30, %v23484_v45  ;;  %v2395_v28 = vpack.c.bf16 %v23491_v19, %v23488_v17  ;;  %v2263_v38 = vmax.f32 %v23496_v53, %v2044_v20  ;;  %v2264_v29 = vmax.f32 %v23497_v4, %v2046_v60  ;;  %v23506_v60 = vld [vmem:[#allocation26_spill] sm:$0xff]  ;;  %v16288_v2 = vld [vmem:[%s23172_s2 + $0x150] ss:$24 sps:$4 sm:$0xff]   ;;  %v16332_v17 = vld [vmem:[%s23172_s2 + $0xcc] ss:$24 sps:$4 sm:$0xff]  }
 0x1e1   : > { %v2411_v41 = vpack.c.bf16 %v2280_v33, %v2279_v57  ;;  %v2277_v6 = vmax.f32 %v23498_v46, %v2072_v59  ;;  %v2278_v61 = vmax.f32 %v23499_v21, %v2074_v44  ;;  %v23500_v35 = vrot.slane %v23486_v52, 4  ;;  %13365 = vmatpush3.bf16.msra.mxu0 %v2404_v31  ;;  %v23511_v33 = vld [vmem:[#allocation8_spill] sm:$0xff]  ;;  %v16291_v11 = vld [vmem:[%s23172_s2 + $0x180] ss:$24 sps:$4 sm:$0xff]   ;;  %v16326_v30 = vld [vmem:[%s23172_s2 + $0x9c] ss:$24 sps:$4 sm:$0xff]  }
 0x1e2   : > { %13272 = vmatprep.subr.bf16.mxu1 %v2395_v28  ;;  %v23501_v55 = vrot.slane %v23494_v63, 4  ;;  %v2387_v1 = vpack.c.bf16 %v2232_v42, %v2231_v23  ;;  %v23502_v3 = vrot.slane %v23489_v43, 4  ;;  %v23504_v5 = vrot.slane %v23499_v21, 4  ;;  %v16318_v42 = vld [vmem:[%s23172_s2 + $0x6c] ss:$24 sps:$4 sm:$0xff]  }
 0x1e3   : > { %v23503_v40 = vmov %v23500_v35  ;;  %v2070_v20 = vsel %vm1905_vm1, %v2067_v24, %v2069_v22  ;;  %13366 = vmatprep.subr.bf16.mxu0 %v2411_v41  ;;  %v2394_v48 = vpack.c.bf16 %v2246_v56, %v2245_v10  ;;  %v2403_v32 = vpack.c.bf16 %v2264_v29, %v2263_v38  ;;  %v16296_v59 = vld [vmem:[%s23172_s2 + $0x1b4] ss:$24 sps:$4 sm:$0xff]   ;;  %v16320_v45 = vld [vmem:[%s23172_s2 + $0x68] ss:$24 sps:$4 sm:$0xff]   ;;  %v16299_v52 = vld [vmem:[%s23172_s2 + $0x1e4] ss:$24 sps:$4 sm:$0xff]  }
 0x1e4   : > { %v2004_v49 = vsel %vm1905_vm1, %v23501_v55, %v23500_v35  ;;  %v2006_v34 = vsel %vm1905_vm1, %v23503_v40, %v23502_v3  ;;  %v2068_v39 = vsel %vm1905_vm1, %v23504_v5, %v2067_v24  ;;  %13273 = vmatpush3.bf16.msra.mxu1 %v2387_v1  ;;  %v2410_v16 = vpack.c.bf16 %v2278_v61, %v2277_v6  ;;  %v16285_v24 = vld [vmem:[%s23172_s2 + $0x120] ss:$24 sps:$4 sm:$0xff]   ;;  %v16294_v44 = vld [vmem:[%s23172_s2 + $0x1b0] ss:$24 sps:$4 sm:$0xff]   ;;  %v16302_v51 = vld [vmem:[%s23172_s2 + $0x214] ss:$24 sps:$4 sm:$0xff]  }
 0x1e5   : > { %v2243_v36 = vmax.f32 %v17981_v15, %v2004_v49  ;;  %v2244_v9 = vmax.f32 %v17974_v50, %v2006_v34  ;;  %13274 = vmatprep.subr.bf16.mxu1 %v2394_v48  ;;  %v2275_v58 = vmax.f32 %v23505_v18, %v2068_v39  ;;  %v2276_v47 = vmax.f32 %v23506_v60, %v2070_v20  ;;  %v16290_v50 = vld [vmem:[%s23172_s2 + $0x154] ss:$24 sps:$4 sm:$0xff]   ;;  %v23507_v15 = vld [vmem:[#allocation18_spill] sm:$0xff]  ;;  %v16330_v19 = vld [vmem:[%s23172_s2 + $0xc8] ss:$24 sps:$4 sm:$0xff]  }
 0x1e6   : > { %13367 = vmatpush3.bf16.msra.mxu0 %v2403_v32  ;;  %v23510_v7 = vmov 0.0   ;;  %v16324_v62 = vld [vmem:[%s23172_s2 + $0x98] ss:$24 sps:$4 sm:$0xff]   ;;  %v16338_v28 = vld [vmem:[%s23172_s2 + $0xfc] ss:$24 sps:$4 sm:$0xff]  }
 0x1e7   : > { %13368 = vmatprep.subr.bf16.mxu0 %v2410_v16  ;;  %v2393_v22 = vpack.c.bf16 %v2244_v9, %v2243_v36  ;;  %v2409_v57 = vpack.c.bf16 %v2276_v47, %v2275_v58  ;;  %2888 = vmatmul.mubr.bf16.gmra.mxu0 %v16285_v24  ;;  %v16297_v43 = vld [vmem:[%s23172_s2 + $0x1e0] ss:$24 sps:$4 sm:$0xff]   ;;  %v16300_v13 = vld [vmem:[%s23172_s2 + $0x210] ss:$24 sps:$4 sm:$0xff]   ;;  %v16305_v10 = vld [vmem:[%s23172_s2 + $0x244] ss:$24 sps:$4 sm:$0xff]  }
 0x1e8   : > { %13275 = vmatpush3.bf16.msra.mxu1 %v23507_v15  ;;  %2895 = vmatprep.mubr.bf16.mxu0 %v16290_v50  ;;  %v16336_v8 = vld [vmem:[%s23172_s2 + $0xf8] ss:$24 sps:$4 sm:$0xff]   ;;  %v16344_v63 = vld [vmem:[%s23172_s2 + $0x12c] ss:$24 sps:$4 sm:$0xff]   ;;  %v16342_v31 = vld [vmem:[%s23172_s2 + $0x128] ss:$24 sps:$4 sm:$0xff]  }
 0x1e9   : > { %13276 = vmatprep.subr.bf16.mxu1 %v2393_v22  ;;  %v16303_v56 = vld [vmem:[%s23172_s2 + $0x240] ss:$24 sps:$4 sm:$0xff]   ;;  %v16311_v0 = vld [vmem:[%s23172_s2 + $0x14] ss:$24 sps:$4 sm:$0xff]   ;;  %v16309_v23 = vld [vmem:[%s23172_s2 + $0x10] ss:$24 sps:$4 sm:$0xff]  }
 0x1ea   : > { %13369 = vmatpush3.bf16.msra.mxu0 %v23508_v26  ;;  %v16317_v53 = vld [vmem:[%s23172_s2 + $0x44] ss:$24 sps:$4 sm:$0xff]   ;;  %v16348_v38 = vld [vmem:[%s23172_s2 + $0x158] ss:$24 sps:$4 sm:$0xff]   ;;  %v16323_v41 = vld [vmem:[%s23172_s2 + $0x74] ss:$24 sps:$4 sm:$0xff]  }
 0x1eb   : > { %13370 = vmatprep.subr.bf16.mxu0 %v2409_v57  ;;  %v16356_v4 = vld [vmem:[%s23172_s2 + $0x18c] ss:$24 sps:$4 sm:$0xff]   ;;  %v16315_v29 = vld [vmem:[%s23172_s2 + $0x40] ss:$24 sps:$4 sm:$0xff]   ;;  %v16362_v6 = vld [vmem:[%s23172_s2 + $0x1bc] ss:$24 sps:$4 sm:$0xff]  }
 0x1ec   : > { %13277 = vmatpush3.bf16.msra.mxu1 %v23509_v12  ;;  %v16354_v46 = vld [vmem:[%s23172_s2 + $0x188] ss:$24 sps:$4 sm:$0xff]   ;;  %v16329_v61 = vld [vmem:[%s23172_s2 + $0xa4] ss:$24 sps:$4 sm:$0xff]   ;;  %v16360_v35 = vld [vmem:[%s23172_s2 + $0x1b8] ss:$24 sps:$4 sm:$0xff]  }
 0x1ed   : > { %14350 = vmatprep.subr.bf16.mxu1 %v23510_v7  ;;  %v16321_v21 = vld [vmem:[%s23172_s2 + $0x70] ss:$24 sps:$4 sm:$0xff]   ;;  %v16368_v55 = vld [vmem:[%s23172_s2 + $0x1ec] ss:$24 sps:$4 sm:$0xff]   ;;  %v16327_v49 = vld [vmem:[%s23172_s2 + $0xa0] ss:$24 sps:$4 sm:$0xff]  }
 0x1ee   : > { %13371 = vmatpush3.bf16.msra.mxu0 %v23511_v33  ;;  %v16335_v1 = vld [vmem:[%s23172_s2 + $0xd4] ss:$24 sps:$4 sm:$0xff]   ;;  %v16366_v3 = vld [vmem:[%s23172_s2 + $0x1e8] ss:$24 sps:$4 sm:$0xff]   ;;  %v16341_v5 = vld [vmem:[%s23172_s2 + $0x104] ss:$24 sps:$4 sm:$0xff]  }
 0x1ef   : > { %2977 = vmatmul.mubr.bf16.vlgmr.msra.gmra.mxu1 %v16306_v27  ;;  %14454 = vmatprep.subr.bf16.mxu0 %v23510_v7  ;;  %v16374_v40 = vld [vmem:[%s23172_s2 + $0x21c] ss:$24 sps:$4 sm:$0xff]   ;;  %v16333_v34 = vld [vmem:[%s23172_s2 + $0xd0] ss:$24 sps:$4 sm:$0xff]   ;;  %v16380_v20 = vld [vmem:[%s23172_s2 + $0x24c] ss:$24 sps:$4 sm:$0xff]  }
 0x1f0   : > { %2984 = vmatprep.mubr.bf16.mxu1 %v16312_v25  ;;  %2896 = vmatmul.mubr.bf16.gmra.mxu0 %v16288_v2  ;;  %v16372_v39 = vld [vmem:[%s23172_s2 + $0x218] ss:$24 sps:$4 sm:$0xff]   ;;  %v16347_v36 = vld [vmem:[%s23172_s2 + $0x134] ss:$24 sps:$4 sm:$0xff]   ;;  %v16378_v9 = vld [vmem:[%s23172_s2 + $0x248] ss:$24 sps:$4 sm:$0xff]  }
 0x1f1   : > { %2903 = vmatprep.mubr.bf16.mxu0 %v16293_v14  ;;  %v16339_v48 = vld [vmem:[%s23172_s2 + $0x100] ss:$24 sps:$4 sm:$0xff]   ;;  %v16345_v32 = vld [vmem:[%s23172_s2 + $0x130] ss:$24 sps:$4 sm:$0xff]   ;;  %v16353_v16 = vld [vmem:[%s23172_s2 + $0x164] ss:$24 sps:$4 sm:$0xff]  }
 0x1f2   : > { %v16351_v18 = vld [vmem:[%s23172_s2 + $0x160] ss:$24 sps:$4 sm:$0xff]   ;;  %v16359_v58 = vld [vmem:[%s23172_s2 + $0x194] ss:$24 sps:$4 sm:$0xff]   ;;  %v16357_v24 = vld [vmem:[%s23172_s2 + $0x190] ss:$24 sps:$4 sm:$0xff]  }
 0x1f3   : > { %v16384_v60 = vld [vmem:[%s23173_s3 + $0xb8] sm:$0xff]   ;;  %v16386_v22 = vld [vmem:[%s23173_s3 + $0xb0] sm:$0xff]   ;;  %v16388_v57 = vld [vmem:[%s23173_s3 + $0xa8] sm:$0xff]  }
 0x1f4   : > { %v16385_v47 = vld [vmem:[%s23173_s3 + $0x78] sm:$0xff]   ;;  %v16387_v15 = vld [vmem:[%s23173_s3 + $0x70] sm:$0xff]   ;;  %v16389_v27 = vld [vmem:[%s23173_s3 + $0x68] sm:$0xff]  }
 0x1f5   : > { %v16365_v50 = vld [vmem:[%s23172_s2 + $0x1c4] ss:$24 sps:$4 sm:$0xff]   ;;  %14351 = vmatpush3.bf16.msra.mxu1 %v16385_v47  ;;  %v16363_v26 = vld [vmem:[%s23172_s2 + $0x1c0] ss:$24 sps:$4 sm:$0xff]   ;;  %v16371_v25 = vld [vmem:[%s23172_s2 + $0x1f4] ss:$24 sps:$4 sm:$0xff]  }
 0x1f6   : > { %14352 = vmatprep.subr.bf16.mxu1 %v23510_v7  ;;  %v16390_v12 = vld [vmem:[%s23173_s3 + $0xa0] sm:$0xff]   ;;  %v16392_v2 = vld [vmem:[%s23173_s3 + $0x98] sm:$0xff]  }
 0x1f7   : > { %2985 = vmatmul.mubr.bf16.gmra.mxu1 %v16314_v54  ;;  %v16391_v33 = vld [vmem:[%s23173_s3 + $0x60] sm:$0xff]   ;;  %v16393_v14 = vld [vmem:[%s23173_s3 + $0x58] sm:$0xff]   ;;  %v16369_v54 = vld [vmem:[%s23172_s2 + $0x1f0] ss:$24 sps:$4 sm:$0xff]  }
 0x1f8   : > { %2992 = vmatprep.mubr.bf16.mxu1 %v16318_v42  ;;  %2904 = vmatmul.mubr.bf16.gmra.mxu0 %v16291_v11  ;;  %v16377_v42 = vld [vmem:[%s23172_s2 + $0x224] ss:$24 sps:$4 sm:$0xff]   ;;  %v16394_v11 = vld [vmem:[%s23173_s3 + $0x90] sm:$0xff]  }
 0x1f9   : > { %2911 = vmatprep.mubr.bf16.mxu0 %v16296_v59  ;;  %14353 = vmatpush3.bf16.msra.mxu1 %v16387_v15  ;;  %v16395_v59 = vld [vmem:[%s23173_s3 + $0x50] sm:$0xff]  }
 0x1fa   : > { %14354 = vmatprep.subr.bf16.mxu1 %v23510_v7 }
 0x1fd   : > { %14355 = vmatpush3.bf16.msra.mxu1 %v16389_v27 }
 0x1fe   : > { %14356 = vmatprep.subr.bf16.mxu1 %v23510_v7 }
 0x1ff   : > { %2993 = vmatmul.mubr.bf16.gmra.mxu1 %v16320_v45  ;;  %v16396_v45 = vld [vmem:[%s23173_s3 + $0x88] sm:$0xff]  }
 0x200   : > { %3000 = vmatprep.mubr.bf16.mxu1 %v16326_v30  ;;  %2912 = vmatmul.mubr.bf16.gmra.mxu0 %v16294_v44  ;;  %v16397_v30 = vld [vmem:[%s23173_s3 + $0x48] sm:$0xff]   ;;  %v16375_v44 = vld [vmem:[%s23172_s2 + $0x220] ss:$24 sps:$4 sm:$0xff]  }
 0x201   : > { %2919 = vmatprep.mubr.bf16.mxu0 %v16299_v52  ;;  %14357 = vmatpush3.bf16.msra.mxu1 %v16391_v33  ;;  %v16383_v52 = vld [vmem:[%s23172_s2 + $0x254] ss:$24 sps:$4 sm:$0xff]  }
 0x202   : > { %14358 = vmatprep.subr.bf16.mxu1 %v23510_v7 }
 0x205   : > { %14359 = vmatpush3.bf16.msra.mxu1 %v16393_v14 }
 0x206   : > { %14360 = vmatprep.subr.bf16.mxu1 %v23510_v7 }
 0x207   : > { %3001 = vmatmul.mubr.bf16.gmra.mxu1 %v16324_v62  ;;  %v16398_v62 = vld [vmem:[%s23173_s3 + $0x80] sm:$0xff]  }
 0x208   : > { %3008 = vmatprep.mubr.bf16.mxu1 %v16332_v17  ;;  %2920 = vmatmul.mubr.bf16.gmra.mxu0 %v16297_v43  ;;  %v16399_v17 = vld [vmem:[%s23173_s3 + $0x40] sm:$0xff]  }
 0x209   : > { %2927 = vmatprep.mubr.bf16.mxu0 %v16302_v51  ;;  %14361 = vmatpush3.bf16.msra.mxu1 %v16395_v59 }
 0x20a   : > { %14362 = vmatprep.subr.bf16.mxu1 %v23510_v7 }
 0x20d   : > { %14363 = vmatpush3.bf16.msra.mxu1 %v16397_v30 }
 0x20e   : > { %14364 = vmatprep.subr.bf16.mxu1 %v23510_v7 }
 0x20f   : > { %3009 = vmatmul.mubr.bf16.gmra.mxu1 %v16330_v19 }
 0x210   : > { %3016 = vmatprep.mubr.bf16.mxu1 %v16338_v28  ;;  %2928 = vmatmul.mubr.bf16.gmra.mxu0 %v16300_v13  ;;  %v16381_v13 = vld [vmem:[%s23172_s2 + $0x250] ss:$24 sps:$4 sm:$0xff]  }
 0x211   : > { %2935 = vmatprep.mubr.bf16.mxu0 %v16305_v10  ;;  %14365 = vmatpush3.bf16.msra.mxu1 %v16399_v17 }
 0x212   : > { %14402 = vmatprep.subr.bf16.mxu1 %v23510_v7 }
 0x217   : > { %3017 = vmatmul.mubr.bf16.gmra.mxu1 %v16336_v8 }
 0x218   : > { %3024 = vmatprep.mubr.bf16.mxu1 %v16344_v63  ;;  %2936 = vmatmul.mubr.bf16.gmra.mxu0 %v16303_v56 }
 0x219   : > { %3113 = vmatprep.mubr.bf16.mxu0 %v16311_v0 }
 0x21f   : > { %3025 = vmatmul.mubr.bf16.gmra.mxu1 %v16342_v31 }
 0x220   : > { %3032 = vmatprep.mubr.bf16.mxu1 %v16350_v37  ;;  %3114 = vmatmul.mubr.bf16.vlgmr.msra.gmra.mxu0 %v16309_v23 }
 0x221   : > { %3121 = vmatprep.mubr.bf16.mxu0 %v16317_v53  ;;  %14455 = vmatpush3.bf16.msra.mxu0 %v16384_v60 }
 0x222   : > { %14456 = vmatprep.subr.bf16.mxu0 %v23510_v7 }
 0x225   : > { %14457 = vmatpush3.bf16.msra.mxu0 %v16386_v22 }
 0x226   : > { %14458 = vmatprep.subr.bf16.mxu0 %v23510_v7 }
 0x227   : > { %3033 = vmatmul.mubr.bf16.gmra.mxu1 %v16348_v38 }
 0x228   : > { %3040 = vmatprep.mubr.bf16.mxu1 %v16356_v4  ;;  %3122 = vmatmul.mubr.bf16.gmra.mxu0 %v16315_v29 }
 0x229   : > { %3129 = vmatprep.mubr.bf16.mxu0 %v16323_v41  ;;  %14459 = vmatpush3.bf16.msra.mxu0 %v16388_v57 }
 0x22a   : > { %14460 = vmatprep.subr.bf16.mxu0 %v23510_v7 }
 0x22d   : > { %14461 = vmatpush3.bf16.msra.mxu0 %v16390_v12 }
 0x22e   : > { %14462 = vmatprep.subr.bf16.mxu0 %v23510_v7 }
 0x22f   : > { %3041 = vmatmul.mubr.bf16.gmra.mxu1 %v16354_v46 }
 0x230   : > { %3048 = vmatprep.mubr.bf16.mxu1 %v16362_v6  ;;  %3130 = vmatmul.mubr.bf16.gmra.mxu0 %v16321_v21 }
 0x231   : > { %3137 = vmatprep.mubr.bf16.mxu0 %v16329_v61  ;;  %14463 = vmatpush3.bf16.msra.mxu0 %v16392_v2 }
 0x232   : > { %14464 = vmatprep.subr.bf16.mxu0 %v23510_v7 }
 0x235   : > { %14465 = vmatpush3.bf16.msra.mxu0 %v16394_v11 }
 0x236   : > { %14466 = vmatprep.subr.bf16.mxu0 %v23510_v7 }
 0x237   : > { %3049 = vmatmul.mubr.bf16.gmra.mxu1 %v16360_v35 }
 0x238   : > { %3056 = vmatprep.mubr.bf16.mxu1 %v16368_v55  ;;  %3138 = vmatmul.mubr.bf16.gmra.mxu0 %v16327_v49 }
 0x239   : > { %3145 = vmatprep.mubr.bf16.mxu0 %v16335_v1  ;;  %14467 = vmatpush3.bf16.msra.mxu0 %v16396_v45 }
 0x23a   : > { %14468 = vmatprep.subr.bf16.mxu0 %v23510_v7 }
 0x23d   : > { %14469 = vmatpush3.bf16.msra.mxu0 %v16398_v62 }
 0x23e   : > { %14558 = vmatprep.subr.bf16.mxu0 %v23510_v7 }
 0x23f   : > { %3057 = vmatmul.mubr.bf16.gmra.mxu1 %v16366_v3 }
 0x240   : > { %3064 = vmatprep.mubr.bf16.mxu1 %v16374_v40  ;;  %3146 = vmatmul.mubr.bf16.gmra.mxu0 %v16333_v34 }
 0x241   : > { %3153 = vmatprep.mubr.bf16.mxu0 %v16341_v5 }
 0x247   : > { %3065 = vmatmul.mubr.bf16.gmra.mxu1 %v16372_v39 }
 0x248   : > { %3072 = vmatprep.mubr.bf16.mxu1 %v16380_v20  ;;  %3154 = vmatmul.mubr.bf16.gmra.mxu0 %v16339_v48 }
 0x249   : > { %3161 = vmatprep.mubr.bf16.mxu0 %v16347_v36 }
 0x24f   : > { %3073 = vmatmul.mubr.bf16.gmra.mxu1 %v16378_v9 }
 0x250   : > { %14366 = vmatprep.mubr.msk.bf16.mxu1 %vm16815_vm0, %v23510_v7  ;;  %3162 = vmatmul.mubr.bf16.gmra.mxu0 %v16345_v32 }
 0x251   : > { %3169 = vmatprep.mubr.bf16.mxu0 %v16353_v16 }
 0x258   : > { %3170 = vmatmul.mubr.bf16.gmra.mxu0 %v16351_v18 }
 0x259   : > { %3177 = vmatprep.mubr.bf16.mxu0 %v16359_v58 }
 0x260   : > { %3178 = vmatmul.mubr.bf16.gmra.mxu0 %v16357_v24 }
 0x261   : > { %3185 = vmatprep.mubr.bf16.mxu0 %v16365_v50 }
 0x268   : > { %3186 = vmatmul.mubr.bf16.gmra.mxu0 %v16363_v26 }
 0x269   : > { %3193 = vmatprep.mubr.bf16.mxu0 %v16371_v25 }
 0x270   : > { %3194 = vmatmul.mubr.bf16.gmra.mxu0 %v16369_v54 }
 0x271   : > { %3201 = vmatprep.mubr.bf16.mxu0 %v16377_v42 }
 0x272   : > { %v13184_v43 = vpop.f32.mrf.mxu0 }
 0x274   : > { %v13185_v51 = vpop.f32.mrf.mxu0 }
 0x275   : > { %v18452_v19 = vadd.f32 %v13185_v51, %v13184_v43 }
 0x276   : > { %v18454_v28 = vpop.f32.mrf.mxu0 }
 0x278   : > { %3202 = vmatmul.mubr.bf16.gmra.mxu0 %v16375_v44  ;;  %v18459_v10 = vpop.f32.mrf.mxu0 }
 0x279   : > { %3209 = vmatprep.mubr.bf16.mxu0 %v16383_v52 }
 0x27a   : > { %v13190_v8 = vpop.f32.mrf.mxu0 }
 0x27c   : > { %v13191_v63 = vpop.f32.mrf.mxu0 }
 0x27d   : > { %v18463_v56 = vadd.f32 %v13191_v63, %v13190_v8 }
 0x27e   : > { %v18465_v0 = vpop.f32.mrf.mxu0 }
 0x280   : > { %3210 = vmatmul.mubr.bf16.gmra.mxu0 %v16381_v13  ;;  %v18467_v31 = vpop.f32.mrf.mxu0 }
 0x281   : > { %14470 = vmatprep.mubr.msk.bf16.mxu0 %vm16815_vm0, %v23510_v7 }
 0x282   : > { %v13196_v37 = vpop.f32.mrf.mxu0 }
 0x284   : > { %v13197_v23 = vpop.f32.mrf.mxu0 }
 0x285   : > { %v18469_v53 = vadd.f32 %v13197_v23, %v13196_v37 }
 0x286   : > { %v18471_v38 = vpop.f32.mrf.mxu0 }
 0x288   : > { %v18473_v4 = vpop.f32.mrf.mxu0 }
 0x28a   : > { %v13202_v29 = vpop.f32.mrf.mxu0 }
 0x28c   : > { %v13203_v41 = vpop.f32.mrf.mxu0 }
 0x28d   : > { %v18475_v46 = vadd.f32 %v13203_v41, %v13202_v29 }
 0x28e   : > { %v18477_v6 = vpop.f32.mrf.mxu0 }
 0x290   : > { %v18479_v21 = vpop.f32.mrf.mxu0 }
 0x292   : > { %v13208_v61 = vpop.f32.mrf.mxu0 }
 0x294   : > { %v13209_v35 = vpop.f32.mrf.mxu0 }
 0x295   : > { %v18481_v55 = vadd.f32 %v13209_v35, %v13208_v61 }
 0x296   : > { %v18483_v49 = vpop.f32.mrf.mxu0 }
 0x298   : > { %v18485_v1 = vpop.f32.mrf.mxu0 }
 0x29a   : > { %v13214_v3 = vpop.f32.mrf.mxu0 }
 0x29c   : > { %v13215_v40 = vpop.f32.mrf.mxu0 }
 0x29d   : > { %v18487_v34 = vadd.f32 %v13215_v40, %v13214_v3 }
 0x29e   : > { %v18489_v5 = vpop.f32.mrf.mxu0 }
 0x2a0   : > { %v18491_v39 = vpop.f32.mrf.mxu0 }
 0x2a7   : > { %v13220_v20 = vpop.f32.mrf.mxu0 }
 0x2a9   : > { %v13221_v48 = vpop.f32.mrf.mxu0 }
 0x2aa   : > { %v18493_v36 = vadd.f32 %v13221_v48, %v13220_v20 }
 0x2ab   : > { %v18495_v32 = vpop.f32.mrf.mxu0 }
 0x2ac   : > { %23512 = vst [vmem:[#allocation3_spill] sm:$0xff] %v18493_v36  ;;  %23513 = vst [vmem:[#allocation23_spill] sm:$0xff] %v18495_v32 }
 0x2ad   : > { %v18497_v18 = vpop.f32.mrf.mxu0 }
 0x2ae   : > { %23514 = vst [vmem:[#allocation19_spill] sm:$0xff] %v18497_v18 }
 0x2af   : > { %v13278_v9 = vpop.f32.mrf.mxu1 }
 0x2b0   : > { %v13226_v60 = vpop.f32.mrf.mxu0 }
 0x2b1   : > { %v13279_v16 = vpop.f32.mrf.mxu1 }
 0x2b2   : > { %v13227_v24 = vpop.f32.mrf.mxu0 }
 0x2b3   : > { %v13281_v58 = vpop.f32.mrf.mxu1  ;;  %v18499_v22 = vadd.f32 %v13227_v24, %v13226_v60 }
 0x2b4   : > { %v18503_v15 = vpop.f32.mrf.mxu0 }
 0x2b5   : > { %v13282_v47 = vpop.f32.mrf.mxu1  ;;  %23515 = vst [vmem:[#allocation29_spill] sm:$0xff] %v18499_v22  ;;  %23516 = vst [vmem:[#allocation15_spill] sm:$0xff] %v18503_v15  ;;  %v13280_v22 = vadd.f32 %v13279_v16, %v13278_v9 }
 0x2b6   : > { %v18505_v27 = vpop.f32.mrf.mxu0  ;;  %v13283_v18 = vadd.f32 %v13282_v47, %v13281_v58 }
 0x2b7   : > { %v18501_v50 = vpop.f32.mrf.mxu1  ;;  %23517 = vst [vmem:[#allocation17_spill] sm:$0xff] %v18505_v27 }
 0x2b8   : > { %v13232_v25 = vpop.f32.mrf.mxu0 }
 0x2b9   : > { %v13285_v57 = vpop.f32.mrf.mxu1 }
 0x2ba   : > { %v13233_v33 = vpop.f32.mrf.mxu0 }
 0x2bb   : > { %v18507_v26 = vpop.f32.mrf.mxu1  ;;  %v18511_v2 = vadd.f32 %v13233_v33, %v13232_v25 }
 0x2bc   : > { %v18515_v54 = vpop.f32.mrf.mxu0 }
 0x2bd   : > { %v18509_v12 = vpop.f32.mrf.mxu1  ;;  %23518 = vst [vmem:[#allocation7_spill] sm:$0xff] %v18511_v2  ;;  %23519 = vst [vmem:[#allocation6_spill] sm:$0xff] %v18515_v54 }
 0x2be   : > { %v18519_v11 = vpop.f32.mrf.mxu0 }
 0x2bf   : > { %v18513_v14 = vpop.f32.mrf.mxu1  ;;  %23520 = vst [vmem:[#allocation30_spill] sm:$0xff] %v18519_v11 }
 0x2c0   : > { %v13238_v45 = vpop.f32.mrf.mxu0 }
 0x2c1   : > { %v18517_v42 = vpop.f32.mrf.mxu1 }
 0x2c2   : > { %v13239_v44 = vpop.f32.mrf.mxu0 }
 0x2c3   : > { %v18521_v59 = vpop.f32.mrf.mxu1  ;;  %v18525_v52 = vadd.f32 %v13239_v44, %v13238_v45 }
 0x2c4   : > { %v18529_v17 = vpop.f32.mrf.mxu0 }
 0x2c5   : > { %v18523_v30 = vpop.f32.mrf.mxu1  ;;  %23521 = vst [vmem:[#allocation13_spill] sm:$0xff] %v18525_v52  ;;  %23522 = vst [vmem:[#allocation11_spill] sm:$0xff] %v18529_v17 }
 0x2c6   : > { %v18533_v51 = vpop.f32.mrf.mxu0 }
 0x2c7   : > { %v18527_v62 = vpop.f32.mrf.mxu1  ;;  %23523 = vst [vmem:[#allocation22_spill] sm:$0xff] %v18533_v51 }
 0x2c8   : > { %v13244_v8 = vpop.f32.mrf.mxu0 }
 0x2c9   : > { %v18531_v43 = vpop.f32.mrf.mxu1 }
 0x2ca   : > { %v13245_v37 = vpop.f32.mrf.mxu0 }
 0x2cb   : > { %v18535_v13 = vpop.f32.mrf.mxu1  ;;  %v18539_v23 = vadd.f32 %v13245_v37, %v13244_v8 }
 0x2cc   : > { %v18543_v41 = vpop.f32.mrf.mxu0 }
 0x2cd   : > { %v18537_v63 = vpop.f32.mrf.mxu1 }
 0x2ce   : > { %v18547_v35 = vpop.f32.mrf.mxu0 }
 0x2cf   : > { %v18541_v29 = vpop.f32.mrf.mxu1 }
 0x2d0   : > { %v13250_v40 = vpop.f32.mrf.mxu0 }
 0x2d1   : > { %v18545_v61 = vpop.f32.mrf.mxu1 }
 0x2d2   : > { %v13251_v48 = vpop.f32.mrf.mxu0 }
 0x2d3   : > { %v18549_v3 = vpop.f32.mrf.mxu1  ;;  %v18553_v60 = vadd.f32 %v13251_v48, %v13250_v40 }
 0x2d4   : > { %v18557_v25 = vpop.f32.mrf.mxu0 }
 0x2d5   : > { %v18551_v20 = vpop.f32.mrf.mxu1 }
 0x2d6   : > { %v18561_v45 = vpop.f32.mrf.mxu0 }
 0x2d7   : > { %v18555_v24 = vpop.f32.mrf.mxu1 }
 0x2d8   : > { %v13256_v8 = vpop.f32.mrf.mxu0 }
 0x2d9   : > { %v18559_v33 = vpop.f32.mrf.mxu1 }
 0x2da   : > { %v13257_v51 = vpop.f32.mrf.mxu0 }
 0x2db   : > { %v18563_v44 = vpop.f32.mrf.mxu1  ;;  %v18567_v17 = vadd.f32 %v13257_v51, %v13256_v8  ;;  %v13189_v8 = vadd.f32 %v18459_v10, %v18454_v28  ;;  %v13289_v28 = vadd.f32 %v18509_v12, %v18507_v26 }
 0x2dc   : > { %v18571_v40 = vpop.f32.mrf.mxu0 }
 0x2dd   : > { %v18565_v37 = vpop.f32.mrf.mxu1  ;;  %23524 = vst [vmem:[#allocation14_spill] sm:$0xff] %v18567_v17  ;;  %23526 = vst [vmem:[#allocation20_spill] sm:$0xff] %v18571_v40 }
 0x2de   : > { %v18575_v11 = vpop.f32.mrf.mxu0 }
 0x2df   : > { %v18569_v52 = vpop.f32.mrf.mxu1  ;;  %23528 = vst [vmem:[#allocation10_spill] sm:$0xff] %v18575_v11  ;;  %v2979_v11 = vadd.f32 %v13280_v22, %v18452_v19  ;;  %v13195_v22 = vadd.f32 %v18467_v31, %v18465_v0 }
 0x2e0   : > { %23525 = vst [vmem:[#allocation24_spill] sm:$0xff] %v18569_v52  ;;  %v13372_v2 = vpop.f32.mrf.mxu0  ;;  %v13286_v52 = vadd.f32 %v13285_v57, %v18501_v50 }
 0x2e1   : > { %v18573_v48 = vpop.f32.mrf.mxu1 }
 0x2e2   : > { %23527 = vst [vmem:[#allocation21_spill] sm:$0xff] %v18573_v48  ;;  %v13373_v15 = vpop.f32.mrf.mxu0  ;;  %v2982_v48 = vadd.f32 %v13283_v18, %v13189_v8 }
 0x2e3   : > { %v18577_v54 = vpop.f32.mrf.mxu1  ;;  %v13374_v36 = vadd.f32 %v13373_v15, %v13372_v2  ;;  %v2987_v15 = vadd.f32 %v13286_v52, %v18463_v56  ;;  %v13292_v56 = vadd.f32 %v18517_v42, %v18513_v14  ;;  %v13201_v42 = vadd.f32 %v18473_v4, %v18471_v38 }
 0x2e4   : > { %23529 = vst [vmem:[#allocation12_spill] sm:$0xff] %v18577_v54  ;;  %v13375_v51 = vpop.f32.mrf.mxu0 }
 0x2e5   : > { %v18579_v27 = vpop.f32.mrf.mxu1  ;;  %v3116_v16 = vadd.f32 %v13374_v36, %v2979_v11  ;;  %v2990_v11 = vadd.f32 %v13289_v28, %v13195_v22  ;;  %v2995_v28 = vadd.f32 %v13292_v56, %v18469_v53  ;;  %v16400_v53 = vld [vmem:[%s23173_s3 + $0x138] sm:$0xff]  }
 0x2e6   : > { %23530 = vst [vmem:[#allocation4_spill] sm:$0xff] %v18579_v27  ;;  %v13376_v17 = vpop.f32.mrf.mxu0 }
 0x2e7   : > { %v18581_v32 = vpop.f32.mrf.mxu1  ;;  %v13377_v54 = vadd.f32 %v13376_v17, %v13375_v51 }
 0x2e8   : > { %23531 = vst [vmem:[#allocation5_spill] sm:$0xff] %v18581_v32  ;;  %v13378_v9 = vpop.f32.mrf.mxu0 }
 0x2e9   : > { %v18585_v40 = vpop.f32.mrf.mxu1  ;;  %v3119_v58 = vadd.f32 %v13377_v54, %v2982_v48 }
 0x2ea   : > { %v13379_v32 = vpop.f32.mrf.mxu0 }
 0x2eb   : > { %v18589_v27 = vpop.f32.mrf.mxu1  ;;  %v18595_v10 = vpack.c.bf16 %v3119_v58, %v3116_v16  ;;  %v13380_v19 = vadd.f32 %v13379_v32, %v13378_v9  ;;  %v13295_v9 = vadd.f32 %v18523_v30, %v18521_v59  ;;  %v13298_v16 = vadd.f32 %v18531_v43, %v18527_v62 }
 0x2ec   : > { %v13381_v50 = vpop.f32.mrf.mxu0  ;;  %v13207_v59 = vadd.f32 %v18479_v21, %v18477_v6 }
 0x2ed   : > { %v18591_v47 = vpop.f32.mrf.mxu1  ;;  %23532 = vst [vmem:[#allocation27_spill] sm:$0xff] %v18595_v10  ;;  %v3124_v57 = vadd.f32 %v13380_v19, %v2987_v15  ;;  %v3263_v36 = vshrl.u32 %v18595_v10, 16  ;;  %v3265_v2 = vshll.u32 %v18595_v10, 16  ;;  %v2998_v6 = vadd.f32 %v13295_v9, %v13201_v42 }
 0x2ee   : > { %v13382_v26 = vpop.f32.mrf.mxu0 }
 0x2ef   : > { %v18598_v18 = vpop.f32.mrf.mxu1  ;;  %v18606_v12 = vpack.c.bf16 %v3124_v57, %v3119_v58  ;;  %v13383_v17 = vadd.f32 %v13382_v26, %v13381_v50  ;;  %v18612_v52 = vrot.slane %v3263_v36, 1  ;;  %v18614_v31 = vrot.slane %v3265_v2, 2 }
 0x2f0   : > { %v13384_v0 = vpop.f32.mrf.mxu0  ;;  %v3267_v22 = vrot.slane %v3265_v2, 1  ;;  %v3003_v26 = vadd.f32 %v13298_v16, %v18475_v46  ;;  %v13301_v2 = vadd.f32 %v18537_v63, %v18535_v13  ;;  %v16401_v13 = vld [vmem:[%s23173_s3 + $0x38] sm:$0xff]  }
 0x2f1   : > { %v18604_v54 = vpop.f32.mrf.mxu1  ;;  %v3127_v48 = vadd.f32 %v13383_v17, %v2990_v11  ;;  %v4592_v30 = vshrl.u32 %v18606_v12, 16  ;;  %v4595_v62 = vshll.u32 %v18606_v12, 16  ;;  %v3681_v11 = vrot.slane %v18595_v10, 1 }
 0x2f2   : > { %v13385_v8 = vpop.f32.mrf.mxu0  ;;  %v3268_v46 = vor.u32 %v3267_v22, %v3263_v36  ;;  %v4374_v63 = vrot.slane %v18606_v12, 3 }
 0x2f3   : > { %v18610_v32 = vpop.f32.mrf.mxu1  ;;  %v18626_v58 = vpack.c.bf16 %v3127_v48, %v3124_v57  ;;  %v13386_v15 = vadd.f32 %v13385_v8, %v13384_v0  ;;  %v4594_v14 = vrot.slane %v4592_v30, 3  ;;  %v4597_v9 = vrot.slane %v4595_v62, 4  ;;  %v16402_v30 = vld [vmem:[%s23173_s3 + $0x130] sm:$0xff]  }
 0x2f4   : > { %v13387_v43 = vpop.f32.mrf.mxu0 }
 0x2f5   : > { %v18616_v51 = vpop.f32.mrf.mxu1  ;;  %v3132_v50 = vadd.f32 %v13386_v15, %v2995_v28  ;;  %v23226_v38 = vrot.slane %v18626_v58, 1  ;;  %v3270_v4 = vshll.u32 %v18626_v58, 16  ;;  %v3274_v17 = vshrl.u32 %v18626_v58, 16 }
 0x2f6   : > { %v13388_v21 = vpop.f32.mrf.mxu0 }
 0x2f7   : > { %v18629_v19 = vpop.f32.mrf.mxu1  ;;  %v18647_v56 = vpack.c.bf16 %v3132_v50, %v3127_v48  ;;  %v13389_v0 = vadd.f32 %v13388_v21, %v13387_v43  ;;  %v3683_v8 = vsel %vm3680_vm2, %v3681_v11, %v23226_v38  ;;  %v3272_v28 = vrot.slane %v3270_v4, 1 }
 0x2f8   : > { %v13390_v42 = vpop.f32.mrf.mxu0  ;;  %14471 = vmatmul.mubr.bf16.vlgmr.msra.gmra.mxu0 %v3683_v8  ;;  %v3901_v16 = vrot.slane %v3274_v17, 1  ;;  %v3902_v62 = vrot.slane %v3270_v4, 2  ;;  %v3006_v8 = vadd.f32 %v13301_v2, %v13207_v59  ;;  %v13304_v38 = vadd.f32 %v18545_v61, %v18541_v29  ;;  %v16403_v61 = vld [vmem:[%s23173_s3 + $0x30] sm:$0xff]  }
 0x2f9   : > { %v18641_v57 = vpop.f32.mrf.mxu1  ;;  %v23230_v48 = vshrl.u32 %v18647_v56, 16  ;;  %v23229_v43 = vshll.u32 %v18647_v56, 16  ;;  %14474 = vmatprep.mubr.msk.bf16.mxu0 %vm16815_vm0, %v23510_v7  ;;  %14559 = vmatpush3.bf16.msra.mxu0 %v16400_v53  ;;  %v3135_v22 = vadd.f32 %v13389_v0, %v2998_v6  ;;  %v3273_v21 = vsel %vm3261_vm3, %v3268_v46, %v3272_v28 }
 0x2fa   : > { %v13391_v11 = vpop.f32.mrf.mxu0  ;;  %14560 = vmatprep.subr.bf16.mxu0 %v23510_v7  ;;  %14367 = vmatmul.mubr.bf16.vlgmr.msra.gmra.mxu1 %v3273_v21  ;;  %v13307_v4 = vadd.f32 %v18551_v20, %v18549_v3  ;;  %v4598_v0 = vor.u32 %v4597_v9, %v4594_v14  ;;  %v18688_v20 = vor.u32 %v3902_v62, %v3901_v16  ;;  %v23534_v14 = vrot.slane %v18647_v56, 3 }
 0x2fb   : > { %v18652_v15 = vpop.f32.mrf.mxu1  ;;  %v4602_v53 = vrot.slane %v23230_v48, 3  ;;  %v4605_v10 = vrot.slane %v23229_v43, 4  ;;  %v18678_v59 = vpack.c.bf16 %v3135_v22, %v3132_v50  ;;  %v13392_v2 = vadd.f32 %v13391_v11, %v13390_v42  ;;  %14370 = vmatprep.mubr.msk.bf16.mxu1 %vm16815_vm0, %v23510_v7  ;;  %14403 = vmatpush3.bf16.msra.mxu1 %v16401_v13 }
 0x2fc   : > { %v13393_v29 = vpop.f32.mrf.mxu0  ;;  %14404 = vmatprep.subr.bf16.mxu1 %v23510_v7  ;;  %v18693_v50 = vsel %vm4373_vm4, %v4374_v63, %v23534_v14  ;;  %v3276_v62 = vor.u32 %v3274_v17, %v3272_v28  ;;  %v16405_v17 = vld [vmem:[%s23173_s3 + $0x28] sm:$0xff]   ;;  %v23538_v28 = vor.u32 %v18614_v31, %v18612_v52 }
 0x2fd   : > { %v18665_v36 = vpop.f32.mrf.mxu1  ;;  %23533 = vst [vmem:[#allocation28_spill] sm:$0xff] %v18678_v59  ;;  %14561 = vmatpush3.bf16.msra.mxu0 %v16402_v30  ;;  %v18686_v3 = vor.u32 %v4605_v10, %v4602_v53  ;;  %v3140_v9 = vadd.f32 %v13392_v2, %v3003_v26  ;;  %v3684_v46 = vrot.slane %v18678_v59, 1  ;;  %v3278_v13 = vshll.u32 %v18678_v59, 16  ;;  %v16404_v10 = vld [vmem:[%s23173_s3 + $0x128] sm:$0xff]  }
 0x2fe   : > { %v13394_v42 = vpop.f32.mrf.mxu0  ;;  %v3282_v30 = vshrl.u32 %v18678_v59, 16  ;;  %14562 = vmatprep.subr.bf16.mxu0 %v23510_v7  ;;  %v23536_v2 = vrot.slane %v18626_v58, 1 }
 0x2ff   : > { %v13338_v6 = vpop.f32.mrf.mxu1  ;;  %v13395_v16 = vadd.f32 %v13394_v42, %v13393_v29  ;;  %v18704_v26 = vsel %vm4590_vm5, %v4598_v0, %v18686_v3  ;;  %v18706_v63 = vpack.c.bf16 %v3140_v9, %v3135_v22  ;;  %v3280_v43 = vrot.slane %v3278_v13, 1  ;;  %14405 = vmatpush3.bf16.msra.mxu1 %v16403_v61 }
 0x300   : > { %v13396_v53 = vpop.f32.mrf.mxu0  ;;  %v18711_v14 = vsel %vm3680_vm2, %v23536_v2, %v3684_v46  ;;  %v13213_v22 = vadd.f32 %v18485_v1, %v18483_v49  ;;  %14406 = vmatprep.subr.bf16.mxu1 %v23510_v7  ;;  %v16406_v49 = vld [vmem:[%s23173_s3 + $0x120] sm:$0xff]   ;;  %v3905_v31 = vrot.slane %v3282_v30, 1 }
 0x301   : > { %v13339_v12 = vpop.f32.mrf.mxu1  ;;  %23535 = vst [vmem:[#allocation25_spill] sm:$0xff] %v18706_v63  ;;  %23537 = vst [vmem:[#allocation26_spill] sm:$0xff] %v18711_v14  ;;  %v3143_v0 = vadd.f32 %v13395_v16, %v3006_v8  ;;  %14475 = vmatmul.mubr.bf16.gmra.mxu0 %v18711_v14  ;;  %v18733_v52 = vsel %vm3261_vm3, %v3276_v62, %v3280_v43  ;;  %v3011_v8 = vadd.f32 %v13304_v38, %v18481_v55 }
 0x302   : > { %v13340_v11 = vadd.f32 %v13339_v12, %v13338_v6  ;;  %v18721_v6 = vsel %vm3897_vm6, %v23538_v28, %v18688_v20  ;;  %v13249_v12 = vadd.f32 %v18547_v35, %v18543_v41  ;;  %v13397_v42 = vpop.f32.mrf.mxu0  ;;  %14478 = vmatprep.mubr.msk.bf16.mxu0 %vm16815_vm0, %v23510_v7  ;;  %14563 = vmatpush3.bf16.msra.mxu0 %v16404_v10  ;;  %v3906_v35 = vrot.slane %v3278_v13, 2  ;;  %v16408_v28 = vld [vmem:[%s23173_s3 + $0x118] sm:$0xff]  }
 0x303   : > { %v13341_v21 = vpop.f32.mrf.mxu1  ;;  %v13398_v16 = vadd.f32 %v13397_v42, %v13396_v53  ;;  %14371 = vmatmul.mubr.bf16.gmra.mxu1 %v18733_v52  ;;  %14564 = vmatprep.subr.bf16.mxu0 %v23510_v7  ;;  %v3014_v62 = vadd.f32 %v13307_v4, %v13213_v22  ;;  %v13310_v38 = vadd.f32 %v18559_v33, %v18555_v24 }
 0x304   : > { %v18728_v29 = vadd.f32 %v13340_v11, %v18539_v23  ;;  %v18740_v23 = vpack.c.bf16 %v3143_v0, %v3140_v9  ;;  %v13399_v11 = vpop.f32.mrf.mxu0  ;;  %14374 = vmatprep.mubr.msk.bf16.mxu1 %vm16815_vm0, %v23510_v7  ;;  %14407 = vmatpush3.bf16.msra.mxu1 %v16405_v17  ;;  %v16407_v9 = vld [vmem:[%s23173_s3 + $0x20] sm:$0xff]   ;;  %v3284_v2 = vor.u32 %v3282_v30, %v3280_v43 }
 0x305   : > { %v13342_v61 = vpop.f32.mrf.mxu1  ;;  %v3148_v55 = vadd.f32 %v13398_v16, %v3011_v8  ;;  %14408 = vmatprep.subr.bf16.mxu1 %v23510_v7 }
 0x306   : > { %v13343_v1 = vadd.f32 %v13342_v61, %v13341_v21  ;;  %23539 = vst [vmem:[#allocation18_spill] sm:$0xff] %v18740_v23  ;;  %v3686_v21 = vrot.slane %v18740_v23, 1  ;;  %v3286_v13 = vshll.u32 %v18740_v23, 16  ;;  %v13400_v53 = vpop.f32.mrf.mxu0  ;;  %v3290_v17 = vshrl.u32 %v18740_v23, 16  ;;  %14565 = vmatpush3.bf16.msra.mxu0 %v16406_v49 }
 0x307   : > { %v13344_v41 = vpop.f32.mrf.mxu1  ;;  %v18761_v61 = vor.u32 %v3906_v35, %v3905_v31  ;;  %v18763_v24 = vpack.c.bf16 %v3148_v55, %v3143_v0  ;;  %v13401_v33 = vadd.f32 %v13400_v53, %v13399_v11  ;;  %14566 = vmatprep.subr.bf16.mxu0 %v23510_v7  ;;  %v13313_v49 = vadd.f32 %v18565_v37, %v18563_v44  ;;  %v16409_v0 = vld [vmem:[%s23173_s3 + $0x18] sm:$0xff]   ;;  %v23544_v53 = vld [vmem:[#allocation21_spill] sm:$0xff] }
 0x308   : > { %v18750_v10 = vadd.f32 %v13343_v1, %v13249_v12  ;;  %v18768_v12 = vsel %vm3680_vm2, %v3684_v46, %v3686_v21  ;;  %v3288_v42 = vrot.slane %v3286_v13, 1  ;;  %v13402_v30 = vpop.f32.mrf.mxu0  ;;  %14409 = vmatpush3.bf16.msra.mxu1 %v16407_v9  ;;  %v13219_v37 = vadd.f32 %v18491_v39, %v18489_v5 }
 0x309   : > { %v13345_v4 = vpop.f32.mrf.mxu1  ;;  %23540 = vst [vmem:[#allocation9_spill] sm:$0xff] %v18763_v24  ;;  %23541 = vst [vmem:[#allocation16_spill] sm:$0xff] %v18768_v12  ;;  %v18782_v46 = vsel %vm3897_vm6, %v18688_v20, %v18761_v61  ;;  %v3151_v31 = vadd.f32 %v13401_v33, %v3014_v62  ;;  %14479 = vmatmul.mubr.bf16.gmra.mxu0 %v18768_v12  ;;  %14410 = vmatprep.subr.bf16.mxu1 %v23510_v7  ;;  %v16410_v20 = vld [vmem:[%s23173_s3 + $0x110] sm:$0xff]   ;;  %v3909_v35 = vrot.slane %v3290_v17, 1 }
 0x30a   : > { %v13346_v22 = vadd.f32 %v13345_v4, %v13344_v41  ;;  %v18786_v8 = vsel %vm3261_vm3, %v3284_v2, %v3288_v42  ;;  %v13403_v16 = vpop.f32.mrf.mxu0  ;;  %14482 = vmatprep.mubr.msk.bf16.mxu0 %vm16815_vm0, %v23510_v7  ;;  %14567 = vmatpush3.bf16.msra.mxu0 %v16408_v28  ;;  %v3019_v11 = vadd.f32 %v13310_v38, %v18487_v34  ;;  %v3910_v39 = vrot.slane %v3286_v13, 2  ;;  %v23543_v38 = vld [vmem:[#allocation24_spill] sm:$0xff] }
 0x30b   : > { %v13347_v43 = vpop.f32.mrf.mxu1  ;;  %v18798_v62 = vpack.c.bf16 %v3151_v31, %v3148_v55  ;;  %v13404_v9 = vadd.f32 %v13403_v16, %v13402_v30  ;;  %14375 = vmatmul.mubr.bf16.gmra.mxu1 %v18786_v8  ;;  %14568 = vmatprep.subr.bf16.mxu0 %v23510_v7  ;;  %v16411_v55 = vld [vmem:[%s23173_s3 + $0x10] sm:$0xff]   ;;  %v13316_v2 = vadd.f32 %v23544_v53, %v23543_v38  ;;  %v23550_v53 = vld [vmem:[#allocation12_spill] sm:$0xff] }
 0x30c   : > { %v18777_v1 = vadd.f32 %v13346_v22, %v18553_v60  ;;  %v13255_v60 = vadd.f32 %v18561_v45, %v18557_v25  ;;  %v3022_v25 = vadd.f32 %v13313_v49, %v13219_v37  ;;  %v13405_v45 = vpop.f32.mrf.mxu0  ;;  %14378 = vmatprep.mubr.msk.bf16.mxu1 %vm16815_vm0, %v23510_v7  ;;  %14411 = vmatpush3.bf16.msra.mxu1 %v16409_v0  ;;  %v16412_v49 = vld [vmem:[%s23173_s3 + $0x108] sm:$0xff]  }
 0x30d   : > { %v13348_v44 = vpop.f32.mrf.mxu1  ;;  %23542 = vst [vmem:[#allocation8_spill] sm:$0xff] %v18798_v62  ;;  %v3156_v34 = vadd.f32 %v13404_v9, %v3019_v11  ;;  %v3688_v28 = vrot.slane %v18798_v62, 1  ;;  %v3294_v13 = vshll.u32 %v18798_v62, 16  ;;  %14412 = vmatprep.subr.bf16.mxu1 %v23510_v7  ;;  %v3298_v30 = vshrl.u32 %v18798_v62, 16  ;;  %v23547_v11 = vld [vmem:[#allocation14_spill] sm:$0xff]  ;;  %v23548_v9 = vld [vmem:[#allocation20_spill] sm:$0xff] }
 0x30e   : > { %v13349_v41 = vadd.f32 %v13348_v44, %v13347_v43  ;;  %v13406_v33 = vpop.f32.mrf.mxu0  ;;  %v3292_v43 = vor.u32 %v3290_v17, %v3288_v42  ;;  %14569 = vmatpush3.bf16.msra.mxu0 %v16410_v20  ;;  %v3911_v44 = vor.u32 %v3910_v39, %v3909_v35  ;;  %v16413_v20 = vld [vmem:[%s23173_s3 + $0x8] sm:$0xff]  }
 0x30f   : > { %v13350_v5 = vpop.f32.mrf.mxu1  ;;  %v18819_v37 = vpack.c.bf16 %v3156_v34, %v3151_v31  ;;  %v18824_v16 = vsel %vm3680_vm2, %v3686_v21, %v3688_v28  ;;  %14570 = vmatprep.subr.bf16.mxu0 %v23510_v7  ;;  %v23549_v21 = vld [vmem:[#allocation10_spill] sm:$0xff] }
 0x310   : > { %v18808_v4 = vadd.f32 %v13349_v41, %v13255_v60  ;;  %v13407_v60 = vadd.f32 %v13406_v33, %v13405_v45  ;;  %23546 = vst [vmem:[#allocation21_spill] sm:$0xff] %v18824_v16  ;;  %v3296_v41 = vrot.slane %v3294_v13, 1  ;;  %v13408_v42 = vpop.f32.mrf.mxu0  ;;  %14413 = vmatpush3.bf16.msra.mxu1 %v16411_v55  ;;  %v18835_v31 = vsel %vm3897_vm6, %v18761_v61, %v3911_v44  ;;  %v16414_v61 = vld [vmem:[%s23173_s3 + $0x100] sm:$0xff]  }
 0x311   : > { %v13351_v22 = vpop.f32.mrf.mxu1  ;;  %23545 = vst [vmem:[#allocation24_spill] sm:$0xff] %v18819_v37  ;;  %14483 = vmatmul.mubr.bf16.gmra.mxu0 %v18824_v16  ;;  %14414 = vmatprep.subr.bf16.mxu1 %v23510_v7 }
 0x312   : > { %v13352_v0 = vadd.f32 %v13351_v22, %v13350_v5  ;;  %v13261_v5 = vadd.f32 %v23549_v21, %v23548_v9  ;;  %v3159_v39 = vadd.f32 %v13407_v60, %v3022_v25  ;;  %v18841_v45 = vsel %vm3261_vm3, %v3292_v43, %v3296_v41  ;;  %v13409_v38 = vpop.f32.mrf.mxu0  ;;  %v23551_v22 = vld [vmem:[#allocation4_spill] sm:$0xff]  ;;  %14486 = vmatprep.mubr.msk.bf16.mxu0 %vm16815_vm0, %v23510_v7 }
 0x313   : > { %v13353_v17 = vpop.f32.mrf.mxu1  ;;  %v13319_v33 = vadd.f32 %v23551_v22, %v23550_v53  ;;  %14571 = vmatpush3.bf16.msra.mxu0 %v16412_v49  ;;  %v3914_v60 = vrot.slane %v3294_v13, 2  ;;  %v13410_v21 = vadd.f32 %v13409_v38, %v13408_v42  ;;  %14379 = vmatmul.mubr.bf16.gmra.mxu1 %v18841_v45  ;;  %v23554_v53 = vld [vmem:[#allocation23_spill] sm:$0xff]  ;;  %v3300_v16 = vor.u32 %v3298_v30, %v3296_v41 }
 0x314   : > { %v18831_v35 = vadd.f32 %v13352_v0, %v23547_v11  ;;  %v3913_v0 = vrot.slane %v3298_v30, 1  ;;  %v18851_v43 = vpack.c.bf16 %v3159_v39, %v3156_v34  ;;  %v23553_v11 = vld [vmem:[#allocation3_spill] sm:$0xff]  ;;  %14572 = vmatprep.subr.bf16.mxu0 %v23510_v7  ;;  %v13411_v49 = vpop.f32.mrf.mxu0  ;;  %14382 = vmatprep.mubr.msk.bf16.mxu1 %vm16815_vm0, %v23510_v7 }
 0x315   : > { %v13354_v55 = vpop.f32.mrf.mxu1  ;;  %v3027_v9 = vadd.f32 %v13316_v2, %v23553_v11  ;;  %v23555_v22 = vld [vmem:[#allocation19_spill] sm:$0xff]  ;;  %14415 = vmatpush3.bf16.msra.mxu1 %v16413_v20 }
 0x316   : > { %v13355_v25 = vadd.f32 %v13354_v55, %v13353_v17  ;;  %23552 = vst [vmem:[#allocation14_spill] sm:$0xff] %v18851_v43  ;;  %v13225_v48 = vadd.f32 %v23555_v22, %v23554_v53  ;;  %v16415_v34 = vld [vmem:[%s23173_s3] sm:$0xff]   ;;  %v3915_v2 = vor.u32 %v3914_v60, %v3913_v0  ;;  %v3690_v42 = vrot.slane %v18851_v43, 1  ;;  %14416 = vmatprep.subr.bf16.mxu1 %v23510_v7  ;;  %v13412_v53 = vpop.f32.mrf.mxu0  ;;  %v23556_v22 = vld [vmem:[#allocation5_spill] sm:$0xff] }
 0x317   : > { %v3164_v17 = vadd.f32 %v13410_v21, %v3027_v9  ;;  %v3302_v55 = vshll.u32 %v18851_v43, 16  ;;  %v3306_v38 = vshrl.u32 %v18851_v43, 16  ;;  %v13322_v20 = vadd.f32 %v18585_v40, %v23556_v22  ;;  %14573 = vmatpush3.bf16.msra.mxu0 %v16414_v61 }
 0x318   : > { %v18863_v13 = vadd.f32 %v13355_v25, %v13261_v5  ;;  %v3030_v11 = vadd.f32 %v13319_v33, %v13225_v48  ;;  %v18872_v5 = vsel %vm3897_vm6, %v3911_v44, %v3915_v2  ;;  %v13413_v0 = vadd.f32 %v13412_v53, %v13411_v49  ;;  %14662 = vmatprep.subr.bf16.mxu0 %v23510_v7  ;;  %v13414_v21 = vpop.f32.mrf.mxu0 }
 0x319   : > { %v18874_v25 = vpack.c.bf16 %v3164_v17, %v3159_v39  ;;  %v18877_v60 = vsel %vm3680_vm2, %v3688_v28, %v3690_v42  ;;  %v3304_v9 = vrot.slane %v3302_v55, 1  ;;  %14417 = vmatpush3.bf16.msra.mxu1 %v16415_v34  ;;  %v3917_v48 = vrot.slane %v3306_v38, 1  ;;  %v23559_v39 = vld [vmem:[#allocation29_spill] sm:$0xff]  ;;  %v23560_v34 = vld [vmem:[#allocation15_spill] sm:$0xff] }
 0x31a   : > { %23558 = vst [vmem:[#allocation10_spill] sm:$0xff] %v18877_v60  ;;  %v3918_v33 = vrot.slane %v3302_v55, 2  ;;  %v3167_v12 = vadd.f32 %v13413_v0, %v3030_v11  ;;  %14487 = vmatmul.mubr.bf16.gmra.mxu0 %v18877_v60  ;;  %14506 = vmatprep.subr.bf16.mxu1 %v23510_v7  ;;  %v13415_v30 = vpop.f32.mrf.mxu0  ;;  %v13325_v28 = vadd.f32 %v18591_v47, %v18589_v27 }
 0x31b   : > { %23557 = vst [vmem:[#allocation20_spill] sm:$0xff] %v18874_v25  ;;  %v18882_v40 = vsel %vm3261_vm3, %v3300_v16, %v3304_v9  ;;  %14490 = vmatprep.mubr.msk.bf16.mxu0 %vm16815_vm0, %v23510_v7  ;;  %v3035_v61 = vadd.f32 %v13322_v20, %v23559_v39  ;;  %v13416_v49 = vadd.f32 %v13415_v30, %v13414_v21  ;;  %v23561_v16 = vld [vmem:[#allocation17_spill] sm:$0xff] }
 0x31c   : > { %v3919_v44 = vor.u32 %v3918_v33, %v3917_v48  ;;  %v18889_v41 = vpack.c.bf16 %v3167_v12, %v3164_v17  ;;  %14383 = vmatmul.mubr.bf16.gmra.mxu1 %v18882_v40  ;;  %v13231_v55 = vadd.f32 %v23561_v16, %v23560_v34  ;;  %v13417_v11 = vpop.f32.mrf.mxu0  ;;  %v13328_v21 = vadd.f32 %v18604_v54, %v18598_v18 }
 0x31d   : > { %14386 = vmatprep.mubr.msk.bf16.mxu1 %vm16815_vm0, %v23510_v7  ;;  %v3172_v47 = vadd.f32 %v13416_v49, %v3035_v61  ;;  %v3308_v48 = vor.u32 %v3306_v38, %v3304_v9  ;;  %v23567_v54 = vshll.u32 %v18647_v56, 16  ;;  %v13331_v38 = vadd.f32 %v18616_v51, %v18610_v32 }
 0x31e   : > { %v18898_v27 = vsel %vm3897_vm6, %v3915_v2, %v3919_v44  ;;  %v3692_v53 = vrot.slane %v18889_v41, 1  ;;  %v3310_v17 = vshll.u32 %v18889_v41, 16  ;;  %v3314_v22 = vshrl.u32 %v18889_v41, 16  ;;  %v13418_v0 = vpop.f32.mrf.mxu0 }
 0x31f   : > { %v3038_v20 = vadd.f32 %v13325_v28, %v13231_v55  ;;  %v18905_v33 = vpack.c.bf16 %v3172_v47, %v3167_v12  ;;  %v13419_v30 = vadd.f32 %v13418_v0, %v13417_v11  ;;  %v23565_v55 = vshrl.u32 %v18647_v56, 16 }
 0x320   : > { %v18908_v39 = vsel %vm3680_vm2, %v3690_v42, %v3692_v53  ;;  %v3312_v2 = vrot.slane %v3310_v17, 1  ;;  %v13420_v61 = vpop.f32.mrf.mxu0  ;;  %v3921_v49 = vrot.slane %v3314_v22, 1  ;;  %v3922_v34 = vrot.slane %v3310_v17, 2  ;;  %v23569_v17 = vld [vmem:[#allocation7_spill] sm:$0xff] }
 0x321   : > { %23562 = vst [vmem:[#allocation12_spill] sm:$0xff] %v18905_v33  ;;  %23563 = vst [vmem:[#allocation4_spill] sm:$0xff] %v18908_v39  ;;  %v3175_v16 = vadd.f32 %v13419_v30, %v3038_v20  ;;  %v18916_v18 = vrot.slane %v23565_v55, 2  ;;  %v18920_v12 = vrot.slane %v23567_v54, 3  ;;  %v3043_v20 = vadd.f32 %v13328_v21, %v23569_v17  ;;  %v23571_v30 = vld [vmem:[#allocation30_spill] sm:$0xff] }
 0x322   : > { %14491 = vmatmul.mubr.bf16.gmra.mxu0 %v18908_v39  ;;  %v18912_v28 = vsel %vm3261_vm3, %v3308_v48, %v3312_v2  ;;  %v13421_v42 = vpop.f32.mrf.mxu0  ;;  %v3923_v9 = vor.u32 %v3922_v34, %v3921_v49  ;;  %v23570_v48 = vld [vmem:[#allocation6_spill] sm:$0xff]  ;;  %v13334_v17 = vadd.f32 %v18641_v57, %v18629_v19 }
 0x323   : > { %23564 = vst [vmem:[#allocation3_spill] sm:$0xff] %v18912_v28  ;;  %23566 = vst [vmem:[#allocation23_spill] sm:$0xff] %v18916_v18  ;;  %14494 = vmatprep.mubr.msk.bf16.mxu0 %vm16815_vm0, %v23510_v7  ;;  %v18926_v11 = vpack.c.bf16 %v3175_v16, %v3172_v47  ;;  %v13422_v0 = vadd.f32 %v13421_v42, %v13420_v61  ;;  %v13237_v55 = vadd.f32 %v23571_v30, %v23570_v48 }
 0x324   : > { %23568 = vst [vmem:[#allocation19_spill] sm:$0xff] %v18920_v12  ;;  %14387 = vmatmul.mubr.bf16.gmra.mxu1 %v18912_v28  ;;  %v13423_v54 = vpop.f32.mrf.mxu0  ;;  %v18935_v32 = vsel %vm3897_vm6, %v3919_v44, %v3923_v9  ;;  %v3316_v42 = vor.u32 %v3314_v22, %v3312_v2 }
 0x325   : > { %14390 = vmatprep.mubr.msk.bf16.mxu1 %vm16815_vm0, %v23510_v7  ;;  %v3180_v51 = vadd.f32 %v13422_v0, %v3043_v20  ;;  %v3694_v49 = vrot.slane %v18926_v11, 1  ;;  %v3318_v47 = vshll.u32 %v18926_v11, 16  ;;  %v3322_v21 = vshrl.u32 %v18926_v11, 16 }
 0x326   : > { %v3046_v61 = vadd.f32 %v13331_v38, %v13237_v55  ;;  %v13424_v34 = vpop.f32.mrf.mxu0  ;;  %v13337_v55 = vadd.f32 %v18665_v36, %v18652_v15 }
 0x327   : > { %v18944_v30 = vpack.c.bf16 %v3180_v51, %v3175_v16  ;;  %v13425_v44 = vadd.f32 %v13424_v34, %v13423_v54  ;;  %v18947_v20 = vsel %vm3680_vm2, %v3692_v53, %v3694_v49  ;;  %v3320_v0 = vrot.slane %v3318_v47, 1  ;;  %v23575_v53 = vld [vmem:[#allocation13_spill] sm:$0xff]  ;;  %v23577_v34 = vld [vmem:[#allocation11_spill] sm:$0xff] }
 0x328   : > { %23573 = vst [vmem:[#allocation29_spill] sm:$0xff] %v18947_v20  ;;  %v13426_v39 = vpop.f32.mrf.mxu0  ;;  %v3925_v60 = vrot.slane %v3322_v21, 1  ;;  %v3926_v14 = vrot.slane %v3318_v47, 2  ;;  %v3051_v16 = vadd.f32 %v13334_v17, %v23575_v53 }
 0x329   : > { %23572 = vst [vmem:[#allocation5_spill] sm:$0xff] %v18944_v30  ;;  %v3183_v28 = vadd.f32 %v13425_v44, %v3046_v61  ;;  %v18951_v22 = vsel %vm3261_vm3, %v3316_v42, %v3320_v0  ;;  %v3324_v17 = vor.u32 %v3322_v21, %v3320_v0 }
 0x32a   : > { %14495 = vmatmul.mubr.bf16.gmra.mxu0 %v18947_v20  ;;  %23574 = vst [vmem:[#allocation15_spill] sm:$0xff] %v18951_v22  ;;  %v13427_v19 = vpop.f32.mrf.mxu0  ;;  %v3927_v57 = vor.u32 %v3926_v14, %v3925_v60 }
 0x32b   : > { %14498 = vmatprep.mubr.msk.bf16.mxu0 %vm16815_vm0, %v23510_v7  ;;  %v18955_v2 = vpack.c.bf16 %v3183_v28, %v3180_v51  ;;  %v13428_v38 = vadd.f32 %v13427_v19, %v13426_v39  ;;  %v23578_v39 = vld [vmem:[#allocation22_spill] sm:$0xff] }
 0x32c   : > { %14391 = vmatmul.mubr.bf16.gmra.mxu1 %v18951_v22  ;;  %v13429_v54 = vpop.f32.mrf.mxu0  ;;  %v18964_v47 = vsel %vm3897_vm6, %v3923_v9, %v3927_v57  ;;  %v13243_v42 = vadd.f32 %v23578_v39, %v23577_v34 }
 0x32d   : > { %14394 = vmatprep.mubr.msk.bf16.mxu1 %vm16815_vm0, %v23510_v7  ;;  %v3188_v61 = vadd.f32 %v13428_v38, %v3051_v16  ;;  %v18967_v14 = vrot.slane %v18955_v2, 1  ;;  %v3326_v60 = vshll.u32 %v18955_v2, 16  ;;  %v3330_v51 = vshrl.u32 %v18955_v2, 16 }
 0x32e   : > { %v13430_v44 = vpop.f32.mrf.mxu0  ;;  %v3054_v53 = vadd.f32 %v13337_v55, %v13243_v42 }
 0x32f   : > { %23576 = vst [vmem:[#allocation17_spill] sm:$0xff] %v18967_v14  ;;  %v18973_v19 = vpack.c.bf16 %v3188_v61, %v3188_v61  ;;  %v18975_v15 = vpack.c.bf16 %v3188_v61, %v3183_v28  ;;  %v18979_v36 = vsel %vm3680_vm2, %v3694_v49, %v18967_v14  ;;  %v3328_v9 = vrot.slane %v3326_v60, 1 }
 0x330   : > { %23580 = vst [vmem:[#allocation6_spill] sm:$0xff] %v18979_v36  ;;  %v13431_v16 = vadd.f32 %v13430_v44, %v13429_v54  ;;  %v13432_v38 = vpop.f32.mrf.mxu0  ;;  %v3929_v34 = vrot.slane %v3330_v51, 1  ;;  %v3930_v55 = vrot.slane %v3326_v60, 2 }
 0x331   : > { %23579 = vst [vmem:[#allocation7_spill] sm:$0xff] %v18975_v15  ;;  %v18983_v48 = vsel %vm3261_vm3, %v3324_v17, %v3328_v9  ;;  %v3334_v28 = vshll.u32 %v18973_v19, 16  ;;  %v3698_v54 = vrot.slane %v18973_v19, 1  ;;  %v3933_v18 = vshrl.u32 %v18973_v19, 16 }
 0x332   : > { %14499 = vmatmul.mubr.bf16.gmra.mxu0 %v18979_v36  ;;  %23581 = vst [vmem:[#allocation30_spill] sm:$0xff] %v18983_v48  ;;  %v18988_v21 = vadd.f32 %v13431_v16, %v3054_v53  ;;  %v13433_v0 = vpop.f32.mrf.mxu0  ;;  %v3931_v44 = vor.u32 %v3930_v55, %v3929_v34 }
 0x333   : > { %14502 = vmatprep.mubr.msk.bf16.mxu0 %vm16815_vm0, %v23510_v7  ;;  %v13434_v49 = vadd.f32 %v13433_v0, %v13432_v38  ;;  %v3336_v53 = vrot.slane %v3334_v28, 1  ;;  %v3936_v12 = vrot.slane %v3334_v28, 2  ;;  %v3699_v0 = vsel %vm3680_vm2, %v18967_v14, %v3698_v54  ;;  %v23587_v54 = vld [vmem:[#allocation27_spill] sm:$0xff]  ;;  %v16420_v14 = vld [vmem:[%s23173_s3 + $0x1a8] sm:$0xff]  }
 0x334   : > { %14395 = vmatmul.mubr.bf16.gmra.mxu1 %v18983_v48  ;;  %v18995_v39 = vpack.c.bf16 %v18988_v21, %v3188_v61  ;;  %v13435_v42 = vpop.f32.mrf.mxu0  ;;  %v19007_v61 = vor.u32 %v3330_v51, %v3328_v9  ;;  %v3935_v34 = vrot.slane %v3933_v18, 1  ;;  %v4138_v9 = vrot.slane %v18626_v58, 2 }
 0x335   : > { %14398 = vmatprep.mubr.msk.bf16.mxu1 %vm16815_vm0, %v23510_v7  ;;  %v18998_v17 = vadd.f32 %v13434_v49, %v18728_v29  ;;  %v19010_v29 = vsel %vm3897_vm6, %v3927_v57, %v3931_v44 }
 0x336   : > { %23582 = vst [vmem:[#allocation13_spill] sm:$0xff] %v18995_v39  ;;  %v13436_v16 = vpop.f32.mrf.mxu0  ;;  %23585 = vst [vmem:[#allocation31_spill] sm:$0xff] %v19007_v61  ;;  %v3337_v28 = vsel %vm3261_vm3, %v19007_v61, %v3336_v53  ;;  %v4137_v53 = vrot.slane %v23587_v54, 2 }
 0x337   : > { %23583 = vst [vmem:[#allocation11_spill] sm:$0xff] %v18998_v17  ;;  %v19003_v60 = vpack.c.bf16 %v18998_v17, %v18988_v21  ;;  %v13437_v38 = vadd.f32 %v13436_v16, %v13435_v42  ;;  %v3937_v42 = vor.u32 %v3936_v12, %v3935_v34  ;;  %v16416_v12 = vld [vmem:[%s23173_s3 + $0x1b8] sm:$0xff]  }
 0x338   : > { %v13438_v36 = vpop.f32.mrf.mxu0 }
 0x339   : > { %23584 = vst [vmem:[#allocation22_spill] sm:$0xff] %v19003_v60  ;;  %v19013_v49 = vadd.f32 %v13437_v38, %v18750_v10  ;;  %v19023_v57 = vsel %vm3897_vm6, %v3931_v44, %v3937_v42  ;;  %v16417_v44 = vld [vmem:[%s23173_s3 + $0xf8] sm:$0xff]   ;;  %v16418_v42 = vld [vmem:[%s23173_s3 + $0x1b0] sm:$0xff]  }
 0x33a   : > { %14503 = vmatmul.mubr.bf16.gmra.mxu0 %v3699_v0  ;;  %v13439_v55 = vpop.f32.mrf.mxu0  ;;  %v4139_v0 = vsel %vm4136_vm7, %v4137_v53, %v4138_v9 }
 0x33b   : > { %23586 = vst [vmem:[#allocation32_spill] sm:$0xff] %v19013_v49  ;;  %14574 = vmatprep.mubr.msk.bf16.mxu0 %vm16815_vm0, %v23510_v7  ;;  %v13440_v51 = vadd.f32 %v13439_v55, %v13438_v36  ;;  %v19044_v55 = vshll.u32 %v18905_v33, 16 }
 0x33c   : > { %14399 = vmatmul.mubr.bf16.gmra.mxu1 %v3337_v28  ;;  %v13441_v18 = vpop.f32.mrf.mxu0  ;;  %v19041_v28 = vshrl.u32 %v18905_v33, 16 }
 0x33d   : > { %14418 = vmatprep.mubr.msk.bf16.mxu1 %vm16815_vm0, %v23510_v7  ;;  %v3204_v10 = vadd.f32 %v13440_v51, %v18777_v1  ;;  %23589 = vst [vmem:[#allocation33_spill] sm:$0xff] %v19044_v55 }
 0x33e   : > { %v13442_v16 = vpop.f32.mrf.mxu0 }
 0x33f   : > { %v19031_v36 = vpack.c.bf16 %v3204_v10, %v19013_v49  ;;  %v13443_v38 = vadd.f32 %v13442_v16, %v13441_v18  ;;  %v19052_v18 = vshrl.u32 %v18944_v30, 16  ;;  %v4140_v10 = vrot.slane %v18678_v59, 2 }
 0x340   : > { %v13444_v34 = vpop.f32.mrf.mxu0 }
 0x341   : > { %23588 = vst [vmem:[#allocation27_spill] sm:$0xff] %v19031_v36  ;;  %v19038_v1 = vadd.f32 %v13443_v38, %v18808_v4  ;;  %v19055_v4 = vshll.u32 %v18944_v30, 16  ;;  %v19066_v38 = vshrl.u32 %v18975_v15, 16  ;;  %v5710_v61 = vrot.slane %v19052_v18, 2 }
 0x342   : > { %14575 = vmatmul.mubr.bf16.vlgmr.msra.gmra.mxu0 %v4139_v0  ;;  %v13445_v51 = vpop.f32.mrf.mxu0  ;;  %v19069_v0 = vshll.u32 %v18975_v15, 16 }
 0x343   : > { %14578 = vmatprep.mubr.msk.bf16.mxu0 %vm16815_vm0, %v23510_v7  ;;  %14663 = vmatpush3.bf16.msra.mxu0 %v16416_v12  ;;  %v13446_v53 = vadd.f32 %v13445_v51, %v13444_v34  ;;  %v16419_v12 = vld [vmem:[%s23173_s3 + $0xf0] sm:$0xff]   ;;  %v5706_v34 = vrot.slane %v19041_v28, 2  ;;  %v5707_v51 = vrot.slane %v19044_v55, 3  ;;  %v5711_v15 = vrot.slane %v19055_v4, 3 }
 0x344   : > { %14419 = vmatmul.mubr.bf16.vlgmr.msra.gmra.mxu1 %v23587_v54  ;;  %14664 = vmatprep.subr.bf16.mxu0 %v23510_v7  ;;  %v13447_v16 = vpop.f32.mrf.mxu0  ;;  %v5714_v22 = vrot.slane %v19066_v38, 2  ;;  %v5715_v33 = vrot.slane %v19069_v0, 3 }
 0x345   : > { %14422 = vmatprep.mubr.msk.bf16.mxu1 %vm16815_vm0, %v23510_v7  ;;  %14507 = vmatpush3.bf16.msra.mxu1 %v16417_v44  ;;  %v3212_v54 = vadd.f32 %v13446_v53, %v18831_v35  ;;  %v19077_v44 = vpack.c.bf16 %v19013_v49, %v19013_v49  ;;  %v4141_v35 = vsel %vm4136_vm7, %v4138_v9, %v4140_v10  ;;  %v16424_v49 = vld [vmem:[%s23173_s3 + $0x198] sm:$0xff]  }
 0x346   : > { %14508 = vmatprep.subr.bf16.mxu1 %v23510_v7  ;;  %v13448_v20 = vpop.f32.mrf.mxu0  ;;  %v19092_v39 = vor.u32 %v5707_v51, %v5706_v34  ;;  %v5712_v30 = vor.u32 %v5711_v15, %v5710_v61  ;;  %v16422_v15 = vld [vmem:[%s23173_s3 + $0x1a0] sm:$0xff]   ;;  %v4142_v51 = vrot.slane %v18740_v23, 2 }
 0x347   : > { %23590 = vst [vmem:[#allocation34_spill] sm:$0xff] %v19077_v44  ;;  %14665 = vmatpush3.bf16.msra.mxu0 %v16418_v42  ;;  %v19087_v53 = vpack.c.bf16 %v3212_v54, %v19038_v1  ;;  %v13449_v48 = vadd.f32 %v13448_v20, %v13447_v16  ;;  %v16421_v42 = vld [vmem:[%s23173_s3 + $0xe8] sm:$0xff]   ;;  %v19101_v20 = vshrl.u32 %v19003_v60, 16  ;;  %v5728_v16 = vshrl.u32 %v19077_v44, 16 }
 0x348   : > { %14666 = vmatprep.subr.bf16.mxu0 %v23510_v7  ;;  %23592 = vst [vmem:[#allocation36_spill] sm:$0xff] %v19092_v39  ;;  %v19113_v61 = vsel %vm5686_vm8, %v19092_v39, %v5712_v30  ;;  %v5731_v34 = vshll.u32 %v19077_v44, 16  ;;  %v4143_v39 = vsel %vm4136_vm7, %v4140_v10, %v4142_v51  ;;  %v6754_v10 = vrot.slane %v19055_v4, 2  ;;  %v16427_v44 = vld [vmem:[%s23173_s3 + $0xd0] sm:$0xff]  }
 0x349   : > { %23591 = vst [vmem:[#allocation35_spill] sm:$0xff] %v19087_v53  ;;  %14509 = vmatpush3.bf16.msra.mxu1 %v16419_v12  ;;  %v19098_v9 = vadd.f32 %v13449_v48, %v18863_v13  ;;  %23593 = vst [vmem:[#allocation37_spill] sm:$0xff] %v19101_v20  ;;  %v19104_v12 = vshll.u32 %v19003_v60, 16  ;;  %v19115_v13 = vor.u32 %v5715_v33, %v5714_v22  ;;  %v16423_v33 = vld [vmem:[%s23173_s3 + $0xe0] sm:$0xff]  }
 0x34a   : > { %14579 = vmatmul.mubr.bf16.gmra.mxu0 %v4141_v35  ;;  %14510 = vmatprep.subr.bf16.mxu1 %v23510_v7  ;;  %23595 = vst [vmem:[#allocation39_spill] sm:$0xff] %v19113_v61  ;;  %v5730_v35 = vrot.slane %v5728_v16, 2  ;;  %v5733_v48 = vrot.slane %v5731_v34, 3 }
 0x34b   : > { %23594 = vst [vmem:[#allocation38_spill] sm:$0xff] %v19104_v12  ;;  %14582 = vmatprep.mubr.msk.bf16.mxu0 %vm16815_vm0, %v23510_v7  ;;  %14667 = vmatpush3.bf16.msra.mxu0 %v16420_v14  ;;  %23596 = vst [vmem:[#allocation40_spill] sm:$0xff] %v19115_v13  ;;  %v5721_v14 = vrot.slane %v19101_v20, 2  ;;  %v5724_v54 = vrot.slane %v19104_v12, 3  ;;  %v19133_v22 = vsel %vm5686_vm8, %v5712_v30, %v19115_v13  ;;  %v16425_v30 = vld [vmem:[%s23173_s3 + $0xd8] sm:$0xff]   ;;  %v6749_v13 = vrot.slane %v19041_v28, 1 }
 0x34c   : > { %14423 = vmatmul.mubr.bf16.gmra.mxu1 %v18626_v58  ;;  %14668 = vmatprep.subr.bf16.mxu0 %v23510_v7  ;;  %23597 = vst [vmem:[#allocation41_spill] sm:$0xff] %v19133_v22  ;;  %v5734_v61 = vor.u32 %v5733_v48, %v5730_v35  ;;  %v6753_v22 = vrot.slane %v19052_v18, 1  ;;  %v16426_v48 = vld [vmem:[%s23173_s3 + $0x190] sm:$0xff]  }
 0x34d   : > { %14426 = vmatprep.mubr.msk.bf16.mxu1 %vm16815_vm0, %v23510_v7  ;;  %14511 = vmatpush3.bf16.msra.mxu1 %v16421_v42  ;;  %v19140_v42 = vor.u32 %v5724_v54, %v5721_v14  ;;  %v6757_v54 = vrot.slane %v19066_v38, 1 }
 0x34e   : > { %14512 = vmatprep.subr.bf16.mxu1 %v23510_v7 }
 0x34f   : > { %14669 = vmatpush3.bf16.msra.mxu0 %v16422_v15  ;;  %23598 = vst [vmem:[#allocation42_spill] sm:$0xff] %v19140_v42  ;;  %v6750_v15 = vrot.slane %v19044_v55, 2  ;;  %v19152_v14 = vsel %vm5686_vm8, %v19140_v42, %v5734_v61  ;;  %v4665_v61 = vrot.slane %v19066_v38, 3 }
 0x350   : > { %14670 = vmatprep.subr.bf16.mxu0 %v23510_v7  ;;  %23599 = vst [vmem:[#allocation43_spill] sm:$0xff] %v19152_v14  ;;  %v6755_v14 = vor.u32 %v6754_v10, %v6753_v22  ;;  %v6128_v22 = vrot.slane %v19104_v12, 4 }
 0x351   : > { %14513 = vmatpush3.bf16.msra.mxu1 %v16423_v33  ;;  %v4668_v33 = vrot.slane %v19069_v0, 4  ;;  %v19166_v35 = vor.u32 %v6750_v15, %v6749_v13  ;;  %v6127_v13 = vrot.slane %v19101_v20, 3  ;;  %v19185_v15 = vpack.c.bf16 %v19038_v1, %v19038_v1  ;;  %v16429_v1 = vld [vmem:[%s23173_s3 + $0xc8] sm:$0xff]  }
 0x352   : > { %14583 = vmatmul.mubr.bf16.gmra.mxu0 %v4143_v39  ;;  %14514 = vmatprep.subr.bf16.mxu1 %v23510_v7  ;;  %v6758_v39 = vrot.slane %v19069_v0, 2 }
 0x353   : > { %14586 = vmatprep.mubr.msk.bf16.mxu0 %vm16815_vm0, %v23510_v7  ;;  %14671 = vmatpush3.bf16.msra.mxu0 %v16424_v49  ;;  %23600 = vst [vmem:[#allocation44_spill] sm:$0xff] %v19166_v35  ;;  %v4144_v49 = vrot.slane %v18798_v62, 2  ;;  %23603 = vst [vmem:[#allocation47_spill] sm:$0xff] %v19185_v15 }
 0x354   : > { %14427 = vmatmul.mubr.bf16.gmra.mxu1 %v18678_v59  ;;  %14672 = vmatprep.subr.bf16.mxu0 %v23510_v7  ;;  %v19174_v60 = vor.u32 %v6758_v39, %v6757_v54  ;;  %v19179_v59 = vsel %vm3897_vm6, %v19166_v35, %v6755_v14  ;;  %v19195_v54 = vor.u32 %v4668_v33, %v4665_v61  ;;  %v23267_v33 = vshll.u32 %v19185_v15, 16 }
 0x355   : > { %14430 = vmatprep.mubr.msk.bf16.mxu1 %vm16815_vm0, %v23510_v7  ;;  %14515 = vmatpush3.bf16.msra.mxu1 %v16425_v30  ;;  %23602 = vst [vmem:[#allocation46_spill] sm:$0xff] %v19179_v59  ;;  %v16428_v30 = vld [vmem:[%s23173_s3 + $0x188] sm:$0xff]   ;;  %v6129_v39 = vor.u32 %v6128_v22, %v6127_v13  ;;  %v6131_v59 = vrot.slane %v5728_v16, 3  ;;  %v4145_v35 = vsel %vm4136_vm7, %v4142_v51, %v4144_v49  ;;  %v6769_v16 = vshll.u32 %v19031_v36, 16  ;;  %v16431_v13 = vld [vmem:[%s23173_s3 + $0xc0] sm:$0xff]  }
 0x356   : > { %23601 = vst [vmem:[#allocation45_spill] sm:$0xff] %v19174_v60  ;;  %14516 = vmatprep.subr.bf16.mxu1 %v23510_v7  ;;  %v19192_v10 = vsel %vm3897_vm6, %v6755_v14, %v19174_v60  ;;  %v19203_v14 = vshrl.u32 %v19031_v36, 16 }
 0x357   : > { %14673 = vmatpush3.bf16.msra.mxu0 %v16426_v48  ;;  %23604 = vst [vmem:[#allocation48_spill] sm:$0xff] %v19192_v10  ;;  %v6132_v48 = vrot.slane %v5731_v34, 4  ;;  %v19207_v61 = vsel %vm4590_vm5, %v19195_v54, %v6129_v39  ;;  %v23268_v34 = vshrl.u32 %v19185_v15, 16  ;;  %v4381_v10 = vrot.slane %v18819_v37, 3 }
 0x358   : > { %14674 = vmatprep.subr.bf16.mxu0 %v23510_v7  ;;  %23605 = vst [vmem:[#allocation49_spill] sm:$0xff] %v19207_v61 }
 0x359   : > { %14517 = vmatpush3.bf16.msra.mxu1 %v16427_v44  ;;  %v16430_v44 = vld [vmem:[%s23173_s3 + $0x180] sm:$0xff]   ;;  %v6133_v51 = vor.u32 %v6132_v48, %v6131_v59  ;;  %v7174_v59 = vrot.slane %v19203_v14, 2  ;;  %v7178_v48 = vrot.slane %v23268_v34, 2 }
 0x35a   : > { %14587 = vmatmul.mubr.bf16.gmra.mxu0 %v4145_v35  ;;  %14518 = vmatprep.subr.bf16.mxu1 %v23510_v7  ;;  %v4146_v35 = vrot.slane %v18851_v43, 2 }
 0x35b   : > { %14590 = vmatprep.mubr.msk.bf16.mxu0 %vm16815_vm0, %v23510_v7  ;;  %14675 = vmatpush3.bf16.msra.mxu0 %v16428_v30  ;;  %v19226_v22 = vsel %vm4590_vm5, %v6129_v39, %v6133_v51  ;;  %v7175_v30 = vrot.slane %v6769_v16, 3 }
 0x35c   : > { %14431 = vmatmul.mubr.bf16.gmra.mxu1 %v18740_v23  ;;  %14676 = vmatprep.subr.bf16.mxu0 %v23510_v7  ;;  %23606 = vst [vmem:[#allocation50_spill] sm:$0xff] %v19226_v22  ;;  %v4147_v36 = vsel %vm4136_vm7, %v4144_v49, %v4146_v35  ;;  %v4148_v49 = vrot.slane %v18889_v41, 2 }
 0x35d   : > { %14434 = vmatprep.mubr.msk.bf16.mxu1 %vm16815_vm0, %v23510_v7  ;;  %14519 = vmatpush3.bf16.msra.mxu1 %v16429_v1  ;;  %v7179_v1 = vrot.slane %v23267_v33, 3  ;;  %v7176_v61 = vor.u32 %v7175_v30, %v7174_v59  ;;  %v7770_v59 = vrot.slane %v19069_v0, 1  ;;  %v7776_v33 = vrot.slane %v6769_v16, 1 }
 0x35e   : > { %14520 = vmatprep.subr.bf16.mxu1 %v23510_v7  ;;  %v4149_v34 = vsel %vm4136_vm7, %v4146_v35, %v4148_v49 }
 0x35f   : > { %14677 = vmatpush3.bf16.msra.mxu0 %v16430_v44  ;;  %v7180_v39 = vor.u32 %v7179_v1, %v7178_v48  ;;  %v19241_v44 = vsel %vm5686_vm8, %v19140_v42, %v7176_v61  ;;  %v7773_v48 = vrot.slane %v19104_v12, 1  ;;  %v19276_v22 = vor.u32 %v7776_v33, %v19203_v14 }
 0x360   : > { %14766 = vmatprep.subr.bf16.mxu0 %v23510_v7  ;;  %23607 = vst [vmem:[#allocation51_spill] sm:$0xff] %v19241_v44 }
 0x361   : > { %14521 = vmatpush3.bf16.msra.mxu1 %v16431_v13  ;;  %v19245_v51 = vsel %vm5686_vm8, %v7176_v61, %v7180_v39  ;;  %v7767_v13 = vrot.slane %v19055_v4, 1  ;;  %v19259_v61 = vpack.c.bf16 %v19098_v9, %v19098_v9  ;;  %v7772_v39 = vor.u32 %v7770_v59, %v19066_v38  ;;  %23613 = vst [vmem:[#allocation57_spill] sm:$0xff] %v19276_v22 }
 0x362   : > { %14591 = vmatmul.mubr.bf16.gmra.mxu0 %v4147_v36  ;;  %14610 = vmatprep.subr.bf16.mxu1 %v23510_v7  ;;  %23608 = vst [vmem:[#allocation52_spill] sm:$0xff] %v19245_v51  ;;  %v23269_v36 = vrot.slane %v19044_v55, 1  ;;  %v7775_v0 = vor.u32 %v7773_v48, %v19101_v20  ;;  %v6771_v38 = vrot.slane %v6769_v16, 2 }
 0x363   : > { %14594 = vmatprep.mubr.msk.bf16.mxu0 %vm16815_vm0, %v23510_v7  ;;  %23609 = vst [vmem:[#allocation53_spill] sm:$0xff] %v19259_v61  ;;  %v7769_v1 = vor.u32 %v7767_v13, %v19052_v18  ;;  %v19273_v9 = vsel %vm3261_vm3, %v7772_v39, %v7773_v48 }
 0x364   : > { %14435 = vmatmul.mubr.bf16.gmra.mxu1 %v18798_v62  ;;  %v7766_v30 = vor.u32 %v23269_v36, %v19041_v28  ;;  %v6768_v36 = vrot.slane %v19203_v14, 1  ;;  %23612 = vst [vmem:[#allocation56_spill] sm:$0xff] %v19273_v9  ;;  %v19281_v35 = vsel %vm3261_vm3, %v7775_v0, %v7776_v33  ;;  %v4150_v14 = vrot.slane %v18926_v11, 2 }
 0x365   : > { %14438 = vmatprep.mubr.msk.bf16.mxu1 %vm16815_vm0, %v23510_v7  ;;  %v19270_v44 = vsel %vm3261_vm3, %v7769_v1, %v7770_v59  ;;  %23614 = vst [vmem:[#allocation58_spill] sm:$0xff] %v19281_v35  ;;  %v23271_v59 = vshll.u32 %v19259_v61, 16 }
 0x366   : > { %v19265_v51 = vsel %vm3261_vm3, %v7766_v30, %v7767_v13  ;;  %23611 = vst [vmem:[#allocation55_spill] sm:$0xff] %v19270_v44  ;;  %v23270_v13 = vshrl.u32 %v19087_v53, 16  ;;  %v8189_v30 = vshrl.u32 %v19259_v61, 16  ;;  %v19297_v39 = vor.u32 %v6771_v38, %v6768_v36 }
 0x367   : > { %23610 = vst [vmem:[#allocation54_spill] sm:$0xff] %v19265_v51  ;;  %v8192_v1 = vrot.slane %v23271_v59, 2  ;;  %v4151_v35 = vsel %vm4136_vm7, %v4148_v49, %v4150_v14  ;;  %v4152_v36 = vrot.slane %v18955_v2, 2  ;;  %v16445_v59 = vld [vmem:[%s23173_s3 + $0x148] sm:$0xff]  }
 0x368   : > { %v8185_v16 = vrot.slane %v23270_v13, 1  ;;  %v8191_v48 = vrot.slane %v8189_v30, 1  ;;  %23615 = vst [vmem:[#allocation59_spill] sm:$0xff] %v19297_v39  ;;  %v19330_v30 = vshll.u32 %v18706_v63, 16 }
 0x369   : > { %v4153_v49 = vsel %vm4136_vm7, %v4150_v14, %v4152_v36 }
 0x36a   : > { %14595 = vmatmul.mubr.bf16.gmra.mxu0 %v4149_v34  ;;  %v23272_v34 = vshll.u32 %v19087_v53, 16  ;;  %v8193_v22 = vor.u32 %v8192_v1, %v8191_v48  ;;  %23619 = vst [vmem:[#allocation63_spill] sm:$0xff] %v19330_v30  ;;  %v16434_v48 = vld [vmem:[%s23173_s3 + $0x230] sm:$0xff]  }
 0x36b   : > { %14598 = vmatprep.mubr.msk.bf16.mxu0 %vm16815_vm0, %v23510_v7 }
 0x36c   : > { %14439 = vmatmul.mubr.bf16.gmra.mxu1 %v18851_v43  ;;  %v8186_v33 = vrot.slane %v23272_v34, 2 }
 0x36d   : > { %14442 = vmatprep.mubr.msk.bf16.mxu1 %vm16815_vm0, %v23510_v7 }
 0x36e   : > { %v8187_v0 = vor.u32 %v8186_v33, %v8185_v16  ;;  %v4614_v16 = vrot.slane %v19330_v30, 4  ;;  %v16433_v33 = vld [vmem:[%s23173_s3 + $0x178] sm:$0xff]  }
 0x370   : > { %v19302_v9 = vsel %vm3897_vm6, %v19297_v39, %v8187_v0  ;;  %v19305_v13 = vsel %vm3897_vm6, %v8187_v0, %v8193_v22  ;;  %v4154_v22 = vrot.slane %v18973_v19, 2  ;;  %v16432_v19 = vld [vmem:[%s23173_s3 + $0x238] sm:$0xff]   ;;  %v19351_v0 = vshrl.u32 %v18763_v24, 16 }
 0x371   : > { %23616 = vst [vmem:[#allocation60_spill] sm:$0xff] %v19302_v9  ;;  %23617 = vst [vmem:[#allocation61_spill] sm:$0xff] %v19305_v13  ;;  %v4379_v39 = vrot.slane %v18763_v24, 3 }
 0x372   : > { %14599 = vmatmul.mubr.bf16.gmra.mxu0 %v4151_v35  ;;  %v4155_v38 = vsel %vm4136_vm7, %v4152_v36, %v4154_v22  ;;  %v19327_v35 = vshrl.u32 %v18706_v63, 16  ;;  %23620 = vst [vmem:[#allocation64_spill] sm:$0xff] %v19351_v0  ;;  %v16435_v36 = vld [vmem:[%s23173_s3 + $0x170] sm:$0xff]   ;;  %v4620_v22 = vrot.slane %v19351_v0, 3 }
 0x373   : > { %14602 = vmatprep.mubr.msk.bf16.mxu0 %vm16815_vm0, %v23510_v7  ;;  %v23651_v0 = vld [vmem:[#allocation5_spill] sm:$0xff] }
 0x374   : > { %14443 = vmatmul.mubr.bf16.gmra.mxu1 %v18889_v41  ;;  %23618 = vst [vmem:[#allocation62_spill] sm:$0xff] %v19327_v35  ;;  %v4611_v14 = vrot.slane %v19327_v35, 3  ;;  %v4387_v30 = vrot.slane %v23651_v0, 3  ;;  %v23653_v35 = vld [vmem:[#allocation13_spill] sm:$0xff] }
 0x375   : > { %14446 = vmatprep.mubr.msk.bf16.mxu1 %vm16815_vm0, %v23510_v7 }
 0x376   : > { %v4615_v1 = vor.u32 %v4614_v16, %v4611_v14  ;;  %v19385_v16 = vshrl.u32 %v18819_v37, 16 }
 0x378   : > { %23623 = vst [vmem:[#allocation67_spill] sm:$0xff] %v19385_v16 }
 0x37a   : > { %14603 = vmatmul.mubr.bf16.gmra.mxu0 %v4153_v49  ;;  %v19366_v49 = vsel %vm4590_vm5, %v18686_v3, %v4615_v1  ;;  %v16438_v3 = vld [vmem:[%s23173_s3 + $0x220] sm:$0xff]  }
 0x37b   : > { %14606 = vmatprep.mubr.msk.bf16.mxu0 %vm16815_vm0, %v23510_v7  ;;  %23622 = vst [vmem:[#allocation66_spill] sm:$0xff] %v19366_v49 }
 0x37c   : > { %14447 = vmatmul.mubr.bf16.gmra.mxu1 %v18926_v11 }
 0x37d   : > { %14450 = vmatprep.mubr.msk.bf16.mxu1 %vm16815_vm0, %v23510_v7 }
 0x382   : > { %14607 = vmatmul.mubr.bf16.gmra.mxu0 %v4155_v38 }
 0x383   : > { %14678 = vmatprep.mubr.msk.bf16.mxu0 %vm16815_vm0, %v23510_v7 }
 0x384   : > { %14451 = vmatmul.mubr.bf16.gmra.mxu1 %v18955_v2 }
 0x385   : > { %14522 = vmatprep.mubr.msk.bf16.mxu1 %vm16815_vm0, %v23510_v7 }
 0x38a   : > { %14679 = vmatmul.mubr.bf16.vlgmr.msra.gmra.mxu0 %v18704_v26  ;;  %v19354_v26 = vshll.u32 %v18763_v24, 16 }
 0x38b   : > { %14682 = vmatprep.mubr.msk.bf16.mxu0 %vm16815_vm0, %v23510_v7  ;;  %14767 = vmatpush3.bf16.msra.mxu0 %v16432_v19  ;;  %v16437_v19 = vld [vmem:[%s23173_s3 + $0x168] sm:$0xff]  }
 0x38c   : > { %14523 = vmatmul.mubr.bf16.vlgmr.msra.gmra.mxu1 %v18721_v6  ;;  %14768 = vmatprep.subr.bf16.mxu0 %v23510_v7  ;;  %23621 = vst [vmem:[#allocation65_spill] sm:$0xff] %v19354_v26  ;;  %v16436_v6 = vld [vmem:[%s23173_s3 + $0x228] sm:$0xff]   ;;  %v4623_v38 = vrot.slane %v19354_v26, 4 }
 0x38d   : > { %14526 = vmatprep.mubr.msk.bf16.mxu1 %vm16815_vm0, %v23510_v7  ;;  %14611 = vmatpush3.bf16.msra.mxu1 %v16433_v33  ;;  %v19388_v33 = vshll.u32 %v18819_v37, 16 }
 0x38e   : > { %14612 = vmatprep.subr.bf16.mxu1 %v23510_v7  ;;  %v4624_v14 = vor.u32 %v4623_v38, %v4620_v22  ;;  %v16441_v38 = vld [vmem:[%s23173_s3 + $0x158] sm:$0xff]  }
 0x38f   : > { %14769 = vmatpush3.bf16.msra.mxu0 %v16434_v48  ;;  %23624 = vst [vmem:[#allocation68_spill] sm:$0xff] %v19388_v33  ;;  %v16439_v48 = vld [vmem:[%s23173_s3 + $0x160] sm:$0xff]   ;;  %v4632_v22 = vrot.slane %v19388_v33, 4 }
 0x390   : > { %14770 = vmatprep.subr.bf16.mxu0 %v23510_v7 }
 0x391   : > { %14613 = vmatpush3.bf16.msra.mxu1 %v16435_v36  ;;  %v19399_v36 = vsel %vm4590_vm5, %v4615_v1, %v4624_v14  ;;  %v16442_v1 = vld [vmem:[%s23173_s3 + $0x210] sm:$0xff]  }
 0x392   : > { %14683 = vmatmul.mubr.bf16.gmra.mxu0 %v19366_v49  ;;  %14614 = vmatprep.subr.bf16.mxu1 %v23510_v7  ;;  %23625 = vst [vmem:[#allocation69_spill] sm:$0xff] %v19399_v36  ;;  %v23640_v49 = vld [vmem:[#allocation3_spill] sm:$0xff] }
 0x393   : > { %14686 = vmatprep.mubr.msk.bf16.mxu0 %vm16815_vm0, %v23510_v7  ;;  %14771 = vmatpush3.bf16.msra.mxu0 %v16436_v6  ;;  %v4629_v6 = vrot.slane %v19385_v16, 3  ;;  %v23647_v16 = vld [vmem:[#allocation15_spill] sm:$0xff] }
 0x394   : > { %14527 = vmatmul.mubr.bf16.gmra.mxu1 %v18782_v46  ;;  %14772 = vmatprep.subr.bf16.mxu0 %v23510_v7  ;;  %v16440_v46 = vld [vmem:[%s23173_s3 + $0x218] sm:$0xff]  }
 0x395   : > { %14530 = vmatprep.mubr.msk.bf16.mxu1 %vm16815_vm0, %v23510_v7  ;;  %14615 = vmatpush3.bf16.msra.mxu1 %v16437_v19  ;;  %v4633_v19 = vor.u32 %v4632_v22, %v4629_v6 }
 0x396   : > { %14616 = vmatprep.subr.bf16.mxu1 %v23510_v7 }
 0x397   : > { %14773 = vmatpush3.bf16.msra.mxu0 %v16438_v3  ;;  %v19418_v3 = vshrl.u32 %v18874_v25, 16  ;;  %v19432_v6 = vsel %vm4590_vm5, %v4624_v14, %v4633_v19  ;;  %v16446_v14 = vld [vmem:[%s23173_s3 + $0x200] sm:$0xff]  }
 0x398   : > { %14774 = vmatprep.subr.bf16.mxu0 %v23510_v7  ;;  %23628 = vst [vmem:[#allocation72_spill] sm:$0xff] %v19432_v6 }
 0x399   : > { %14617 = vmatpush3.bf16.msra.mxu1 %v16439_v48  ;;  %23626 = vst [vmem:[#allocation70_spill] sm:$0xff] %v19418_v3  ;;  %v19421_v48 = vshll.u32 %v18874_v25, 16  ;;  %v4638_v22 = vrot.slane %v19418_v3, 3 }
 0x39a   : > { %14687 = vmatmul.mubr.bf16.gmra.mxu0 %v19399_v36  ;;  %14618 = vmatprep.subr.bf16.mxu1 %v23510_v7 }
 0x39b   : > { %14690 = vmatprep.mubr.msk.bf16.mxu0 %vm16815_vm0, %v23510_v7  ;;  %14775 = vmatpush3.bf16.msra.mxu0 %v16440_v46  ;;  %23627 = vst [vmem:[#allocation71_spill] sm:$0xff] %v19421_v48  ;;  %v16443_v46 = vld [vmem:[%s23173_s3 + $0x150] sm:$0xff]  }
 0x39c   : > { %14531 = vmatmul.mubr.bf16.gmra.mxu1 %v18835_v31  ;;  %14776 = vmatprep.subr.bf16.mxu0 %v23510_v7  ;;  %v16444_v31 = vld [vmem:[%s23173_s3 + $0x208] sm:$0xff]  }
 0x39d   : > { %14534 = vmatprep.mubr.msk.bf16.mxu1 %vm16815_vm0, %v23510_v7  ;;  %14619 = vmatpush3.bf16.msra.mxu1 %v16441_v38  ;;  %v4641_v38 = vrot.slane %v19421_v48, 4 }
 0x39e   : > { %14620 = vmatprep.subr.bf16.mxu1 %v23510_v7 }
 0x39f   : > { %14777 = vmatpush3.bf16.msra.mxu0 %v16442_v1  ;;  %v4642_v1 = vor.u32 %v4641_v38, %v4638_v22  ;;  %v4650_v22 = vrot.slane %v19044_v55, 4  ;;  %v4659_v38 = vrot.slane %v19055_v4, 4 }
 0x3a0   : > { %14778 = vmatprep.subr.bf16.mxu0 %v23510_v7 }
 0x3a1   : > { %14621 = vmatpush3.bf16.msra.mxu1 %v16443_v46  ;;  %v16447_v46 = vld [vmem:[%s23173_s3 + $0x140] sm:$0xff]  }
 0x3a2   : > { %14691 = vmatmul.mubr.bf16.gmra.mxu0 %v19432_v6  ;;  %14622 = vmatprep.subr.bf16.mxu1 %v23510_v7 }
 0x3a3   : > { %14694 = vmatprep.mubr.msk.bf16.mxu0 %vm16815_vm0, %v23510_v7  ;;  %14779 = vmatpush3.bf16.msra.mxu0 %v16444_v31  ;;  %v19456_v31 = vsel %vm4590_vm5, %v4633_v19, %v4642_v1 }
 0x3a4   : > { %14535 = vmatmul.mubr.bf16.gmra.mxu1 %v18872_v5  ;;  %14780 = vmatprep.subr.bf16.mxu0 %v23510_v7  ;;  %23629 = vst [vmem:[#allocation73_spill] sm:$0xff] %v19456_v31  ;;  %v4647_v5 = vrot.slane %v19041_v28, 3  ;;  %v4656_v28 = vrot.slane %v19052_v18, 3 }
 0x3a5   : > { %14538 = vmatprep.mubr.msk.bf16.mxu1 %vm16815_vm0, %v23510_v7  ;;  %14623 = vmatpush3.bf16.msra.mxu1 %v16445_v59 }
 0x3a6   : > { %14624 = vmatprep.subr.bf16.mxu1 %v23510_v7  ;;  %v4651_v59 = vor.u32 %v4650_v22, %v4647_v5 }
 0x3a7   : > { %14781 = vmatpush3.bf16.msra.mxu0 %v16446_v14  ;;  %v4660_v14 = vor.u32 %v4659_v38, %v4656_v28 }
 0x3a8   : > { %14870 = vmatprep.subr.bf16.mxu0 %v23510_v7  ;;  %v19468_v19 = vsel %vm4590_vm5, %v4642_v1, %v4651_v59 }
 0x3a9   : > { %14625 = vmatpush3.bf16.msra.mxu1 %v16447_v46  ;;  %23630 = vst [vmem:[#allocation74_spill] sm:$0xff] %v19468_v19  ;;  %v19485_v18 = vsel %vm4590_vm5, %v4651_v59, %v4660_v14  ;;  %v19503_v38 = vsel %vm4590_vm5, %v4660_v14, %v19195_v54 }
 0x3aa   : > { %14695 = vmatmul.mubr.bf16.gmra.mxu0 %v19456_v31  ;;  %14714 = vmatprep.subr.bf16.mxu1 %v23510_v7  ;;  %23631 = vst [vmem:[#allocation75_spill] sm:$0xff] %v19485_v18  ;;  %23632 = vst [vmem:[#allocation76_spill] sm:$0xff] %v19503_v38  ;;  %v4383_v31 = vrot.slane %v18874_v25, 3 }
 0x3ab   : > { %14698 = vmatprep.mubr.msk.bf16.mxu0 %vm16815_vm0, %v23510_v7 }
 0x3ac   : > { %14539 = vmatmul.mubr.bf16.gmra.mxu1 %v18898_v27  ;;  %v19480_v27 = vpack.c.bf16 %v18988_v21, %v18988_v21 }
 0x3ad   : > { %14542 = vmatprep.mubr.msk.bf16.mxu1 %vm16815_vm0, %v23510_v7 }
 0x3ae   : > { %v4672_v21 = vshrl.u32 %v19480_v27, 16  ;;  %v4675_v5 = vshll.u32 %v19480_v27, 16 }
 0x3b0   : > { %v4677_v34 = vrot.slane %v4675_v5, 4 }
 0x3b2   : > { %14699 = vmatmul.mubr.bf16.gmra.mxu0 %v19468_v19 }
 0x3b3   : > { %14702 = vmatprep.mubr.msk.bf16.mxu0 %vm16815_vm0, %v23510_v7 }
 0x3b4   : > { %14543 = vmatmul.mubr.bf16.gmra.mxu1 %v18935_v32 }
 0x3b5   : > { %14546 = vmatprep.mubr.msk.bf16.mxu1 %vm16815_vm0, %v23510_v7 }
 0x3b8   : > { %v19482_v1 = vpop.f32.mrf.mxu0 }
 0x3ba   : > { %14703 = vmatmul.mubr.bf16.gmra.mxu0 %v19485_v18  ;;  %v14472_v4 = vpop.f32.mrf.mxu0  ;;  %v19490_v32 = vpop.f32.mrf.mxu1 }
 0x3bb   : > { %14706 = vmatprep.mubr.msk.bf16.mxu0 %vm16815_vm0, %v23510_v7  ;;  %v4674_v4 = vrot.slane %v4672_v21, 3 }
 0x3bc   : > { %14547 = vmatmul.mubr.bf16.gmra.mxu1 %v18964_v47  ;;  %v19493_v46 = vpop.f32.mrf.mxu0  ;;  %v14368_v22 = vpop.f32.mrf.mxu1 }
 0x3bd   : > { %14550 = vmatprep.mubr.msk.bf16.mxu1 %vm16815_vm0, %v23510_v7 }
 0x3be   : > { %v14473_v59 = vpop.f32.mrf.mxu0  ;;  %v19499_v28 = vpop.f32.mrf.mxu1 }
 0x3bf   : > { %v4678_v59 = vor.u32 %v4677_v34, %v4674_v4 }
 0x3c0   : > { %v14369_v47 = vpop.f32.mrf.mxu1 }
 0x3c1   : > { %v19505_v13 = vpop.f32.mrf.mxu0  ;;  %v4679_v44 = vsel %vm4590_vm5, %v19195_v54, %v4678_v59  ;;  %v16448_v54 = vld [vmem:[%s23173_s3 + $0x2b8] sm:$0xff]  }
 0x3c2   : > { %14707 = vmatmul.mubr.bf16.gmra.mxu0 %v19503_v38  ;;  %v16449_v59 = vld [vmem:[%s23173_s3 + $0x1f8] sm:$0xff]  }
 0x3c3   : > { %14710 = vmatprep.mubr.msk.bf16.mxu0 %vm16815_vm0, %v23510_v7  ;;  %v19510_v9 = vpop.f32.mrf.mxu1  ;;  %v14476_v22 = vpop.f32.mrf.mxu0 }
 0x3c4   : > { %14551 = vmatmul.mubr.bf16.gmra.mxu1 %v19010_v29 }
 0x3c5   : > { %14554 = vmatprep.mubr.msk.bf16.mxu1 %vm16815_vm0, %v23510_v7  ;;  %v14372_v14 = vpop.f32.mrf.mxu1  ;;  %v19515_v21 = vpop.f32.mrf.mxu0 }
 0x3c7   : > { %v19517_v5 = vpop.f32.mrf.mxu1  ;;  %v14477_v47 = vpop.f32.mrf.mxu0 }
 0x3c9   : > { %v14373_v51 = vpop.f32.mrf.mxu1  ;;  %v19521_v55 = vpop.f32.mrf.mxu0 }
 0x3ca   : > { %14711 = vmatmul.mubr.bf16.gmra.mxu0 %v4679_v44 }
 0x3cb   : > { %14782 = vmatprep.mubr.msk.bf16.mxu0 %vm16815_vm0, %v23510_v7  ;;  %v19525_v29 = vpop.f32.mrf.mxu1  ;;  %v14480_v34 = vpop.f32.mrf.mxu0 }
 0x3cc   : > { %14555 = vmatmul.mubr.bf16.gmra.mxu1 %v19023_v57  ;;  %v16450_v57 = vld [vmem:[%s23173_s3 + $0x2b0] sm:$0xff]  }
 0x3cd   : > { %14626 = vmatprep.mubr.msk.bf16.mxu1 %vm16815_vm0, %v23510_v7  ;;  %v14376_v4 = vpop.f32.mrf.mxu1  ;;  %v19530_v22 = vpop.f32.mrf.mxu0 }
 0x3cf   : > { %v19535_v51 = vpop.f32.mrf.mxu1  ;;  %v14481_v44 = vpop.f32.mrf.mxu0 }
 0x3d1   : > { %v14377_v14 = vpop.f32.mrf.mxu1  ;;  %v19540_v47 = vpop.f32.mrf.mxu0 }
 0x3d2   : > { %14783 = vmatmul.mubr.bf16.vlgmr.msra.gmra.mxu0 %v18733_v52  ;;  %v16451_v52 = vld [vmem:[%s23173_s3 + $0x1f0] sm:$0xff]   ;;  %v4377_v14 = vrot.slane %v18706_v63, 3 }
 0x3d3   : > { %14786 = vmatprep.mubr.msk.bf16.mxu0 %vm16815_vm0, %v23510_v7  ;;  %14871 = vmatpush3.bf16.msra.mxu0 %v16448_v54  ;;  %v19548_v34 = vpop.f32.mrf.mxu1  ;;  %v14484_v4 = vpop.f32.mrf.mxu0 }
 0x3d4   : > { %14627 = vmatmul.mubr.bf16.vlgmr.msra.gmra.mxu1 %v18693_v50  ;;  %14872 = vmatprep.subr.bf16.mxu0 %v23510_v7  ;;  %v16452_v50 = vld [vmem:[%s23173_s3 + $0x2a8] sm:$0xff]  }
 0x3d5   : > { %14630 = vmatprep.mubr.msk.bf16.mxu1 %vm16815_vm0, %v23510_v7  ;;  %14715 = vmatpush3.bf16.msra.mxu1 %v16449_v59  ;;  %v14380_v54 = vpop.f32.mrf.mxu1  ;;  %v19557_v44 = vpop.f32.mrf.mxu0  ;;  %v16453_v59 = vld [vmem:[%s23173_s3 + $0x1e8] sm:$0xff]  }
 0x3d6   : > { %14716 = vmatprep.subr.bf16.mxu1 %v23510_v7 }
 0x3d7   : > { %14873 = vmatpush3.bf16.msra.mxu0 %v16450_v57  ;;  %v19564_v4 = vpop.f32.mrf.mxu1  ;;  %v14485_v61 = vpop.f32.mrf.mxu0  ;;  %v23633_v57 = vrot.slane %v18647_v56, 3 }
 0x3d8   : > { %14874 = vmatprep.subr.bf16.mxu0 %v23510_v7  ;;  %v16454_v61 = vld [vmem:[%s23173_s3 + $0x2a0] sm:$0xff]  }
 0x3d9   : > { %14717 = vmatpush3.bf16.msra.mxu1 %v16451_v52  ;;  %v14381_v54 = vpop.f32.mrf.mxu1  ;;  %v19577_v15 = vsel %vm4373_vm4, %v23633_v57, %v4377_v14 }
 0x3da   : > { %v19570_v53 = vpop.f32.mrf.mxu0  ;;  %14787 = vmatmul.mubr.bf16.gmra.mxu0 %v18786_v8  ;;  %14718 = vmatprep.subr.bf16.mxu1 %v23510_v7  ;;  %v16455_v8 = vld [vmem:[%s23173_s3 + $0x1e0] sm:$0xff]  }
 0x3db   : > { %14790 = vmatprep.mubr.msk.bf16.mxu0 %vm16815_vm0, %v23510_v7  ;;  %14875 = vmatpush3.bf16.msra.mxu0 %v16452_v50 }
 0x3dc   : > { %v19584_v52 = vpop.f32.mrf.mxu1  ;;  %v14488_v54 = vpop.f32.mrf.mxu0  ;;  %14631 = vmatmul.mubr.bf16.gmra.mxu1 %v19577_v15  ;;  %14876 = vmatprep.subr.bf16.mxu0 %v23510_v7 }
 0x3dd   : > { %14634 = vmatprep.mubr.msk.bf16.mxu1 %vm16815_vm0, %v23510_v7  ;;  %14719 = vmatpush3.bf16.msra.mxu1 %v16453_v59  ;;  %v16456_v54 = vld [vmem:[%s23173_s3 + $0x298] sm:$0xff]  }
 0x3de   : > { %v14384_v50 = vpop.f32.mrf.mxu1  ;;  %v19593_v57 = vpop.f32.mrf.mxu0  ;;  %14720 = vmatprep.subr.bf16.mxu1 %v23510_v7  ;;  %v16457_v59 = vld [vmem:[%s23173_s3 + $0x1d8] sm:$0xff]  }
 0x3df   : > { %14877 = vmatpush3.bf16.msra.mxu0 %v16454_v61  ;;  %v19611_v61 = vsel %vm4373_vm4, %v4377_v14, %v4379_v39 }
 0x3e0   : > { %v19600_v38 = vpop.f32.mrf.mxu1  ;;  %v14489_v60 = vpop.f32.mrf.mxu0  ;;  %14878 = vmatprep.subr.bf16.mxu0 %v23510_v7  ;;  %23634 = vst [vmem:[#allocation77_spill] sm:$0xff] %v19611_v61 }
 0x3e1   : > { %14721 = vmatpush3.bf16.msra.mxu1 %v16455_v8  ;;  %v16458_v60 = vld [vmem:[%s23173_s3 + $0x290] sm:$0xff]  }
 0x3e2   : > { %v14385_v50 = vpop.f32.mrf.mxu1  ;;  %v19606_v18 = vpop.f32.mrf.mxu0  ;;  %14791 = vmatmul.mubr.bf16.gmra.mxu0 %v18841_v45  ;;  %14722 = vmatprep.subr.bf16.mxu1 %v23510_v7  ;;  %v16459_v45 = vld [vmem:[%s23173_s3 + $0x1d0] sm:$0xff]  }
 0x3e3   : > { %14794 = vmatprep.mubr.msk.bf16.mxu0 %vm16815_vm0, %v23510_v7  ;;  %14879 = vmatpush3.bf16.msra.mxu0 %v16456_v54 }
 0x3e4   : > { %v19618_v8 = vpop.f32.mrf.mxu1  ;;  %v14492_v50 = vpop.f32.mrf.mxu0  ;;  %14635 = vmatmul.mubr.bf16.gmra.mxu1 %v19611_v61  ;;  %14880 = vmatprep.subr.bf16.mxu0 %v23510_v7 }
 0x3e5   : > { %14638 = vmatprep.mubr.msk.bf16.mxu1 %vm16815_vm0, %v23510_v7  ;;  %14723 = vmatpush3.bf16.msra.mxu1 %v16457_v59  ;;  %v16460_v50 = vld [vmem:[%s23173_s3 + $0x288] sm:$0xff]  }
 0x3e6   : > { %v14388_v14 = vpop.f32.mrf.mxu1  ;;  %v19627_v54 = vpop.f32.mrf.mxu0  ;;  %14724 = vmatprep.subr.bf16.mxu1 %v23510_v7  ;;  %v16461_v59 = vld [vmem:[%s23173_s3 + $0x1c8] sm:$0xff]  }
 0x3e7   : > { %14881 = vmatpush3.bf16.msra.mxu0 %v16458_v60  ;;  %v19645_v60 = vsel %vm4373_vm4, %v4379_v39, %v4381_v10 }
 0x3e8   : > { %v19634_v12 = vpop.f32.mrf.mxu1  ;;  %v14493_v20 = vpop.f32.mrf.mxu0  ;;  %14882 = vmatprep.subr.bf16.mxu0 %v23510_v7  ;;  %23636 = vst [vmem:[#allocation79_spill] sm:$0xff] %v19645_v60 }
 0x3e9   : > { %14725 = vmatpush3.bf16.msra.mxu1 %v16459_v45  ;;  %v16462_v20 = vld [vmem:[%s23173_s3 + $0x280] sm:$0xff]  }
 0x3ea   : > { %v14389_v14 = vpop.f32.mrf.mxu1  ;;  %v19640_v19 = vpop.f32.mrf.mxu0  ;;  %14795 = vmatmul.mubr.bf16.gmra.mxu0 %v18882_v40  ;;  %14726 = vmatprep.subr.bf16.mxu1 %v23510_v7  ;;  %v16463_v40 = vld [vmem:[%s23173_s3 + $0x1c0] sm:$0xff]  }
 0x3eb   : > { %23635 = vst [vmem:[#allocation78_spill] sm:$0xff] %v19640_v19  ;;  %14798 = vmatprep.mubr.msk.bf16.mxu0 %vm16815_vm0, %v23510_v7  ;;  %14883 = vmatpush3.bf16.msra.mxu0 %v16460_v50 }
 0x3ec   : > { %v19652_v45 = vpop.f32.mrf.mxu1  ;;  %v14496_v14 = vpop.f32.mrf.mxu0  ;;  %14639 = vmatmul.mubr.bf16.gmra.mxu1 %v19645_v60  ;;  %14884 = vmatprep.subr.bf16.mxu0 %v23510_v7 }
 0x3ed   : > { %14642 = vmatprep.mubr.msk.bf16.mxu1 %vm16815_vm0, %v23510_v7  ;;  %14727 = vmatpush3.bf16.msra.mxu1 %v16461_v59 }
 0x3ee   : > { %v14392_v39 = vpop.f32.mrf.mxu1  ;;  %v19661_v50 = vpop.f32.mrf.mxu0  ;;  %14728 = vmatprep.subr.bf16.mxu1 %v23510_v7 }
 0x3ef   : > { %23637 = vst [vmem:[#allocation80_spill] sm:$0xff] %v19661_v50  ;;  %14885 = vmatpush3.bf16.msra.mxu0 %v16462_v20  ;;  %v19673_v39 = vsel %vm4373_vm4, %v4381_v10, %v4383_v31 }
 0x3f0   : > { %v19665_v14 = vpop.f32.mrf.mxu1  ;;  %v14497_v6 = vpop.f32.mrf.mxu0  ;;  %14974 = vmatprep.subr.bf16.mxu0 %v23510_v7  ;;  %23641 = vst [vmem:[#allocation3_spill] sm:$0xff] %v19673_v39 }
 0x3f1   : > { %23638 = vst [vmem:[#allocation81_spill] sm:$0xff] %v19665_v14  ;;  %14729 = vmatpush3.bf16.msra.mxu1 %v16463_v40 }
 0x3f2   : > { %v14393_v36 = vpop.f32.mrf.mxu1  ;;  %v19668_v59 = vpop.f32.mrf.mxu0  ;;  %14799 = vmatmul.mubr.bf16.gmra.mxu0 %v23640_v49  ;;  %14818 = vmatprep.subr.bf16.mxu1 %v23510_v7  ;;  %v23644_v49 = vld [vmem:[#allocation12_spill] sm:$0xff] }
 0x3f3   : > { %23639 = vst [vmem:[#allocation82_spill] sm:$0xff] %v19668_v59  ;;  %14802 = vmatprep.mubr.msk.bf16.mxu0 %vm16815_vm0, %v23510_v7  ;;  %v4385_v40 = vrot.slane %v23644_v49, 3 }
 0x3f4   : > { %v19677_v20 = vpop.f32.mrf.mxu1  ;;  %v14500_v42 = vpop.f32.mrf.mxu0  ;;  %14643 = vmatmul.mubr.bf16.gmra.mxu1 %v19673_v39 }
 0x3f5   : > { %23642 = vst [vmem:[#allocation83_spill] sm:$0xff] %v19677_v20  ;;  %14646 = vmatprep.mubr.msk.bf16.mxu1 %vm16815_vm0, %v23510_v7  ;;  %v19691_v42 = vsel %vm4373_vm4, %v4383_v31, %v4385_v40 }
 0x3f6   : > { %v14396_v36 = vpop.f32.mrf.mxu1  ;;  %v19682_v6 = vpop.f32.mrf.mxu0  ;;  %23648 = vst [vmem:[#allocation15_spill] sm:$0xff] %v19691_v42 }
 0x3f7   : > { %23643 = vst [vmem:[#allocation84_spill] sm:$0xff] %v19682_v6 }
 0x3f8   : > { %v19685_v48 = vpop.f32.mrf.mxu1  ;;  %v14501_v10 = vpop.f32.mrf.mxu0 }
 0x3f9   : > { %23645 = vst [vmem:[#allocation85_spill] sm:$0xff] %v19685_v48 }
 0x3fa   : > { %v14397_v3 = vpop.f32.mrf.mxu1  ;;  %v19687_v33 = vpop.f32.mrf.mxu0  ;;  %14803 = vmatmul.mubr.bf16.gmra.mxu0 %v23647_v16 }
 0x3fb   : > { %23646 = vst [vmem:[#allocation86_spill] sm:$0xff] %v19687_v33  ;;  %14806 = vmatprep.mubr.msk.bf16.mxu0 %vm16815_vm0, %v23510_v7  ;;  %v5068_v33 = vshll.u32 %v23653_v35, 16 }
 0x3fc   : > { %v19695_v26 = vpop.f32.mrf.mxu1  ;;  %v14504_v36 = vpop.f32.mrf.mxu0  ;;  %14647 = vmatmul.mubr.bf16.gmra.mxu1 %v19691_v42 }
 0x3fd   : > { %23649 = vst [vmem:[#allocation87_spill] sm:$0xff] %v19695_v26  ;;  %14650 = vmatprep.mubr.msk.bf16.mxu1 %vm16815_vm0, %v23510_v7  ;;  %v23655_v26 = vld [vmem:[#allocation30_spill] sm:$0xff]  ;;  %v19710_v36 = vsel %vm4373_vm4, %v4385_v40, %v4387_v30  ;;  %v23659_v40 = vld [vmem:[#allocation7_spill] sm:$0xff] }
 0x3fe   : > { %v14400_v10 = vpop.f32.mrf.mxu1  ;;  %v19700_v3 = vpop.f32.mrf.mxu0  ;;  %23656 = vst [vmem:[#allocation30_spill] sm:$0xff] %v19710_v36 }
 0x3ff   : > { %23650 = vst [vmem:[#allocation88_spill] sm:$0xff] %v19700_v3 }
 0x400   : > { %v19703_v16 = vpop.f32.mrf.mxu1  ;;  %v14505_v31 = vpop.f32.mrf.mxu0 }
 0x401   : > { %23652 = vst [vmem:[#allocation89_spill] sm:$0xff] %v19703_v16  ;;  %v19719_v31 = vpack.c.bf16 %v18998_v17, %v18998_v17  ;;  %v19726_v16 = vrot.slane %v23659_v40, 3 }
 0x402   : > { %v14401_v6 = vpop.f32.mrf.mxu1  ;;  %v19706_v59 = vpop.f32.mrf.mxu0  ;;  %14807 = vmatmul.mubr.bf16.gmra.mxu0 %v23655_v26 }
 0x403   : > { %23654 = vst [vmem:[#allocation13_spill] sm:$0xff] %v19706_v59  ;;  %14810 = vmatprep.mubr.msk.bf16.mxu0 %vm16815_vm0, %v23510_v7  ;;  %23657 = vst [vmem:[#allocation90_spill] sm:$0xff] %v19719_v31  ;;  %v5070_v6 = vrot.slane %v5068_v33, 1  ;;  %v5076_v50 = vshll.u32 %v19719_v31, 16  ;;  %v19737_v33 = vsel %vm4373_vm4, %v4387_v30, %v19726_v16  ;;  %v4391_v30 = vrot.slane %v19480_v27, 3 }
 0x404   : > { %v19714_v10 = vpop.f32.mrf.mxu1  ;;  %v14576_v3 = vpop.f32.mrf.mxu0  ;;  %14651 = vmatmul.mubr.bf16.gmra.mxu1 %v19710_v36  ;;  %23662 = vst [vmem:[#allocation92_spill] sm:$0xff] %v19737_v33  ;;  %v5471_v27 = vrot.slane %v18706_v63, 2 }
 0x405   : > { %14654 = vmatprep.mubr.msk.bf16.mxu1 %vm16815_vm0, %v23510_v7  ;;  %v23660_v3 = vld [vmem:[#allocation31_spill] sm:$0xff] }
 0x406   : > { %v14420_v26 = vpop.f32.mrf.mxu1  ;;  %v19723_v59 = vpop.f32.mrf.mxu0  ;;  %v5071_v36 = vsel %vm3261_vm3, %v23660_v3, %v5070_v6  ;;  %v5078_v3 = vrot.slane %v5076_v50, 1  ;;  %v4392_v50 = vsel %vm4373_vm4, %v19726_v16, %v4391_v30 }
 0x407   : > { %23658 = vst [vmem:[#allocation91_spill] sm:$0xff] %v19723_v59 }
 0x408   : > { %v19728_v48 = vpop.f32.mrf.mxu1  ;;  %v14577_v42 = vpop.f32.mrf.mxu0 }
 0x409   : > { %v5072_v42 = vshrl.u32 %v23653_v35, 16 }
 0x40a   : > { %v14421_v17 = vpop.f32.mrf.mxu1  ;;  %v19733_v20 = vpop.f32.mrf.mxu0  ;;  %14811 = vmatmul.mubr.bf16.gmra.mxu0 %v5071_v36 }
 0x40b   : > { %23661 = vst [vmem:[#allocation31_spill] sm:$0xff] %v19733_v20  ;;  %14814 = vmatprep.mubr.msk.bf16.mxu0 %vm16815_vm0, %v23510_v7  ;;  %v5074_v31 = vor.u32 %v5072_v42, %v5070_v6  ;;  %v16464_v42 = vld [vmem:[%s23173_s3 + $0x338] sm:$0xff]  }
 0x40c   : > { %v19741_v26 = vpop.f32.mrf.mxu1  ;;  %v14580_v59 = vpop.f32.mrf.mxu0  ;;  %14655 = vmatmul.mubr.bf16.gmra.mxu1 %v19737_v33 }
 0x40d   : > { %14658 = vmatprep.mubr.msk.bf16.mxu1 %vm16815_vm0, %v23510_v7  ;;  %v5079_v14 = vsel %vm3261_vm3, %v5074_v31, %v5078_v3 }
 0x40e   : > { %v14424_v17 = vpop.f32.mrf.mxu1  ;;  %v19747_v36 = vpop.f32.mrf.mxu0 }
 0x410   : > { %v19750_v20 = vpop.f32.mrf.mxu1  ;;  %v14581_v19 = vpop.f32.mrf.mxu0 }
 0x412   : > { %v14425_v59 = vpop.f32.mrf.mxu1  ;;  %v19753_v39 = vpop.f32.mrf.mxu0  ;;  %14815 = vmatmul.mubr.bf16.gmra.mxu0 %v5079_v14  ;;  %v5470_v14 = vrot.slane %v18647_v56, 2  ;;  %v16466_v56 = vld [vmem:[%s23173_s3 + $0x330] sm:$0xff]  }
 0x413   : > { %23663 = vst [vmem:[#allocation93_spill] sm:$0xff] %v19753_v39  ;;  %14886 = vmatprep.mubr.msk.bf16.mxu0 %vm16815_vm0, %v23510_v7 }
 0x414   : > { %v19759_v17 = vpop.f32.mrf.mxu1  ;;  %v14584_v6 = vpop.f32.mrf.mxu0  ;;  %14659 = vmatmul.mubr.bf16.gmra.mxu1 %v4392_v50  ;;  %v5472_v59 = vsel %vm4136_vm7, %v5470_v14, %v5471_v27  ;;  %v16465_v50 = vld [vmem:[%s23173_s3 + $0x278] sm:$0xff]   ;;  %v5473_v14 = vrot.slane %v18763_v24, 2 }
 0x415   : > { %14730 = vmatprep.mubr.msk.bf16.mxu1 %vm16815_vm0, %v23510_v7 }
 0x416   : > { %v14428_v19 = vpop.f32.mrf.mxu1  ;;  %v19764_v31 = vpop.f32.mrf.mxu0 }
 0x417   : > { %23664 = vst [vmem:[#allocation94_spill] sm:$0xff] %v19764_v31 }
 0x418   : > { %v19770_v3 = vpop.f32.mrf.mxu1  ;;  %v14585_v30 = vpop.f32.mrf.mxu0 }
 0x41a   : > { %v14429_v6 = vpop.f32.mrf.mxu1  ;;  %v19776_v63 = vpop.f32.mrf.mxu0  ;;  %14887 = vmatmul.mubr.bf16.vlgmr.msra.gmra.mxu0 %v5472_v59 }
 0x41b   : > { %23665 = vst [vmem:[#allocation95_spill] sm:$0xff] %v19776_v63  ;;  %14890 = vmatprep.mubr.msk.bf16.mxu0 %vm16815_vm0, %v23510_v7  ;;  %14975 = vmatpush3.bf16.msra.mxu0 %v16464_v42  ;;  %v16467_v42 = vld [vmem:[%s23173_s3 + $0x270] sm:$0xff]  }
 0x41c   : > { %v19783_v19 = vpop.f32.mrf.mxu1  ;;  %v14588_v30 = vpop.f32.mrf.mxu0  ;;  %14731 = vmatmul.mubr.bf16.vlgmr.msra.gmra.mxu1 %v18626_v58  ;;  %14976 = vmatprep.subr.bf16.mxu0 %v23510_v7  ;;  %v16468_v58 = vld [vmem:[%s23173_s3 + $0x328] sm:$0xff]  }
 0x41d   : > { %14734 = vmatprep.mubr.msk.bf16.mxu1 %vm16815_vm0, %v23510_v7  ;;  %14819 = vmatpush3.bf16.msra.mxu1 %v16465_v50  ;;  %v19803_v50 = vsel %vm4136_vm7, %v5471_v27, %v5473_v14 }
 0x41e   : > { %v14432_v59 = vpop.f32.mrf.mxu1  ;;  %v19793_v6 = vpop.f32.mrf.mxu0  ;;  %14820 = vmatprep.subr.bf16.mxu1 %v23510_v7  ;;  %23667 = vst [vmem:[#allocation97_spill] sm:$0xff] %v19803_v50 }
 0x41f   : > { %23666 = vst [vmem:[#allocation96_spill] sm:$0xff] %v19793_v6  ;;  %14977 = vmatpush3.bf16.msra.mxu0 %v16466_v56  ;;  %v16469_v59 = vld [vmem:[%s23173_s3 + $0x268] sm:$0xff]  }
 0x420   : > { %v19799_v30 = vpop.f32.mrf.mxu1  ;;  %v14589_v24 = vpop.f32.mrf.mxu0  ;;  %14978 = vmatprep.subr.bf16.mxu0 %v23510_v7 }
 0x421   : > { %14821 = vmatpush3.bf16.msra.mxu1 %v16467_v42  ;;  %v16470_v24 = vld [vmem:[%s23173_s3 + $0x320] sm:$0xff]   ;;  %v23669_v42 = vld [vmem:[#allocation28_spill] sm:$0xff] }
 0x422   : > { %v14433_v6 = vpop.f32.mrf.mxu1  ;;  %v19808_v63 = vpop.f32.mrf.mxu0  ;;  %14891 = vmatmul.mubr.bf16.gmra.mxu0 %v19803_v50  ;;  %14822 = vmatprep.subr.bf16.mxu1 %v23510_v7 }
 0x423   : > { %23668 = vst [vmem:[#allocation98_spill] sm:$0xff] %v19808_v63  ;;  %14894 = vmatprep.mubr.msk.bf16.mxu0 %vm16815_vm0, %v23510_v7  ;;  %14979 = vmatpush3.bf16.msra.mxu0 %v16468_v58  ;;  %v5475_v6 = vrot.slane %v18819_v37, 2  ;;  %v16471_v58 = vld [vmem:[%s23173_s3 + $0x260] sm:$0xff]  }
 0x424   : > { %v19817_v27 = vpop.f32.mrf.mxu1  ;;  %v14592_v56 = vpop.f32.mrf.mxu0  ;;  %14735 = vmatmul.mubr.bf16.gmra.mxu1 %v23669_v42  ;;  %14980 = vmatprep.subr.bf16.mxu0 %v23510_v7 }
 0x425   : > { %14738 = vmatprep.mubr.msk.bf16.mxu1 %vm16815_vm0, %v23510_v7  ;;  %14823 = vmatpush3.bf16.msra.mxu1 %v16469_v59  ;;  %v16472_v56 = vld [vmem:[%s23173_s3 + $0x318] sm:$0xff]   ;;  %v19837_v59 = vsel %vm4136_vm7, %v5473_v14, %v5475_v6 }
 0x426   : > { %v14436_v50 = vpop.f32.mrf.mxu1  ;;  %v19827_v63 = vpop.f32.mrf.mxu0  ;;  %14824 = vmatprep.subr.bf16.mxu1 %v23510_v7  ;;  %23671 = vst [vmem:[#allocation100_spill] sm:$0xff] %v19837_v59 }
 0x427   : > { %23670 = vst [vmem:[#allocation99_spill] sm:$0xff] %v19827_v63  ;;  %14981 = vmatpush3.bf16.msra.mxu0 %v16470_v24  ;;  %v16473_v50 = vld [vmem:[%s23173_s3 + $0x258] sm:$0xff]  }
 0x428   : > { %v19833_v42 = vpop.f32.mrf.mxu1  ;;  %v14593_v37 = vpop.f32.mrf.mxu0  ;;  %14982 = vmatprep.subr.bf16.mxu0 %v23510_v7 }
 0x429   : > { %14825 = vmatpush3.bf16.msra.mxu1 %v16471_v58  ;;  %v16474_v37 = vld [vmem:[%s23173_s3 + $0x310] sm:$0xff]  }
 0x42a   : > { %v14437_v63 = vpop.f32.mrf.mxu1  ;;  %v19842_v31 = vpop.f32.mrf.mxu0  ;;  %14895 = vmatmul.mubr.bf16.gmra.mxu0 %v19837_v59  ;;  %14826 = vmatprep.subr.bf16.mxu1 %v23510_v7  ;;  %v16475_v58 = vld [vmem:[%s23173_s3 + $0x250] sm:$0xff]  }
 0x42b   : > { %23672 = vst [vmem:[#allocation101_spill] sm:$0xff] %v19842_v31  ;;  %14898 = vmatprep.mubr.msk.bf16.mxu0 %vm16815_vm0, %v23510_v7  ;;  %14983 = vmatpush3.bf16.msra.mxu0 %v16472_v56  ;;  %v5477_v63 = vrot.slane %v18874_v25, 2 }
 0x42c   : > { %v19851_v14 = vpop.f32.mrf.mxu1  ;;  %v14596_v24 = vpop.f32.mrf.mxu0  ;;  %14739 = vmatmul.mubr.bf16.gmra.mxu1 %v18740_v23  ;;  %14984 = vmatprep.subr.bf16.mxu0 %v23510_v7 }
 0x42d   : > { %14742 = vmatprep.mubr.msk.bf16.mxu1 %vm16815_vm0, %v23510_v7  ;;  %14827 = vmatpush3.bf16.msra.mxu1 %v16473_v50  ;;  %v16476_v24 = vld [vmem:[%s23173_s3 + $0x308] sm:$0xff]   ;;  %v19871_v50 = vsel %vm4136_vm7, %v5475_v6, %v5477_v63 }
 0x42e   : > { %v14440_v56 = vpop.f32.mrf.mxu1  ;;  %v19861_v59 = vpop.f32.mrf.mxu0  ;;  %14828 = vmatprep.subr.bf16.mxu1 %v23510_v7  ;;  %23674 = vst [vmem:[#allocation103_spill] sm:$0xff] %v19871_v50 }
 0x42f   : > { %23673 = vst [vmem:[#allocation102_spill] sm:$0xff] %v19861_v59  ;;  %14985 = vmatpush3.bf16.msra.mxu0 %v16474_v37  ;;  %v16477_v56 = vld [vmem:[%s23173_s3 + $0x248] sm:$0xff]  }
 0x430   : > { %v19867_v31 = vpop.f32.mrf.mxu1  ;;  %v14597_v25 = vpop.f32.mrf.mxu0  ;;  %14986 = vmatprep.subr.bf16.mxu0 %v23510_v7 }
 0x431   : > { %14829 = vmatpush3.bf16.msra.mxu1 %v16475_v58  ;;  %v16478_v25 = vld [vmem:[%s23173_s3 + $0x300] sm:$0xff]  }
 0x432   : > { %v14441_v59 = vpop.f32.mrf.mxu1  ;;  %v19876_v23 = vpop.f32.mrf.mxu0  ;;  %14899 = vmatmul.mubr.bf16.gmra.mxu0 %v19871_v50  ;;  %14830 = vmatprep.subr.bf16.mxu1 %v23510_v7  ;;  %v16479_v58 = vld [vmem:[%s23173_s3 + $0x240] sm:$0xff]  }
 0x433   : > { %23675 = vst [vmem:[#allocation104_spill] sm:$0xff] %v19876_v23  ;;  %14902 = vmatprep.mubr.msk.bf16.mxu0 %vm16815_vm0, %v23510_v7  ;;  %14987 = vmatpush3.bf16.msra.mxu0 %v16476_v24  ;;  %v5479_v59 = vrot.slane %v23644_v49, 2 }
 0x434   : > { %v19885_v6 = vpop.f32.mrf.mxu1  ;;  %v14600_v37 = vpop.f32.mrf.mxu0  ;;  %14743 = vmatmul.mubr.bf16.gmra.mxu1 %v18798_v62  ;;  %14988 = vmatprep.subr.bf16.mxu0 %v23510_v7 }
 0x435   : > { %14746 = vmatprep.mubr.msk.bf16.mxu1 %vm16815_vm0, %v23510_v7  ;;  %14831 = vmatpush3.bf16.msra.mxu1 %v16477_v56  ;;  %v19902_v49 = vsel %vm4136_vm7, %v5477_v63, %v5479_v59 }
 0x436   : > { %v14444_v24 = vpop.f32.mrf.mxu1  ;;  %v19895_v50 = vpop.f32.mrf.mxu0  ;;  %14832 = vmatprep.subr.bf16.mxu1 %v23510_v7  ;;  %23677 = vst [vmem:[#allocation106_spill] sm:$0xff] %v19902_v49 }
 0x437   : > { %23676 = vst [vmem:[#allocation105_spill] sm:$0xff] %v19895_v50  ;;  %14989 = vmatpush3.bf16.msra.mxu0 %v16478_v25 }
 0x438   : > { %v19898_v37 = vpop.f32.mrf.mxu1  ;;  %v14601_v23 = vpop.f32.mrf.mxu0  ;;  %15078 = vmatprep.subr.bf16.mxu0 %v23510_v7 }
 0x439   : > { %14833 = vmatpush3.bf16.msra.mxu1 %v16479_v58  ;;  %v5481_v23 = vrot.slane %v23651_v0, 2 }
 0x43a   : > { %v14445_v56 = vpop.f32.mrf.mxu1  ;;  %v19904_v62 = vpop.f32.mrf.mxu0  ;;  %14903 = vmatmul.mubr.bf16.gmra.mxu0 %v19902_v49  ;;  %14922 = vmatprep.subr.bf16.mxu1 %v23510_v7 }
 0x43b   : > { %23678 = vst [vmem:[#allocation107_spill] sm:$0xff] %v19904_v62  ;;  %14906 = vmatprep.mubr.msk.bf16.mxu0 %vm16815_vm0, %v23510_v7  ;;  %v19921_v62 = vsel %vm4136_vm7, %v5479_v59, %v5481_v23 }
 0x43c   : > { %v19910_v25 = vpop.f32.mrf.mxu1  ;;  %v14604_v24 = vpop.f32.mrf.mxu0  ;;  %14747 = vmatmul.mubr.bf16.gmra.mxu1 %v18851_v43  ;;  %23680 = vst [vmem:[#allocation109_spill] sm:$0xff] %v19921_v62 }
 0x43d   : > { %14750 = vmatprep.mubr.msk.bf16.mxu1 %vm16815_vm0, %v23510_v7 }
 0x43e   : > { %v14448_v63 = vpop.f32.mrf.mxu1  ;;  %v19916_v58 = vpop.f32.mrf.mxu0 }
 0x43f   : > { %23679 = vst [vmem:[#allocation108_spill] sm:$0xff] %v19916_v58  ;;  %v5483_v63 = vrot.slane %v23659_v40, 2  ;;  %v3586_v40 = vadd.f32 %v19728_v48, %v19499_v28  ;;  %v3591_v48 = vadd.f32 %v19741_v26, %v19510_v9 }
 0x440   : > { %v19918_v56 = vpop.f32.mrf.mxu1  ;;  %v14605_v49 = vpop.f32.mrf.mxu0 }
 0x441   : > { %v19941_v58 = vsel %vm4136_vm7, %v5481_v23, %v5483_v63  ;;  %v23685_v23 = vld [vmem:[#allocation22_spill] sm:$0xff]  ;;  %v3864_v9 = vadd.f32 %v19505_v13, %v3591_v48  ;;  %v3599_v13 = vadd.f32 %v19759_v17, %v19525_v29 }
 0x442   : > { %v14449_v50 = vpop.f32.mrf.mxu1  ;;  %v19923_v39 = vpop.f32.mrf.mxu0  ;;  %14907 = vmatmul.mubr.bf16.gmra.mxu0 %v19921_v62  ;;  %23683 = vst [vmem:[#allocation112_spill] sm:$0xff] %v19941_v58 }
 0x443   : > { %23681 = vst [vmem:[#allocation110_spill] sm:$0xff] %v19923_v39  ;;  %14910 = vmatprep.mubr.msk.bf16.mxu0 %vm16815_vm0, %v23510_v7  ;;  %v3583_v50 = vadd.f32 %v19714_v10, %v19490_v32 }
 0x444   : > { %v19928_v24 = vpop.f32.mrf.mxu1  ;;  %v14608_v0 = vpop.f32.mrf.mxu0  ;;  %14751 = vmatmul.mubr.bf16.gmra.mxu1 %v18889_v41 }
 0x445   : > { %14754 = vmatprep.mubr.msk.bf16.mxu1 %vm16815_vm0, %v23510_v7 }
 0x446   : > { %v14452_v49 = vpop.f32.mrf.mxu1  ;;  %v19934_v59 = vpop.f32.mrf.mxu0 }
 0x447   : > { %23682 = vst [vmem:[#allocation111_spill] sm:$0xff] %v19934_v59  ;;  %v3862_v49 = vadd.f32 %v19482_v1, %v3583_v50  ;;  %v3863_v1 = vadd.f32 %v19493_v46, %v3586_v40 }
 0x448   : > { %v19938_v62 = vpop.f32.mrf.mxu1  ;;  %v14609_v39 = vpop.f32.mrf.mxu0 }
 0x44a   : > { %v14453_v0 = vpop.f32.mrf.mxu1  ;;  %v19943_v43 = vpop.f32.mrf.mxu0  ;;  %14911 = vmatmul.mubr.bf16.gmra.mxu0 %v19941_v58 }
 0x44b   : > { %23684 = vst [vmem:[#allocation113_spill] sm:$0xff] %v19943_v43  ;;  %14914 = vmatprep.mubr.msk.bf16.mxu0 %vm16815_vm0, %v23510_v7  ;;  %v19955_v0 = vrot.slane %v23685_v23, 2 }
 0x44c   : > { %v4030_v32 = vpop.f32.mrf.mxu1  ;;  %v14680_v10 = vpop.f32.mrf.mxu0  ;;  %14755 = vmatmul.mubr.bf16.gmra.mxu1 %v18926_v11 }
 0x44d   : > { %v19952_v39 = vadd.f32 %v4030_v32, %v3862_v49  ;;  %23686 = vst [vmem:[#allocation114_spill] sm:$0xff] %v19955_v0  ;;  %14758 = vmatprep.mubr.msk.bf16.mxu1 %vm16815_vm0, %v23510_v7  ;;  %v19968_v49 = vsel %vm4136_vm7, %v5483_v63, %v19955_v0  ;;  %v23688_v63 = vld [vmem:[#allocation34_spill] sm:$0xff] }
 0x44e   : > { %v14524_v58 = vpop.f32.mrf.mxu1  ;;  %v19959_v43 = vpop.f32.mrf.mxu0  ;;  %23687 = vst [vmem:[#allocation115_spill] sm:$0xff] %v19968_v49 }
 0x44f   : > { %v3594_v58 = vadd.f32 %v19750_v20, %v19517_v5 }
 0x450   : > { %v4033_v28 = vpop.f32.mrf.mxu1  ;;  %v14681_v50 = vpop.f32.mrf.mxu0 }
 0x451   : > { %v19964_v10 = vadd.f32 %v4033_v28, %v3863_v1  ;;  %v5487_v1 = vrot.slane %v23688_v63, 2  ;;  %v3865_v5 = vadd.f32 %v19515_v21, %v3594_v58 }
 0x452   : > { %v14525_v32 = vpop.f32.mrf.mxu1  ;;  %v19970_v59 = vpop.f32.mrf.mxu0  ;;  %14915 = vmatmul.mubr.bf16.gmra.mxu0 %v19968_v49  ;;  %v3866_v49 = vadd.f32 %v19521_v55, %v3599_v13 }
 0x453   : > { %14918 = vmatprep.mubr.msk.bf16.mxu0 %vm16815_vm0, %v23510_v7 }
 0x454   : > { %v4038_v46 = vpop.f32.mrf.mxu1  ;;  %v14684_v40 = vpop.f32.mrf.mxu0  ;;  %14759 = vmatmul.mubr.bf16.gmra.mxu1 %v18955_v2 }
 0x455   : > { %v19979_v26 = vadd.f32 %v4038_v46, %v3864_v9  ;;  %14762 = vmatprep.mubr.msk.bf16.mxu1 %vm16815_vm0, %v23510_v7  ;;  %v5488_v9 = vsel %vm4136_vm7, %v19955_v0, %v5487_v1 }
 0x456   : > { %v14528_v28 = vpop.f32.mrf.mxu1  ;;  %v19984_v50 = vpop.f32.mrf.mxu0 }
 0x457   : > { %v3602_v28 = vadd.f32 %v19770_v3, %v19535_v51  ;;  %v3607_v51 = vadd.f32 %v19783_v19, %v19548_v34  ;;  %v16480_v3 = vld [vmem:[%s23173_s3 + $0x3b8] sm:$0xff]   ;;  %v16482_v19 = vld [vmem:[%s23173_s3 + $0x3b0] sm:$0xff]  }
 0x458   : > { %v4041_v20 = vpop.f32.mrf.mxu1  ;;  %v14685_v48 = vpop.f32.mrf.mxu0 }
 0x459   : > { %v19989_v32 = vadd.f32 %v4041_v20, %v3865_v5  ;;  %v3867_v55 = vadd.f32 %v19530_v22, %v3602_v28  ;;  %v3610_v22 = vadd.f32 %v19799_v30, %v19564_v4  ;;  %v3868_v34 = vadd.f32 %v19540_v47, %v3607_v51  ;;  %v16483_v47 = vld [vmem:[%s23173_s3 + $0x2f0] sm:$0xff]   ;;  %v16484_v51 = vld [vmem:[%s23173_s3 + $0x3a8] sm:$0xff]  }
 0x45a   : > { %v14529_v46 = vpop.f32.mrf.mxu1  ;;  %v19993_v40 = vpop.f32.mrf.mxu0  ;;  %14919 = vmatmul.mubr.bf16.gmra.mxu0 %v5488_v9 }
 0x45b   : > { %14990 = vmatprep.mubr.msk.bf16.mxu0 %vm16815_vm0, %v23510_v7 }
 0x45c   : > { %v4046_v21 = vpop.f32.mrf.mxu1  ;;  %v14688_v29 = vpop.f32.mrf.mxu0  ;;  %14763 = vmatmul.mubr.bf16.gmra.mxu1 %v23653_v35 }
 0x45d   : > { %v20001_v17 = vadd.f32 %v4046_v21, %v3866_v49  ;;  %14834 = vmatprep.mubr.msk.bf16.mxu1 %vm16815_vm0, %v23510_v7  ;;  %v16481_v49 = vld [vmem:[%s23173_s3 + $0x2f8] sm:$0xff]   ;;  %v3615_v29 = vadd.f32 %v19817_v27, %v19584_v52 }
 0x45e   : > { %v14532_v58 = vpop.f32.mrf.mxu1  ;;  %v20005_v1 = vpop.f32.mrf.mxu0  ;;  %v23689_v21 = vld [vmem:[#allocation26_spill] sm:$0xff] }
 0x45f   : > { %v3869_v58 = vadd.f32 %v19557_v44, %v3610_v22  ;;  %v3618_v44 = vadd.f32 %v19833_v42, %v19600_v38  ;;  %v3870_v27 = vadd.f32 %v19570_v53, %v3615_v29  ;;  %v16487_v53 = vld [vmem:[%s23173_s3 + $0x2e0] sm:$0xff]  }
 0x460   : > { %v4049_v13 = vpop.f32.mrf.mxu1  ;;  %v14689_v5 = vpop.f32.mrf.mxu0 }
 0x461   : > { %v20013_v20 = vadd.f32 %v4049_v13, %v3867_v55  ;;  %v16485_v5 = vld [vmem:[%s23173_s3 + $0x2e8] sm:$0xff]  }
 0x462   : > { %v14533_v48 = vpop.f32.mrf.mxu1  ;;  %v20018_v9 = vpop.f32.mrf.mxu0  ;;  %14991 = vmatmul.mubr.bf16.vlgmr.msra.gmra.mxu0 %v19577_v15 }
 0x463   : > { %14994 = vmatprep.mubr.msk.bf16.mxu0 %vm16815_vm0, %v23510_v7  ;;  %15079 = vmatpush3.bf16.msra.mxu0 %v16480_v3  ;;  %v16486_v48 = vld [vmem:[%s23173_s3 + $0x3a0] sm:$0xff]  }
 0x464   : > { %v4054_v46 = vpop.f32.mrf.mxu1  ;;  %v14692_v28 = vpop.f32.mrf.mxu0  ;;  %14835 = vmatmul.mubr.bf16.vlgmr.msra.gmra.mxu1 %v23689_v21  ;;  %15080 = vmatprep.subr.bf16.mxu0 %v23510_v7  ;;  %v3871_v21 = vadd.f32 %v19593_v57, %v3618_v44  ;;  %v3626_v57 = vadd.f32 %v19867_v31, %v19634_v12  ;;  %v23691_v44 = vld [vmem:[#allocation21_spill] sm:$0xff] }
 0x465   : > { %v20031_v15 = vadd.f32 %v4054_v46, %v3868_v34  ;;  %14838 = vmatprep.mubr.msk.bf16.mxu1 %vm16815_vm0, %v23510_v7  ;;  %14923 = vmatpush3.bf16.msra.mxu1 %v16481_v49  ;;  %v3623_v28 = vadd.f32 %v19851_v14, %v19618_v8  ;;  %v16491_v12 = vld [vmem:[%s23173_s3 + $0x2d0] sm:$0xff]  }
 0x466   : > { %v14536_v4 = vpop.f32.mrf.mxu1  ;;  %v20038_v30 = vpop.f32.mrf.mxu0  ;;  %14924 = vmatprep.subr.bf16.mxu1 %v23510_v7 }
 0x467   : > { %15081 = vmatpush3.bf16.msra.mxu0 %v16482_v19  ;;  %v23690_v19 = vld [vmem:[#allocation16_spill] sm:$0xff]  ;;  %v3872_v14 = vadd.f32 %v19606_v18, %v3623_v28 }
 0x468   : > { %v4057_v55 = vpop.f32.mrf.mxu1  ;;  %v14693_v3 = vpop.f32.mrf.mxu0  ;;  %15082 = vmatprep.subr.bf16.mxu0 %v23510_v7  ;;  %v16493_v28 = vld [vmem:[%s23173_s3 + $0x2c8] sm:$0xff]  }
 0x469   : > { %v20048_v13 = vadd.f32 %v4057_v55, %v3869_v58  ;;  %14925 = vmatpush3.bf16.msra.mxu1 %v16483_v47  ;;  %v16488_v47 = vld [vmem:[%s23173_s3 + $0x398] sm:$0xff]   ;;  %v16490_v3 = vld [vmem:[%s23173_s3 + $0x390] sm:$0xff]  }
 0x46a   : > { %v14537_v49 = vpop.f32.mrf.mxu1  ;;  %v20053_v52 = vpop.f32.mrf.mxu0  ;;  %14995 = vmatmul.mubr.bf16.gmra.mxu0 %v19611_v61  ;;  %14926 = vmatprep.subr.bf16.mxu1 %v23510_v7 }
 0x46b   : > { %14998 = vmatprep.mubr.msk.bf16.mxu0 %vm16815_vm0, %v23510_v7  ;;  %15083 = vmatpush3.bf16.msra.mxu0 %v16484_v51  ;;  %v16489_v51 = vld [vmem:[%s23173_s3 + $0x2d8] sm:$0xff]  }
 0x46c   : > { %v4062_v22 = vpop.f32.mrf.mxu1  ;;  %v14696_v34 = vpop.f32.mrf.mxu0  ;;  %14839 = vmatmul.mubr.bf16.gmra.mxu1 %v23690_v19  ;;  %15084 = vmatprep.subr.bf16.mxu0 %v23510_v7 }
 0x46d   : > { %v20067_v46 = vadd.f32 %v4062_v22, %v3870_v27  ;;  %14842 = vmatprep.mubr.msk.bf16.mxu1 %vm16815_vm0, %v23510_v7  ;;  %14927 = vmatpush3.bf16.msra.mxu1 %v16485_v5  ;;  %v3873_v22 = vadd.f32 %v19627_v54, %v3626_v57  ;;  %v16492_v34 = vld [vmem:[%s23173_s3 + $0x388] sm:$0xff]   ;;  %v23692_v54 = vld [vmem:[#allocation3_spill] sm:$0xff] }
 0x46e   : > { %v14540_v38 = vpop.f32.mrf.mxu1  ;;  %v20074_v42 = vpop.f32.mrf.mxu0  ;;  %14928 = vmatprep.subr.bf16.mxu1 %v23510_v7 }
 0x46f   : > { %15085 = vmatpush3.bf16.msra.mxu0 %v16486_v48  ;;  %v3631_v48 = vadd.f32 %v19885_v6, %v19652_v45  ;;  %v23693_v6 = vld [vmem:[#allocation81_spill] sm:$0xff] }
 0x470   : > { %v4065_v4 = vpop.f32.mrf.mxu1  ;;  %v14697_v29 = vpop.f32.mrf.mxu0  ;;  %15086 = vmatprep.subr.bf16.mxu0 %v23510_v7 }
 0x471   : > { %v20084_v58 = vadd.f32 %v4065_v4, %v3871_v21  ;;  %14929 = vmatpush3.bf16.msra.mxu1 %v16487_v53  ;;  %v23694_v4 = vld [vmem:[#allocation78_spill] sm:$0xff] }
 0x472   : > { %v14541_v55 = vpop.f32.mrf.mxu1  ;;  %v20089_v8 = vpop.f32.mrf.mxu0  ;;  %14999 = vmatmul.mubr.bf16.gmra.mxu0 %v19645_v60  ;;  %14930 = vmatprep.subr.bf16.mxu1 %v23510_v7  ;;  %v3874_v29 = vadd.f32 %v23694_v4, %v3631_v48  ;;  %v23700_v4 = vld [vmem:[#allocation82_spill] sm:$0xff] }
 0x473   : > { %15002 = vmatprep.mubr.msk.bf16.mxu0 %vm16815_vm0, %v23510_v7  ;;  %15087 = vmatpush3.bf16.msra.mxu0 %v16488_v47  ;;  %v3634_v47 = vadd.f32 %v19898_v37, %v23693_v6  ;;  %v16495_v37 = vld [vmem:[%s23173_s3 + $0x2c0] sm:$0xff]   ;;  %v23699_v6 = vld [vmem:[#allocation85_spill] sm:$0xff] }
 0x474   : > { %v4070_v5 = vpop.f32.mrf.mxu1  ;;  %v14700_v49 = vpop.f32.mrf.mxu0  ;;  %14843 = vmatmul.mubr.bf16.gmra.mxu1 %v23691_v44  ;;  %15088 = vmatprep.subr.bf16.mxu0 %v23510_v7  ;;  %v23696_v44 = vld [vmem:[#allocation83_spill] sm:$0xff] }
 0x475   : > { %v20103_v27 = vadd.f32 %v4070_v5, %v3872_v14  ;;  %14846 = vmatprep.mubr.msk.bf16.mxu1 %vm16815_vm0, %v23510_v7  ;;  %14931 = vmatpush3.bf16.msra.mxu1 %v16489_v51  ;;  %v16494_v51 = vld [vmem:[%s23173_s3 + $0x380] sm:$0xff]   ;;  %v23695_v14 = vld [vmem:[#allocation10_spill] sm:$0xff] }
 0x476   : > { %v14544_v18 = vpop.f32.mrf.mxu1  ;;  %v20110_v31 = vpop.f32.mrf.mxu0  ;;  %14932 = vmatprep.subr.bf16.mxu1 %v23510_v7 }
 0x477   : > { %15089 = vmatpush3.bf16.msra.mxu0 %v16490_v3  ;;  %v23697_v18 = vld [vmem:[#allocation80_spill] sm:$0xff] }
 0x478   : > { %v4073_v19 = vpop.f32.mrf.mxu1  ;;  %v14701_v53 = vpop.f32.mrf.mxu0  ;;  %15090 = vmatprep.subr.bf16.mxu0 %v23510_v7  ;;  %v3875_v48 = vadd.f32 %v23697_v18, %v3634_v47 }
 0x479   : > { %v20120_v38 = vadd.f32 %v4073_v19, %v3873_v22  ;;  %14933 = vmatpush3.bf16.msra.mxu1 %v16491_v12  ;;  %v3639_v12 = vadd.f32 %v19910_v25, %v23696_v44  ;;  %v3642_v25 = vadd.f32 %v19918_v56, %v23699_v6  ;;  %v23703_v44 = vld [vmem:[#allocation84_spill] sm:$0xff]  ;;  %v23704_v6 = vld [vmem:[#allocation30_spill] sm:$0xff] }
 0x47a   : > { %v14545_v21 = vpop.f32.mrf.mxu1  ;;  %v20125_v45 = vpop.f32.mrf.mxu0  ;;  %15003 = vmatmul.mubr.bf16.gmra.mxu0 %v23692_v54  ;;  %14934 = vmatprep.subr.bf16.mxu1 %v23510_v7 }
 0x47b   : > { %15006 = vmatprep.mubr.msk.bf16.mxu0 %vm16815_vm0, %v23510_v7  ;;  %15091 = vmatpush3.bf16.msra.mxu0 %v16492_v34  ;;  %v23698_v21 = vld [vmem:[#allocation15_spill] sm:$0xff]  ;;  %v3876_v47 = vadd.f32 %v23700_v4, %v3639_v12  ;;  %v3877_v12 = vadd.f32 %v23703_v44, %v3642_v25  ;;  %v23705_v4 = vld [vmem:[#allocation89_spill] sm:$0xff] }
 0x47c   : > { %v4078_v55 = vpop.f32.mrf.mxu1  ;;  %v14704_v57 = vpop.f32.mrf.mxu0  ;;  %14847 = vmatmul.mubr.bf16.gmra.mxu1 %v23695_v14  ;;  %15092 = vmatprep.subr.bf16.mxu0 %v23510_v7  ;;  %v23707_v25 = vld [vmem:[#allocation29_spill] sm:$0xff] }
 0x47d   : > { %v20139_v3 = vadd.f32 %v4078_v55, %v3874_v29  ;;  %14850 = vmatprep.mubr.msk.bf16.mxu1 %vm16815_vm0, %v23510_v7  ;;  %14935 = vmatpush3.bf16.msra.mxu1 %v16493_v28  ;;  %v23701_v55 = vld [vmem:[#allocation4_spill] sm:$0xff] }
 0x47e   : > { %v14548_v5 = vpop.f32.mrf.mxu1  ;;  %v20146_v49 = vpop.f32.mrf.mxu0  ;;  %14936 = vmatprep.subr.bf16.mxu1 %v23510_v7 }
 0x47f   : > { %15093 = vmatpush3.bf16.msra.mxu0 %v16494_v51  ;;  %v23702_v5 = vld [vmem:[#allocation87_spill] sm:$0xff] }
 0x480   : > { %v4081_v22 = vpop.f32.mrf.mxu1  ;;  %v14705_v34 = vpop.f32.mrf.mxu0  ;;  %15182 = vmatprep.subr.bf16.mxu0 %v23510_v7  ;;  %v3647_v56 = vadd.f32 %v19928_v24, %v23702_v5 }
 0x481   : > { %v20153_v19 = vadd.f32 %v4081_v22, %v3875_v48  ;;  %14937 = vmatpush3.bf16.msra.mxu1 %v16495_v37 }
 0x482   : > { %v14549_v53 = vpop.f32.mrf.mxu1  ;;  %v20155_v28 = vpop.f32.mrf.mxu0  ;;  %15007 = vmatmul.mubr.bf16.gmra.mxu0 %v23698_v21  ;;  %15026 = vmatprep.subr.bf16.mxu1 %v23510_v7 }
 0x483   : > { %15010 = vmatprep.mubr.msk.bf16.mxu0 %vm16815_vm0, %v23510_v7 }
 0x484   : > { %v4086_v29 = vpop.f32.mrf.mxu1  ;;  %v14708_v51 = vpop.f32.mrf.mxu0  ;;  %14851 = vmatmul.mubr.bf16.gmra.mxu1 %v23701_v55 }
 0x485   : > { %v20165_v57 = vadd.f32 %v4086_v29, %v3876_v47  ;;  %14854 = vmatprep.mubr.msk.bf16.mxu1 %vm16815_vm0, %v23510_v7  ;;  %v3650_v47 = vadd.f32 %v19938_v62, %v23705_v4  ;;  %v23706_v29 = vld [vmem:[#allocation86_spill] sm:$0xff] }
 0x486   : > { %v14552_v14 = vpop.f32.mrf.mxu1  ;;  %v20169_v37 = vpop.f32.mrf.mxu0  ;;  %v3878_v51 = vadd.f32 %v23706_v29, %v3647_v56  ;;  %v23709_v29 = vld [vmem:[#allocation13_spill] sm:$0xff] }
 0x488   : > { %v4089_v18 = vpop.f32.mrf.mxu1  ;;  %v14709_v48 = vpop.f32.mrf.mxu0 }
 0x489   : > { %v20174_v22 = vadd.f32 %v4089_v18, %v3877_v12  ;;  %v23708_v12 = vld [vmem:[#allocation88_spill] sm:$0xff] }
 0x48a   : > { %v14553_v34 = vpop.f32.mrf.mxu1  ;;  %v20176_v53 = vpop.f32.mrf.mxu0  ;;  %15011 = vmatmul.mubr.bf16.gmra.mxu0 %v23704_v6  ;;  %v3879_v18 = vadd.f32 %v23708_v12, %v3650_v47 }
 0x48b   : > { %15014 = vmatprep.mubr.msk.bf16.mxu0 %vm16815_vm0, %v23510_v7 }
 0x48c   : > { %v4094_v24 = vpop.f32.mrf.mxu1  ;;  %v14712_v55 = vpop.f32.mrf.mxu0  ;;  %14855 = vmatmul.mubr.bf16.gmra.mxu1 %v23707_v25  ;;  %v23710_v25 = vld [vmem:[#allocation6_spill] sm:$0xff] }
 0x48d   : > { %v20185_v14 = vadd.f32 %v4094_v24, %v3878_v51  ;;  %14858 = vmatprep.mubr.msk.bf16.mxu1 %vm16815_vm0, %v23510_v7  ;;  %v4318_v51 = vadd.f32 %v23709_v29, %v19952_v39  ;;  %v23713_v39 = vld [vmem:[#allocation91_spill] sm:$0xff] }
 0x48e   : > { %v14556_v5 = vpop.f32.mrf.mxu1  ;;  %v20189_v44 = vpop.f32.mrf.mxu0 }
 0x48f   : > { %v20205_v5 = vrot.slane %v23685_v23, 3 }
 0x490   : > { %v4097_v62 = vpop.f32.mrf.mxu1  ;;  %v14713_v48 = vpop.f32.mrf.mxu0 }
 0x491   : > { %v20192_v56 = vadd.f32 %v4097_v62, %v3879_v18  ;;  %23711 = vst [vmem:[#allocation34_spill] sm:$0xff] %v20205_v5  ;;  %v4319_v62 = vadd.f32 %v23713_v39, %v19964_v10  ;;  %v5272_v48 = vrot.slane %v23653_v35, 1  ;;  %v23717_v10 = vld [vmem:[#allocation17_spill] sm:$0xff] }
 0x492   : > { %v14557_v34 = vpop.f32.mrf.mxu1  ;;  %v20194_v4 = vpop.f32.mrf.mxu0  ;;  %15015 = vmatmul.mubr.bf16.gmra.mxu0 %v19737_v33 }
 0x493   : > { %15018 = vmatprep.mubr.msk.bf16.mxu0 %vm16815_vm0, %v23510_v7  ;;  %v5273_v39 = vsel %vm3680_vm2, %v23717_v10, %v5272_v48 }
 0x494   : > { %v4484_v24 = vpop.f32.mrf.mxu1  ;;  %v14784_v55 = vpop.f32.mrf.mxu0  ;;  %14859 = vmatmul.mubr.bf16.gmra.mxu1 %v23710_v25 }
 0x495   : > { %v20202_v47 = vadd.f32 %v4484_v24, %v4318_v51  ;;  %14862 = vmatprep.mubr.msk.bf16.mxu1 %vm16815_vm0, %v23510_v7  ;;  %v20219_v51 = vsel %vm4373_vm4, %v19726_v16, %v20205_v5  ;;  %v5935_v16 = vrot.slane %v23688_v63, 3 }
 0x496   : > { %v14628_v12 = vpop.f32.mrf.mxu1  ;;  %v20209_v18 = vpop.f32.mrf.mxu0  ;;  %23714 = vst [vmem:[#allocation16_spill] sm:$0xff] %v20219_v51 }
 0x497   : > { %23712 = vst [vmem:[#allocation26_spill] sm:$0xff] %v20209_v18  ;;  %v23716_v12 = vld [vmem:[#allocation31_spill] sm:$0xff] }
 0x498   : > { %v4487_v34 = vpop.f32.mrf.mxu1  ;;  %v14785_v29 = vpop.f32.mrf.mxu0  ;;  %v4320_v33 = vadd.f32 %v23716_v12, %v19979_v26  ;;  %v4321_v26 = vadd.f32 %v19747_v36, %v19989_v32  ;;  %v23719_v12 = vld [vmem:[#allocation90_spill] sm:$0xff] }
 0x499   : > { %v20214_v55 = vadd.f32 %v4487_v34, %v4319_v62  ;;  %v5274_v10 = vrot.slane %v23719_v12, 1  ;;  %v23722_v36 = vld [vmem:[#allocation62_spill] sm:$0xff] }
 0x49a   : > { %v14629_v24 = vpop.f32.mrf.mxu1  ;;  %v20221_v25 = vpop.f32.mrf.mxu0  ;;  %15019 = vmatmul.mubr.bf16.gmra.mxu0 %v20219_v51  ;;  %v5690_v32 = vrot.slane %v23722_v36, 2 }
 0x49b   : > { %23715 = vst [vmem:[#allocation21_spill] sm:$0xff] %v20221_v25  ;;  %15022 = vmatprep.mubr.msk.bf16.mxu0 %vm16815_vm0, %v23510_v7 }
 0x49c   : > { %v4492_v62 = vpop.f32.mrf.mxu1  ;;  %v14788_v34 = vpop.f32.mrf.mxu0  ;;  %14863 = vmatmul.mubr.bf16.gmra.mxu1 %v5273_v39 }
 0x49d   : > { %v20230_v29 = vadd.f32 %v4492_v62, %v4320_v33  ;;  %14866 = vmatprep.mubr.msk.bf16.mxu1 %vm16815_vm0, %v23510_v7  ;;  %v5936_v33 = vsel %vm4373_vm4, %v20205_v5, %v5935_v16  ;;  %v23721_v62 = vld [vmem:[#allocation93_spill] sm:$0xff] }
 0x49e   : > { %v14632_v24 = vpop.f32.mrf.mxu1  ;;  %v20235_v51 = vpop.f32.mrf.mxu0  ;;  %v4322_v34 = vadd.f32 %v23721_v62, %v20001_v17  ;;  %v23725_v17 = vld [vmem:[#allocation94_spill] sm:$0xff] }
 0x49f   : > { %23718 = vst [vmem:[#allocation81_spill] sm:$0xff] %v20235_v51  ;;  %v5275_v24 = vsel %vm3680_vm2, %v5272_v48, %v5274_v10  ;;  %v4323_v48 = vadd.f32 %v23725_v17, %v20013_v20  ;;  %v16496_v62 = vld [vmem:[%s23173_s3 + $0x438] sm:$0xff]   ;;  %v23728_v20 = vld [vmem:[#allocation95_spill] sm:$0xff] }
 0x4a0   : > { %v4495_v6 = vpop.f32.mrf.mxu1  ;;  %v14789_v21 = vpop.f32.mrf.mxu0  ;;  %v23730_v17 = vld [vmem:[#allocation23_spill] sm:$0xff] }
 0x4a1   : > { %v20240_v54 = vadd.f32 %v4495_v6, %v4321_v26  ;;  %v23723_v21 = vld [vmem:[#allocation63_spill] sm:$0xff] }
 0x4a2   : > { %v14633_v39 = vpop.f32.mrf.mxu1  ;;  %v20244_v63 = vpop.f32.mrf.mxu0  ;;  %15023 = vmatmul.mubr.bf16.gmra.mxu0 %v5936_v33  ;;  %v5691_v6 = vrot.slane %v23723_v21, 3 }
 0x4a3   : > { %23720 = vst [vmem:[#allocation78_spill] sm:$0xff] %v20244_v63  ;;  %15094 = vmatprep.mubr.msk.bf16.mxu0 %vm16815_vm0, %v23510_v7 }
 0x4a4   : > { %v4500_v26 = vpop.f32.mrf.mxu1  ;;  %v14792_v12 = vpop.f32.mrf.mxu0  ;;  %14867 = vmatmul.mubr.bf16.gmra.mxu1 %v5275_v24  ;;  %v5692_v10 = vor.u32 %v5691_v6, %v5690_v32  ;;  %v4324_v32 = vadd.f32 %v23728_v20, %v20031_v15  ;;  %v23729_v6 = vld [vmem:[#allocation19_spill] sm:$0xff] }
 0x4a5   : > { %v20253_v16 = vadd.f32 %v4500_v26, %v4322_v34  ;;  %14938 = vmatprep.mubr.msk.bf16.mxu1 %vm16815_vm0, %v23510_v7  ;;  %v16497_v34 = vld [vmem:[%s23173_s3 + $0x378] sm:$0xff]   ;;  %v23731_v61 = vor.u32 %v23729_v6, %v23730_v17 }
 0x4a6   : > { %v14636_v33 = vpop.f32.mrf.mxu1  ;;  %v20257_v39 = vpop.f32.mrf.mxu0 }
 0x4a7   : > { %23724 = vst [vmem:[#allocation10_spill] sm:$0xff] %v20257_v39  ;;  %v23727_v33 = vld [vmem:[#allocation28_spill] sm:$0xff]  ;;  %v5693_v0 = vsel %vm5686_vm8, %v23731_v61, %v5692_v10  ;;  %v16499_v61 = vld [vmem:[%s23173_s3 + $0x370] sm:$0xff]  }
 0x4a8   : > { %v4503_v5 = vpop.f32.mrf.mxu1  ;;  %v14793_v60 = vpop.f32.mrf.mxu0 }
 0x4a9   : > { %v20264_v12 = vadd.f32 %v4503_v5, %v4323_v48  ;;  %v23732_v60 = vld [vmem:[#allocation64_spill] sm:$0xff]  ;;  %v23733_v48 = vld [vmem:[#allocation65_spill] sm:$0xff] }
 0x4aa   : > { %v14637_v24 = vpop.f32.mrf.mxu1  ;;  %v20269_v26 = vpop.f32.mrf.mxu0  ;;  %15095 = vmatmul.mubr.bf16.vlgmr.msra.gmra.mxu0 %v23727_v33  ;;  %v5694_v5 = vrot.slane %v23732_v60, 2  ;;  %v5695_v23 = vrot.slane %v23733_v48, 3 }
 0x4ab   : > { %23726 = vst [vmem:[#allocation83_spill] sm:$0xff] %v20269_v26  ;;  %15098 = vmatprep.mubr.msk.bf16.mxu0 %vm16815_vm0, %v23510_v7  ;;  %15183 = vmatpush3.bf16.msra.mxu0 %v16496_v62  ;;  %v16498_v24 = vld [vmem:[%s23173_s3 + $0x430] sm:$0xff]  }
 0x4ac   : > { %v4508_v33 = vpop.f32.mrf.mxu1  ;;  %v14796_v26 = vpop.f32.mrf.mxu0  ;;  %14939 = vmatmul.mubr.bf16.vlgmr.msra.gmra.mxu1 %v5693_v0  ;;  %15184 = vmatprep.subr.bf16.mxu0 %v23510_v7  ;;  %v5696_v6 = vor.u32 %v5695_v23, %v5694_v5  ;;  %v23737_v23 = vld [vmem:[#allocation18_spill] sm:$0xff] }
 0x4ad   : > { %v20286_v15 = vadd.f32 %v4508_v33, %v4324_v32  ;;  %14942 = vmatprep.mubr.msk.bf16.mxu1 %vm16815_vm0, %v23510_v7  ;;  %15027 = vmatpush3.bf16.msra.mxu1 %v16497_v34  ;;  %v23735_v26 = vld [vmem:[#allocation96_spill] sm:$0xff] }
 0x4ae   : > { %v14640_v62 = vpop.f32.mrf.mxu1  ;;  %v20293_v20 = vpop.f32.mrf.mxu0  ;;  %15028 = vmatprep.subr.bf16.mxu1 %v23510_v7  ;;  %v4325_v0 = vadd.f32 %v23735_v26, %v20048_v13  ;;  %v16500_v32 = vld [vmem:[%s23173_s3 + $0x428] sm:$0xff]   ;;  %v23738_v13 = vld [vmem:[#allocation98_spill] sm:$0xff] }
 0x4af   : > { %23734 = vst [vmem:[#allocation80_spill] sm:$0xff] %v20293_v20  ;;  %15185 = vmatpush3.bf16.msra.mxu0 %v16498_v24  ;;  %v16501_v62 = vld [vmem:[%s23173_s3 + $0x368] sm:$0xff]   ;;  %v4326_v5 = vadd.f32 %v23738_v13, %v20067_v46  ;;  %v20314_v24 = vsel %vm5686_vm8, %v5692_v10, %v5696_v6  ;;  %v16503_v10 = vld [vmem:[%s23173_s3 + $0x360] sm:$0xff]  }
 0x4b0   : > { %v4511_v17 = vpop.f32.mrf.mxu1  ;;  %v14797_v34 = vpop.f32.mrf.mxu0  ;;  %15186 = vmatprep.subr.bf16.mxu0 %v23510_v7  ;;  %23739 = vst [vmem:[#allocation82_spill] sm:$0xff] %v20314_v24 }
 0x4b1   : > { %v20302_v33 = vadd.f32 %v4511_v17, %v4325_v0  ;;  %15029 = vmatpush3.bf16.msra.mxu1 %v16499_v61  ;;  %v23740_v61 = vld [vmem:[#allocation67_spill] sm:$0xff]  ;;  %v23741_v0 = vld [vmem:[#allocation68_spill] sm:$0xff] }
 0x4b2   : > { %v14641_v20 = vpop.f32.mrf.mxu1  ;;  %v20307_v39 = vpop.f32.mrf.mxu0  ;;  %15099 = vmatmul.mubr.bf16.gmra.mxu0 %v23737_v23  ;;  %15030 = vmatprep.subr.bf16.mxu1 %v23510_v7  ;;  %v5698_v26 = vrot.slane %v23740_v61, 2  ;;  %v5699_v17 = vrot.slane %v23741_v0, 3 }
 0x4b3   : > { %23736 = vst [vmem:[#allocation85_spill] sm:$0xff] %v20307_v39  ;;  %15102 = vmatprep.mubr.msk.bf16.mxu0 %vm16815_vm0, %v23510_v7  ;;  %15187 = vmatpush3.bf16.msra.mxu0 %v16500_v32  ;;  %v16502_v20 = vld [vmem:[%s23173_s3 + $0x420] sm:$0xff]  }
 0x4b4   : > { %v4516_v34 = vpop.f32.mrf.mxu1  ;;  %v14800_v23 = vpop.f32.mrf.mxu0  ;;  %14943 = vmatmul.mubr.bf16.gmra.mxu1 %v20314_v24  ;;  %15188 = vmatprep.subr.bf16.mxu0 %v23510_v7  ;;  %v5700_v24 = vor.u32 %v5699_v17, %v5698_v26  ;;  %v23746_v26 = vld [vmem:[#allocation101_spill] sm:$0xff] }
 0x4b5   : > { %v20325_v46 = vadd.f32 %v4516_v34, %v4326_v5  ;;  %14946 = vmatprep.mubr.msk.bf16.mxu1 %vm16815_vm0, %v23510_v7  ;;  %15031 = vmatpush3.bf16.msra.mxu1 %v16501_v62  ;;  %v23743_v23 = vld [vmem:[#allocation99_spill] sm:$0xff]  ;;  %v16504_v5 = vld [vmem:[%s23173_s3 + $0x418] sm:$0xff]   ;;  %v4328_v17 = vadd.f32 %v23746_v26, %v20103_v27 }
 0x4b6   : > { %v14644_v32 = vpop.f32.mrf.mxu1  ;;  %v20332_v13 = vpop.f32.mrf.mxu0  ;;  %15032 = vmatprep.subr.bf16.mxu1 %v23510_v7  ;;  %v4327_v39 = vadd.f32 %v23743_v23, %v20084_v58  ;;  %v23745_v58 = vld [vmem:[#allocation8_spill] sm:$0xff]  ;;  %v23749_v23 = vld [vmem:[#allocation71_spill] sm:$0xff] }
 0x4b7   : > { %23742 = vst [vmem:[#allocation4_spill] sm:$0xff] %v20332_v13  ;;  %15189 = vmatpush3.bf16.msra.mxu0 %v16502_v20  ;;  %v16505_v32 = vld [vmem:[%s23173_s3 + $0x358] sm:$0xff]   ;;  %v20353_v20 = vsel %vm5686_vm8, %v5696_v6, %v5700_v24  ;;  %v16507_v6 = vld [vmem:[%s23173_s3 + $0x350] sm:$0xff]  }
 0x4b8   : > { %v4519_v34 = vpop.f32.mrf.mxu1  ;;  %v14801_v62 = vpop.f32.mrf.mxu0  ;;  %15190 = vmatprep.subr.bf16.mxu0 %v23510_v7  ;;  %23747 = vst [vmem:[#allocation84_spill] sm:$0xff] %v20353_v20 }
 0x4b9   : > { %v20341_v63 = vadd.f32 %v4519_v34, %v4327_v39  ;;  %15033 = vmatpush3.bf16.msra.mxu1 %v16503_v10  ;;  %v23748_v39 = vld [vmem:[#allocation70_spill] sm:$0xff]  ;;  %v5703_v34 = vrot.slane %v23749_v23, 3 }
 0x4ba   : > { %v14645_v13 = vpop.f32.mrf.mxu1  ;;  %v20346_v51 = vpop.f32.mrf.mxu0  ;;  %15103 = vmatmul.mubr.bf16.gmra.mxu0 %v23745_v58  ;;  %15034 = vmatprep.subr.bf16.mxu1 %v23510_v7  ;;  %v5702_v10 = vrot.slane %v23748_v39, 2 }
 0x4bb   : > { %23744 = vst [vmem:[#allocation87_spill] sm:$0xff] %v20346_v51  ;;  %15106 = vmatprep.mubr.msk.bf16.mxu0 %vm16815_vm0, %v23510_v7  ;;  %15191 = vmatpush3.bf16.msra.mxu0 %v16504_v5  ;;  %v16506_v13 = vld [vmem:[%s23173_s3 + $0x410] sm:$0xff]  }
 0x4bc   : > { %v4524_v62 = vpop.f32.mrf.mxu1  ;;  %v14804_v58 = vpop.f32.mrf.mxu0  ;;  %14947 = vmatmul.mubr.bf16.gmra.mxu1 %v20353_v20  ;;  %15192 = vmatprep.subr.bf16.mxu0 %v23510_v7  ;;  %v5704_v20 = vor.u32 %v5703_v34, %v5702_v10  ;;  %v23753_v10 = vld [vmem:[#allocation104_spill] sm:$0xff] }
 0x4bd   : > { %v20364_v27 = vadd.f32 %v4524_v62, %v4328_v17  ;;  %14950 = vmatprep.mubr.msk.bf16.mxu1 %vm16815_vm0, %v23510_v7  ;;  %15035 = vmatpush3.bf16.msra.mxu1 %v16505_v32  ;;  %v23751_v58 = vld [vmem:[#allocation102_spill] sm:$0xff]  ;;  %v16508_v17 = vld [vmem:[%s23173_s3 + $0x408] sm:$0xff]   ;;  %v4330_v34 = vadd.f32 %v23753_v10, %v20139_v3  ;;  %v16511_v3 = vld [vmem:[%s23173_s3 + $0x340] sm:$0xff]  }
 0x4be   : > { %v14648_v5 = vpop.f32.mrf.mxu1  ;;  %v20371_v26 = vpop.f32.mrf.mxu0  ;;  %15036 = vmatprep.subr.bf16.mxu1 %v23510_v7  ;;  %v4329_v51 = vadd.f32 %v23751_v58, %v20120_v38  ;;  %v23752_v38 = vld [vmem:[#allocation14_spill] sm:$0xff] }
 0x4bf   : > { %23750 = vst [vmem:[#allocation89_spill] sm:$0xff] %v20371_v26  ;;  %15193 = vmatpush3.bf16.msra.mxu0 %v16506_v13  ;;  %v16509_v5 = vld [vmem:[%s23173_s3 + $0x348] sm:$0xff]   ;;  %v20392_v13 = vsel %vm5686_vm8, %v5700_v24, %v5704_v20 }
 0x4c0   : > { %v4527_v62 = vpop.f32.mrf.mxu1  ;;  %v14805_v32 = vpop.f32.mrf.mxu0  ;;  %15194 = vmatprep.subr.bf16.mxu0 %v23510_v7 }
 0x4c1   : > { %v20380_v25 = vadd.f32 %v4527_v62, %v4329_v51  ;;  %15037 = vmatpush3.bf16.msra.mxu1 %v16507_v6  ;;  %v16510_v51 = vld [vmem:[%s23173_s3 + $0x400] sm:$0xff]   ;;  %v23755_v62 = vld [vmem:[#allocation105_spill] sm:$0xff] }
 0x4c2   : > { %v14649_v26 = vpop.f32.mrf.mxu1  ;;  %v20385_v18 = vpop.f32.mrf.mxu0  ;;  %15107 = vmatmul.mubr.bf16.gmra.mxu0 %v23752_v38  ;;  %15038 = vmatprep.subr.bf16.mxu1 %v23510_v7  ;;  %v4331_v32 = vadd.f32 %v23755_v62, %v20153_v19 }
 0x4c3   : > { %15110 = vmatprep.mubr.msk.bf16.mxu0 %vm16815_vm0, %v23510_v7  ;;  %15195 = vmatpush3.bf16.msra.mxu0 %v16508_v17 }
 0x4c4   : > { %v4532_v6 = vpop.f32.mrf.mxu1  ;;  %v14808_v26 = vpop.f32.mrf.mxu0  ;;  %14951 = vmatmul.mubr.bf16.gmra.mxu1 %v20392_v13  ;;  %15196 = vmatprep.subr.bf16.mxu0 %v23510_v7 }
 0x4c5   : > { %v20401_v58 = vadd.f32 %v4532_v6, %v4330_v34  ;;  %14954 = vmatprep.mubr.msk.bf16.mxu1 %vm16815_vm0, %v23510_v7  ;;  %15039 = vmatpush3.bf16.msra.mxu1 %v16509_v5  ;;  %v23756_v26 = vld [vmem:[#allocation107_spill] sm:$0xff] }
 0x4c6   : > { %v14652_v24 = vpop.f32.mrf.mxu1  ;;  %v20408_v17 = vpop.f32.mrf.mxu0  ;;  %15040 = vmatprep.subr.bf16.mxu1 %v23510_v7 }
 0x4c7   : > { %23754 = vst [vmem:[#allocation86_spill] sm:$0xff] %v20408_v17  ;;  %15197 = vmatpush3.bf16.msra.mxu0 %v16510_v51  ;;  %v4332_v24 = vadd.f32 %v23756_v26, %v20165_v57  ;;  %v23757_v17 = vld [vmem:[#allocation36_spill] sm:$0xff] }
 0x4c8   : > { %v4535_v38 = vpop.f32.mrf.mxu1  ;;  %v14809_v10 = vpop.f32.mrf.mxu0  ;;  %15286 = vmatprep.subr.bf16.mxu0 %v23510_v7  ;;  %v20424_v19 = vsel %vm5686_vm8, %v5704_v20, %v23757_v17  ;;  %v23759_v57 = vld [vmem:[#allocation108_spill] sm:$0xff] }
 0x4c9   : > { %v20414_v34 = vadd.f32 %v4535_v38, %v4331_v32  ;;  %15041 = vmatpush3.bf16.msra.mxu1 %v16511_v3  ;;  %v4333_v38 = vadd.f32 %v23759_v57, %v20174_v22 }
 0x4ca   : > { %v14653_v5 = vpop.f32.mrf.mxu1  ;;  %v20416_v6 = vpop.f32.mrf.mxu0  ;;  %15111 = vmatmul.mubr.bf16.gmra.mxu0 %v18889_v41  ;;  %15130 = vmatprep.subr.bf16.mxu1 %v23510_v7 }
 0x4cb   : > { %15114 = vmatprep.mubr.msk.bf16.mxu0 %vm16815_vm0, %v23510_v7 }
 0x4cc   : > { %v4540_v51 = vpop.f32.mrf.mxu1  ;;  %v14812_v62 = vpop.f32.mrf.mxu0  ;;  %14955 = vmatmul.mubr.bf16.gmra.mxu1 %v20424_v19 }
 0x4cd   : > { %v20429_v3 = vadd.f32 %v4540_v51, %v4332_v24  ;;  %14958 = vmatprep.mubr.msk.bf16.mxu1 %vm16815_vm0, %v23510_v7  ;;  %v23761_v24 = vld [vmem:[#allocation110_spill] sm:$0xff] }
 0x4ce   : > { %v14656_v41 = vpop.f32.mrf.mxu1  ;;  %v20433_v32 = vpop.f32.mrf.mxu0  ;;  %v4334_v51 = vadd.f32 %v23761_v24, %v20185_v14 }
 0x4cf   : > { %23758 = vst [vmem:[#allocation29_spill] sm:$0xff] %v20433_v32  ;;  %v23762_v32 = vld [vmem:[#allocation39_spill] sm:$0xff] }
 0x4d0   : > { %v4543_v20 = vpop.f32.mrf.mxu1  ;;  %v14813_v17 = vpop.f32.mrf.mxu0 }
 0x4d1   : > { %v20437_v10 = vadd.f32 %v4543_v20, %v4333_v38 }
 0x4d2   : > { %v14657_v5 = vpop.f32.mrf.mxu1  ;;  %v20439_v26 = vpop.f32.mrf.mxu0  ;;  %15115 = vmatmul.mubr.bf16.gmra.mxu0 %v18926_v11  ;;  %v23764_v11 = vld [vmem:[#allocation111_spill] sm:$0xff] }
 0x4d3   : > { %23760 = vst [vmem:[#allocation88_spill] sm:$0xff] %v20439_v26  ;;  %15118 = vmatprep.mubr.msk.bf16.mxu0 %vm16815_vm0, %v23510_v7  ;;  %v4335_v20 = vadd.f32 %v23764_v11, %v20192_v56 }
 0x4d4   : > { %v4548_v62 = vpop.f32.mrf.mxu1  ;;  %v14816_v41 = vpop.f32.mrf.mxu0  ;;  %14959 = vmatmul.mubr.bf16.gmra.mxu1 %v23762_v32 }
 0x4d5   : > { %v20447_v22 = vadd.f32 %v4548_v62, %v4334_v51  ;;  %14962 = vmatprep.mubr.msk.bf16.mxu1 %vm16815_vm0, %v23510_v7  ;;  %v23765_v51 = vld [vmem:[#allocation113_spill] sm:$0xff] }
 0x4d6   : > { %v14660_v57 = vpop.f32.mrf.mxu1  ;;  %v20451_v38 = vpop.f32.mrf.mxu0  ;;  %v4842_v62 = vadd.f32 %v23765_v51, %v20202_v47 }
 0x4d7   : > { %23763 = vst [vmem:[#allocation13_spill] sm:$0xff] %v20451_v38  ;;  %v23766_v38 = vld [vmem:[#allocation41_spill] sm:$0xff] }
 0x4d8   : > { %v4551_v17 = vpop.f32.mrf.mxu1  ;;  %v14817_v14 = vpop.f32.mrf.mxu0 }
 0x4d9   : > { %v20455_v5 = vadd.f32 %v4551_v17, %v4335_v20 }
 0x4da   : > { %v14661_v24 = vpop.f32.mrf.mxu1  ;;  %v20457_v26 = vpop.f32.mrf.mxu0  ;;  %15119 = vmatmul.mubr.bf16.gmra.mxu0 %v18955_v2  ;;  %v4843_v2 = vadd.f32 %v19959_v43, %v20214_v55 }
 0x4db   : > { %15122 = vmatprep.mubr.msk.bf16.mxu0 %vm16815_vm0, %v23510_v7 }
 0x4dc   : > { %v4960_v41 = vpop.f32.mrf.mxu1  ;;  %v14888_v57 = vpop.f32.mrf.mxu0  ;;  %14963 = vmatmul.mubr.bf16.gmra.mxu1 %v23766_v38 }
 0x4dd   : > { %v20465_v56 = vadd.f32 %v4960_v41, %v4842_v62  ;;  %14966 = vmatprep.mubr.msk.bf16.mxu1 %vm16815_vm0, %v23510_v7  ;;  %v4844_v62 = vadd.f32 %v19970_v59, %v20230_v29  ;;  %v23769_v41 = vld [vmem:[#allocation42_spill] sm:$0xff]  ;;  %v23770_v57 = vld [vmem:[#allocation40_spill] sm:$0xff]  ;;  %v4845_v59 = vadd.f32 %v19984_v50, %v20240_v54  ;;  %v6734_v50 = vrot.slane %v23722_v36, 1 }
 0x4de   : > { %v14732_v11 = vpop.f32.mrf.mxu1  ;;  %v20469_v20 = vpop.f32.mrf.mxu0  ;;  %v6735_v54 = vrot.slane %v23723_v21, 2  ;;  %v16512_v36 = vld [vmem:[%s23173_s3 + $0x4b8] sm:$0xff]  }
 0x4df   : > { %23767 = vst [vmem:[#allocation6_spill] sm:$0xff] %v20469_v20  ;;  %v20483_v11 = vsel %vm5686_vm8, %v23770_v57, %v23769_v41  ;;  %v6737_v41 = vrot.slane %v23732_v60, 1  ;;  %v6738_v57 = vrot.slane %v23733_v48, 2 }
 0x4e0   : > { %v4963_v17 = vpop.f32.mrf.mxu1  ;;  %v14889_v47 = vpop.f32.mrf.mxu0 }
 0x4e1   : > { %v20473_v14 = vadd.f32 %v4963_v17, %v4843_v2  ;;  %v6739_v60 = vor.u32 %v6738_v57, %v6737_v41  ;;  %v6741_v57 = vrot.slane %v23740_v61, 1 }
 0x4e2   : > { %v14733_v24 = vpop.f32.mrf.mxu1  ;;  %v20475_v51 = vpop.f32.mrf.mxu0  ;;  %15123 = vmatmul.mubr.bf16.gmra.mxu0 %v23653_v35 }
 0x4e3   : > { %23768 = vst [vmem:[#allocation91_spill] sm:$0xff] %v20475_v51  ;;  %15126 = vmatprep.mubr.msk.bf16.mxu0 %vm16815_vm0, %v23510_v7  ;;  %v23772_v51 = vld [vmem:[#allocation11_spill] sm:$0xff] }
 0x4e4   : > { %v4968_v43 = vpop.f32.mrf.mxu1  ;;  %v14892_v55 = vpop.f32.mrf.mxu0  ;;  %14967 = vmatmul.mubr.bf16.gmra.mxu1 %v20483_v11 }
 0x4e5   : > { %v20488_v2 = vadd.f32 %v4968_v43, %v4844_v62  ;;  %14970 = vmatprep.mubr.msk.bf16.mxu1 %vm16815_vm0, %v23510_v7  ;;  %v23771_v43 = vld [vmem:[#allocation32_spill] sm:$0xff] }
 0x4e6   : > { %v14736_v35 = vpop.f32.mrf.mxu1  ;;  %v20492_v17 = vpop.f32.mrf.mxu0  ;;  %v23773_v20 = vpack.c.bf16 %v23771_v43, %v23772_v51 }
 0x4e7   : > { %v4846_v35 = vadd.f32 %v19993_v40, %v20253_v16  ;;  %v4847_v40 = vadd.f32 %v20005_v1, %v20264_v12  ;;  %v6736_v16 = vor.u32 %v6735_v54, %v6734_v50  ;;  %v4848_v50 = vadd.f32 %v20018_v9, %v20286_v15  ;;  %v16514_v54 = vld [vmem:[%s23173_s3 + $0x4b0] sm:$0xff]  }
 0x4e8   : > { %v4971_v29 = vpop.f32.mrf.mxu1  ;;  %v14893_v47 = vpop.f32.mrf.mxu0  ;;  %v16515_v9 = vld [vmem:[%s23173_s3 + $0x3f0] sm:$0xff]  }
 0x4e9   : > { %v20496_v24 = vadd.f32 %v4971_v29, %v4845_v59  ;;  %v23774_v47 = vld [vmem:[#allocation43_spill] sm:$0xff]  ;;  %v6740_v41 = vsel %vm3897_vm6, %v6736_v16, %v6739_v60 }
 0x4ea   : > { %v14737_v55 = vpop.f32.mrf.mxu1  ;;  %v20500_v62 = vpop.f32.mrf.mxu0  ;;  %15127 = vmatmul.mubr.bf16.gmra.mxu0 %v23773_v20 }
 0x4eb   : > { %15198 = vmatprep.mubr.msk.bf16.mxu0 %vm16815_vm0, %v23510_v7 }
 0x4ec   : > { %v4976_v59 = vpop.f32.mrf.mxu1  ;;  %v14896_v29 = vpop.f32.mrf.mxu0  ;;  %14971 = vmatmul.mubr.bf16.gmra.mxu1 %v23774_v47 }
 0x4ed   : > { %v20512_v55 = vadd.f32 %v4976_v59, %v4846_v35  ;;  %15042 = vmatprep.mubr.msk.bf16.mxu1 %vm16815_vm0, %v23510_v7  ;;  %v6742_v35 = vrot.slane %v23741_v0, 2  ;;  %v16513_v59 = vld [vmem:[%s23173_s3 + $0x3f8] sm:$0xff]  }
 0x4ee   : > { %v14740_v20 = vpop.f32.mrf.mxu1  ;;  %v20516_v51 = vpop.f32.mrf.mxu0 }
 0x4f0   : > { %v4979_v21 = vpop.f32.mrf.mxu1  ;;  %v14897_v43 = vpop.f32.mrf.mxu0 }
 0x4f1   : > { %v20523_v29 = vadd.f32 %v4979_v21, %v4847_v40  ;;  %v23775_v40 = vld [vmem:[#allocation66_spill] sm:$0xff]  ;;  %v6743_v21 = vor.u32 %v6742_v35, %v6741_v57  ;;  %v4849_v43 = vadd.f32 %v20038_v30, %v20302_v33  ;;  %v16517_v30 = vld [vmem:[%s23173_s3 + $0x3e8] sm:$0xff]  }
 0x4f2   : > { %v14741_v1 = vpop.f32.mrf.mxu1  ;;  %v20531_v12 = vpop.f32.mrf.mxu0  ;;  %15199 = vmatmul.mubr.bf16.vlgmr.msra.gmra.mxu0 %v6740_v41  ;;  %v16516_v41 = vld [vmem:[%s23173_s3 + $0x4a8] sm:$0xff]  }
 0x4f3   : > { %15202 = vmatprep.mubr.msk.bf16.mxu0 %vm16815_vm0, %v23510_v7  ;;  %15287 = vmatpush3.bf16.msra.mxu0 %v16512_v36  ;;  %v20561_v1 = vsel %vm3897_vm6, %v6739_v60, %v6743_v21  ;;  %v4850_v60 = vadd.f32 %v20053_v52, %v20325_v46  ;;  %v16519_v52 = vld [vmem:[%s23173_s3 + $0x3e0] sm:$0xff]  }
 0x4f4   : > { %v4984_v47 = vpop.f32.mrf.mxu1  ;;  %v14900_v20 = vpop.f32.mrf.mxu0  ;;  %15043 = vmatmul.mubr.bf16.vlgmr.msra.gmra.mxu1 %v23775_v40  ;;  %15288 = vmatprep.subr.bf16.mxu0 %v23510_v7  ;;  %23776 = vst [vmem:[#allocation31_spill] sm:$0xff] %v20561_v1 }
 0x4f5   : > { %v20542_v16 = vadd.f32 %v4984_v47, %v4848_v50  ;;  %15046 = vmatprep.mubr.msk.bf16.mxu1 %vm16815_vm0, %v23510_v7  ;;  %15131 = vmatpush3.bf16.msra.mxu1 %v16513_v59  ;;  %v6745_v50 = vrot.slane %v23748_v39, 1  ;;  %v6746_v47 = vrot.slane %v23749_v23, 2  ;;  %v16518_v20 = vld [vmem:[%s23173_s3 + $0x4a0] sm:$0xff]  }
 0x4f6   : > { %v14744_v15 = vpop.f32.mrf.mxu1  ;;  %v20549_v36 = vpop.f32.mrf.mxu0  ;;  %15132 = vmatprep.subr.bf16.mxu1 %v23510_v7 }
 0x4f7   : > { %15289 = vmatpush3.bf16.msra.mxu0 %v16514_v54  ;;  %v23777_v15 = vld [vmem:[#allocation69_spill] sm:$0xff] }
 0x4f8   : > { %v4987_v57 = vpop.f32.mrf.mxu1  ;;  %v14901_v35 = vpop.f32.mrf.mxu0  ;;  %15290 = vmatprep.subr.bf16.mxu0 %v23510_v7 }
 0x4f9   : > { %v20558_v59 = vadd.f32 %v4987_v57, %v4849_v43  ;;  %15133 = vmatpush3.bf16.msra.mxu1 %v16515_v9  ;;  %v6747_v57 = vor.u32 %v6746_v47, %v6745_v50  ;;  %v4851_v35 = vadd.f32 %v20074_v42, %v20341_v63  ;;  %v16520_v50 = vld [vmem:[%s23173_s3 + $0x498] sm:$0xff]  }
 0x4fa   : > { %v14745_v33 = vpop.f32.mrf.mxu1  ;;  %v20568_v54 = vpop.f32.mrf.mxu0  ;;  %15203 = vmatmul.mubr.bf16.gmra.mxu0 %v20561_v1  ;;  %15134 = vmatprep.subr.bf16.mxu1 %v23510_v7 }
 0x4fb   : > { %15206 = vmatprep.mubr.msk.bf16.mxu0 %vm16815_vm0, %v23510_v7  ;;  %15291 = vmatpush3.bf16.msra.mxu0 %v16516_v41 }
 0x4fc   : > { %v4992_v40 = vpop.f32.mrf.mxu1  ;;  %v14904_v9 = vpop.f32.mrf.mxu0  ;;  %15047 = vmatmul.mubr.bf16.gmra.mxu1 %v23777_v15  ;;  %15292 = vmatprep.subr.bf16.mxu0 %v23510_v7 }
 0x4fd   : > { %v20581_v43 = vadd.f32 %v4992_v40, %v4850_v60  ;;  %15050 = vmatprep.mubr.msk.bf16.mxu1 %vm16815_vm0, %v23510_v7  ;;  %15135 = vmatpush3.bf16.msra.mxu1 %v16517_v30  ;;  %v20600_v60 = vsel %vm3897_vm6, %v6743_v21, %v6747_v57  ;;  %v16521_v40 = vld [vmem:[%s23173_s3 + $0x3d8] sm:$0xff]   ;;  %v16522_v21 = vld [vmem:[%s23173_s3 + $0x490] sm:$0xff]  }
 0x4fe   : > { %v14748_v46 = vpop.f32.mrf.mxu1  ;;  %v20588_v41 = vpop.f32.mrf.mxu0  ;;  %15136 = vmatprep.subr.bf16.mxu1 %v23510_v7  ;;  %23778 = vst [vmem:[#allocation17_spill] sm:$0xff] %v20600_v60 }
 0x4ff   : > { %15293 = vmatpush3.bf16.msra.mxu0 %v16518_v20  ;;  %v4852_v20 = vadd.f32 %v20089_v8, %v20364_v27  ;;  %v16523_v8 = vld [vmem:[%s23173_s3 + $0x3d0] sm:$0xff]  }
 0x500   : > { %v4995_v47 = vpop.f32.mrf.mxu1  ;;  %v14905_v33 = vpop.f32.mrf.mxu0  ;;  %15294 = vmatprep.subr.bf16.mxu0 %v23510_v7 }
 0x501   : > { %v20597_v30 = vadd.f32 %v4995_v47, %v4851_v35  ;;  %15137 = vmatpush3.bf16.msra.mxu1 %v16519_v52  ;;  %v23779_v52 = vld [vmem:[#allocation72_spill] sm:$0xff] }
 0x502   : > { %v14749_v42 = vpop.f32.mrf.mxu1  ;;  %v20605_v63 = vpop.f32.mrf.mxu0  ;;  %15207 = vmatmul.mubr.bf16.gmra.mxu0 %v20600_v60  ;;  %15138 = vmatprep.subr.bf16.mxu1 %v23510_v7  ;;  %v16524_v47 = vld [vmem:[%s23173_s3 + $0x488] sm:$0xff]  }
 0x503   : > { %15210 = vmatprep.mubr.msk.bf16.mxu0 %vm16815_vm0, %v23510_v7  ;;  %15295 = vmatpush3.bf16.msra.mxu0 %v16520_v50  ;;  %v4853_v50 = vadd.f32 %v20110_v31, %v20380_v25  ;;  %v16525_v31 = vld [vmem:[%s23173_s3 + $0x3c8] sm:$0xff]  }
 0x504   : > { %v5000_v9 = vpop.f32.mrf.mxu1  ;;  %v14908_v15 = vpop.f32.mrf.mxu0  ;;  %15051 = vmatmul.mubr.bf16.gmra.mxu1 %v23779_v52  ;;  %15296 = vmatprep.subr.bf16.mxu0 %v23510_v7 }
 0x505   : > { %v20618_v46 = vadd.f32 %v5000_v9, %v4852_v20  ;;  %15054 = vmatprep.mubr.msk.bf16.mxu1 %vm16815_vm0, %v23510_v7  ;;  %15139 = vmatpush3.bf16.msra.mxu1 %v16521_v40  ;;  %v23780_v20 = vld [vmem:[#allocation44_spill] sm:$0xff]  ;;  %v4854_v15 = vadd.f32 %v20125_v45, %v20401_v58  ;;  %v16527_v45 = vld [vmem:[%s23173_s3 + $0x3c0] sm:$0xff]  }
 0x506   : > { %v14752_v27 = vpop.f32.mrf.mxu1  ;;  %v20625_v35 = vpop.f32.mrf.mxu0  ;;  %15140 = vmatprep.subr.bf16.mxu1 %v23510_v7  ;;  %v20638_v9 = vsel %vm3897_vm6, %v6747_v57, %v23780_v20  ;;  %v16526_v57 = vld [vmem:[%s23173_s3 + $0x480] sm:$0xff]  }
 0x507   : > { %15297 = vmatpush3.bf16.msra.mxu0 %v16522_v21  ;;  %23781 = vst [vmem:[#allocation90_spill] sm:$0xff] %v20638_v9  ;;  %v23782_v27 = vld [vmem:[#allocation73_spill] sm:$0xff] }
 0x508   : > { %v5003_v33 = vpop.f32.mrf.mxu1  ;;  %v14909_v42 = vpop.f32.mrf.mxu0  ;;  %15298 = vmatprep.subr.bf16.mxu0 %v23510_v7 }
 0x509   : > { %v20634_v40 = vadd.f32 %v5003_v33, %v4853_v50  ;;  %15141 = vmatpush3.bf16.msra.mxu1 %v16523_v8  ;;  %v4855_v33 = vadd.f32 %v20146_v49, %v20414_v34 }
 0x50a   : > { %v14753_v25 = vpop.f32.mrf.mxu1  ;;  %v20643_v21 = vpop.f32.mrf.mxu0  ;;  %15211 = vmatmul.mubr.bf16.gmra.mxu0 %v20638_v9  ;;  %15142 = vmatprep.subr.bf16.mxu1 %v23510_v7  ;;  %v23789_v9 = vld [vmem:[#allocation45_spill] sm:$0xff] }
 0x50b   : > { %15214 = vmatprep.mubr.msk.bf16.mxu0 %vm16815_vm0, %v23510_v7  ;;  %15299 = vmatpush3.bf16.msra.mxu0 %v16524_v47 }
 0x50c   : > { %v5008_v52 = vpop.f32.mrf.mxu1  ;;  %v14912_v8 = vpop.f32.mrf.mxu0  ;;  %15055 = vmatmul.mubr.bf16.gmra.mxu1 %v23782_v27  ;;  %15300 = vmatprep.subr.bf16.mxu0 %v23510_v7 }
 0x50d   : > { %v20656_v50 = vadd.f32 %v5008_v52, %v4854_v15  ;;  %15058 = vmatprep.mubr.msk.bf16.mxu1 %vm16815_vm0, %v23510_v7  ;;  %15143 = vmatpush3.bf16.msra.mxu1 %v16525_v31  ;;  %v23783_v52 = vld [vmem:[#allocation46_spill] sm:$0xff]  ;;  %v4856_v8 = vadd.f32 %v20155_v28, %v20429_v3 }
 0x50e   : > { %v14756_v58 = vpop.f32.mrf.mxu1  ;;  %v20663_v47 = vpop.f32.mrf.mxu0  ;;  %15144 = vmatprep.subr.bf16.mxu1 %v23510_v7 }
 0x50f   : > { %15301 = vmatpush3.bf16.msra.mxu0 %v16526_v57  ;;  %v23784_v57 = vld [vmem:[#allocation74_spill] sm:$0xff] }
 0x510   : > { %v5011_v42 = vpop.f32.mrf.mxu1  ;;  %v14913_v20 = vpop.f32.mrf.mxu0  ;;  %15390 = vmatprep.subr.bf16.mxu0 %v23510_v7 }
 0x511   : > { %v20669_v25 = vadd.f32 %v5011_v42, %v4855_v33  ;;  %15145 = vmatpush3.bf16.msra.mxu1 %v16527_v45  ;;  %v4857_v33 = vadd.f32 %v20169_v37, %v20437_v10  ;;  %v23785_v20 = vld [vmem:[#allocation37_spill] sm:$0xff] }
 0x512   : > { %v14757_v31 = vpop.f32.mrf.mxu1  ;;  %v20671_v15 = vpop.f32.mrf.mxu0  ;;  %15215 = vmatmul.mubr.bf16.gmra.mxu0 %v23783_v52  ;;  %15234 = vmatprep.subr.bf16.mxu1 %v23510_v7 }
 0x513   : > { %15218 = vmatprep.mubr.msk.bf16.mxu0 %vm16815_vm0, %v23510_v7  ;;  %v6761_v31 = vrot.slane %v23785_v20, 1 }
 0x514   : > { %v5016_v49 = vpop.f32.mrf.mxu1  ;;  %v14916_v34 = vpop.f32.mrf.mxu0  ;;  %15059 = vmatmul.mubr.bf16.gmra.mxu1 %v23784_v57 }
 0x515   : > { %v20680_v27 = vadd.f32 %v5016_v49, %v4856_v8  ;;  %15062 = vmatprep.mubr.msk.bf16.mxu1 %vm16815_vm0, %v23510_v7  ;;  %v23786_v34 = vld [vmem:[#allocation38_spill] sm:$0xff]  ;;  %v23787_v49 = vld [vmem:[#allocation48_spill] sm:$0xff] }
 0x516   : > { %v14760_v45 = vpop.f32.mrf.mxu1  ;;  %v20684_v58 = vpop.f32.mrf.mxu0  ;;  %v6762_v52 = vrot.slane %v23786_v34, 2 }
 0x517   : > { %v4858_v45 = vadd.f32 %v20176_v53, %v20447_v22 }
 0x518   : > { %v5019_v42 = vpop.f32.mrf.mxu1  ;;  %v14917_v28 = vpop.f32.mrf.mxu0 }
 0x519   : > { %v20688_v3 = vadd.f32 %v5019_v42, %v4857_v33  ;;  %v23788_v28 = vld [vmem:[#allocation75_spill] sm:$0xff]  ;;  %v6763_v42 = vor.u32 %v6762_v52, %v6761_v31  ;;  %v5235_v52 = vadd.f32 %v20194_v4, %v20465_v56  ;;  %v23791_v31 = vld [vmem:[#allocation76_spill] sm:$0xff] }
 0x51a   : > { %v14761_v57 = vpop.f32.mrf.mxu1  ;;  %v20692_v8 = vpop.f32.mrf.mxu0  ;;  %15219 = vmatmul.mubr.bf16.gmra.mxu0 %v23787_v49 }
 0x51b   : > { %15222 = vmatprep.mubr.msk.bf16.mxu0 %vm16815_vm0, %v23510_v7  ;;  %v4859_v57 = vadd.f32 %v20189_v44, %v20455_v5 }
 0x51c   : > { %v5024_v37 = vpop.f32.mrf.mxu1  ;;  %v14920_v10 = vpop.f32.mrf.mxu0  ;;  %15063 = vmatmul.mubr.bf16.gmra.mxu1 %v23788_v28 }
 0x51d   : > { %v20700_v33 = vadd.f32 %v5024_v37, %v4858_v45  ;;  %15066 = vmatprep.mubr.msk.bf16.mxu1 %vm16815_vm0, %v23510_v7  ;;  %v20712_v10 = vsel %vm3897_vm6, %v23789_v9, %v6763_v42 }
 0x51e   : > { %v14764_v20 = vpop.f32.mrf.mxu1  ;;  %v20704_v34 = vpop.f32.mrf.mxu0  ;;  %23790 = vst [vmem:[#allocation93_spill] sm:$0xff] %v20712_v10 }
 0x520   : > { %v5027_v53 = vpop.f32.mrf.mxu1  ;;  %v14921_v22 = vpop.f32.mrf.mxu0 }
 0x521   : > { %v20708_v49 = vadd.f32 %v5027_v53, %v4859_v57  ;;  %v23792_v57 = vld [vmem:[#allocation26_spill] sm:$0xff] }
 0x522   : > { %v14765_v45 = vpop.f32.mrf.mxu1  ;;  %v20714_v37 = vpop.f32.mrf.mxu0  ;;  %15223 = vmatmul.mubr.bf16.gmra.mxu0 %v20712_v10  ;;  %v5236_v53 = vadd.f32 %v23792_v57, %v20473_v14  ;;  %v23798_v14 = vld [vmem:[#allocation21_spill] sm:$0xff] }
 0x523   : > { %15226 = vmatprep.mubr.msk.bf16.mxu0 %vm16815_vm0, %v23510_v7  ;;  %v23793_v45 = vld [vmem:[#allocation59_spill] sm:$0xff]  ;;  %v5237_v57 = vadd.f32 %v23798_v14, %v20488_v2 }
 0x524   : > { %v5360_v44 = vpop.f32.mrf.mxu1  ;;  %v14992_v5 = vpop.f32.mrf.mxu0  ;;  %15067 = vmatmul.mubr.bf16.gmra.mxu1 %v23791_v31  ;;  %v23795_v31 = vld [vmem:[#allocation47_spill] sm:$0xff] }
 0x525   : > { %v20722_v28 = vadd.f32 %v5360_v44, %v5235_v52  ;;  %15070 = vmatprep.mubr.msk.bf16.mxu1 %vm16815_vm0, %v23510_v7  ;;  %v20734_v5 = vsel %vm3897_vm6, %v6763_v42, %v23793_v45  ;;  %v23796_v52 = vshrl.u32 %v23795_v31, 16  ;;  %v23797_v10 = vshll.u32 %v23795_v31, 16 }
 0x526   : > { %v14836_v9 = vpop.f32.mrf.mxu1  ;;  %v20726_v20 = vpop.f32.mrf.mxu0  ;;  %23794 = vst [vmem:[#allocation62_spill] sm:$0xff] %v20734_v5 }
 0x527   : > { %v6777_v44 = vrot.slane %v23796_v52, 1  ;;  %v6780_v60 = vrot.slane %v23797_v10, 2 }
 0x528   : > { %v5363_v22 = vpop.f32.mrf.mxu1  ;;  %v14993_v4 = vpop.f32.mrf.mxu0 }
 0x529   : > { %v20730_v56 = vadd.f32 %v5363_v22, %v5236_v53  ;;  %v23799_v22 = vld [vmem:[#allocation49_spill] sm:$0xff]  ;;  %v6781_v52 = vor.u32 %v6780_v60, %v6777_v44  ;;  %v23801_v60 = vld [vmem:[#allocation78_spill] sm:$0xff] }
 0x52a   : > { %v14837_v9 = vpop.f32.mrf.mxu1  ;;  %v20740_v1 = vpop.f32.mrf.mxu0  ;;  %15227 = vmatmul.mubr.bf16.gmra.mxu0 %v20734_v5  ;;  %v23800_v5 = vld [vmem:[#allocation81_spill] sm:$0xff]  ;;  %v5239_v44 = vadd.f32 %v23801_v60, %v20512_v55 }
 0x52b   : > { %15230 = vmatprep.mubr.msk.bf16.mxu0 %vm16815_vm0, %v23510_v7  ;;  %v5238_v39 = vadd.f32 %v23800_v5, %v20496_v24  ;;  %v23802_v24 = vld [vmem:[#allocation50_spill] sm:$0xff] }
 0x52c   : > { %v5368_v53 = vpop.f32.mrf.mxu1  ;;  %v14996_v42 = vpop.f32.mrf.mxu0  ;;  %15071 = vmatmul.mubr.bf16.gmra.mxu1 %v23799_v22 }
 0x52d   : > { %v20748_v4 = vadd.f32 %v5368_v53, %v5237_v57  ;;  %15074 = vmatprep.mubr.msk.bf16.mxu1 %vm16815_vm0, %v23510_v7  ;;  %v6782_v42 = vsel %vm3897_vm6, %v23793_v45, %v6781_v52  ;;  %v23803_v52 = vld [vmem:[#allocation10_spill] sm:$0xff] }
 0x52e   : > { %v14840_v10 = vpop.f32.mrf.mxu1  ;;  %v20752_v9 = vpop.f32.mrf.mxu0 }
 0x530   : > { %v5371_v2 = vpop.f32.mrf.mxu1  ;;  %v14997_v14 = vpop.f32.mrf.mxu0 }
 0x531   : > { %v20756_v61 = vadd.f32 %v5371_v2, %v5238_v39  ;;  %v5240_v2 = vadd.f32 %v23803_v52, %v20523_v29  ;;  %v23804_v14 = vld [vmem:[#allocation9_spill] sm:$0xff]  ;;  %v23807_v29 = vld [vmem:[#allocation82_spill] sm:$0xff]  ;;  %v23808_v52 = vld [vmem:[#allocation83_spill] sm:$0xff] }
 0x532   : > { %v14841_v22 = vpop.f32.mrf.mxu1  ;;  %v20760_v57 = vpop.f32.mrf.mxu0  ;;  %15231 = vmatmul.mubr.bf16.gmra.mxu0 %v6782_v42  ;;  %v6519_v55 = vrot.slane %v23804_v14, 1  ;;  %v16528_v42 = vld [vmem:[%s23173_s3 + $0x538] sm:$0xff]   ;;  %v5241_v0 = vadd.f32 %v23808_v52, %v20542_v16  ;;  %v16531_v16 = vld [vmem:[%s23173_s3 + $0x470] sm:$0xff]  }
 0x533   : > { %15302 = vmatprep.mubr.msk.bf16.mxu0 %vm16815_vm0, %v23510_v7 }
 0x534   : > { %v5376_v53 = vpop.f32.mrf.mxu1  ;;  %v15000_v10 = vpop.f32.mrf.mxu0  ;;  %15075 = vmatmul.mubr.bf16.gmra.mxu1 %v23802_v24  ;;  %v16529_v24 = vld [vmem:[%s23173_s3 + $0x478] sm:$0xff]  }
 0x535   : > { %v20767_v5 = vadd.f32 %v5376_v53, %v5239_v44  ;;  %15146 = vmatprep.mubr.msk.bf16.mxu1 %vm16815_vm0, %v23510_v7  ;;  %v23805_v44 = vld [vmem:[#allocation25_spill] sm:$0xff] }
 0x536   : > { %v14844_v39 = vpop.f32.mrf.mxu1  ;;  %v20771_v45 = vpop.f32.mrf.mxu0  ;;  %v6518_v53 = vrot.slane %v23805_v44, 1 }
 0x538   : > { %v5379_v22 = vpop.f32.mrf.mxu1  ;;  %v15001_v60 = vpop.f32.mrf.mxu0  ;;  %v6520_v48 = vsel %vm3680_vm2, %v6518_v53, %v6519_v55 }
 0x539   : > { %v20779_v10 = vadd.f32 %v5379_v22, %v5240_v2  ;;  %v16530_v2 = vld [vmem:[%s23173_s3 + $0x530] sm:$0xff]  }
 0x53a   : > { %v14845_v39 = vpop.f32.mrf.mxu1  ;;  %v20785_v23 = vpop.f32.mrf.mxu0  ;;  %15303 = vmatmul.mubr.bf16.vlgmr.msra.gmra.mxu0 %v23807_v29  ;;  %v23811_v29 = vld [vmem:[#allocation24_spill] sm:$0xff] }
 0x53b   : > { %23806 = vst [vmem:[#allocation63_spill] sm:$0xff] %v20785_v23  ;;  %15306 = vmatprep.mubr.msk.bf16.mxu0 %vm16815_vm0, %v23510_v7  ;;  %15391 = vmatpush3.bf16.msra.mxu0 %v16528_v42  ;;  %v23810_v39 = vld [vmem:[#allocation80_spill] sm:$0xff]  ;;  %v6521_v52 = vrot.slane %v23811_v29, 1 }
 0x53c   : > { %v5384_v22 = vpop.f32.mrf.mxu1  ;;  %v15004_v60 = vpop.f32.mrf.mxu0  ;;  %15147 = vmatmul.mubr.bf16.vlgmr.msra.gmra.mxu1 %v6520_v48  ;;  %15392 = vmatprep.subr.bf16.mxu0 %v23510_v7  ;;  %v5242_v48 = vadd.f32 %v23810_v39, %v20558_v59  ;;  %v23813_v39 = vld [vmem:[#allocation84_spill] sm:$0xff] }
 0x53d   : > { %v20797_v44 = vadd.f32 %v5384_v22, %v5241_v0  ;;  %15150 = vmatprep.mubr.msk.bf16.mxu1 %vm16815_vm0, %v23510_v7  ;;  %15235 = vmatpush3.bf16.msra.mxu1 %v16529_v24  ;;  %v16532_v0 = vld [vmem:[%s23173_s3 + $0x528] sm:$0xff]  }
 0x53e   : > { %v14848_v42 = vpop.f32.mrf.mxu1  ;;  %v20804_v53 = vpop.f32.mrf.mxu0  ;;  %15236 = vmatprep.subr.bf16.mxu1 %v23510_v7 }
 0x53f   : > { %23809 = vst [vmem:[#allocation94_spill] sm:$0xff] %v20804_v53  ;;  %15393 = vmatpush3.bf16.msra.mxu0 %v16530_v2  ;;  %v16533_v42 = vld [vmem:[%s23173_s3 + $0x468] sm:$0xff]   ;;  %v23814_v2 = vld [vmem:[#allocation85_spill] sm:$0xff] }
 0x540   : > { %v5387_v24 = vpop.f32.mrf.mxu1  ;;  %v15005_v22 = vpop.f32.mrf.mxu0  ;;  %15394 = vmatprep.subr.bf16.mxu0 %v23510_v7  ;;  %v5243_v23 = vadd.f32 %v23814_v2, %v20581_v43  ;;  %v16535_v43 = vld [vmem:[%s23173_s3 + $0x460] sm:$0xff]  }
 0x541   : > { %v20814_v60 = vadd.f32 %v5387_v24, %v5242_v48  ;;  %15237 = vmatpush3.bf16.msra.mxu1 %v16531_v16  ;;  %v20826_v22 = vsel %vm3680_vm2, %v6519_v55, %v6521_v52  ;;  %v16534_v16 = vld [vmem:[%s23173_s3 + $0x520] sm:$0xff]  }
 0x542   : > { %v14849_v53 = vpop.f32.mrf.mxu1  ;;  %v20819_v59 = vpop.f32.mrf.mxu0  ;;  %15307 = vmatmul.mubr.bf16.gmra.mxu0 %v23813_v39  ;;  %15238 = vmatprep.subr.bf16.mxu1 %v23510_v7  ;;  %23815 = vst [vmem:[#allocation95_spill] sm:$0xff] %v20826_v22  ;;  %v23817_v39 = vld [vmem:[#allocation4_spill] sm:$0xff] }
 0x543   : > { %23812 = vst [vmem:[#allocation28_spill] sm:$0xff] %v20819_v59  ;;  %15310 = vmatprep.mubr.msk.bf16.mxu0 %vm16815_vm0, %v23510_v7  ;;  %15395 = vmatpush3.bf16.msra.mxu0 %v16532_v0  ;;  %v5244_v2 = vadd.f32 %v23817_v39, %v20597_v30 }
 0x544   : > { %v5392_v53 = vpop.f32.mrf.mxu1  ;;  %v15008_v48 = vpop.f32.mrf.mxu0  ;;  %15151 = vmatmul.mubr.bf16.gmra.mxu1 %v20826_v22  ;;  %15396 = vmatprep.subr.bf16.mxu0 %v23510_v7 }
 0x545   : > { %v20835_v24 = vadd.f32 %v5392_v53, %v5243_v23  ;;  %15154 = vmatprep.mubr.msk.bf16.mxu1 %vm16815_vm0, %v23510_v7  ;;  %15239 = vmatpush3.bf16.msra.mxu1 %v16533_v42  ;;  %v23818_v48 = vld [vmem:[#allocation20_spill] sm:$0xff]  ;;  %v16536_v23 = vld [vmem:[%s23173_s3 + $0x518] sm:$0xff]  }
 0x546   : > { %v14852_v55 = vpop.f32.mrf.mxu1  ;;  %v20842_v0 = vpop.f32.mrf.mxu0  ;;  %15240 = vmatprep.subr.bf16.mxu1 %v23510_v7  ;;  %v6523_v59 = vrot.slane %v23818_v48, 1 }
 0x547   : > { %23816 = vst [vmem:[#allocation19_spill] sm:$0xff] %v20842_v0  ;;  %15397 = vmatpush3.bf16.msra.mxu0 %v16534_v16  ;;  %v16537_v55 = vld [vmem:[%s23173_s3 + $0x458] sm:$0xff]   ;;  %v23820_v16 = vld [vmem:[#allocation87_spill] sm:$0xff] }
 0x548   : > { %v5395_v42 = vpop.f32.mrf.mxu1  ;;  %v15009_v53 = vpop.f32.mrf.mxu0  ;;  %15398 = vmatprep.subr.bf16.mxu0 %v23510_v7  ;;  %v5245_v39 = vadd.f32 %v23820_v16, %v20618_v46  ;;  %v16539_v46 = vld [vmem:[%s23173_s3 + $0x450] sm:$0xff]  }
 0x549   : > { %v20852_v22 = vadd.f32 %v5395_v42, %v5244_v2  ;;  %15241 = vmatpush3.bf16.msra.mxu1 %v16535_v43  ;;  %v20864_v53 = vsel %vm3680_vm2, %v6521_v52, %v6523_v59  ;;  %v16538_v43 = vld [vmem:[%s23173_s3 + $0x510] sm:$0xff]  }
 0x54a   : > { %v14853_v0 = vpop.f32.mrf.mxu1  ;;  %v20857_v30 = vpop.f32.mrf.mxu0  ;;  %15311 = vmatmul.mubr.bf16.gmra.mxu0 %v20392_v13  ;;  %15242 = vmatprep.subr.bf16.mxu1 %v23510_v7  ;;  %23821 = vst [vmem:[#allocation96_spill] sm:$0xff] %v20864_v53  ;;  %v23823_v42 = vld [vmem:[#allocation89_spill] sm:$0xff] }
 0x54b   : > { %23819 = vst [vmem:[#allocation23_spill] sm:$0xff] %v20857_v30  ;;  %15314 = vmatprep.mubr.msk.bf16.mxu0 %vm16815_vm0, %v23510_v7  ;;  %15399 = vmatpush3.bf16.msra.mxu0 %v16536_v23  ;;  %v5246_v16 = vadd.f32 %v23823_v42, %v20634_v40 }
 0x54c   : > { %v5400_v0 = vpop.f32.mrf.mxu1  ;;  %v15012_v2 = vpop.f32.mrf.mxu0  ;;  %15155 = vmatmul.mubr.bf16.gmra.mxu1 %v20864_v53  ;;  %15400 = vmatprep.subr.bf16.mxu0 %v23510_v7 }
 0x54d   : > { %v20873_v13 = vadd.f32 %v5400_v0, %v5245_v39  ;;  %15158 = vmatprep.mubr.msk.bf16.mxu1 %vm16815_vm0, %v23510_v7  ;;  %15243 = vmatpush3.bf16.msra.mxu1 %v16537_v55  ;;  %v23824_v2 = vld [vmem:[#allocation12_spill] sm:$0xff] }
 0x54e   : > { %v14856_v52 = vpop.f32.mrf.mxu1  ;;  %v20880_v23 = vpop.f32.mrf.mxu0  ;;  %15244 = vmatprep.subr.bf16.mxu1 %v23510_v7  ;;  %v6525_v30 = vrot.slane %v23824_v2, 1  ;;  %v16540_v39 = vld [vmem:[%s23173_s3 + $0x508] sm:$0xff]  }
 0x54f   : > { %23822 = vst [vmem:[#allocation18_spill] sm:$0xff] %v20880_v23  ;;  %15401 = vmatpush3.bf16.msra.mxu0 %v16538_v43  ;;  %v16541_v52 = vld [vmem:[%s23173_s3 + $0x448] sm:$0xff]   ;;  %v5247_v43 = vadd.f32 %v20385_v18, %v20656_v50  ;;  %v16543_v18 = vld [vmem:[%s23173_s3 + $0x440] sm:$0xff]  }
 0x550   : > { %v5403_v55 = vpop.f32.mrf.mxu1  ;;  %v15013_v0 = vpop.f32.mrf.mxu0  ;;  %15402 = vmatprep.subr.bf16.mxu0 %v23510_v7  ;;  %v20902_v42 = vsel %vm3680_vm2, %v6523_v59, %v6525_v30 }
 0x551   : > { %v20890_v53 = vadd.f32 %v5403_v55, %v5246_v16  ;;  %15245 = vmatpush3.bf16.msra.mxu1 %v16539_v46  ;;  %23826 = vst [vmem:[#allocation99_spill] sm:$0xff] %v20902_v42  ;;  %v16542_v46 = vld [vmem:[%s23173_s3 + $0x500] sm:$0xff]   ;;  %v23829_v0 = vld [vmem:[#allocation5_spill] sm:$0xff] }
 0x552   : > { %v14857_v23 = vpop.f32.mrf.mxu1  ;;  %v20895_v40 = vpop.f32.mrf.mxu0  ;;  %15315 = vmatmul.mubr.bf16.gmra.mxu0 %v20424_v19  ;;  %15246 = vmatprep.subr.bf16.mxu1 %v23510_v7 }
 0x553   : > { %23825 = vst [vmem:[#allocation98_spill] sm:$0xff] %v20895_v40  ;;  %15318 = vmatprep.mubr.msk.bf16.mxu0 %vm16815_vm0, %v23510_v7  ;;  %15403 = vmatpush3.bf16.msra.mxu0 %v16540_v39  ;;  %v23828_v39 = vld [vmem:[#allocation86_spill] sm:$0xff] }
 0x554   : > { %v5408_v23 = vpop.f32.mrf.mxu1  ;;  %v15016_v16 = vpop.f32.mrf.mxu0  ;;  %15159 = vmatmul.mubr.bf16.gmra.mxu1 %v20902_v42  ;;  %15404 = vmatprep.subr.bf16.mxu0 %v23510_v7  ;;  %v5248_v55 = vadd.f32 %v23828_v39, %v20669_v25  ;;  %v5249_v25 = vadd.f32 %v20416_v6, %v20680_v27  ;;  %v23833_v6 = vld [vmem:[#allocation29_spill] sm:$0xff] }
 0x555   : > { %v20911_v19 = vadd.f32 %v5408_v23, %v5247_v43  ;;  %15162 = vmatprep.mubr.msk.bf16.mxu1 %vm16815_vm0, %v23510_v7  ;;  %15247 = vmatpush3.bf16.msra.mxu1 %v16541_v52  ;;  %v6527_v16 = vrot.slane %v23829_v0, 1  ;;  %v5250_v27 = vadd.f32 %v23833_v6, %v20688_v3 }
 0x556   : > { %v14860_v50 = vpop.f32.mrf.mxu1  ;;  %v20918_v59 = vpop.f32.mrf.mxu0  ;;  %15248 = vmatprep.subr.bf16.mxu1 %v23510_v7 }
 0x557   : > { %23827 = vst [vmem:[#allocation8_spill] sm:$0xff] %v20918_v59  ;;  %15405 = vmatpush3.bf16.msra.mxu0 %v16542_v46  ;;  %v20934_v50 = vsel %vm3680_vm2, %v6525_v30, %v6527_v16  ;;  %v23834_v30 = vld [vmem:[#allocation7_spill] sm:$0xff] }
 0x558   : > { %v5411_v43 = vpop.f32.mrf.mxu1  ;;  %v15017_v23 = vpop.f32.mrf.mxu0  ;;  %15494 = vmatprep.subr.bf16.mxu0 %v23510_v7  ;;  %23831 = vst [vmem:[#allocation102_spill] sm:$0xff] %v20934_v50 }
 0x559   : > { %v20925_v52 = vadd.f32 %v5411_v43, %v5248_v55  ;;  %15249 = vmatpush3.bf16.msra.mxu1 %v16543_v18  ;;  %v6529_v55 = vrot.slane %v23834_v30, 1 }
 0x55a   : > { %v14861_v40 = vpop.f32.mrf.mxu1  ;;  %v20927_v42 = vpop.f32.mrf.mxu0  ;;  %15319 = vmatmul.mubr.bf16.gmra.mxu0 %v23762_v32  ;;  %15338 = vmatprep.subr.bf16.mxu1 %v23510_v7 }
 0x55b   : > { %23830 = vst [vmem:[#allocation101_spill] sm:$0xff] %v20927_v42  ;;  %15322 = vmatprep.mubr.msk.bf16.mxu0 %vm16815_vm0, %v23510_v7 }
 0x55c   : > { %v5416_v46 = vpop.f32.mrf.mxu1  ;;  %v15020_v39 = vpop.f32.mrf.mxu0  ;;  %15163 = vmatmul.mubr.bf16.gmra.mxu1 %v20934_v50 }
 0x55d   : > { %v20939_v40 = vadd.f32 %v5416_v46, %v5249_v25  ;;  %15166 = vmatprep.mubr.msk.bf16.mxu1 %vm16815_vm0, %v23510_v7  ;;  %v23836_v25 = vld [vmem:[#allocation88_spill] sm:$0xff] }
 0x55e   : > { %v14864_v32 = vpop.f32.mrf.mxu1  ;;  %v20943_v18 = vpop.f32.mrf.mxu0  ;;  %v5251_v46 = vadd.f32 %v23836_v25, %v20700_v33  ;;  %v23838_v33 = vld [vmem:[#allocation13_spill] sm:$0xff] }
 0x55f   : > { %23832 = vst [vmem:[#allocation14_spill] sm:$0xff] %v20943_v18  ;;  %v20956_v32 = vsel %vm3680_vm2, %v6527_v16, %v6529_v55  ;;  %v23839_v16 = vld [vmem:[#allocation22_spill] sm:$0xff] }
 0x560   : > { %v5419_v43 = vpop.f32.mrf.mxu1  ;;  %v15021_v23 = vpop.f32.mrf.mxu0 }
 0x561   : > { %v20948_v42 = vadd.f32 %v5419_v43, %v5250_v27  ;;  %v5252_v23 = vadd.f32 %v23838_v33, %v20708_v49 }
 0x562   : > { %v14865_v39 = vpop.f32.mrf.mxu1  ;;  %v20950_v59 = vpop.f32.mrf.mxu0  ;;  %15323 = vmatmul.mubr.bf16.gmra.mxu0 %v23766_v38 }
 0x563   : > { %23835 = vst [vmem:[#allocation104_spill] sm:$0xff] %v20950_v59  ;;  %15326 = vmatprep.mubr.msk.bf16.mxu0 %vm16815_vm0, %v23510_v7  ;;  %v6531_v39 = vrot.slane %v23839_v16, 1 }
 0x564   : > { %v5424_v3 = vpop.f32.mrf.mxu1  ;;  %v15024_v6 = vpop.f32.mrf.mxu0  ;;  %15167 = vmatmul.mubr.bf16.gmra.mxu1 %v20956_v32 }
 0x565   : > { %v20961_v27 = vadd.f32 %v5424_v3, %v5251_v46  ;;  %15170 = vmatprep.mubr.msk.bf16.mxu1 %vm16815_vm0, %v23510_v7  ;;  %v5651_v46 = vadd.f32 %v20457_v26, %v20722_v28  ;;  %v20978_v3 = vsel %vm3680_vm2, %v6529_v55, %v6531_v39  ;;  %v23842_v26 = vld [vmem:[#allocation6_spill] sm:$0xff]  ;;  %v23843_v55 = vld [vmem:[#allocation27_spill] sm:$0xff] }
 0x566   : > { %v14868_v43 = vpop.f32.mrf.mxu1  ;;  %v20965_v38 = vpop.f32.mrf.mxu0  ;;  %v5652_v28 = vadd.f32 %v23842_v26, %v20730_v56 }
 0x567   : > { %23837 = vst [vmem:[#allocation105_spill] sm:$0xff] %v20965_v38 }
 0x568   : > { %v5427_v25 = vpop.f32.mrf.mxu1  ;;  %v15025_v59 = vpop.f32.mrf.mxu0 }
 0x569   : > { %v20970_v18 = vadd.f32 %v5427_v25, %v5252_v23  ;;  %v20992_v23 = vrot.slane %v23843_v55, 1 }
 0x56a   : > { %v14869_v6 = vpop.f32.mrf.mxu1  ;;  %v20972_v50 = vpop.f32.mrf.mxu0  ;;  %15327 = vmatmul.mubr.bf16.gmra.mxu0 %v20483_v11 }
 0x56b   : > { %23840 = vst [vmem:[#allocation107_spill] sm:$0xff] %v20972_v50  ;;  %15330 = vmatprep.mubr.msk.bf16.mxu0 %vm16815_vm0, %v23510_v7 }
 0x56c   : > { %v5827_v49 = vpop.f32.mrf.mxu1  ;;  %v15096_v43 = vpop.f32.mrf.mxu0  ;;  %15171 = vmatmul.mubr.bf16.gmra.mxu1 %v20978_v3 }
 0x56d   : > { %v20983_v59 = vadd.f32 %v5827_v49, %v5651_v46  ;;  %15174 = vmatprep.mubr.msk.bf16.mxu1 %vm16815_vm0, %v23510_v7  ;;  %v23845_v46 = vld [vmem:[#allocation51_spill] sm:$0xff] }
 0x56e   : > { %v14940_v33 = vpop.f32.mrf.mxu1  ;;  %v20987_v11 = vpop.f32.mrf.mxu0  ;;  %v23846_v49 = vld [vmem:[#allocation91_spill] sm:$0xff] }
 0x56f   : > { %23841 = vst [vmem:[#allocation36_spill] sm:$0xff] %v20987_v11  ;;  %v5653_v33 = vadd.f32 %v23846_v49, %v20748_v4  ;;  %v21003_v11 = vsel %vm3680_vm2, %v6531_v39, %v20992_v23  ;;  %v5654_v4 = vadd.f32 %v20492_v17, %v20756_v61  ;;  %v6535_v39 = vrot.slane %v23795_v31, 1 }
 0x570   : > { %v5830_v25 = vpop.f32.mrf.mxu1  ;;  %v15097_v6 = vpop.f32.mrf.mxu0 }
 0x571   : > { %v20994_v50 = vadd.f32 %v5830_v25, %v5652_v28 }
 0x572   : > { %v14941_v43 = vpop.f32.mrf.mxu1  ;;  %v20996_v38 = vpop.f32.mrf.mxu0  ;;  %15331 = vmatmul.mubr.bf16.gmra.mxu0 %v23845_v46 }
 0x573   : > { %23844 = vst [vmem:[#allocation108_spill] sm:$0xff] %v20996_v38  ;;  %15334 = vmatprep.mubr.msk.bf16.mxu0 %vm16815_vm0, %v23510_v7 }
 0x574   : > { %v5835_v56 = vpop.f32.mrf.mxu1  ;;  %v15100_v26 = vpop.f32.mrf.mxu0  ;;  %15175 = vmatmul.mubr.bf16.gmra.mxu1 %v21003_v11 }
 0x575   : > { %v21008_v28 = vadd.f32 %v5835_v56, %v5653_v33  ;;  %15178 = vmatprep.mubr.msk.bf16.mxu1 %vm16815_vm0, %v23510_v7  ;;  %v23847_v33 = vld [vmem:[#allocation52_spill] sm:$0xff]  ;;  %v5655_v56 = vadd.f32 %v20500_v62, %v20767_v5  ;;  %v5656_v62 = vadd.f32 %v20516_v51, %v20779_v10  ;;  %v16544_v5 = vld [vmem:[%s23173_s3 + $0x5b8] sm:$0xff]   ;;  %v5657_v51 = vadd.f32 %v20531_v12, %v20797_v44  ;;  %v16546_v10 = vld [vmem:[%s23173_s3 + $0x5b0] sm:$0xff]  }
 0x576   : > { %v14944_v25 = vpop.f32.mrf.mxu1  ;;  %v21012_v6 = vpop.f32.mrf.mxu0  ;;  %v16547_v12 = vld [vmem:[%s23173_s3 + $0x4f0] sm:$0xff]  }
 0x577   : > { %v6536_v25 = vsel %vm3680_vm2, %v20992_v23, %v6535_v39 }
 0x578   : > { %v5838_v43 = vpop.f32.mrf.mxu1  ;;  %v15101_v46 = vpop.f32.mrf.mxu0 }
 0x579   : > { %v21017_v49 = vadd.f32 %v5838_v43, %v5654_v4 }
 0x57a   : > { %v14945_v26 = vpop.f32.mrf.mxu1  ;;  %v21019_v38 = vpop.f32.mrf.mxu0  ;;  %15335 = vmatmul.mubr.bf16.gmra.mxu0 %v23847_v33 }
 0x57b   : > { %15406 = vmatprep.mubr.msk.bf16.mxu0 %vm16815_vm0, %v23510_v7 }
 0x57c   : > { %v5843_v61 = vpop.f32.mrf.mxu1  ;;  %v15104_v17 = vpop.f32.mrf.mxu0  ;;  %15179 = vmatmul.mubr.bf16.gmra.mxu1 %v6536_v25 }
 0x57d   : > { %v21028_v46 = vadd.f32 %v5843_v61, %v5655_v56  ;;  %15250 = vmatprep.mubr.msk.bf16.mxu1 %vm16815_vm0, %v23510_v7  ;;  %v16545_v56 = vld [vmem:[%s23173_s3 + $0x4f8] sm:$0xff]  }
 0x57e   : > { %v14948_v4 = vpop.f32.mrf.mxu1  ;;  %v21032_v43 = vpop.f32.mrf.mxu0 }
 0x580   : > { %v5846_v39 = vpop.f32.mrf.mxu1  ;;  %v15105_v26 = vpop.f32.mrf.mxu0 }
 0x581   : > { %v21039_v33 = vadd.f32 %v5846_v39, %v5656_v62  ;;  %v23848_v62 = vld [vmem:[#allocation97_spill] sm:$0xff]  ;;  %v16548_v26 = vld [vmem:[%s23173_s3 + $0x5a8] sm:$0xff]  }
 0x582   : > { %v14949_v25 = vpop.f32.mrf.mxu1  ;;  %v21044_v61 = vpop.f32.mrf.mxu0  ;;  %15407 = vmatmul.mubr.bf16.vlgmr.msra.gmra.mxu0 %v23804_v14 }
 0x583   : > { %15410 = vmatprep.mubr.msk.bf16.mxu0 %vm16815_vm0, %v23510_v7  ;;  %15495 = vmatpush3.bf16.msra.mxu0 %v16544_v5  ;;  %v5658_v5 = vadd.f32 %v20549_v36, %v20814_v60  ;;  %v5659_v36 = vadd.f32 %v20568_v54, %v20835_v24  ;;  %v16550_v60 = vld [vmem:[%s23173_s3 + $0x5a0] sm:$0xff]  }
 0x584   : > { %v5851_v17 = vpop.f32.mrf.mxu1  ;;  %v15108_v4 = vpop.f32.mrf.mxu0  ;;  %15251 = vmatmul.mubr.bf16.vlgmr.msra.gmra.mxu1 %v23848_v62  ;;  %15496 = vmatprep.subr.bf16.mxu0 %v23510_v7  ;;  %v16551_v54 = vld [vmem:[%s23173_s3 + $0x4e0] sm:$0xff]  }
 0x585   : > { %v21056_v39 = vadd.f32 %v5851_v17, %v5657_v51  ;;  %15254 = vmatprep.mubr.msk.bf16.mxu1 %vm16815_vm0, %v23510_v7  ;;  %15339 = vmatpush3.bf16.msra.mxu1 %v16545_v56  ;;  %v16549_v17 = vld [vmem:[%s23173_s3 + $0x4e8] sm:$0xff]  }
 0x586   : > { %v14952_v14 = vpop.f32.mrf.mxu1  ;;  %v21063_v44 = vpop.f32.mrf.mxu0  ;;  %15340 = vmatprep.subr.bf16.mxu1 %v23510_v7 }
 0x587   : > { %15497 = vmatpush3.bf16.msra.mxu0 %v16546_v10  ;;  %v23849_v14 = vld [vmem:[#allocation100_spill] sm:$0xff] }
 0x588   : > { %v5854_v25 = vpop.f32.mrf.mxu1  ;;  %v15109_v51 = vpop.f32.mrf.mxu0  ;;  %15498 = vmatprep.subr.bf16.mxu0 %v23510_v7 }
 0x589   : > { %v21072_v56 = vadd.f32 %v5854_v25, %v5658_v5  ;;  %15341 = vmatpush3.bf16.msra.mxu1 %v16547_v12  ;;  %v16552_v25 = vld [vmem:[%s23173_s3 + $0x598] sm:$0xff]  }
 0x58a   : > { %v14953_v4 = vpop.f32.mrf.mxu1  ;;  %v21077_v62 = vpop.f32.mrf.mxu0  ;;  %15411 = vmatmul.mubr.bf16.gmra.mxu0 %v23811_v29  ;;  %15342 = vmatprep.subr.bf16.mxu1 %v23510_v7 }
 0x58b   : > { %15414 = vmatprep.mubr.msk.bf16.mxu0 %vm16815_vm0, %v23510_v7  ;;  %15499 = vmatpush3.bf16.msra.mxu0 %v16548_v26  ;;  %v5660_v26 = vadd.f32 %v20588_v41, %v20852_v22  ;;  %v5661_v41 = vadd.f32 %v20605_v63, %v20873_v13  ;;  %v16554_v22 = vld [vmem:[%s23173_s3 + $0x590] sm:$0xff]  }
 0x58c   : > { %v5859_v10 = vpop.f32.mrf.mxu1  ;;  %v15112_v12 = vpop.f32.mrf.mxu0  ;;  %15255 = vmatmul.mubr.bf16.gmra.mxu1 %v23849_v14  ;;  %15500 = vmatprep.subr.bf16.mxu0 %v23510_v7  ;;  %v16555_v63 = vld [vmem:[%s23173_s3 + $0x4d0] sm:$0xff]  }
 0x58d   : > { %v21090_v29 = vadd.f32 %v5859_v10, %v5659_v36  ;;  %15258 = vmatprep.mubr.msk.bf16.mxu1 %vm16815_vm0, %v23510_v7  ;;  %15343 = vmatpush3.bf16.msra.mxu1 %v16549_v17  ;;  %v16553_v36 = vld [vmem:[%s23173_s3 + $0x4d8] sm:$0xff]  }
 0x58e   : > { %v14956_v24 = vpop.f32.mrf.mxu1  ;;  %v21097_v5 = vpop.f32.mrf.mxu0  ;;  %15344 = vmatprep.subr.bf16.mxu1 %v23510_v7 }
 0x58f   : > { %15501 = vmatpush3.bf16.msra.mxu0 %v16550_v60  ;;  %v23850_v24 = vld [vmem:[#allocation103_spill] sm:$0xff] }
 0x590   : > { %v5862_v51 = vpop.f32.mrf.mxu1  ;;  %v15113_v4 = vpop.f32.mrf.mxu0  ;;  %15502 = vmatprep.subr.bf16.mxu0 %v23510_v7 }
 0x591   : > { %v21106_v17 = vadd.f32 %v5862_v51, %v5660_v26  ;;  %15345 = vmatpush3.bf16.msra.mxu1 %v16551_v54  ;;  %v16556_v51 = vld [vmem:[%s23173_s3 + $0x588] sm:$0xff]  }
 0x592   : > { %v14957_v10 = vpop.f32.mrf.mxu1  ;;  %v21111_v12 = vpop.f32.mrf.mxu0  ;;  %15415 = vmatmul.mubr.bf16.gmra.mxu0 %v23818_v48  ;;  %15346 = vmatprep.subr.bf16.mxu1 %v23510_v7 }
 0x593   : > { %15418 = vmatprep.mubr.msk.bf16.mxu0 %vm16815_vm0, %v23510_v7  ;;  %15503 = vmatpush3.bf16.msra.mxu0 %v16552_v25  ;;  %v5662_v25 = vadd.f32 %v20625_v35, %v20890_v53  ;;  %v5663_v35 = vadd.f32 %v20643_v21, %v20911_v19  ;;  %v16558_v53 = vld [vmem:[%s23173_s3 + $0x580] sm:$0xff]  }
 0x594   : > { %v5867_v60 = vpop.f32.mrf.mxu1  ;;  %v15116_v54 = vpop.f32.mrf.mxu0  ;;  %15259 = vmatmul.mubr.bf16.gmra.mxu1 %v23850_v24  ;;  %15504 = vmatprep.subr.bf16.mxu0 %v23510_v7  ;;  %v16559_v21 = vld [vmem:[%s23173_s3 + $0x4c0] sm:$0xff]  }
 0x595   : > { %v21124_v48 = vadd.f32 %v5867_v60, %v5661_v41  ;;  %15262 = vmatprep.mubr.msk.bf16.mxu1 %vm16815_vm0, %v23510_v7  ;;  %15347 = vmatpush3.bf16.msra.mxu1 %v16553_v36  ;;  %v16557_v41 = vld [vmem:[%s23173_s3 + $0x4c8] sm:$0xff]  }
 0x596   : > { %v14960_v13 = vpop.f32.mrf.mxu1  ;;  %v21131_v26 = vpop.f32.mrf.mxu0  ;;  %15348 = vmatprep.subr.bf16.mxu1 %v23510_v7 }
 0x597   : > { %15505 = vmatpush3.bf16.msra.mxu0 %v16554_v22  ;;  %v23851_v13 = vld [vmem:[#allocation106_spill] sm:$0xff] }
 0x598   : > { %v5870_v4 = vpop.f32.mrf.mxu1  ;;  %v15117_v10 = vpop.f32.mrf.mxu0  ;;  %15506 = vmatprep.subr.bf16.mxu0 %v23510_v7 }
 0x599   : > { %v21140_v36 = vadd.f32 %v5870_v4, %v5662_v25  ;;  %15349 = vmatpush3.bf16.msra.mxu1 %v16555_v63 }
 0x59a   : > { %v14961_v60 = vpop.f32.mrf.mxu1  ;;  %v21145_v54 = vpop.f32.mrf.mxu0  ;;  %15419 = vmatmul.mubr.bf16.gmra.mxu0 %v23824_v2  ;;  %15350 = vmatprep.subr.bf16.mxu1 %v23510_v7 }
 0x59b   : > { %15422 = vmatprep.mubr.msk.bf16.mxu0 %vm16815_vm0, %v23510_v7  ;;  %15507 = vmatpush3.bf16.msra.mxu0 %v16556_v51  ;;  %v5664_v51 = vadd.f32 %v20663_v47, %v20925_v52 }
 0x59c   : > { %v5875_v22 = vpop.f32.mrf.mxu1  ;;  %v15120_v63 = vpop.f32.mrf.mxu0  ;;  %15263 = vmatmul.mubr.bf16.gmra.mxu1 %v23851_v13  ;;  %15508 = vmatprep.subr.bf16.mxu0 %v23510_v7 }
 0x59d   : > { %v21158_v2 = vadd.f32 %v5875_v22, %v5663_v35  ;;  %15266 = vmatprep.mubr.msk.bf16.mxu1 %vm16815_vm0, %v23510_v7  ;;  %15351 = vmatpush3.bf16.msra.mxu1 %v16557_v41  ;;  %v5665_v22 = vadd.f32 %v20671_v15, %v20939_v40 }
 0x59e   : > { %v14964_v19 = vpop.f32.mrf.mxu1  ;;  %v21165_v25 = vpop.f32.mrf.mxu0  ;;  %15352 = vmatprep.subr.bf16.mxu1 %v23510_v7 }
 0x59f   : > { %15509 = vmatpush3.bf16.msra.mxu0 %v16558_v53  ;;  %v23852_v53 = vld [vmem:[#allocation109_spill] sm:$0xff] }
 0x5a0   : > { %v5878_v4 = vpop.f32.mrf.mxu1  ;;  %v15121_v10 = vpop.f32.mrf.mxu0  ;;  %15598 = vmatprep.subr.bf16.mxu0 %v23510_v7 }
 0x5a1   : > { %v21171_v60 = vadd.f32 %v5878_v4, %v5664_v51  ;;  %15353 = vmatpush3.bf16.msra.mxu1 %v16559_v21 }
 0x5a2   : > { %v14965_v41 = vpop.f32.mrf.mxu1  ;;  %v21173_v35 = vpop.f32.mrf.mxu0  ;;  %15423 = vmatmul.mubr.bf16.gmra.mxu0 %v23829_v0  ;;  %15442 = vmatprep.subr.bf16.mxu1 %v23510_v7  ;;  %v5666_v0 = vadd.f32 %v20684_v58, %v20948_v42 }
 0x5a3   : > { %15426 = vmatprep.mubr.msk.bf16.mxu0 %vm16815_vm0, %v23510_v7  ;;  %v5667_v41 = vadd.f32 %v20692_v8, %v20961_v27 }
 0x5a4   : > { %v5883_v47 = vpop.f32.mrf.mxu1  ;;  %v15124_v52 = vpop.f32.mrf.mxu0  ;;  %15267 = vmatmul.mubr.bf16.gmra.mxu1 %v23852_v53 }
 0x5a5   : > { %v21182_v63 = vadd.f32 %v5883_v47, %v5665_v22  ;;  %15270 = vmatprep.mubr.msk.bf16.mxu1 %vm16815_vm0, %v23510_v7  ;;  %v23853_v52 = vld [vmem:[#allocation112_spill] sm:$0xff] }
 0x5a6   : > { %v14968_v21 = vpop.f32.mrf.mxu1  ;;  %v21186_v19 = vpop.f32.mrf.mxu0 }
 0x5a8   : > { %v5886_v51 = vpop.f32.mrf.mxu1  ;;  %v15125_v15 = vpop.f32.mrf.mxu0 }
 0x5a9   : > { %v21190_v40 = vadd.f32 %v5886_v51, %v5666_v0 }
 0x5aa   : > { %v14969_v4 = vpop.f32.mrf.mxu1  ;;  %v21192_v10 = vpop.f32.mrf.mxu0  ;;  %15427 = vmatmul.mubr.bf16.gmra.mxu0 %v23834_v30  ;;  %v5668_v30 = vadd.f32 %v20704_v34, %v20970_v18 }
 0x5ab   : > { %15430 = vmatprep.mubr.msk.bf16.mxu0 %vm16815_vm0, %v23510_v7  ;;  %v6092_v4 = vadd.f32 %v20714_v37, %v20983_v59  ;;  %v21227_v37 = vrot.slane %v23843_v55, 2 }
 0x5ac   : > { %v5891_v22 = vpop.f32.mrf.mxu1  ;;  %v15128_v47 = vpop.f32.mrf.mxu0  ;;  %15271 = vmatmul.mubr.bf16.gmra.mxu1 %v23853_v52 }
 0x5ad   : > { %v21200_v58 = vadd.f32 %v5891_v22, %v5667_v41  ;;  %15274 = vmatprep.mubr.msk.bf16.mxu1 %vm16815_vm0, %v23510_v7  ;;  %v23854_v47 = vld [vmem:[#allocation115_spill] sm:$0xff] }
 0x5ae   : > { %v14972_v42 = vpop.f32.mrf.mxu1  ;;  %v21204_v21 = vpop.f32.mrf.mxu0 }
 0x5b0   : > { %v5894_v0 = vpop.f32.mrf.mxu1  ;;  %v15129_v8 = vpop.f32.mrf.mxu0 }
 0x5b1   : > { %v21208_v27 = vadd.f32 %v5894_v0, %v5668_v30 }
 0x5b2   : > { %v14973_v51 = vpop.f32.mrf.mxu1  ;;  %v21210_v15 = vpop.f32.mrf.mxu0  ;;  %15431 = vmatmul.mubr.bf16.gmra.mxu0 %v23839_v16  ;;  %v6093_v16 = vadd.f32 %v20726_v20, %v20994_v50 }
 0x5b3   : > { %15434 = vmatprep.mubr.msk.bf16.mxu0 %vm16815_vm0, %v23510_v7 }
 0x5b4   : > { %v6219_v41 = vpop.f32.mrf.mxu1  ;;  %v15200_v22 = vpop.f32.mrf.mxu0  ;;  %15275 = vmatmul.mubr.bf16.gmra.mxu1 %v23854_v47 }
 0x5b5   : > { %v21218_v34 = vadd.f32 %v6219_v41, %v6092_v4  ;;  %15278 = vmatprep.mubr.msk.bf16.mxu1 %vm16815_vm0, %v23510_v7  ;;  %v6094_v4 = vadd.f32 %v20740_v1, %v21008_v28  ;;  %v23856_v41 = vld [vmem:[#allocation114_spill] sm:$0xff]  ;;  %v6095_v1 = vadd.f32 %v20752_v9, %v21017_v49  ;;  %v6982_v28 = vrot.slane %v23795_v31, 2 }
 0x5b6   : > { %v15044_v18 = vpop.f32.mrf.mxu1  ;;  %v21222_v42 = vpop.f32.mrf.mxu0  ;;  %v21239_v22 = vsel %vm4136_vm7, %v23856_v41, %v21227_v37 }
 0x5b8   : > { %v6222_v59 = vpop.f32.mrf.mxu1  ;;  %v15201_v30 = vpop.f32.mrf.mxu0 }
 0x5b9   : > { %v21229_v0 = vadd.f32 %v6222_v59, %v6093_v16 }
 0x5ba   : > { %v15045_v8 = vpop.f32.mrf.mxu1  ;;  %v21231_v51 = vpop.f32.mrf.mxu0  ;;  %15435 = vmatmul.mubr.bf16.gmra.mxu0 %v23843_v55 }
 0x5bb   : > { %23855 = vst [vmem:[#allocation110_spill] sm:$0xff] %v21231_v51  ;;  %15438 = vmatprep.mubr.msk.bf16.mxu0 %vm16815_vm0, %v23510_v7 }
 0x5bc   : > { %v6227_v20 = vpop.f32.mrf.mxu1  ;;  %v15204_v50 = vpop.f32.mrf.mxu0  ;;  %15279 = vmatmul.mubr.bf16.gmra.mxu1 %v21239_v22 }
 0x5bd   : > { %v21244_v18 = vadd.f32 %v6227_v20, %v6094_v4  ;;  %15282 = vmatprep.mubr.msk.bf16.mxu1 %vm16815_vm0, %v23510_v7  ;;  %v23858_v4 = vld [vmem:[#allocation35_spill] sm:$0xff]  ;;  %v6096_v20 = vadd.f32 %v20760_v57, %v21028_v46  ;;  %v6097_v57 = vadd.f32 %v20771_v45, %v21039_v33  ;;  %v16560_v46 = vld [vmem:[%s23173_s3 + $0x638] sm:$0xff]   ;;  %v16562_v33 = vld [vmem:[%s23173_s3 + $0x630] sm:$0xff]  }
 0x5be   : > { %v15048_v16 = vpop.f32.mrf.mxu1  ;;  %v21248_v59 = vpop.f32.mrf.mxu0 }
 0x5bf   : > { %v6983_v16 = vsel %vm4136_vm7, %v21227_v37, %v6982_v28 }
 0x5c0   : > { %v6230_v30 = vpop.f32.mrf.mxu1  ;;  %v15205_v8 = vpop.f32.mrf.mxu0 }
 0x5c1   : > { %v21253_v41 = vadd.f32 %v6230_v30, %v6095_v1 }
 0x5c2   : > { %v15049_v50 = vpop.f32.mrf.mxu1  ;;  %v21255_v51 = vpop.f32.mrf.mxu0  ;;  %15439 = vmatmul.mubr.bf16.gmra.mxu0 %v23858_v4 }
 0x5c3   : > { %23857 = vst [vmem:[#allocation39_spill] sm:$0xff] %v21255_v51  ;;  %15510 = vmatprep.mubr.msk.bf16.mxu0 %vm16815_vm0, %v23510_v7 }
 0x5c4   : > { %v6235_v9 = vpop.f32.mrf.mxu1  ;;  %v15208_v49 = vpop.f32.mrf.mxu0  ;;  %15283 = vmatmul.mubr.bf16.gmra.mxu1 %v6983_v16 }
 0x5c5   : > { %v21264_v8 = vadd.f32 %v6235_v9, %v6096_v20  ;;  %15354 = vmatprep.mubr.msk.bf16.mxu1 %vm16815_vm0, %v23510_v7  ;;  %v16561_v20 = vld [vmem:[%s23173_s3 + $0x578] sm:$0xff]   ;;  %v23861_v49 = vld [vmem:[#allocation95_spill] sm:$0xff] }
 0x5c6   : > { %v15052_v1 = vpop.f32.mrf.mxu1  ;;  %v21268_v30 = vpop.f32.mrf.mxu0 }
 0x5c7   : > { %23859 = vst [vmem:[#allocation111_spill] sm:$0xff] %v21268_v30  ;;  %v23862_v1 = vld [vmem:[#allocation63_spill] sm:$0xff] }
 0x5c8   : > { %v6238_v28 = vpop.f32.mrf.mxu1  ;;  %v15209_v50 = vpop.f32.mrf.mxu0  ;;  %v6098_v45 = vadd.f32 %v23862_v1, %v21056_v39  ;;  %v16563_v39 = vld [vmem:[%s23173_s3 + $0x570] sm:$0xff]   ;;  %v23865_v1 = vld [vmem:[#allocation94_spill] sm:$0xff] }
 0x5c9   : > { %v21275_v51 = vadd.f32 %v6238_v28, %v6097_v57  ;;  %v23863_v50 = vld [vmem:[#allocation77_spill] sm:$0xff] }
 0x5ca   : > { %v15053_v16 = vpop.f32.mrf.mxu1  ;;  %v21280_v9 = vpop.f32.mrf.mxu0  ;;  %15511 = vmatmul.mubr.bf16.vlgmr.msra.gmra.mxu0 %v23861_v49 }
 0x5cb   : > { %23860 = vst [vmem:[#allocation113_spill] sm:$0xff] %v21280_v9  ;;  %15514 = vmatprep.mubr.msk.bf16.mxu0 %vm16815_vm0, %v23510_v7  ;;  %15599 = vmatpush3.bf16.msra.mxu0 %v16560_v46 }
 0x5cc   : > { %v6243_v57 = vpop.f32.mrf.mxu1  ;;  %v15212_v28 = vpop.f32.mrf.mxu0  ;;  %15355 = vmatmul.mubr.bf16.vlgmr.msra.gmra.mxu1 %v23863_v50  ;;  %15600 = vmatprep.subr.bf16.mxu0 %v23510_v7 }
 0x5cd   : > { %v21292_v16 = vadd.f32 %v6243_v57, %v6098_v45  ;;  %15358 = vmatprep.mubr.msk.bf16.mxu1 %vm16815_vm0, %v23510_v7  ;;  %15443 = vmatpush3.bf16.msra.mxu1 %v16561_v20  ;;  %v6099_v28 = vadd.f32 %v23865_v1, %v21072_v56  ;;  %v16564_v45 = vld [vmem:[%s23173_s3 + $0x628] sm:$0xff]  }
 0x5ce   : > { %v15056_v46 = vpop.f32.mrf.mxu1  ;;  %v21299_v49 = vpop.f32.mrf.mxu0  ;;  %15444 = vmatprep.subr.bf16.mxu1 %v23510_v7  ;;  %v23867_v56 = vld [vmem:[#allocation96_spill] sm:$0xff] }
 0x5cf   : > { %23864 = vst [vmem:[#allocation41_spill] sm:$0xff] %v21299_v49  ;;  %15601 = vmatpush3.bf16.msra.mxu0 %v16562_v33  ;;  %v16565_v46 = vld [vmem:[%s23173_s3 + $0x568] sm:$0xff]  }
 0x5d0   : > { %v6246_v57 = vpop.f32.mrf.mxu1  ;;  %v15213_v50 = vpop.f32.mrf.mxu0  ;;  %15602 = vmatprep.subr.bf16.mxu0 %v23510_v7  ;;  %v23868_v33 = vld [vmem:[#allocation28_spill] sm:$0xff] }
 0x5d1   : > { %v21308_v20 = vadd.f32 %v6246_v57, %v6099_v28  ;;  %15445 = vmatpush3.bf16.msra.mxu1 %v16563_v39  ;;  %v6100_v1 = vadd.f32 %v23868_v33, %v21090_v29  ;;  %v16566_v39 = vld [vmem:[%s23173_s3 + $0x620] sm:$0xff]  }
 0x5d2   : > { %v15057_v49 = vpop.f32.mrf.mxu1  ;;  %v21313_v9 = vpop.f32.mrf.mxu0  ;;  %15515 = vmatmul.mubr.bf16.gmra.mxu0 %v23867_v56  ;;  %15446 = vmatprep.subr.bf16.mxu1 %v23510_v7  ;;  %v16567_v29 = vld [vmem:[%s23173_s3 + $0x560] sm:$0xff]  }
 0x5d3   : > { %23866 = vst [vmem:[#allocation42_spill] sm:$0xff] %v21313_v9  ;;  %15518 = vmatprep.mubr.msk.bf16.mxu0 %vm16815_vm0, %v23510_v7  ;;  %15603 = vmatpush3.bf16.msra.mxu0 %v16564_v45  ;;  %v23869_v49 = vld [vmem:[#allocation79_spill] sm:$0xff] }
 0x5d4   : > { %v6251_v28 = vpop.f32.mrf.mxu1  ;;  %v15216_v57 = vpop.f32.mrf.mxu0  ;;  %15359 = vmatmul.mubr.bf16.gmra.mxu1 %v23869_v49  ;;  %15604 = vmatprep.subr.bf16.mxu0 %v23510_v7  ;;  %v23871_v33 = vld [vmem:[#allocation19_spill] sm:$0xff] }
 0x5d5   : > { %v21326_v50 = vadd.f32 %v6251_v28, %v6100_v1  ;;  %15362 = vmatprep.mubr.msk.bf16.mxu1 %vm16815_vm0, %v23510_v7  ;;  %15447 = vmatpush3.bf16.msra.mxu1 %v16565_v46  ;;  %v6101_v57 = vadd.f32 %v23871_v33, %v21106_v17  ;;  %v16568_v1 = vld [vmem:[%s23173_s3 + $0x618] sm:$0xff]   ;;  %v23873_v17 = vld [vmem:[#allocation99_spill] sm:$0xff] }
 0x5d6   : > { %v15060_v45 = vpop.f32.mrf.mxu1  ;;  %v21333_v56 = vpop.f32.mrf.mxu0  ;;  %15448 = vmatprep.subr.bf16.mxu1 %v23510_v7 }
 0x5d7   : > { %23870 = vst [vmem:[#allocation40_spill] sm:$0xff] %v21333_v56  ;;  %15605 = vmatpush3.bf16.msra.mxu0 %v16566_v39  ;;  %v16569_v45 = vld [vmem:[%s23173_s3 + $0x558] sm:$0xff]   ;;  %v23874_v39 = vld [vmem:[#allocation23_spill] sm:$0xff] }
 0x5d8   : > { %v6254_v28 = vpop.f32.mrf.mxu1  ;;  %v15217_v49 = vpop.f32.mrf.mxu0  ;;  %15606 = vmatprep.subr.bf16.mxu0 %v23510_v7  ;;  %v6102_v33 = vadd.f32 %v23874_v39, %v21124_v48  ;;  %v16571_v48 = vld [vmem:[%s23173_s3 + $0x550] sm:$0xff]   ;;  %v23877_v39 = vld [vmem:[#allocation18_spill] sm:$0xff] }
 0x5d9   : > { %v21342_v46 = vadd.f32 %v6254_v28, %v6101_v57  ;;  %15449 = vmatpush3.bf16.msra.mxu1 %v16567_v29  ;;  %v16570_v29 = vld [vmem:[%s23173_s3 + $0x610] sm:$0xff]  }
 0x5da   : > { %v15061_v56 = vpop.f32.mrf.mxu1  ;;  %v21347_v9 = vpop.f32.mrf.mxu0  ;;  %15519 = vmatmul.mubr.bf16.gmra.mxu0 %v23873_v17  ;;  %15450 = vmatprep.subr.bf16.mxu1 %v23510_v7 }
 0x5db   : > { %23872 = vst [vmem:[#allocation32_spill] sm:$0xff] %v21347_v9  ;;  %15522 = vmatprep.mubr.msk.bf16.mxu0 %vm16815_vm0, %v23510_v7  ;;  %15607 = vmatpush3.bf16.msra.mxu0 %v16568_v1  ;;  %v23875_v56 = vld [vmem:[#allocation3_spill] sm:$0xff] }
 0x5dc   : > { %v6259_v57 = vpop.f32.mrf.mxu1  ;;  %v15220_v28 = vpop.f32.mrf.mxu0  ;;  %15363 = vmatmul.mubr.bf16.gmra.mxu1 %v23875_v56  ;;  %15608 = vmatprep.subr.bf16.mxu0 %v23510_v7 }
 0x5dd   : > { %v21360_v49 = vadd.f32 %v6259_v57, %v6102_v33  ;;  %15366 = vmatprep.mubr.msk.bf16.mxu1 %vm16815_vm0, %v23510_v7  ;;  %15451 = vmatpush3.bf16.msra.mxu1 %v16569_v45  ;;  %v6103_v28 = vadd.f32 %v23877_v39, %v21140_v36  ;;  %v16572_v33 = vld [vmem:[%s23173_s3 + $0x608] sm:$0xff]   ;;  %v23879_v36 = vld [vmem:[#allocation102_spill] sm:$0xff] }
 0x5de   : > { %v15064_v1 = vpop.f32.mrf.mxu1  ;;  %v21367_v17 = vpop.f32.mrf.mxu0  ;;  %15452 = vmatprep.subr.bf16.mxu1 %v23510_v7 }
 0x5df   : > { %23876 = vst [vmem:[#allocation11_spill] sm:$0xff] %v21367_v17  ;;  %15609 = vmatpush3.bf16.msra.mxu0 %v16570_v29  ;;  %v16573_v1 = vld [vmem:[%s23173_s3 + $0x548] sm:$0xff]   ;;  %v23880_v29 = vld [vmem:[#allocation98_spill] sm:$0xff] }
 0x5e0   : > { %v6262_v57 = vpop.f32.mrf.mxu1  ;;  %v15221_v56 = vpop.f32.mrf.mxu0  ;;  %15610 = vmatprep.subr.bf16.mxu0 %v23510_v7  ;;  %v6104_v39 = vadd.f32 %v23880_v29, %v21158_v2  ;;  %v16575_v2 = vld [vmem:[%s23173_s3 + $0x540] sm:$0xff]   ;;  %v23883_v29 = vld [vmem:[#allocation8_spill] sm:$0xff] }
 0x5e1   : > { %v21376_v45 = vadd.f32 %v6262_v57, %v6103_v28  ;;  %15453 = vmatpush3.bf16.msra.mxu1 %v16571_v48  ;;  %v16574_v48 = vld [vmem:[%s23173_s3 + $0x600] sm:$0xff]  }
 0x5e2   : > { %v15065_v17 = vpop.f32.mrf.mxu1  ;;  %v21381_v9 = vpop.f32.mrf.mxu0  ;;  %15523 = vmatmul.mubr.bf16.gmra.mxu0 %v23879_v36  ;;  %15454 = vmatprep.subr.bf16.mxu1 %v23510_v7 }
 0x5e3   : > { %23878 = vst [vmem:[#allocation43_spill] sm:$0xff] %v21381_v9  ;;  %15526 = vmatprep.mubr.msk.bf16.mxu0 %vm16815_vm0, %v23510_v7  ;;  %15611 = vmatpush3.bf16.msra.mxu0 %v16572_v33  ;;  %v23881_v17 = vld [vmem:[#allocation15_spill] sm:$0xff] }
 0x5e4   : > { %v6267_v28 = vpop.f32.mrf.mxu1  ;;  %v15224_v57 = vpop.f32.mrf.mxu0  ;;  %15367 = vmatmul.mubr.bf16.gmra.mxu1 %v23881_v17  ;;  %15612 = vmatprep.subr.bf16.mxu0 %v23510_v7 }
 0x5e5   : > { %v21394_v56 = vadd.f32 %v6267_v28, %v6104_v39  ;;  %15370 = vmatprep.mubr.msk.bf16.mxu1 %vm16815_vm0, %v23510_v7  ;;  %15455 = vmatpush3.bf16.msra.mxu1 %v16573_v1  ;;  %v6105_v57 = vadd.f32 %v23883_v29, %v21171_v60  ;;  %v23886_v29 = vld [vmem:[#allocation30_spill] sm:$0xff] }
 0x5e6   : > { %v15068_v33 = vpop.f32.mrf.mxu1  ;;  %v21401_v36 = vpop.f32.mrf.mxu0  ;;  %15456 = vmatprep.subr.bf16.mxu1 %v23510_v7 }
 0x5e7   : > { %23882 = vst [vmem:[#allocation66_spill] sm:$0xff] %v21401_v36  ;;  %15613 = vmatpush3.bf16.msra.mxu0 %v16574_v48  ;;  %v23885_v33 = vld [vmem:[#allocation101_spill] sm:$0xff] }
 0x5e8   : > { %v6270_v17 = vpop.f32.mrf.mxu1  ;;  %v15225_v39 = vpop.f32.mrf.mxu0  ;;  %15670 = vmatprep.subr.bf16.mxu0 %v23510_v7  ;;  %v6106_v36 = vadd.f32 %v23885_v33, %v21182_v63 }
 0x5e9   : > { %v21407_v28 = vadd.f32 %v6270_v17, %v6105_v57  ;;  %15457 = vmatpush3.bf16.msra.mxu1 %v16575_v2 }
 0x5ea   : > { %v15069_v1 = vpop.f32.mrf.mxu1  ;;  %v21409_v9 = vpop.f32.mrf.mxu0  ;;  %15527 = vmatmul.mubr.bf16.gmra.mxu0 %v20956_v32  ;;  %15546 = vmatprep.subr.bf16.mxu1 %v23510_v7  ;;  %v23887_v32 = vld [vmem:[#allocation14_spill] sm:$0xff] }
 0x5eb   : > { %23884 = vst [vmem:[#allocation69_spill] sm:$0xff] %v21409_v9  ;;  %15530 = vmatprep.mubr.msk.bf16.mxu0 %vm16815_vm0, %v23510_v7  ;;  %v6107_v39 = vadd.f32 %v23887_v32, %v21190_v40 }
 0x5ec   : > { %v6275_v60 = vpop.f32.mrf.mxu1  ;;  %v15228_v48 = vpop.f32.mrf.mxu0  ;;  %15371 = vmatmul.mubr.bf16.gmra.mxu1 %v23886_v29 }
 0x5ed   : > { %v21418_v57 = vadd.f32 %v6275_v60, %v6106_v36  ;;  %15374 = vmatprep.mubr.msk.bf16.mxu1 %vm16815_vm0, %v23510_v7  ;;  %v23889_v36 = vld [vmem:[#allocation104_spill] sm:$0xff] }
 0x5ee   : > { %v15072_v2 = vpop.f32.mrf.mxu1  ;;  %v21422_v17 = vpop.f32.mrf.mxu0  ;;  %v6108_v60 = vadd.f32 %v23889_v36, %v21200_v58 }
 0x5ef   : > { %v23890_v2 = vld [vmem:[#allocation92_spill] sm:$0xff] }
 0x5f0   : > { %v6278_v1 = vpop.f32.mrf.mxu1  ;;  %v15229_v63 = vpop.f32.mrf.mxu0 }
 0x5f1   : > { %v21426_v33 = vadd.f32 %v6278_v1, %v6107_v39 }
 0x5f2   : > { %v15073_v9 = vpop.f32.mrf.mxu1  ;;  %v21428_v30 = vpop.f32.mrf.mxu0  ;;  %15531 = vmatmul.mubr.bf16.gmra.mxu0 %v20978_v3  ;;  %v23892_v3 = vld [vmem:[#allocation105_spill] sm:$0xff] }
 0x5f3   : > { %23888 = vst [vmem:[#allocation72_spill] sm:$0xff] %v21428_v30  ;;  %15534 = vmatprep.mubr.msk.bf16.mxu0 %vm16815_vm0, %v23510_v7  ;;  %v6109_v39 = vadd.f32 %v23892_v3, %v21208_v27  ;;  %v7991_v3 = vrot.slane %v23858_v4, 1 }
 0x5f4   : > { %v6283_v48 = vpop.f32.mrf.mxu1  ;;  %v15232_v29 = vpop.f32.mrf.mxu0  ;;  %15375 = vmatmul.mubr.bf16.gmra.mxu1 %v23890_v2 }
 0x5f5   : > { %v21436_v40 = vadd.f32 %v6283_v48, %v6108_v60  ;;  %15378 = vmatprep.mubr.msk.bf16.mxu1 %vm16815_vm0, %v23510_v7  ;;  %v23894_v60 = vld [vmem:[#allocation107_spill] sm:$0xff] }
 0x5f6   : > { %v15076_v9 = vpop.f32.mrf.mxu1  ;;  %v21440_v32 = vpop.f32.mrf.mxu0  ;;  %v6479_v48 = vadd.f32 %v23894_v60, %v21218_v34 }
 0x5f7   : > { %23891 = vst [vmem:[#allocation44_spill] sm:$0xff] %v21440_v32  ;;  %v23895_v9 = vld [vmem:[#allocation16_spill] sm:$0xff] }
 0x5f8   : > { %v6286_v1 = vpop.f32.mrf.mxu1  ;;  %v15233_v58 = vpop.f32.mrf.mxu0 }
 0x5f9   : > { %v21444_v63 = vadd.f32 %v6286_v1, %v6109_v39  ;;  %v7372_v58 = vrot.slane %v23843_v55, 3 }
 0x5fa   : > { %v15077_v36 = vpop.f32.mrf.mxu1  ;;  %v21446_v30 = vpop.f32.mrf.mxu0  ;;  %15535 = vmatmul.mubr.bf16.gmra.mxu0 %v21003_v11  ;;  %v23897_v11 = vld [vmem:[#allocation36_spill] sm:$0xff] }
 0x5fb   : > { %23893 = vst [vmem:[#allocation73_spill] sm:$0xff] %v21446_v30  ;;  %15538 = vmatprep.mubr.msk.bf16.mxu0 %vm16815_vm0, %v23510_v7  ;;  %v6480_v34 = vadd.f32 %v23897_v11, %v21229_v0 }
 0x5fc   : > { %v6628_v29 = vpop.f32.mrf.mxu1  ;;  %v15304_v2 = vpop.f32.mrf.mxu0  ;;  %15379 = vmatmul.mubr.bf16.gmra.mxu1 %v23895_v9 }
 0x5fd   : > { %v21454_v27 = vadd.f32 %v6628_v29, %v6479_v48  ;;  %15382 = vmatprep.mubr.msk.bf16.mxu1 %vm16815_vm0, %v23510_v7  ;;  %v7992_v48 = vsel %vm3680_vm2, %v20992_v23, %v7991_v3 }
 0x5fe   : > { %v15148_v39 = vpop.f32.mrf.mxu1  ;;  %v21459_v1 = vpop.f32.mrf.mxu0 }
 0x5ff   : > { %23896 = vst [vmem:[#allocation74_spill] sm:$0xff] %v21459_v1  ;;  %v23898_v39 = vld [vmem:[#allocation108_spill] sm:$0xff]  ;;  %v23899_v1 = vld [vmem:[#allocation34_spill] sm:$0xff] }
 0x600   : > { %v6631_v36 = vpop.f32.mrf.mxu1  ;;  %v15305_v60 = vpop.f32.mrf.mxu0  ;;  %v6481_v30 = vadd.f32 %v23898_v39, %v21244_v18  ;;  %v7373_v32 = vsel %vm4373_vm4, %v23899_v1, %v7372_v58  ;;  %v6482_v18 = vadd.f32 %v21012_v6, %v21253_v41  ;;  %v7374_v1 = vrot.slane %v23795_v31, 3 }
 0x601   : > { %v21464_v2 = vadd.f32 %v6631_v36, %v6480_v34  ;;  %v23900_v34 = vld [vmem:[#allocation53_spill] sm:$0xff] }
 0x602   : > { %v15149_v29 = vpop.f32.mrf.mxu1  ;;  %v21468_v9 = vpop.f32.mrf.mxu0  ;;  %15539 = vmatmul.mubr.bf16.gmra.mxu0 %v7992_v48  ;;  %v7993_v23 = vrot.slane %v23900_v34, 1 }
 0x603   : > { %15542 = vmatprep.mubr.msk.bf16.mxu0 %vm16815_vm0, %v23510_v7 }
 0x604   : > { %v6636_v55 = vpop.f32.mrf.mxu1  ;;  %v15308_v0 = vpop.f32.mrf.mxu0  ;;  %15383 = vmatmul.mubr.bf16.gmra.mxu1 %v7373_v32 }
 0x605   : > { %v21476_v11 = vadd.f32 %v6636_v55, %v6481_v30  ;;  %15386 = vmatprep.mubr.msk.bf16.mxu1 %vm16815_vm0, %v23510_v7  ;;  %v7994_v30 = vsel %vm3680_vm2, %v7991_v3, %v7993_v23  ;;  %v6483_v0 = vadd.f32 %v21019_v38, %v21264_v8  ;;  %v23901_v3 = vld [vmem:[#allocation65_spill] sm:$0xff]  ;;  %v6484_v38 = vadd.f32 %v21032_v43, %v21275_v51  ;;  %v23902_v8 = vld [vmem:[#allocation68_spill] sm:$0xff] }
 0x606   : > { %v15152_v36 = vpop.f32.mrf.mxu1  ;;  %v21481_v60 = vpop.f32.mrf.mxu0  ;;  %v7756_v23 = vrot.slane %v23901_v3, 1  ;;  %v6485_v43 = vadd.f32 %v21044_v61, %v21292_v16  ;;  %v6486_v16 = vadd.f32 %v21063_v44, %v21308_v20  ;;  %v6487_v44 = vadd.f32 %v21077_v62, %v21326_v50 }
 0x607   : > { %v7375_v36 = vsel %vm4373_vm4, %v7372_v58, %v7374_v1  ;;  %v7758_v58 = vrot.slane %v23902_v8, 1  ;;  %v23904_v8 = vld [vmem:[#allocation71_spill] sm:$0xff]  ;;  %v6488_v50 = vadd.f32 %v21097_v5, %v21342_v46  ;;  %v6489_v5 = vadd.f32 %v21111_v12, %v21360_v49  ;;  %v23907_v46 = vld [vmem:[#allocation33_spill] sm:$0xff] }
 0x608   : > { %v6639_v48 = vpop.f32.mrf.mxu1  ;;  %v15309_v29 = vpop.f32.mrf.mxu0  ;;  %v16581_v12 = vld [vmem:[%s23173_s3 + $0x5d0] sm:$0xff]  }
 0x609   : > { %v21486_v39 = vadd.f32 %v6639_v48, %v6482_v18 }
 0x60a   : > { %v15153_v32 = vpop.f32.mrf.mxu1  ;;  %v21489_v55 = vpop.f32.mrf.mxu0  ;;  %15543 = vmatmul.mubr.bf16.gmra.mxu0 %v7994_v30 }
 0x60b   : > { %15614 = vmatprep.mubr.msk.bf16.mxu0 %vm16815_vm0, %v23510_v7  ;;  %v23903_v32 = vld [vmem:[#allocation64_spill] sm:$0xff] }
 0x60c   : > { %v6644_v6 = vpop.f32.mrf.mxu1  ;;  %v15312_v31 = vpop.f32.mrf.mxu0  ;;  %15387 = vmatmul.mubr.bf16.gmra.mxu1 %v7375_v36  ;;  %v16576_v36 = vld [vmem:[%s23173_s3 + $0x5f8] sm:$0xff]  }
 0x60d   : > { %v21496_v41 = vadd.f32 %v6644_v6, %v6483_v0  ;;  %15458 = vmatprep.mubr.msk.bf16.mxu1 %vm16815_vm0, %v23510_v7  ;;  %v7757_v0 = vor.u32 %v7756_v23, %v23903_v32 }
 0x60e   : > { %v15156_v18 = vpop.f32.mrf.mxu1  ;;  %v21501_v48 = vpop.f32.mrf.mxu0 }
 0x60f   : > { %v7759_v51 = vsel %vm3261_vm3, %v7757_v0, %v7758_v58 }
 0x610   : > { %v6647_v1 = vpop.f32.mrf.mxu1  ;;  %v15313_v29 = vpop.f32.mrf.mxu0 }
 0x611   : > { %v21506_v30 = vadd.f32 %v6647_v1, %v6484_v38  ;;  %v7761_v1 = vrot.slane %v23904_v8, 1 }
 0x612   : > { %v15157_v6 = vpop.f32.mrf.mxu1  ;;  %v21512_v31 = vpop.f32.mrf.mxu0  ;;  %15615 = vmatmul.mubr.bf16.vlgmr.msra.gmra.mxu0 %v23849_v14  ;;  %v16577_v14 = vld [vmem:[%s23173_s3 + $0x5f0] sm:$0xff]  }
 0x613   : > { %15618 = vmatprep.mubr.msk.bf16.mxu0 %vm16815_vm0, %v23510_v7  ;;  %v23905_v6 = vld [vmem:[#allocation67_spill] sm:$0xff] }
 0x614   : > { %v6652_v3 = vpop.f32.mrf.mxu1  ;;  %v15316_v18 = vpop.f32.mrf.mxu0  ;;  %15459 = vmatmul.mubr.bf16.vlgmr.msra.gmra.mxu1 %v7759_v51 }
 0x615   : > { %v21520_v23 = vadd.f32 %v6652_v3, %v6485_v43  ;;  %15462 = vmatprep.mubr.msk.bf16.mxu1 %vm16815_vm0, %v23510_v7  ;;  %15547 = vmatpush3.bf16.msra.mxu1 %v16576_v36  ;;  %v7760_v36 = vor.u32 %v7758_v58, %v23905_v6  ;;  %v16578_v43 = vld [vmem:[%s23173_s3 + $0x5e8] sm:$0xff]  }
 0x616   : > { %v15160_v38 = vpop.f32.mrf.mxu1  ;;  %v21527_v61 = vpop.f32.mrf.mxu0  ;;  %15548 = vmatprep.subr.bf16.mxu1 %v23510_v7 }
 0x617   : > { %v7762_v20 = vsel %vm3261_vm3, %v7760_v36, %v7761_v1  ;;  %v16580_v36 = vld [vmem:[%s23173_s3 + $0x5d8] sm:$0xff]  }
 0x618   : > { %v6655_v29 = vpop.f32.mrf.mxu1  ;;  %v15317_v32 = vpop.f32.mrf.mxu0 }
 0x619   : > { %v21533_v0 = vadd.f32 %v6655_v29, %v6486_v16  ;;  %15549 = vmatpush3.bf16.msra.mxu1 %v16577_v14  ;;  %v23906_v32 = vld [vmem:[#allocation70_spill] sm:$0xff] }
 0x61a   : > { %v15161_v51 = vpop.f32.mrf.mxu1  ;;  %v21539_v3 = vpop.f32.mrf.mxu0  ;;  %15619 = vmatmul.mubr.bf16.gmra.mxu0 %v23850_v24  ;;  %15550 = vmatprep.subr.bf16.mxu1 %v23510_v7  ;;  %v16579_v24 = vld [vmem:[%s23173_s3 + $0x5e0] sm:$0xff]   ;;  %v7763_v6 = vor.u32 %v7761_v1, %v23906_v32 }
 0x61b   : > { %15622 = vmatprep.mubr.msk.bf16.mxu0 %vm16815_vm0, %v23510_v7 }
 0x61c   : > { %v6660_v58 = vpop.f32.mrf.mxu1  ;;  %v15320_v18 = vpop.f32.mrf.mxu0  ;;  %15463 = vmatmul.mubr.bf16.gmra.mxu1 %v7762_v20 }
 0x61d   : > { %v21548_v14 = vadd.f32 %v6660_v58, %v6487_v44  ;;  %15466 = vmatprep.mubr.msk.bf16.mxu1 %vm16815_vm0, %v23510_v7  ;;  %15551 = vmatpush3.bf16.msra.mxu1 %v16578_v43  ;;  %v23908_v44 = vrot.slane %v23907_v46, 1 }
 0x61e   : > { %v15164_v38 = vpop.f32.mrf.mxu1  ;;  %v21555_v62 = vpop.f32.mrf.mxu0  ;;  %15552 = vmatprep.subr.bf16.mxu1 %v23510_v7 }
 0x61f   : > { %v7765_v20 = vsel %vm3261_vm3, %v7763_v6, %v23908_v44 }
 0x620   : > { %v6663_v16 = vpop.f32.mrf.mxu1  ;;  %v15321_v8 = vpop.f32.mrf.mxu0 }
 0x621   : > { %v21560_v29 = vadd.f32 %v6663_v16, %v6488_v50  ;;  %15553 = vmatpush3.bf16.msra.mxu1 %v16579_v24  ;;  %v6490_v24 = vadd.f32 %v21131_v26, %v21376_v45  ;;  %v16582_v8 = vld [vmem:[%s23173_s3 + $0x5c8] sm:$0xff]  }
 0x622   : > { %v15165_v43 = vpop.f32.mrf.mxu1  ;;  %v21566_v51 = vpop.f32.mrf.mxu0  ;;  %15623 = vmatmul.mubr.bf16.gmra.mxu0 %v23851_v13  ;;  %15554 = vmatprep.subr.bf16.mxu1 %v23510_v7 }
 0x623   : > { %15626 = vmatprep.mubr.msk.bf16.mxu0 %vm16815_vm0, %v23510_v7  ;;  %v23909_v43 = vld [vmem:[#allocation54_spill] sm:$0xff] }
 0x624   : > { %v6668_v1 = vpop.f32.mrf.mxu1  ;;  %v15324_v58 = vpop.f32.mrf.mxu0  ;;  %15467 = vmatmul.mubr.bf16.gmra.mxu1 %v7765_v20 }
 0x625   : > { %v21577_v18 = vadd.f32 %v6668_v1, %v6489_v5  ;;  %15470 = vmatprep.mubr.msk.bf16.mxu1 %vm16815_vm0, %v23510_v7  ;;  %15555 = vmatpush3.bf16.msra.mxu1 %v16580_v36  ;;  %v6491_v36 = vadd.f32 %v21145_v54, %v21394_v56  ;;  %v6492_v54 = vadd.f32 %v21165_v25, %v21407_v28  ;;  %v23910_v28 = vld [vmem:[#allocation55_spill] sm:$0xff] }
 0x626   : > { %v15168_v13 = vpop.f32.mrf.mxu1  ;;  %v21584_v49 = vpop.f32.mrf.mxu0  ;;  %15556 = vmatprep.subr.bf16.mxu1 %v23510_v7 }
 0x627   : > { %v6493_v13 = vadd.f32 %v21173_v35, %v21418_v57 }
 0x628   : > { %v6671_v38 = vpop.f32.mrf.mxu1  ;;  %v15325_v50 = vpop.f32.mrf.mxu0 }
 0x629   : > { %v21589_v16 = vadd.f32 %v6671_v38, %v6490_v24  ;;  %15557 = vmatpush3.bf16.msra.mxu1 %v16581_v12 }
 0x62a   : > { %v15169_v32 = vpop.f32.mrf.mxu1  ;;  %v21594_v6 = vpop.f32.mrf.mxu0  ;;  %15627 = vmatmul.mubr.bf16.gmra.mxu0 %v23852_v53  ;;  %15558 = vmatprep.subr.bf16.mxu1 %v23510_v7  ;;  %v16583_v53 = vld [vmem:[%s23173_s3 + $0x5c0] sm:$0xff]  }
 0x62b   : > { %15630 = vmatprep.mubr.msk.bf16.mxu0 %vm16815_vm0, %v23510_v7 }
 0x62c   : > { %v6676_v26 = vpop.f32.mrf.mxu1  ;;  %v15328_v45 = vpop.f32.mrf.mxu0  ;;  %15471 = vmatmul.mubr.bf16.gmra.mxu1 %v23909_v43 }
 0x62d   : > { %v21603_v5 = vadd.f32 %v6676_v26, %v6491_v36  ;;  %15474 = vmatprep.mubr.msk.bf16.mxu1 %vm16815_vm0, %v23510_v7  ;;  %15559 = vmatpush3.bf16.msra.mxu1 %v16582_v8  ;;  %v6495_v45 = vadd.f32 %v21192_v10, %v21436_v40 }
 0x62e   : > { %v15172_v46 = vpop.f32.mrf.mxu1  ;;  %v21610_v44 = vpop.f32.mrf.mxu0  ;;  %15560 = vmatprep.subr.bf16.mxu1 %v23510_v7 }
 0x62f   : > { %v23911_v46 = vld [vmem:[#allocation56_spill] sm:$0xff] }
 0x630   : > { %v6679_v56 = vpop.f32.mrf.mxu1  ;;  %v15329_v20 = vpop.f32.mrf.mxu0 }
 0x631   : > { %v21615_v1 = vadd.f32 %v6679_v56, %v6492_v54  ;;  %15561 = vmatpush3.bf16.msra.mxu1 %v16583_v53 }
 0x632   : > { %v15173_v58 = vpop.f32.mrf.mxu1  ;;  %v21617_v12 = vpop.f32.mrf.mxu0  ;;  %15631 = vmatmul.mubr.bf16.gmra.mxu0 %v23853_v52  ;;  %15650 = vmatprep.subr.bf16.mxu1 %v23510_v7  ;;  %v6494_v52 = vadd.f32 %v21186_v19, %v21426_v33 }
 0x633   : > { %15634 = vmatprep.mubr.msk.bf16.mxu0 %vm16815_vm0, %v23510_v7 }
 0x634   : > { %v6684_v24 = vpop.f32.mrf.mxu1  ;;  %v15332_v25 = vpop.f32.mrf.mxu0  ;;  %15475 = vmatmul.mubr.bf16.gmra.mxu1 %v23910_v28  ;;  %v23912_v28 = vld [vmem:[#allocation58_spill] sm:$0xff] }
 0x635   : > { %v21626_v38 = vadd.f32 %v6684_v24, %v6493_v13  ;;  %15478 = vmatprep.mubr.msk.bf16.mxu1 %vm16815_vm0, %v23510_v7  ;;  %v6945_v13 = vadd.f32 %v21210_v15, %v21454_v27  ;;  %v6946_v15 = vadd.f32 %v21222_v42, %v21464_v2 }
 0x636   : > { %v15176_v50 = vpop.f32.mrf.mxu1  ;;  %v21630_v8 = vpop.f32.mrf.mxu0 }
 0x638   : > { %v6687_v32 = vpop.f32.mrf.mxu1  ;;  %v15333_v35 = vpop.f32.mrf.mxu0 }
 0x639   : > { %v21634_v57 = vadd.f32 %v6687_v32, %v6494_v52 }
 0x63a   : > { %v15177_v36 = vpop.f32.mrf.mxu1  ;;  %v21636_v26 = vpop.f32.mrf.mxu0  ;;  %15635 = vmatmul.mubr.bf16.gmra.mxu0 %v23854_v47  ;;  %v6496_v47 = vadd.f32 %v21204_v21, %v21444_v63  ;;  %v8385_v63 = vrot.slane %v23858_v4, 2 }
 0x63b   : > { %15638 = vmatprep.mubr.msk.bf16.mxu0 %vm16815_vm0, %v23510_v7 }
 0x63c   : > { %v6692_v43 = vpop.f32.mrf.mxu1  ;;  %v15336_v53 = vpop.f32.mrf.mxu0  ;;  %15479 = vmatmul.mubr.bf16.gmra.mxu1 %v23911_v46  ;;  %v23914_v46 = vld [vmem:[#allocation110_spill] sm:$0xff] }
 0x63d   : > { %v21644_v19 = vadd.f32 %v6692_v43, %v6495_v45  ;;  %15482 = vmatprep.mubr.msk.bf16.mxu1 %vm16815_vm0, %v23510_v7  ;;  %v8386_v45 = vsel %vm4136_vm7, %v21227_v37, %v8385_v63  ;;  %v8387_v37 = vrot.slane %v23900_v34, 2 }
 0x63e   : > { %v15180_v33 = vpop.f32.mrf.mxu1  ;;  %v21648_v54 = vpop.f32.mrf.mxu0 }
 0x63f   : > { %v6947_v33 = vadd.f32 %v23914_v46, %v21476_v11  ;;  %v6948_v11 = vadd.f32 %v21248_v59, %v21486_v39  ;;  %v23918_v46 = vld [vmem:[#allocation39_spill] sm:$0xff] }
 0x640   : > { %v6695_v56 = vpop.f32.mrf.mxu1  ;;  %v15337_v10 = vpop.f32.mrf.mxu0 }
 0x641   : > { %v21652_v40 = vadd.f32 %v6695_v56, %v6496_v47  ;;  %v23915_v47 = vld [vmem:[#allocation57_spill] sm:$0xff] }
 0x642   : > { %v15181_v20 = vpop.f32.mrf.mxu1  ;;  %v21654_v58 = vpop.f32.mrf.mxu0  ;;  %15639 = vmatmul.mubr.bf16.gmra.mxu0 %v21239_v22  ;;  %v23913_v22 = vshll.u32 %v23858_v4, 16 }
 0x643   : > { %15642 = vmatprep.mubr.msk.bf16.mxu0 %vm16815_vm0, %v23510_v7 }
 0x644   : > { %v7068_v24 = vpop.f32.mrf.mxu1  ;;  %v15408_v25 = vpop.f32.mrf.mxu0  ;;  %15483 = vmatmul.mubr.bf16.gmra.mxu1 %v23912_v28  ;;  %v7782_v27 = vrot.slane %v23913_v22, 1  ;;  %v8388_v22 = vsel %vm4136_vm7, %v8385_v63, %v8387_v37 }
 0x645   : > { %v21662_v21 = vadd.f32 %v7068_v24, %v6945_v13  ;;  %15486 = vmatprep.mubr.msk.bf16.mxu1 %vm16815_vm0, %v23510_v7  ;;  %v23916_v24 = vshll.u32 %v23900_v34, 16 }
 0x646   : > { %v15252_v50 = vpop.f32.mrf.mxu1  ;;  %v21667_v52 = vpop.f32.mrf.mxu0  ;;  %v7783_v42 = vsel %vm3261_vm3, %v23915_v47, %v7782_v27 }
 0x647   : > { %v7790_v25 = vrot.slane %v23916_v24, 1 }
 0x648   : > { %v7071_v32 = vpop.f32.mrf.mxu1  ;;  %v15409_v35 = vpop.f32.mrf.mxu0 }
 0x649   : > { %v21673_v36 = vadd.f32 %v7071_v32, %v6946_v15  ;;  %v23917_v32 = vshrl.u32 %v23858_v4, 16 }
 0x64a   : > { %v15253_v43 = vpop.f32.mrf.mxu1  ;;  %v21677_v53 = vpop.f32.mrf.mxu0  ;;  %15643 = vmatmul.mubr.bf16.gmra.mxu0 %v8386_v45 }
 0x64b   : > { %15646 = vmatprep.mubr.msk.bf16.mxu0 %vm16815_vm0, %v23510_v7  ;;  %v7786_v35 = vor.u32 %v23917_v32, %v7782_v27  ;;  %v23919_v27 = vld [vmem:[#allocation111_spill] sm:$0xff] }
 0x64c   : > { %v7076_v2 = vpop.f32.mrf.mxu1  ;;  %v15412_v56 = vpop.f32.mrf.mxu0  ;;  %15487 = vmatmul.mubr.bf16.gmra.mxu1 %v7783_v42  ;;  %v6950_v42 = vadd.f32 %v23919_v27, %v21506_v30 }
 0x64d   : > { %v21685_v10 = vadd.f32 %v7076_v2, %v6947_v33  ;;  %15490 = vmatprep.mubr.msk.bf16.mxu1 %vm16815_vm0, %v23510_v7  ;;  %v6949_v33 = vadd.f32 %v23918_v46, %v21496_v41  ;;  %v7791_v59 = vsel %vm3261_vm3, %v7786_v35, %v7790_v25  ;;  %v23922_v35 = vld [vmem:[#allocation41_spill] sm:$0xff] }
 0x64e   : > { %v15256_v20 = vpop.f32.mrf.mxu1  ;;  %v21690_v13 = vpop.f32.mrf.mxu0 }
 0x650   : > { %v7079_v28 = vpop.f32.mrf.mxu1  ;;  %v15413_v50 = vpop.f32.mrf.mxu0 }
 0x651   : > { %v21696_v15 = vadd.f32 %v7079_v28, %v6948_v11  ;;  %v23920_v11 = vld [vmem:[#allocation113_spill] sm:$0xff]  ;;  %v23921_v50 = vld [vmem:[#allocation31_spill] sm:$0xff] }
 0x652   : > { %v15257_v45 = vpop.f32.mrf.mxu1  ;;  %v21701_v43 = vpop.f32.mrf.mxu0  ;;  %15647 = vmatmul.mubr.bf16.gmra.mxu0 %v8388_v22  ;;  %v6951_v24 = vadd.f32 %v23920_v11, %v21520_v23  ;;  %v23925_v11 = vld [vmem:[#allocation40_spill] sm:$0xff] }
 0x653   : > { %15686 = vmatprep.mubr.msk.bf16.mxu0 %vm16815_vm0, %v23510_v7  ;;  %v6952_v45 = vadd.f32 %v23922_v35, %v21533_v0  ;;  %v23926_v35 = vld [vmem:[#allocation32_spill] sm:$0xff] }
 0x654   : > { %v7084_v34 = vpop.f32.mrf.mxu1  ;;  %v15416_v39 = vpop.f32.mrf.mxu0  ;;  %15491 = vmatmul.mubr.bf16.gmra.mxu1 %v7791_v59 }
 0x655   : > { %v21708_v47 = vadd.f32 %v7084_v34, %v6949_v33  ;;  %15562 = vmatprep.mubr.msk.bf16.mxu1 %vm16815_vm0, %v23510_v7  ;;  %v23923_v39 = vld [vmem:[#allocation42_spill] sm:$0xff] }
 0x656   : > { %v15260_v4 = vpop.f32.mrf.mxu1  ;;  %v21712_v63 = vpop.f32.mrf.mxu0 }
 0x657   : > { %v6953_v4 = vadd.f32 %v23923_v39, %v21548_v14 }
 0x658   : > { %v7087_v41 = vpop.f32.mrf.mxu1  ;;  %v15417_v2 = vpop.f32.mrf.mxu0 }
 0x659   : > { %v21716_v56 = vadd.f32 %v7087_v41, %v6950_v42  ;;  %v23924_v41 = vld [vmem:[#allocation17_spill] sm:$0xff] }
 0x65a   : > { %v15261_v37 = vpop.f32.mrf.mxu1  ;;  %v21718_v20 = vpop.f32.mrf.mxu0 }
 0x65c   : > { %v7092_v25 = vpop.f32.mrf.mxu1  ;;  %v15420_v28 = vpop.f32.mrf.mxu0  ;;  %15563 = vmatmul.mubr.bf16.vlgmr.msra.gmra.mxu1 %v23921_v50 }
 0x65d   : > { %v21723_v22 = vadd.f32 %v7092_v25, %v6951_v24  ;;  %15566 = vmatprep.mubr.msk.bf16.mxu1 %vm16815_vm0, %v23510_v7  ;;  %v6954_v24 = vadd.f32 %v23925_v11, %v21560_v29 }
 0x65e   : > { %v15264_v30 = vpop.f32.mrf.mxu1  ;;  %v21727_v32 = vpop.f32.mrf.mxu0 }
 0x660   : > { %v7095_v46 = vpop.f32.mrf.mxu1  ;;  %v15421_v33 = vpop.f32.mrf.mxu0 }
 0x661   : > { %v21731_v59 = vadd.f32 %v7095_v46, %v6952_v45  ;;  %v6955_v45 = vadd.f32 %v23926_v35, %v21577_v18 }
 0x662   : > { %v15265_v23 = vpop.f32.mrf.mxu1  ;;  %v21733_v34 = vpop.f32.mrf.mxu0 }
 0x663   : > { %v23927_v23 = vld [vmem:[#allocation90_spill] sm:$0xff] }
 0x664   : > { %v7100_v27 = vpop.f32.mrf.mxu1  ;;  %v15424_v42 = vpop.f32.mrf.mxu0  ;;  %15567 = vmatmul.mubr.bf16.gmra.mxu1 %v23924_v41 }
 0x665   : > { %v21738_v2 = vadd.f32 %v7100_v27, %v6953_v4  ;;  %15570 = vmatprep.mubr.msk.bf16.mxu1 %vm16815_vm0, %v23510_v7  ;;  %v23928_v27 = vld [vmem:[#allocation11_spill] sm:$0xff] }
 0x666   : > { %v15268_v0 = vpop.f32.mrf.mxu1  ;;  %v21742_v37 = vpop.f32.mrf.mxu0  ;;  %v6956_v42 = vadd.f32 %v23928_v27, %v21589_v16 }
 0x668   : > { %v7103_v25 = vpop.f32.mrf.mxu1  ;;  %v15425_v28 = vpop.f32.mrf.mxu0 }
 0x669   : > { %v21746_v50 = vadd.f32 %v7103_v25, %v6954_v24  ;;  %v23929_v25 = vld [vmem:[#allocation43_spill] sm:$0xff] }
 0x66a   : > { %v15269_v14 = vpop.f32.mrf.mxu1  ;;  %v21748_v30 = vpop.f32.mrf.mxu0  ;;  %v6957_v28 = vadd.f32 %v23929_v25, %v21603_v5 }
 0x66c   : > { %v7108_v46 = vpop.f32.mrf.mxu1  ;;  %v15428_v33 = vpop.f32.mrf.mxu0  ;;  %15571 = vmatmul.mubr.bf16.gmra.mxu1 %v23927_v23  ;;  %v23931_v23 = vld [vmem:[#allocation66_spill] sm:$0xff] }
 0x66d   : > { %v21753_v39 = vadd.f32 %v7108_v46, %v6955_v45  ;;  %15574 = vmatprep.mubr.msk.bf16.mxu1 %vm16815_vm0, %v23510_v7  ;;  %v23930_v45 = vld [vmem:[#allocation46_spill] sm:$0xff] }
 0x66e   : > { %v15272_v29 = vpop.f32.mrf.mxu1  ;;  %v21757_v4 = vpop.f32.mrf.mxu0 }
 0x66f   : > { %v6958_v29 = vadd.f32 %v23931_v23, %v21615_v1  ;;  %v6960_v23 = vadd.f32 %v21422_v17, %v21634_v57 }
 0x670   : > { %v7111_v41 = vpop.f32.mrf.mxu1  ;;  %v15429_v0 = vpop.f32.mrf.mxu0 }
 0x671   : > { %v21761_v11 = vadd.f32 %v7111_v41, %v6956_v42 }
 0x672   : > { %v15273_v18 = vpop.f32.mrf.mxu1  ;;  %v21763_v24 = vpop.f32.mrf.mxu0 }
 0x673   : > { %v23932_v18 = vld [vmem:[#allocation69_spill] sm:$0xff] }
 0x674   : > { %v7116_v14 = vpop.f32.mrf.mxu1  ;;  %v15432_v35 = vpop.f32.mrf.mxu0  ;;  %15575 = vmatmul.mubr.bf16.gmra.mxu1 %v23930_v45  ;;  %v6959_v25 = vadd.f32 %v23932_v18, %v21626_v38  ;;  %v23936_v18 = vld [vmem:[#allocation72_spill] sm:$0xff] }
 0x675   : > { %v21768_v46 = vadd.f32 %v7116_v14, %v6957_v28  ;;  %15578 = vmatprep.mubr.msk.bf16.mxu1 %vm16815_vm0, %v23510_v7  ;;  %v23933_v35 = vld [vmem:[#allocation48_spill] sm:$0xff] }
 0x676   : > { %v15276_v16 = vpop.f32.mrf.mxu1  ;;  %v21772_v33 = vpop.f32.mrf.mxu0 }
 0x678   : > { %v7119_v27 = vpop.f32.mrf.mxu1  ;;  %v15433_v42 = vpop.f32.mrf.mxu0 }
 0x679   : > { %v21776_v41 = vadd.f32 %v7119_v27, %v6958_v29 }
 0x67a   : > { %v15277_v5 = vpop.f32.mrf.mxu1  ;;  %v21778_v0 = vpop.f32.mrf.mxu0 }
 0x67c   : > { %v7124_v28 = vpop.f32.mrf.mxu1  ;;  %v15436_v14 = vpop.f32.mrf.mxu0  ;;  %15579 = vmatmul.mubr.bf16.gmra.mxu1 %v23933_v35  ;;  %v23937_v35 = vld [vmem:[#allocation93_spill] sm:$0xff] }
 0x67d   : > { %v21783_v45 = vadd.f32 %v7124_v28, %v6959_v25  ;;  %15582 = vmatprep.mubr.msk.bf16.mxu1 %vm16815_vm0, %v23510_v7  ;;  %v6961_v25 = vadd.f32 %v23936_v18, %v21644_v19 }
 0x67e   : > { %v15280_v1 = vpop.f32.mrf.mxu1  ;;  %v21787_v16 = vpop.f32.mrf.mxu0 }
 0x67f   : > { %23934 = vst [vmem:[#allocation37_spill] sm:$0xff] %v21787_v16  ;;  %v23941_v16 = vld [vmem:[#allocation62_spill] sm:$0xff] }
 0x680   : > { %v7127_v29 = vpop.f32.mrf.mxu1  ;;  %v15437_v27 = vpop.f32.mrf.mxu0 }
 0x681   : > { %v21791_v42 = vadd.f32 %v7127_v29, %v6960_v23  ;;  %v23938_v23 = vld [vmem:[#allocation44_spill] sm:$0xff] }
 0x682   : > { %v15281_v38 = vpop.f32.mrf.mxu1  ;;  %v21793_v5 = vpop.f32.mrf.mxu0  ;;  %v6962_v29 = vadd.f32 %v23938_v23, %v21652_v40 }
 0x683   : > { %23935 = vst [vmem:[#allocation38_spill] sm:$0xff] %v21793_v5 }
 0x684   : > { %v7132_v28 = vpop.f32.mrf.mxu1  ;;  %v15440_v14 = vpop.f32.mrf.mxu0  ;;  %15583 = vmatmul.mubr.bf16.gmra.mxu1 %v23937_v35 }
 0x685   : > { %v21798_v1 = vadd.f32 %v7132_v28, %v6961_v25  ;;  %15586 = vmatprep.mubr.msk.bf16.mxu1 %vm16815_vm0, %v23510_v7  ;;  %v23940_v14 = vld [vmem:[#allocation73_spill] sm:$0xff] }
 0x686   : > { %v15284_v17 = vpop.f32.mrf.mxu1  ;;  %v21802_v57 = vpop.f32.mrf.mxu0  ;;  %v7337_v25 = vadd.f32 %v23940_v14, %v21662_v21 }
 0x688   : > { %v7135_v27 = vpop.f32.mrf.mxu1  ;;  %v15441_v38 = vpop.f32.mrf.mxu0 }
 0x689   : > { %v21806_v5 = vadd.f32 %v7135_v27, %v6962_v29  ;;  %v23942_v29 = vld [vmem:[#allocation74_spill] sm:$0xff] }
 0x68a   : > { %v15285_v19 = vpop.f32.mrf.mxu1  ;;  %v21808_v18 = vpop.f32.mrf.mxu0  ;;  %v7338_v27 = vadd.f32 %v23942_v29, %v21673_v36 }
 0x68b   : > { %23939 = vst [vmem:[#allocation75_spill] sm:$0xff] %v21808_v18 }
 0x68c   : > { %v7460_v28 = vpop.f32.mrf.mxu1  ;;  %v15512_v35 = vpop.f32.mrf.mxu0  ;;  %15587 = vmatmul.mubr.bf16.gmra.mxu1 %v23941_v16  ;;  %v7339_v16 = vadd.f32 %v21468_v9, %v21685_v10 }
 0x68d   : > { %v21813_v17 = vadd.f32 %v7460_v28, %v7337_v25  ;;  %15590 = vmatprep.mubr.msk.bf16.mxu1 %vm16815_vm0, %v23510_v7  ;;  %v23943_v35 = vld [vmem:[#allocation60_spill] sm:$0xff] }
 0x68e   : > { %v15356_v40 = vpop.f32.mrf.mxu1  ;;  %v21817_v23 = vpop.f32.mrf.mxu0 }
 0x690   : > { %v7463_v38 = vpop.f32.mrf.mxu1  ;;  %v15513_v19 = vpop.f32.mrf.mxu0 }
 0x691   : > { %v21821_v18 = vadd.f32 %v7463_v38, %v7338_v27  ;;  %v7340_v27 = vadd.f32 %v21481_v60, %v21696_v15 }
 0x692   : > { %v15357_v21 = vpop.f32.mrf.mxu1  ;;  %v21823_v14 = vpop.f32.mrf.mxu0 }
 0x694   : > { %v7468_v25 = vpop.f32.mrf.mxu1  ;;  %v15516_v28 = vpop.f32.mrf.mxu0  ;;  %15591 = vmatmul.mubr.bf16.gmra.mxu1 %v23943_v35  ;;  %v23944_v35 = vld [vmem:[#allocation61_spill] sm:$0xff] }
 0x695   : > { %v21828_v40 = vadd.f32 %v7468_v25, %v7339_v16  ;;  %15594 = vmatprep.mubr.msk.bf16.mxu1 %vm16815_vm0, %v23510_v7  ;;  %v7341_v16 = vadd.f32 %v21489_v55, %v21708_v47 }
 0x696   : > { %v15360_v36 = vpop.f32.mrf.mxu1  ;;  %v21832_v29 = vpop.f32.mrf.mxu0 }
 0x698   : > { %v7471_v38 = vpop.f32.mrf.mxu1  ;;  %v15517_v19 = vpop.f32.mrf.mxu0 }
 0x699   : > { %v21836_v21 = vadd.f32 %v7471_v38, %v7340_v27  ;;  %v7342_v27 = vadd.f32 %v21501_v48, %v21716_v56  ;;  %v7344_v56 = vadd.f32 %v21527_v61, %v21731_v59  ;;  %v16586_v61 = vld [vmem:[%s23174_s4 + $0x78] sm:$0xff]  }
 0x69a   : > { %v15361_v9 = vpop.f32.mrf.mxu1  ;;  %v21838_v10 = vpop.f32.mrf.mxu0  ;;  %15651 = vmatpush3.bf16.msra.mxu1 %v16586_v61 }
 0x69b   : > { %15652 = vmatprep.subr.bf16.mxu1 %v23510_v7 }
 0x69c   : > { %v7476_v25 = vpop.f32.mrf.mxu1  ;;  %v15520_v28 = vpop.f32.mrf.mxu0  ;;  %15595 = vmatmul.mubr.bf16.gmra.mxu1 %v23944_v35 }
 0x69d   : > { %v21843_v36 = vadd.f32 %v7476_v25, %v7341_v16  ;;  %15666 = vmatprep.mubr.msk.bf16.mxu1 %vm16815_vm0, %v23510_v7  ;;  %v7343_v16 = vadd.f32 %v21512_v31, %v21723_v22 }
 0x69e   : > { %v15364_v60 = vpop.f32.mrf.mxu1  ;;  %v21847_v15 = vpop.f32.mrf.mxu0 }
 0x69f   : > { %23945 = vst [vmem:[#allocation45_spill] sm:$0xff] %v21847_v15  ;;  %v16584_v60 = vld [vmem:[%s23174_s4 + $0x38] sm:$0xff]  }
 0x6a0   : > { %v7479_v38 = vpop.f32.mrf.mxu1  ;;  %v15521_v19 = vpop.f32.mrf.mxu0  ;;  %15671 = vmatpush3.bf16.msra.mxu0 %v16584_v60 }
 0x6a1   : > { %v21851_v9 = vadd.f32 %v7479_v38, %v7342_v27  ;;  %15672 = vmatprep.subr.bf16.mxu0 %v23510_v7 }
 0x6a2   : > { %v15365_v55 = vpop.f32.mrf.mxu1  ;;  %v21853_v47 = vpop.f32.mrf.mxu0 }
 0x6a3   : > { %v7345_v55 = vadd.f32 %v21539_v3, %v21738_v2  ;;  %v7346_v3 = vadd.f32 %v21555_v62, %v21746_v50  ;;  %v7347_v62 = vadd.f32 %v21566_v51, %v21753_v39  ;;  %v16589_v51 = vld [vmem:[%s23174_s4 + $0x20] sm:$0xff]   ;;  %v16590_v39 = vld [vmem:[%s23174_s4 + $0x68] sm:$0xff]  }
 0x6a4   : > { %v7484_v25 = vpop.f32.mrf.mxu1  ;;  %v15524_v28 = vpop.f32.mrf.mxu0 }
 0x6a5   : > { %v21857_v35 = vadd.f32 %v7484_v25, %v7343_v16  ;;  %v16585_v25 = vld [vmem:[%s23174_s4 + $0x30] sm:$0xff]  }
 0x6a6   : > { %v15368_v15 = vpop.f32.mrf.mxu1  ;;  %v21862_v48 = vpop.f32.mrf.mxu0  ;;  %15673 = vmatpush3.bf16.msra.mxu0 %v16585_v25 }
 0x6a7   : > { %15674 = vmatprep.subr.bf16.mxu0 %v23510_v7 }
 0x6a8   : > { %v7487_v27 = vpop.f32.mrf.mxu1  ;;  %v15525_v38 = vpop.f32.mrf.mxu0 }
 0x6a9   : > { %v21867_v31 = vadd.f32 %v7487_v27, %v7344_v56 }
 0x6aa   : > { %v15369_v22 = vpop.f32.mrf.mxu1  ;;  %v21869_v19 = vpop.f32.mrf.mxu0 }
 0x6ac   : > { %v7492_v16 = vpop.f32.mrf.mxu1  ;;  %v15528_v15 = vpop.f32.mrf.mxu0 }
 0x6ad   : > { %v21879_v59 = vadd.f32 %v7492_v16, %v7345_v55  ;;  %v16587_v55 = vld [vmem:[%s23174_s4 + $0x28] sm:$0xff]   ;;  %v16588_v16 = vld [vmem:[%s23174_s4 + $0x70] sm:$0xff]  }
 0x6ae   : > { %v15372_v28 = vpop.f32.mrf.mxu1  ;;  %v21881_v60 = vpop.f32.mrf.mxu0  ;;  %15675 = vmatpush3.bf16.msra.mxu0 %v16587_v55  ;;  %15653 = vmatpush3.bf16.msra.mxu1 %v16588_v16 }
 0x6af   : > { %15676 = vmatprep.subr.bf16.mxu0 %v23510_v7  ;;  %15654 = vmatprep.subr.bf16.mxu1 %v23510_v7 }
 0x6b0   : > { %v7495_v2 = vpop.f32.mrf.mxu1  ;;  %v15529_v56 = vpop.f32.mrf.mxu0 }
 0x6b1   : > { %v21887_v27 = vadd.f32 %v7495_v2, %v7346_v3  ;;  %v7348_v3 = vadd.f32 %v21584_v49, %v21761_v11 }
 0x6b2   : > { %v15373_v38 = vpop.f32.mrf.mxu1  ;;  %v21889_v22 = vpop.f32.mrf.mxu0  ;;  %15677 = vmatpush3.bf16.msra.mxu0 %v16589_v51  ;;  %15655 = vmatpush3.bf16.msra.mxu1 %v16590_v39 }
 0x6b3   : > { %15678 = vmatprep.subr.bf16.mxu0 %v23510_v7  ;;  %15656 = vmatprep.subr.bf16.mxu1 %v23510_v7 }
 0x6b4   : > { %v7500_v50 = vpop.f32.mrf.mxu1  ;;  %v15532_v15 = vpop.f32.mrf.mxu0 }
 0x6b5   : > { %v21899_v25 = vadd.f32 %v7500_v50, %v7347_v62  ;;  %v7349_v62 = vadd.f32 %v21594_v6, %v21768_v46  ;;  %v16591_v15 = vld [vmem:[%s23174_s4 + $0x18] sm:$0xff]   ;;  %v7350_v46 = vadd.f32 %v21610_v44, %v21776_v41  ;;  %v7351_v41 = vadd.f32 %v21617_v12, %v21783_v45 }
 0x6b6   : > { %v15376_v61 = vpop.f32.mrf.mxu1  ;;  %v21903_v28 = vpop.f32.mrf.mxu0  ;;  %15679 = vmatpush3.bf16.msra.mxu0 %v16591_v15  ;;  %v7352_v45 = vadd.f32 %v21630_v8, %v21791_v42  ;;  %v7353_v42 = vadd.f32 %v21636_v26, %v21798_v1  ;;  %v7354_v26 = vadd.f32 %v21648_v54, %v21806_v5  ;;  %v7721_v54 = vadd.f32 %v21667_v52, %v21821_v18 }
 0x6b7   : > { %v16592_v61 = vld [vmem:[%s23174_s4 + $0x60] sm:$0xff]   ;;  %15680 = vmatprep.subr.bf16.mxu0 %v23510_v7  ;;  %v7723_v52 = vadd.f32 %v21690_v13, %v21836_v21  ;;  %v7725_v13 = vadd.f32 %v21712_v63, %v21851_v9  ;;  %v7727_v63 = vadd.f32 %v21727_v32, %v21867_v31  ;;  %v7729_v32 = vadd.f32 %v21742_v37, %v21887_v27 }
 0x6b8   : > { %v7503_v2 = vpop.f32.mrf.mxu1  ;;  %v15533_v56 = vpop.f32.mrf.mxu0  ;;  %15657 = vmatpush3.bf16.msra.mxu1 %v16592_v61 }
 0x6b9   : > { %v21907_v38 = vadd.f32 %v7503_v2, %v7348_v3  ;;  %v16593_v2 = vld [vmem:[%s23174_s4 + $0x10] sm:$0xff]   ;;  %v16594_v56 = vld [vmem:[%s23174_s4 + $0x58] sm:$0xff]   ;;  %15658 = vmatprep.subr.bf16.mxu1 %v23510_v7 }
 0x6ba   : > { %v15377_v55 = vpop.f32.mrf.mxu1  ;;  %v21915_v16 = vpop.f32.mrf.mxu0  ;;  %15681 = vmatpush3.bf16.msra.mxu0 %v16593_v2 }
 0x6bb   : > { %15682 = vmatprep.subr.bf16.mxu0 %v23510_v7  ;;  %v7731_v37 = vadd.f32 %v21757_v4, %v21907_v38 }
 0x6bc   : > { %v7508_v49 = vpop.f32.mrf.mxu1  ;;  %v15536_v11 = vpop.f32.mrf.mxu0  ;;  %15659 = vmatpush3.bf16.msra.mxu1 %v16594_v56 }
 0x6bd   : > { %v21921_v50 = vadd.f32 %v7508_v49, %v7349_v62  ;;  %v16595_v49 = vld [vmem:[%s23174_s4 + $0x8] sm:$0xff]   ;;  %v16596_v11 = vld [vmem:[%s23174_s4 + $0x50] sm:$0xff]   ;;  %15660 = vmatprep.subr.bf16.mxu1 %v23510_v7 }
 0x6be   : > { %v15380_v3 = vpop.f32.mrf.mxu1  ;;  %v21929_v6 = vpop.f32.mrf.mxu0  ;;  %15683 = vmatpush3.bf16.msra.mxu0 %v16595_v49  ;;  %v16600_v49 = vld [vmem:[%s23174_s4 + $0x40] sm:$0xff]  }
 0x6bf   : > { %15684 = vmatprep.subr.bf16.mxu0 %v23510_v7 }
 0x6c0   : > { %v7511_v51 = vpop.f32.mrf.mxu1  ;;  %v15537_v39 = vpop.f32.mrf.mxu0  ;;  %15661 = vmatpush3.bf16.msra.mxu1 %v16596_v11 }
 0x6c1   : > { %v21941_v55 = vadd.f32 %v7511_v51, %v7350_v46  ;;  %v16597_v51 = vld [vmem:[%s23174_s4] sm:$0xff]   ;;  %15662 = vmatprep.subr.bf16.mxu1 %v23510_v7  ;;  %v16598_v39 = vld [vmem:[%s23174_s4 + $0x48] sm:$0xff]  }
 0x6c2   : > { %v15381_v62 = vpop.f32.mrf.mxu1  ;;  %v21943_v44 = vpop.f32.mrf.mxu0  ;;  %15685 = vmatpush3.bf16.msra.mxu0 %v16597_v51 }
 0x6c3   : > { %15710 = vmatprep.subr.bf16.mxu0 %v23510_v7  ;;  %v7733_v4 = vadd.f32 %v21772_v33, %v21941_v55 }
 0x6c4   : > { %v7516_v15 = vpop.f32.mrf.mxu1  ;;  %v15540_v61 = vpop.f32.mrf.mxu0  ;;  %15663 = vmatpush3.bf16.msra.mxu1 %v16598_v39 }
 0x6c5   : > { %v21955_v3 = vadd.f32 %v7516_v15, %v7351_v41  ;;  %15664 = vmatprep.subr.bf16.mxu1 %v23510_v7 }
 0x6c6   : > { %v15384_v46 = vpop.f32.mrf.mxu1  ;;  %v21957_v12 = vpop.f32.mrf.mxu0 }
 0x6c8   : > { %v7519_v2 = vpop.f32.mrf.mxu1  ;;  %v15541_v56 = vpop.f32.mrf.mxu0  ;;  %15665 = vmatpush3.bf16.msra.mxu1 %v16600_v49 }
 0x6c9   : > { %v21969_v62 = vadd.f32 %v7519_v2, %v7352_v45  ;;  %15690 = vmatprep.subr.bf16.mxu1 %v23510_v7 }
 0x6ca   : > { %v15385_v41 = vpop.f32.mrf.mxu1  ;;  %v21971_v8 = vpop.f32.mrf.mxu0 }
 0x6cb   : > { %23946 = vst [vmem:[#allocation76_spill] sm:$0xff] %v21971_v8  ;;  %v7720_v41 = vadd.f32 %v21654_v58, %v21813_v17  ;;  %v7722_v58 = vadd.f32 %v21677_v53, %v21828_v40  ;;  %v7724_v53 = vadd.f32 %v21701_v43, %v21843_v36  ;;  %v7726_v43 = vadd.f32 %v21718_v20, %v21857_v35  ;;  %v23951_v8 = vld [vmem:[#allocation38_spill] sm:$0xff] }
 0x6cc   : > { %v7524_v11 = vpop.f32.mrf.mxu1  ;;  %v15544_v15 = vpop.f32.mrf.mxu0  ;;  %v7728_v20 = vadd.f32 %v21733_v34, %v21879_v59  ;;  %v7730_v34 = vadd.f32 %v21748_v30, %v21899_v25  ;;  %v7732_v30 = vadd.f32 %v21763_v24, %v21921_v50  ;;  %v7734_v24 = vadd.f32 %v21778_v0, %v21955_v3 }
 0x6cd   : > { %v21980_v61 = vadd.f32 %v7524_v11, %v7353_v42 }
 0x6ce   : > { %v15388_v46 = vpop.f32.mrf.mxu1  ;;  %v21982_v45 = vpop.f32.mrf.mxu0 }
 0x6cf   : > { %23947 = vst [vmem:[#allocation26_spill] sm:$0xff] %v21982_v45  ;;  %v7736_v0 = vadd.f32 %v23951_v8, %v21980_v61  ;;  %v22102_v61 = vld [vmem:[%s23177_s7 + $0x1] ss:$0 sm:$0xff] }
 0x6d0   : > { %v7527_v1 = vpop.f32.mrf.mxu1  ;;  %v15545_v2 = vpop.f32.mrf.mxu0 }
 0x6d1   : > { %v21987_v56 = vadd.f32 %v7527_v1, %v7354_v26 }
 0x6d2   : > { %v15389_v51 = vpop.f32.mrf.mxu1  ;;  %v21989_v39 = vpop.f32.mrf.mxu0 }
 0x6d4   : > { %v7883_v42 = vpop.f32.mrf.mxu1  ;;  %v15616_v11 = vpop.f32.mrf.mxu0 }
 0x6d5   : > { %v21993_v15 = vadd.f32 %v7883_v42, %v7720_v41 }
 0x6d6   : > { %v15460_v46 = vpop.f32.mrf.mxu1  ;;  %v21995_v45 = vpop.f32.mrf.mxu0 }
 0x6d8   : > { %v7886_v5 = vpop.f32.mrf.mxu1  ;;  %v15617_v49 = vpop.f32.mrf.mxu0 }
 0x6d9   : > { %v21999_v26 = vadd.f32 %v7886_v5, %v7721_v54 }
 0x6da   : > { %v15461_v1 = vpop.f32.mrf.mxu1  ;;  %v22001_v2 = vpop.f32.mrf.mxu0 }
 0x6dc   : > { %v7891_v17 = vpop.f32.mrf.mxu1  ;;  %v15620_v51 = vpop.f32.mrf.mxu0 }
 0x6dd   : > { %v22005_v41 = vadd.f32 %v7891_v17, %v7722_v58 }
 0x6de   : > { %v15464_v42 = vpop.f32.mrf.mxu1  ;;  %v22007_v11 = vpop.f32.mrf.mxu0 }
 0x6e0   : > { %v7894_v18 = vpop.f32.mrf.mxu1  ;;  %v15621_v46 = vpop.f32.mrf.mxu0 }
 0x6e1   : > { %v22011_v54 = vadd.f32 %v7894_v18, %v7723_v52 }
 0x6e2   : > { %v15465_v5 = vpop.f32.mrf.mxu1  ;;  %v22013_v49 = vpop.f32.mrf.mxu0 }
 0x6e4   : > { %v7899_v40 = vpop.f32.mrf.mxu1  ;;  %v15624_v1 = vpop.f32.mrf.mxu0 }
 0x6e5   : > { %v22017_v58 = vadd.f32 %v7899_v40, %v7724_v53 }
 0x6e6   : > { %v15468_v17 = vpop.f32.mrf.mxu1  ;;  %v22019_v51 = vpop.f32.mrf.mxu0 }
 0x6e8   : > { %v7902_v21 = vpop.f32.mrf.mxu1  ;;  %v15625_v42 = vpop.f32.mrf.mxu0 }
 0x6e9   : > { %v22023_v52 = vadd.f32 %v7902_v21, %v7725_v13 }
 0x6ea   : > { %v15469_v18 = vpop.f32.mrf.mxu1  ;;  %v22025_v46 = vpop.f32.mrf.mxu0 }
 0x6ec   : > { %v7907_v36 = vpop.f32.mrf.mxu1  ;;  %v15628_v5 = vpop.f32.mrf.mxu0 }
 0x6ed   : > { %v22029_v53 = vadd.f32 %v7907_v36, %v7726_v43 }
 0x6ee   : > { %v15472_v40 = vpop.f32.mrf.mxu1  ;;  %v22031_v1 = vpop.f32.mrf.mxu0 }
 0x6f0   : > { %v7910_v9 = vpop.f32.mrf.mxu1  ;;  %v15629_v17 = vpop.f32.mrf.mxu0 }
 0x6f1   : > { %v22035_v13 = vadd.f32 %v7910_v9, %v7727_v63 }
 0x6f2   : > { %v15473_v21 = vpop.f32.mrf.mxu1  ;;  %v22037_v42 = vpop.f32.mrf.mxu0 }
 0x6f4   : > { %v7915_v35 = vpop.f32.mrf.mxu1  ;;  %v15632_v18 = vpop.f32.mrf.mxu0 }
 0x6f5   : > { %v22041_v43 = vadd.f32 %v7915_v35, %v7728_v20 }
 0x6f6   : > { %v15476_v36 = vpop.f32.mrf.mxu1  ;;  %v22043_v5 = vpop.f32.mrf.mxu0 }
 0x6f8   : > { %v7918_v31 = vpop.f32.mrf.mxu1  ;;  %v15633_v40 = vpop.f32.mrf.mxu0 }
 0x6f9   : > { %v22047_v63 = vadd.f32 %v7918_v31, %v7729_v32 }
 0x6fa   : > { %v15477_v9 = vpop.f32.mrf.mxu1  ;;  %v22049_v17 = vpop.f32.mrf.mxu0 }
 0x6fc   : > { %v7923_v59 = vpop.f32.mrf.mxu1  ;;  %v15636_v21 = vpop.f32.mrf.mxu0 }
 0x6fd   : > { %v22053_v20 = vadd.f32 %v7923_v59, %v7730_v34 }
 0x6fe   : > { %v15480_v35 = vpop.f32.mrf.mxu1  ;;  %v22055_v18 = vpop.f32.mrf.mxu0 }
 0x700   : > { %v7926_v27 = vpop.f32.mrf.mxu1  ;;  %v15637_v36 = vpop.f32.mrf.mxu0 }
 0x701   : > { %v22059_v32 = vadd.f32 %v7926_v27, %v7731_v37 }
 0x702   : > { %v15481_v31 = vpop.f32.mrf.mxu1  ;;  %v22061_v40 = vpop.f32.mrf.mxu0 }
 0x704   : > { %v7931_v25 = vpop.f32.mrf.mxu1  ;;  %v15640_v9 = vpop.f32.mrf.mxu0 }
 0x705   : > { %v22065_v34 = vadd.f32 %v7931_v25, %v7732_v30 }
 0x706   : > { %v15484_v59 = vpop.f32.mrf.mxu1  ;;  %v22067_v21 = vpop.f32.mrf.mxu0 }
 0x707   : > { %v23949_v59 = vld [vmem:[#allocation37_spill] sm:$0xff] }
 0x708   : > { %v7934_v38 = vpop.f32.mrf.mxu1  ;;  %v15641_v35 = vpop.f32.mrf.mxu0  ;;  %v7735_v33 = vadd.f32 %v23949_v59, %v21969_v62  ;;  %v7737_v62 = vadd.f32 %v21802_v57, %v21987_v56  ;;  %v8151_v57 = vadd.f32 %v21817_v23, %v21999_v26  ;;  %v8153_v23 = vadd.f32 %v21832_v29, %v22011_v54 }
 0x709   : > { %v22071_v37 = vadd.f32 %v7934_v38, %v7733_v4 }
 0x70a   : > { %v15485_v27 = vpop.f32.mrf.mxu1  ;;  %v22073_v36 = vpop.f32.mrf.mxu0 }
 0x70c   : > { %v7939_v50 = vpop.f32.mrf.mxu1  ;;  %v15644_v31 = vpop.f32.mrf.mxu0 }
 0x70d   : > { %v22077_v30 = vadd.f32 %v7939_v50, %v7734_v24 }
 0x70e   : > { %v15488_v25 = vpop.f32.mrf.mxu1  ;;  %v22079_v9 = vpop.f32.mrf.mxu0 }
 0x70f   : > { %23948 = vst [vmem:[#allocation59_spill] sm:$0xff] %v22079_v9 }
 0x710   : > { %v7942_v55 = vpop.f32.mrf.mxu1  ;;  %v15645_v35 = vpop.f32.mrf.mxu0 }
 0x711   : > { %v22083_v4 = vadd.f32 %v7942_v55, %v7735_v33 }
 0x712   : > { %v15489_v38 = vpop.f32.mrf.mxu1  ;;  %v22085_v27 = vpop.f32.mrf.mxu0 }
 0x713   : > { %23950 = vst [vmem:[#allocation47_spill] sm:$0xff] %v22085_v27  ;;  %v23952_v38 = vld [vmem:[#allocation75_spill] sm:$0xff] }
 0x714   : > { %v7947_v3 = vpop.f32.mrf.mxu1  ;;  %v15648_v31 = vpop.f32.mrf.mxu0  ;;  %v8150_v27 = vadd.f32 %v23952_v38, %v21993_v15 }
 0x715   : > { %v22089_v24 = vadd.f32 %v7947_v3, %v7736_v0 }
 0x716   : > { %v15492_v50 = vpop.f32.mrf.mxu1  ;;  %v22091_v25 = vpop.f32.mrf.mxu0 }
 0x718   : > { %v7950_v59 = vpop.f32.mrf.mxu1  ;;  %v15649_v35 = vpop.f32.mrf.mxu0 }
 0x719   : > { %v22095_v33 = vadd.f32 %v7950_v59, %v7737_v62 }
 0x71a   : > { %v15493_v55 = vpop.f32.mrf.mxu1 }
 0x71c   : > { %v8279_v9 = vpop.f32.mrf.mxu1 }
 0x71d   : > { %v8350_v8 = vadd.f32 %v8279_v9, %v8150_v27  ;;  %v8152_v9 = vadd.f32 %v21823_v14, %v22005_v41 }
 0x71e   : > { %v15564_v0 = vpop.f32.mrf.mxu1 }
 0x71f   : > { %v8544_v3 = vadd.f32 %v21989_v39, %v8350_v8 }
 0x720   : > { %v8282_v56 = vpop.f32.mrf.mxu1 }
 0x721   : > { %v8566_v31 = vadd.f32 %v22102_v61, %v8544_v3  ;;  %v8351_v50 = vadd.f32 %v8282_v56, %v8151_v57 }
 0x722   : > { %v15565_v62 = vpop.f32.mrf.mxu1 }
 0x723   : > { %v8545_v15 = vadd.f32 %v21995_v45, %v8351_v50  ;;  %v8584_v59 = vmax.f32 %v8566_v31, 0.0  ;;  %v8154_v50 = vadd.f32 %v21838_v10, %v22017_v58 }
 0x724   : > { %v8287_v27 = vpop.f32.mrf.mxu1 }
 0x725   : > { %v8567_v35 = vadd.f32 %v22102_v61, %v8545_v15  ;;  %v8352_v55 = vadd.f32 %v8287_v27, %v8152_v9  ;;  %v8621_v0 = vrot.slane %v8584_v59, 1 }
 0x726   : > { %v15568_v38 = vpop.f32.mrf.mxu1 }
 0x727   : > { %v8585_v39 = vmax.f32 %v8567_v35, 0.0  ;;  %v8546_v8 = vadd.f32 %v22001_v2, %v8352_v55  ;;  %v23953_v38 = vld [vmem:[#allocation45_spill] sm:$0xff] }
 0x728   : > { %v8290_v26 = vpop.f32.mrf.mxu1 }
 0x729   : > { %v8622_v3 = vrot.slane %v8585_v39, 1  ;;  %v8568_v45 = vadd.f32 %v22102_v61, %v8546_v8  ;;  %v8353_v57 = vadd.f32 %v8290_v26, %v8153_v23  ;;  %v8155_v8 = vadd.f32 %v23953_v38, %v22023_v52 }
 0x72a   : > { %v15569_v56 = vpop.f32.mrf.mxu1 }
 0x72b   : > { %v8623_v14 = vsel %vm3680_vm2, %v8621_v0, %v8622_v3  ;;  %v8586_v41 = vmax.f32 %v8568_v45, 0.0  ;;  %v8547_v31 = vadd.f32 %v22007_v11, %v8353_v57 }
 0x72c   : > { %v8674_v62 = vmax.f32 %v8584_v59, %v8623_v14  ;;  %v8295_v2 = vpop.f32.mrf.mxu1 }
 0x72d   : > { %v8624_v15 = vrot.slane %v8586_v41, 1  ;;  %v8569_v29 = vadd.f32 %v22102_v61, %v8547_v31  ;;  %v8354_v54 = vadd.f32 %v8295_v2, %v8154_v50 }
 0x72e   : > { %v15572_v9 = vpop.f32.mrf.mxu1 }
 0x72f   : > { %v8625_v27 = vsel %vm3680_vm2, %v8622_v3, %v8624_v15  ;;  %v8587_v35 = vmax.f32 %v8569_v29, 0.0  ;;  %v8548_v55 = vadd.f32 %v22013_v49, %v8354_v54  ;;  %v8156_v3 = vadd.f32 %v21853_v47, %v22029_v53 }
 0x730   : > { %v8675_v23 = vmax.f32 %v8585_v39, %v8625_v27  ;;  %v8298_v11 = vpop.f32.mrf.mxu1 }
 0x731   : > { %v8626_v26 = vrot.slane %v8587_v35, 1  ;;  %v8570_v10 = vadd.f32 %v22102_v61, %v8548_v55  ;;  %v8355_v58 = vadd.f32 %v8298_v11, %v8155_v8 }
 0x732   : > { %v15573_v59 = vpop.f32.mrf.mxu1  ;;  %v8710_v31 = vrot.slane %v8675_v23, 6 }
 0x733   : > { %v8627_v0 = vsel %vm3680_vm2, %v8624_v15, %v8626_v26  ;;  %v8588_v45 = vmax.f32 %v8570_v10, 0.0  ;;  %v8549_v57 = vadd.f32 %v22019_v51, %v8355_v58  ;;  %v8157_v51 = vadd.f32 %v21862_v48, %v22035_v13  ;;  %v16599_v48 = vld [vmem:[%s23174_s4 + $0xf8] sm:$0xff]  }
 0x734   : > { %v8676_v56 = vmax.f32 %v8586_v41, %v8627_v0  ;;  %v8303_v49 = vpop.f32.mrf.mxu1 }
 0x735   : > { %v8628_v14 = vrot.slane %v8588_v45, 1  ;;  %v8571_v52 = vadd.f32 %v22102_v61, %v8549_v57  ;;  %v8356_v39 = vadd.f32 %v8303_v49, %v8156_v3 }
 0x736   : > { %v8711_v50 = vrot.slane %v8676_v56, 6  ;;  %v15576_v2 = vpop.f32.mrf.mxu1  ;;  %v8159_v56 = vadd.f32 %v21881_v60, %v22047_v63  ;;  %v16602_v63 = vld [vmem:[%s23174_s4 + $0xb8] sm:$0xff]  }
 0x737   : > { %v8629_v29 = vsel %vm3680_vm2, %v8626_v26, %v8628_v14  ;;  %v8589_v54 = vmax.f32 %v8571_v52, 0.0  ;;  %v8550_v15 = vadd.f32 %v22025_v46, %v8356_v39  ;;  %v8158_v26 = vadd.f32 %v21869_v19, %v22041_v43 }
 0x738   : > { %v8712_v47 = vsel %vm8709_vm9, %v8710_v31, %v8711_v50  ;;  %v22136_v53 = vmax.f32 %v8587_v35, %v8629_v29  ;;  %v8306_v41 = vpop.f32.mrf.mxu1 }
 0x739   : > { %v8751_v9 = vmax.f32 %v8674_v62, %v8712_v47  ;;  %v8630_v27 = vrot.slane %v8589_v54, 1  ;;  %v8572_v55 = vadd.f32 %v22102_v61, %v8550_v15  ;;  %v8357_v38 = vadd.f32 %v8306_v41, %v8157_v51 }
 0x73a   : > { %v8713_v8 = vrot.slane %v22136_v53, 6  ;;  %v15577_v11 = vpop.f32.mrf.mxu1 }
 0x73b   : > { %v8631_v46 = vsel %vm3680_vm2, %v8628_v14, %v8630_v27  ;;  %v8590_v13 = vmax.f32 %v8572_v55, 0.0  ;;  %v8551_v35 = vadd.f32 %v22031_v1, %v8357_v38  ;;  %v8763_v62 = vpack.c.bf16 %v8751_v9, %v8751_v9  ;;  %v16601_v1 = vld [vmem:[%s23174_s4 + $0xf0] sm:$0xff]  }
 0x73c   : > { %v8714_v10 = vsel %vm8709_vm9, %v8711_v50, %v8713_v8  ;;  %v22148_v58 = vmax.f32 %v8588_v45, %v8631_v46  ;;  %v8311_v59 = vpop.f32.mrf.mxu1  ;;  %v16604_v38 = vld [vmem:[%s23174_s4 + $0xb0] sm:$0xff]   ;;  %v16605_v46 = vld [vmem:[%s23174_s4 + $0xe0] sm:$0xff]  }
 0x73d   : > { %v22150_v0 = vmax.f32 %v8675_v23, %v8714_v10  ;;  %v8632_v57 = vrot.slane %v8590_v13, 1  ;;  %v8573_v19 = vadd.f32 %v22102_v61, %v8551_v35  ;;  %v8358_v43 = vadd.f32 %v8311_v59, %v8158_v26  ;;  %15687 = vmatmul.mubr.bf16.vlgmr.msra.gmra.mxu0 %v8763_v62 }
 0x73e   : > { %15711 = vmatpush3.bf16.msra.mxu0 %v16599_v48  ;;  %v15580_v3 = vpop.f32.mrf.mxu1  ;;  %15726 = vmatprep.mubr.msk.bf16.mxu0 %vm16815_vm0, %v23510_v7  ;;  %v8161_v10 = vadd.f32 %v21903_v28, %v22059_v32 }
 0x73f   : > { %v8633_v23 = vsel %vm3680_vm2, %v8630_v27, %v8632_v57  ;;  %v8591_v45 = vmax.f32 %v8573_v19, 0.0  ;;  %v8552_v49 = vadd.f32 %v22037_v42, %v8358_v43  ;;  %15712 = vmatprep.subr.bf16.mxu0 %v23510_v7  ;;  %v22164_v14 = vpack.c.bf16 %v22150_v0, %v8751_v9  ;;  %v16606_v19 = vld [vmem:[%s23174_s4 + $0xa8] sm:$0xff]  }
 0x740   : > { %v22166_v52 = vmax.f32 %v8589_v54, %v8633_v23  ;;  %v8314_v60 = vpop.f32.mrf.mxu1  ;;  %v8715_v42 = vrot.slane %v22148_v58, 6  ;;  %v16603_v54 = vld [vmem:[%s23174_s4 + $0xe8] sm:$0xff]   ;;  %v8160_v9 = vadd.f32 %v21889_v22, %v22053_v20  ;;  %v16607_v23 = vld [vmem:[%s23174_s4 + $0xd8] sm:$0xff]  }
 0x741   : > { %v8634_v39 = vrot.slane %v8591_v45, 1  ;;  %v8574_v31 = vadd.f32 %v22102_v61, %v8552_v49  ;;  %v8359_v50 = vadd.f32 %v8314_v60, %v8159_v56  ;;  %v8799_v2 = vrot.slane %v22164_v14, 1 }
 0x742   : > { %v8716_v29 = vrot.slane %v22166_v52, 6  ;;  %15713 = vmatpush3.bf16.msra.mxu0 %v16601_v1  ;;  %v15581_v15 = vpop.f32.mrf.mxu1  ;;  %v8162_v1 = vadd.f32 %v21915_v16, %v22065_v34  ;;  %v16608_v16 = vld [vmem:[%s23174_s4 + $0xa0] sm:$0xff]  }
 0x743   : > { %v8635_v51 = vsel %vm3680_vm2, %v8632_v57, %v8634_v39  ;;  %v8592_v47 = vmax.f32 %v8574_v31, 0.0  ;;  %v8553_v41 = vadd.f32 %v22043_v5, %v8359_v50  ;;  %15667 = vmatmul.mubr.bf16.vlgmr.msra.gmra.mxu1 %v8799_v2  ;;  %15714 = vmatprep.subr.bf16.mxu0 %v23510_v7 }
 0x744   : > { %v8680_v27 = vmax.f32 %v8590_v13, %v8635_v51  ;;  %15691 = vmatpush3.bf16.msra.mxu1 %v16602_v63  ;;  %v8319_v55 = vpop.f32.mrf.mxu1  ;;  %15706 = vmatprep.mubr.msk.bf16.mxu1 %vm16815_vm0, %v23510_v7  ;;  %v8717_v8 = vsel %vm8709_vm9, %v8715_v42, %v8716_v29  ;;  %v16609_v42 = vld [vmem:[%s23174_s4 + $0xd0] sm:$0xff]  }
 0x745   : > { %v8636_v11 = vrot.slane %v8592_v47, 1  ;;  %v8575_v5 = vadd.f32 %v22102_v61, %v8553_v41  ;;  %v8360_v26 = vadd.f32 %v8319_v55, %v8160_v9  ;;  %15692 = vmatprep.subr.bf16.mxu1 %v23510_v7  ;;  %v8753_v22 = vmax.f32 %v22136_v53, %v8717_v8 }
 0x746   : > { %v8718_v20 = vrot.slane %v8680_v27, 6  ;;  %15715 = vmatpush3.bf16.msra.mxu0 %v16603_v54  ;;  %v15584_v48 = vpop.f32.mrf.mxu1  ;;  %v16610_v27 = vld [vmem:[%s23174_s4 + $0x98] sm:$0xff]  }
 0x747   : > { %v8637_v13 = vsel %vm3680_vm2, %v8634_v39, %v8636_v11  ;;  %v8593_v35 = vmax.f32 %v8575_v5, 0.0  ;;  %v8554_v62 = vadd.f32 %v22049_v17, %v8360_v26  ;;  %15716 = vmatprep.subr.bf16.mxu0 %v23510_v7 }
 0x748   : > { %v8719_v59 = vsel %vm8709_vm9, %v8716_v29, %v8718_v20  ;;  %v22201_v53 = vmax.f32 %v8591_v45, %v8637_v13  ;;  %15693 = vmatpush3.bf16.msra.mxu1 %v16604_v38  ;;  %v8322_v57 = vpop.f32.mrf.mxu1 }
 0x749   : > { %v8638_v43 = vrot.slane %v8593_v35, 1  ;;  %v8576_v3 = vadd.f32 %v22102_v61, %v8554_v62  ;;  %v8361_v56 = vadd.f32 %v8322_v57, %v8161_v10  ;;  %15694 = vmatprep.subr.bf16.mxu1 %v23510_v7  ;;  %v22209_v28 = vmax.f32 %v22148_v58, %v8719_v59  ;;  %v16613_v57 = vld [vmem:[%s23174_s4 + $0xc0] sm:$0xff]  }
 0x74a   : > { %v8720_v17 = vrot.slane %v22201_v53, 6  ;;  %15717 = vmatpush3.bf16.msra.mxu0 %v16605_v46  ;;  %v15585_v32 = vpop.f32.mrf.mxu1 }
 0x74b   : > { %v8639_v45 = vsel %vm3680_vm2, %v8636_v11, %v8638_v43  ;;  %v8594_v49 = vmax.f32 %v8576_v3, 0.0  ;;  %v8555_v60 = vadd.f32 %v22055_v18, %v8361_v56  ;;  %15718 = vmatprep.subr.bf16.mxu0 %v23510_v7  ;;  %v22221_v58 = vpack.c.bf16 %v22209_v28, %v8753_v22  ;;  %v16611_v11 = vld [vmem:[%s23174_s4 + $0xc8] sm:$0xff]  }
 0x74c   : > { %v22223_v63 = vmax.f32 %v8592_v47, %v8639_v45  ;;  %15695 = vmatpush3.bf16.msra.mxu1 %v16606_v19  ;;  %v8327_v39 = vpop.f32.mrf.mxu1  ;;  %v8721_v34 = vsel %vm8709_vm9, %v8718_v20, %v8720_v17  ;;  %v8163_v47 = vadd.f32 %v21929_v6, %v22071_v37  ;;  %v8164_v20 = vadd.f32 %v21943_v44, %v22077_v30 }
 0x74d   : > { %v8640_v31 = vrot.slane %v8594_v49, 1  ;;  %v8577_v50 = vadd.f32 %v22102_v61, %v8555_v60  ;;  %v8362_v2 = vadd.f32 %v8327_v39, %v8162_v1  ;;  %15696 = vmatprep.subr.bf16.mxu1 %v23510_v7  ;;  %v8755_v29 = vmax.f32 %v22166_v52, %v8721_v34  ;;  %v16614_v1 = vld [vmem:[%s23174_s4 + $0x88] sm:$0xff]  }
 0x74e   : > { %15719 = vmatpush3.bf16.msra.mxu0 %v16607_v23  ;;  %v15588_v18 = vpop.f32.mrf.mxu1  ;;  %v8722_v6 = vrot.slane %v22223_v63, 6  ;;  %v8165_v56 = vadd.f32 %v21957_v12, %v22083_v4  ;;  %v23954_v4 = vld [vmem:[#allocation76_spill] sm:$0xff]  ;;  %v9102_v39 = vrot.slane %v22164_v14, 3 }
 0x74f   : > { %v8641_v15 = vsel %vm3680_vm2, %v8638_v43, %v8640_v31  ;;  %v8595_v54 = vmax.f32 %v8577_v50, 0.0  ;;  %v8556_v51 = vadd.f32 %v22061_v40, %v8362_v2  ;;  %15720 = vmatprep.subr.bf16.mxu0 %v23510_v7  ;;  %v22244_v55 = vpack.c.bf16 %v8755_v29, %v22209_v28  ;;  %v23955_v50 = vld [vmem:[#allocation59_spill] sm:$0xff] }
 0x750   : > { %v8683_v41 = vmax.f32 %v8593_v35, %v8641_v15  ;;  %15697 = vmatpush3.bf16.msra.mxu1 %v16608_v16  ;;  %v8330_v9 = vpop.f32.mrf.mxu1  ;;  %v16612_v35 = vld [vmem:[%s23174_s4 + $0x90] sm:$0xff]   ;;  %v8166_v60 = vadd.f32 %v23954_v4, %v22089_v24  ;;  %v16615_v16 = vld [vmem:[%s23174_s4 + $0x178] sm:$0xff]  }
 0x751   : > { %v8642_v52 = vrot.slane %v8595_v54, 1  ;;  %v8578_v38 = vadd.f32 %v22102_v61, %v8556_v51  ;;  %v8363_v8 = vadd.f32 %v8330_v9, %v8163_v47  ;;  %15698 = vmatprep.subr.bf16.mxu1 %v23510_v7  ;;  %v16617_v9 = vld [vmem:[%s23174_s4 + $0x170] sm:$0xff]  }
 0x752   : > { %v8723_v40 = vrot.slane %v8683_v41, 6  ;;  %15721 = vmatpush3.bf16.msra.mxu0 %v16609_v42  ;;  %v15589_v37 = vpop.f32.mrf.mxu1  ;;  %v16616_v42 = vld [vmem:[%s23174_s4 + $0x80] sm:$0xff]  }
 0x753   : > { %v8643_v5 = vsel %vm3680_vm2, %v8640_v31, %v8642_v52  ;;  %v8596_v26 = vmax.f32 %v8578_v38, 0.0  ;;  %v8557_v22 = vadd.f32 %v22067_v21, %v8363_v8  ;;  %15722 = vmatprep.subr.bf16.mxu0 %v23510_v7  ;;  %v23956_v38 = vld [vmem:[#allocation47_spill] sm:$0xff] }
 0x754   : > { %v8724_v48 = vsel %vm8709_vm9, %v8722_v6, %v8723_v40  ;;  %v22258_v46 = vmax.f32 %v8594_v49, %v8643_v5  ;;  %15699 = vmatpush3.bf16.msra.mxu1 %v16610_v27  ;;  %v8335_v13 = vpop.f32.mrf.mxu1  ;;  %v23957_v6 = vld [vmem:[#allocation26_spill] sm:$0xff]  ;;  %v8994_v5 = vrot.slane %v22164_v14, 2  ;;  %v16619_v14 = vld [vmem:[%s23174_s4 + $0x168] sm:$0xff]  }
 0x755   : > { %v8644_v62 = vrot.slane %v8596_v26, 1  ;;  %v8579_v10 = vadd.f32 %v22102_v61, %v8557_v22  ;;  %v8364_v59 = vadd.f32 %v8335_v13, %v8164_v20  ;;  %15700 = vmatprep.subr.bf16.mxu1 %v23510_v7  ;;  %v22266_v44 = vmax.f32 %v22201_v53, %v8724_v48 }
 0x756   : > { %v8725_v21 = vrot.slane %v22258_v46, 6  ;;  %15723 = vmatpush3.bf16.msra.mxu0 %v16611_v11  ;;  %v15592_v30 = vpop.f32.mrf.mxu1 }
 0x757   : > { %v8645_v19 = vsel %vm3680_vm2, %v8642_v52, %v8644_v62  ;;  %v8597_v43 = vmax.f32 %v8579_v10, 0.0  ;;  %v8558_v3 = vadd.f32 %v22073_v36, %v8364_v59  ;;  %15724 = vmatprep.subr.bf16.mxu0 %v23510_v7 }
 0x758   : > { %v8726_v53 = vsel %vm8709_vm9, %v8723_v40, %v8725_v21  ;;  %v22278_v17 = vmax.f32 %v8595_v54, %v8645_v19  ;;  %15701 = vmatpush3.bf16.msra.mxu1 %v16612_v35  ;;  %v8338_v32 = vpop.f32.mrf.mxu1  ;;  %v8167_v40 = vadd.f32 %v23957_v6, %v22095_v33  ;;  %v16633_v6 = vld [vmem:[%s23174_s4 + $0x1f0] sm:$0xff]  }
 0x759   : > { %v8646_v23 = vrot.slane %v8597_v43, 1  ;;  %v8580_v45 = vadd.f32 %v22102_v61, %v8558_v3  ;;  %v8365_v49 = vadd.f32 %v8338_v32, %v8165_v56  ;;  %15702 = vmatprep.subr.bf16.mxu1 %v23510_v7  ;;  %v22286_v12 = vmax.f32 %v22223_v63, %v8726_v53  ;;  %v16621_v56 = vld [vmem:[%s23174_s4 + $0x160] sm:$0xff]  }
 0x75a   : > { %15725 = vmatpush3.bf16.msra.mxu0 %v16613_v57  ;;  %v15593_v36 = vpop.f32.mrf.mxu1  ;;  %v8727_v51 = vrot.slane %v22278_v17, 6 }
 0x75b   : > { %v8647_v34 = vsel %vm3680_vm2, %v8644_v62, %v8646_v23  ;;  %v8598_v31 = vmax.f32 %v8580_v45, 0.0  ;;  %v8559_v2 = vadd.f32 %v23955_v50, %v8365_v49  ;;  %15750 = vmatprep.subr.bf16.mxu0 %v23510_v7  ;;  %v22299_v63 = vpack.c.bf16 %v22286_v12, %v22266_v44  ;;  %v16623_v36 = vld [vmem:[%s23174_s4 + $0x158] sm:$0xff]  }
 0x75c   : > { %v22301_v18 = vmax.f32 %v8596_v26, %v8647_v34  ;;  %15703 = vmatpush3.bf16.msra.mxu1 %v16614_v1  ;;  %v8343_v24 = vpop.f32.mrf.mxu1  ;;  %v16618_v26 = vld [vmem:[%s23174_s4 + $0x138] sm:$0xff]   ;;  %v16624_v34 = vld [vmem:[%s23174_s4 + $0x120] sm:$0xff]  }
 0x75d   : > { %v8648_v29 = vrot.slane %v8598_v31, 1  ;;  %v8581_v15 = vadd.f32 %v22102_v61, %v8559_v2  ;;  %v8366_v54 = vadd.f32 %v8343_v24, %v8166_v60  ;;  %15727 = vmatmul.mubr.bf16.vlgmr.msra.gmra.mxu0 %v9102_v39  ;;  %15704 = vmatprep.subr.bf16.mxu1 %v23510_v7 }
 0x75e   : > { %v8728_v47 = vrot.slane %v22301_v18, 6  ;;  %15751 = vmatpush3.bf16.msra.mxu0 %v16615_v16  ;;  %v15596_v41 = vpop.f32.mrf.mxu1  ;;  %15766 = vmatprep.mubr.msk.bf16.mxu0 %vm16815_vm0, %v23510_v7 }
 0x75f   : > { %v8649_v27 = vsel %vm3680_vm2, %v8646_v23, %v8648_v29  ;;  %v8599_v52 = vmax.f32 %v8581_v15, 0.0  ;;  %v8560_v8 = vadd.f32 %v23956_v38, %v8366_v54  ;;  %15752 = vmatprep.subr.bf16.mxu0 %v23510_v7  ;;  %v16628_v41 = vld [vmem:[%s23174_s4 + $0x110] sm:$0xff]   ;;  %v9319_v38 = vrot.slane %v22221_v58, 2 }
 0x760   : > { %v8687_v37 = vmax.f32 %v8597_v43, %v8649_v27  ;;  %15705 = vmatpush3.bf16.msra.mxu1 %v16616_v42  ;;  %v8346_v11 = vpop.f32.mrf.mxu1  ;;  %v8729_v22 = vsel %vm8709_vm9, %v8727_v51, %v8728_v47  ;;  %v16627_v51 = vld [vmem:[%s23174_s4 + $0x148] sm:$0xff]  }
 0x761   : > { %v8650_v20 = vrot.slane %v8599_v52, 1  ;;  %v8582_v48 = vadd.f32 %v22102_v61, %v8560_v8  ;;  %v8367_v13 = vadd.f32 %v8346_v11, %v8167_v40  ;;  %15730 = vmatprep.subr.bf16.mxu1 %v23510_v7  ;;  %v8758_v33 = vmax.f32 %v22258_v46, %v8729_v22  ;;  %v16620_v46 = vld [vmem:[%s23174_s4 + $0x130] sm:$0xff]   ;;  %v16630_v27 = vld [vmem:[%s23174_s4 + $0x108] sm:$0xff]   ;;  %v16632_v8 = vld [vmem:[%s23174_s4 + $0x100] sm:$0xff]  }
 0x762   : > { %v8730_v35 = vrot.slane %v8687_v37, 6  ;;  %15753 = vmatpush3.bf16.msra.mxu0 %v16617_v9  ;;  %v15597_v62 = vpop.f32.mrf.mxu1  ;;  %v16629_v9 = vld [vmem:[%s23174_s4 + $0x140] sm:$0xff]   ;;  %v16634_v40 = vld [vmem:[%s23174_s4 + $0x1b8] sm:$0xff]   ;;  %v9193_v37 = vpack.c.bf16 %v22150_v0, %v22150_v0  ;;  %v16635_v11 = vld [vmem:[%s23174_s4 + $0x1e8] sm:$0xff]  }
 0x763   : > { %v8651_v10 = vsel %vm3680_vm2, %v8648_v29, %v8650_v20  ;;  %v8600_v59 = vmax.f32 %v8582_v48, 0.0  ;;  %v8561_v21 = vadd.f32 %v22091_v25, %v8367_v13  ;;  %15707 = vmatmul.mubr.bf16.vlgmr.msra.gmra.mxu1 %v8994_v5  ;;  %15754 = vmatprep.subr.bf16.mxu0 %v23510_v7  ;;  %v16626_v29 = vld [vmem:[%s23174_s4 + $0x118] sm:$0xff]   ;;  %v16636_v5 = vld [vmem:[%s23174_s4 + $0x1b0] sm:$0xff]   ;;  %v16637_v0 = vld [vmem:[%s23174_s4 + $0x1e0] sm:$0xff]  }
 0x764   : > { %v8731_v30 = vsel %vm8709_vm9, %v8728_v47, %v8730_v35  ;;  %v8688_v57 = vmax.f32 %v8598_v31, %v8651_v10  ;;  %15731 = vmatpush3.bf16.msra.mxu1 %v16618_v26  ;;  %15746 = vmatprep.mubr.msk.bf16.mxu1 %vm16815_vm0, %v23510_v7  ;;  %v16638_v26 = vld [vmem:[%s23174_s4 + $0x1a8] sm:$0xff]   ;;  %v16639_v22 = vld [vmem:[%s23174_s4 + $0x1d8] sm:$0xff]   ;;  %v16641_v48 = vld [vmem:[%s23174_s4 + $0x1d0] sm:$0xff]  }
 0x765   : > { %v8652_v19 = vrot.slane %v8600_v59, 1  ;;  %v8583_v43 = vadd.f32 %v22102_v61, %v8561_v21  ;;  %15732 = vmatprep.subr.bf16.mxu1 %v23510_v7  ;;  %v22343_v25 = vmax.f32 %v22278_v17, %v8731_v30  ;;  %v16622_v17 = vld [vmem:[%s23174_s4 + $0x128] sm:$0xff]   ;;  %v16642_v13 = vld [vmem:[%s23174_s4 + $0x198] sm:$0xff]   ;;  %v16645_v62 = vld [vmem:[%s23174_s4 + $0x1c0] sm:$0xff]  }
 0x766   : > { %v8732_v3 = vrot.slane %v8688_v57, 6  ;;  %15755 = vmatpush3.bf16.msra.mxu0 %v16619_v14  ;;  %v16646_v14 = vld [vmem:[%s23174_s4 + $0x188] sm:$0xff]   ;;  %v16647_v10 = vld [vmem:[%s23174_s4 + $0x278] sm:$0xff]   ;;  %v16648_v21 = vld [vmem:[%s23174_s4 + $0x180] sm:$0xff]  }
 0x767   : > { %v8653_v53 = vsel %vm3680_vm2, %v8650_v20, %v8652_v19  ;;  %v8601_v32 = vmax.f32 %v8583_v43, 0.0  ;;  %15756 = vmatprep.subr.bf16.mxu0 %v23510_v7  ;;  %v22351_v1 = vpack.c.bf16 %v22343_v25, %v8758_v33  ;;  %v16640_v20 = vld [vmem:[%s23174_s4 + $0x1a0] sm:$0xff]   ;;  %v16643_v33 = vld [vmem:[%s23174_s4 + $0x1c8] sm:$0xff]   ;;  %v16649_v30 = vld [vmem:[%s23174_s4 + $0x270] sm:$0xff]  }
 0x768   : > { %v8689_v61 = vmax.f32 %v8599_v52, %v8653_v53  ;;  %15733 = vmatpush3.bf16.msra.mxu1 %v16620_v46  ;;  %v8733_v23 = vsel %vm8709_vm9, %v8730_v35, %v8732_v3  ;;  %v16631_v52 = vld [vmem:[%s23174_s4 + $0x1f8] sm:$0xff]   ;;  %v16644_v35 = vld [vmem:[%s23174_s4 + $0x190] sm:$0xff]   ;;  %v16651_v46 = vld [vmem:[%s23174_s4 + $0x268] sm:$0xff]  }
 0x769   : > { %v8654_v45 = vrot.slane %v8601_v32, 1  ;;  %15734 = vmatprep.subr.bf16.mxu1 %v23510_v7  ;;  %v8760_v49 = vmax.f32 %v22301_v18, %v8733_v23  ;;  %v16625_v18 = vld [vmem:[%s23174_s4 + $0x150] sm:$0xff]   ;;  %v16654_v43 = vld [vmem:[%s23174_s4 + $0x228] sm:$0xff]   ;;  %v16655_v3 = vld [vmem:[%s23174_s4 + $0x258] sm:$0xff]  }
 0x76a   : > { %15757 = vmatpush3.bf16.msra.mxu0 %v16621_v56  ;;  %v8734_v50 = vrot.slane %v8689_v61, 6  ;;  %v16656_v56 = vld [vmem:[%s23174_s4 + $0x220] sm:$0xff]   ;;  %v16657_v53 = vld [vmem:[%s23174_s4 + $0x250] sm:$0xff]  }
 0x76b   : > { %v8655_v4 = vsel %vm3680_vm2, %v8652_v19, %v8654_v45  ;;  %v8691_v60 = vmax.f32 %v8601_v32, %v8654_v45  ;;  %15758 = vmatprep.subr.bf16.mxu0 %v23510_v7  ;;  %v22365_v39 = vpack.c.bf16 %v8760_v49, %v22343_v25  ;;  %v16652_v19 = vld [vmem:[%s23174_s4 + $0x230] sm:$0xff]   ;;  %v16658_v32 = vld [vmem:[%s23174_s4 + $0x218] sm:$0xff]   ;;  %v16661_v23 = vld [vmem:[%s23174_s4 + $0x240] sm:$0xff]  }
 0x76c   : > { %v8690_v16 = vmax.f32 %v8600_v59, %v8655_v4  ;;  %15735 = vmatpush3.bf16.msra.mxu1 %v16622_v17  ;;  %v9518_v59 = vpack.c.bf16 %v22209_v28, %v22209_v28  ;;  %v16650_v28 = vld [vmem:[%s23174_s4 + $0x238] sm:$0xff]   ;;  %v16660_v17 = vld [vmem:[%s23174_s4 + $0x210] sm:$0xff]   ;;  %v16662_v45 = vld [vmem:[%s23174_s4 + $0x208] sm:$0xff]  }
 0x76d   : > { %v8737_v31 = vrot.slane %v8691_v60, 6  ;;  %15736 = vmatprep.subr.bf16.mxu1 %v23510_v7  ;;  %v16663_v49 = vld [vmem:[%s23174_s4 + $0x2f8] sm:$0xff]   ;;  %v16664_v4 = vld [vmem:[%s23174_s4 + $0x200] sm:$0xff]   ;;  %v16665_v60 = vld [vmem:[%s23174_s4 + $0x2f0] sm:$0xff]  }
 0x76e   : > { %v8735_v2 = vrot.slane %v8690_v16, 6  ;;  %15759 = vmatpush3.bf16.msra.mxu0 %v16623_v36  ;;  %v9752_v36 = vrot.slane %v22244_v55, 2  ;;  %v16666_v16 = vld [vmem:[%s23174_s4 + $0x2b8] sm:$0xff]  }
 0x76f   : > { %15760 = vmatprep.subr.bf16.mxu0 %v23510_v7 }
 0x770   : > { %v8736_v24 = vsel %vm8709_vm9, %v8734_v50, %v8735_v2  ;;  %v8738_v42 = vsel %vm8709_vm9, %v8735_v2, %v8737_v31  ;;  %15737 = vmatpush3.bf16.msra.mxu1 %v16624_v34  ;;  %v9644_v34 = vrot.slane %v22244_v55, 1  ;;  %v16667_v31 = vld [vmem:[%s23174_s4 + $0x2e8] sm:$0xff]   ;;  %v16668_v50 = vld [vmem:[%s23174_s4 + $0x2b0] sm:$0xff]   ;;  %v16669_v55 = vld [vmem:[%s23174_s4 + $0x2e0] sm:$0xff]  }
 0x771   : > { %v22380_v15 = vmax.f32 %v8688_v57, %v8736_v24  ;;  %v22382_v54 = vmax.f32 %v8689_v61, %v8738_v42  ;;  %15738 = vmatprep.subr.bf16.mxu1 %v23510_v7  ;;  %v9427_v57 = vrot.slane %v22221_v58, 3  ;;  %v16653_v58 = vld [vmem:[%s23174_s4 + $0x260] sm:$0xff]   ;;  %v16659_v61 = vld [vmem:[%s23174_s4 + $0x248] sm:$0xff]   ;;  %v16673_v42 = vld [vmem:[%s23174_s4 + $0x2d0] sm:$0xff]  }
 0x772   : > { %15761 = vmatpush3.bf16.msra.mxu0 %v16625_v18  ;;  %v16670_v2 = vld [vmem:[%s23174_s4 + $0x2a8] sm:$0xff]   ;;  %v16671_v18 = vld [vmem:[%s23174_s4 + $0x2d8] sm:$0xff]   ;;  %v16672_v24 = vld [vmem:[%s23174_s4 + $0x2a0] sm:$0xff]  }
 0x773   : > { %v22390_v47 = vpack.c.bf16 %v22382_v54, %v22380_v15  ;;  %15762 = vmatprep.subr.bf16.mxu0 %v23510_v7 }
 0x774   : > { %15739 = vmatpush3.bf16.msra.mxu1 %v16626_v29  ;;  %v16674_v29 = vld [vmem:[%s23174_s4 + $0x298] sm:$0xff]  }
 0x775   : > { %15740 = vmatprep.subr.bf16.mxu1 %v23510_v7 }
 0x776   : > { %15763 = vmatpush3.bf16.msra.mxu0 %v16627_v51  ;;  %v16675_v51 = vld [vmem:[%s23174_s4 + $0x2c8] sm:$0xff]  }
 0x777   : > { %15764 = vmatprep.subr.bf16.mxu0 %v23510_v7 }
 0x778   : > { %15741 = vmatpush3.bf16.msra.mxu1 %v16628_v41  ;;  %v16676_v41 = vld [vmem:[%s23174_s4 + $0x290] sm:$0xff]  }
 0x779   : > { %15742 = vmatprep.subr.bf16.mxu1 %v23510_v7 }
 0x77a   : > { %15765 = vmatpush3.bf16.msra.mxu0 %v16629_v9  ;;  %v16677_v9 = vld [vmem:[%s23174_s4 + $0x2c0] sm:$0xff]  }
 0x77b   : > { %15790 = vmatprep.subr.bf16.mxu0 %v23510_v7 }
 0x77c   : > { %15743 = vmatpush3.bf16.msra.mxu1 %v16630_v27  ;;  %v16678_v27 = vld [vmem:[%s23174_s4 + $0x288] sm:$0xff]  }
 0x77d   : > { %15767 = vmatmul.mubr.bf16.vlgmr.msra.gmra.mxu0 %v9319_v38  ;;  %15744 = vmatprep.subr.bf16.mxu1 %v23510_v7  ;;  %v9969_v38 = vrot.slane %v22299_v63, 1 }
 0x77e   : > { %15791 = vmatpush3.bf16.msra.mxu0 %v16631_v52  ;;  %15806 = vmatprep.mubr.msk.bf16.mxu0 %vm16815_vm0, %v23510_v7  ;;  %v16679_v52 = vld [vmem:[%s23174_s4 + $0x378] sm:$0xff]  }
 0x77f   : > { %15792 = vmatprep.subr.bf16.mxu0 %v23510_v7 }
 0x780   : > { %15745 = vmatpush3.bf16.msra.mxu1 %v16632_v8  ;;  %v16680_v8 = vld [vmem:[%s23174_s4 + $0x280] sm:$0xff]  }
 0x781   : > { %15770 = vmatprep.subr.bf16.mxu1 %v23510_v7 }
 0x782   : > { %15793 = vmatpush3.bf16.msra.mxu0 %v16633_v6  ;;  %v16681_v6 = vld [vmem:[%s23174_s4 + $0x370] sm:$0xff]  }
 0x783   : > { %15747 = vmatmul.mubr.bf16.vlgmr.msra.gmra.mxu1 %v9193_v37  ;;  %15794 = vmatprep.subr.bf16.mxu0 %v23510_v7  ;;  %v9843_v37 = vpack.c.bf16 %v22266_v44, %v22266_v44  ;;  %v16685_v44 = vld [vmem:[%s23174_s4 + $0x360] sm:$0xff]  }
 0x784   : > { %15771 = vmatpush3.bf16.msra.mxu1 %v16634_v40  ;;  %15786 = vmatprep.mubr.msk.bf16.mxu1 %vm16815_vm0, %v23510_v7  ;;  %v16682_v40 = vld [vmem:[%s23174_s4 + $0x338] sm:$0xff]  }
 0x785   : > { %15772 = vmatprep.subr.bf16.mxu1 %v23510_v7 }
 0x786   : > { %15795 = vmatpush3.bf16.msra.mxu0 %v16635_v11  ;;  %v16683_v11 = vld [vmem:[%s23174_s4 + $0x368] sm:$0xff]  }
 0x787   : > { %15796 = vmatprep.subr.bf16.mxu0 %v23510_v7 }
 0x788   : > { %15773 = vmatpush3.bf16.msra.mxu1 %v16636_v5  ;;  %v16684_v5 = vld [vmem:[%s23174_s4 + $0x330] sm:$0xff]  }
 0x789   : > { %15774 = vmatprep.subr.bf16.mxu1 %v23510_v7 }
 0x78a   : > { %15797 = vmatpush3.bf16.msra.mxu0 %v16637_v0  ;;  %v16686_v0 = vld [vmem:[%s23174_s4 + $0x328] sm:$0xff]  }
 0x78b   : > { %15798 = vmatprep.subr.bf16.mxu0 %v23510_v7 }
 0x78c   : > { %15775 = vmatpush3.bf16.msra.mxu1 %v16638_v26  ;;  %v16687_v26 = vld [vmem:[%s23174_s4 + $0x358] sm:$0xff]  }
 0x78d   : > { %15776 = vmatprep.subr.bf16.mxu1 %v23510_v7 }
 0x78e   : > { %15799 = vmatpush3.bf16.msra.mxu0 %v16639_v22  ;;  %v16688_v22 = vld [vmem:[%s23174_s4 + $0x320] sm:$0xff]  }
 0x78f   : > { %15800 = vmatprep.subr.bf16.mxu0 %v23510_v7 }
 0x790   : > { %15777 = vmatpush3.bf16.msra.mxu1 %v16640_v20  ;;  %v16689_v20 = vld [vmem:[%s23174_s4 + $0x350] sm:$0xff]  }
 0x791   : > { %15778 = vmatprep.subr.bf16.mxu1 %v23510_v7 }
 0x792   : > { %15801 = vmatpush3.bf16.msra.mxu0 %v16641_v48  ;;  %v16690_v48 = vld [vmem:[%s23174_s4 + $0x318] sm:$0xff]  }
 0x793   : > { %15802 = vmatprep.subr.bf16.mxu0 %v23510_v7 }
 0x794   : > { %15779 = vmatpush3.bf16.msra.mxu1 %v16642_v13  ;;  %v16691_v13 = vld [vmem:[%s23174_s4 + $0x348] sm:$0xff]  }
 0x795   : > { %15780 = vmatprep.subr.bf16.mxu1 %v23510_v7 }
 0x796   : > { %15803 = vmatpush3.bf16.msra.mxu0 %v16643_v33  ;;  %v16692_v33 = vld [vmem:[%s23174_s4 + $0x310] sm:$0xff]  }
 0x797   : > { %15804 = vmatprep.subr.bf16.mxu0 %v23510_v7 }
 0x798   : > { %15781 = vmatpush3.bf16.msra.mxu1 %v16644_v35  ;;  %v16693_v35 = vld [vmem:[%s23174_s4 + $0x340] sm:$0xff]  }
 0x799   : > { %15782 = vmatprep.subr.bf16.mxu1 %v23510_v7 }
 0x79a   : > { %15805 = vmatpush3.bf16.msra.mxu0 %v16645_v62  ;;  %v16694_v62 = vld [vmem:[%s23174_s4 + $0x308] sm:$0xff]  }
 0x79b   : > { %15830 = vmatprep.subr.bf16.mxu0 %v23510_v7 }
 0x79c   : > { %15783 = vmatpush3.bf16.msra.mxu1 %v16646_v14  ;;  %v16695_v14 = vld [vmem:[%s23174_s4 + $0x3f8] sm:$0xff]  }
 0x79d   : > { %15807 = vmatmul.mubr.bf16.vlgmr.msra.gmra.mxu0 %v9518_v59  ;;  %15784 = vmatprep.subr.bf16.mxu1 %v23510_v7  ;;  %v16696_v59 = vld [vmem:[%s23174_s4 + $0x300] sm:$0xff]  }
 0x79e   : > { %15831 = vmatpush3.bf16.msra.mxu0 %v16647_v10  ;;  %15846 = vmatprep.mubr.msk.bf16.mxu0 %vm16815_vm0, %v23510_v7  ;;  %v10185_v10 = vrot.slane %v22299_v63, 3 }
 0x79f   : > { %15832 = vmatprep.subr.bf16.mxu0 %v23510_v7 }
 0x7a0   : > { %15785 = vmatpush3.bf16.msra.mxu1 %v16648_v21 }
 0x7a1   : > { %15810 = vmatprep.subr.bf16.mxu1 %v23510_v7 }
 0x7a2   : > { %15833 = vmatpush3.bf16.msra.mxu0 %v16649_v30  ;;  %v16697_v30 = vld [vmem:[%s23174_s4 + $0x3f0] sm:$0xff]  }
 0x7a3   : > { %15787 = vmatmul.mubr.bf16.vlgmr.msra.gmra.mxu1 %v9427_v57  ;;  %15834 = vmatprep.subr.bf16.mxu0 %v23510_v7  ;;  %v16698_v57 = vld [vmem:[%s23174_s4 + $0x3b8] sm:$0xff]  }
 0x7a4   : > { %15811 = vmatpush3.bf16.msra.mxu1 %v16650_v28  ;;  %15826 = vmatprep.mubr.msk.bf16.mxu1 %vm16815_vm0, %v23510_v7 }
 0x7a5   : > { %15812 = vmatprep.subr.bf16.mxu1 %v23510_v7 }
 0x7a6   : > { %15835 = vmatpush3.bf16.msra.mxu0 %v16651_v46 }
 0x7a7   : > { %15836 = vmatprep.subr.bf16.mxu0 %v23510_v7 }
 0x7a8   : > { %15813 = vmatpush3.bf16.msra.mxu1 %v16652_v19  ;;  %v10077_v19 = vrot.slane %v22299_v63, 2 }
 0x7a9   : > { %15814 = vmatprep.subr.bf16.mxu1 %v23510_v7 }
 0x7aa   : > { %15837 = vmatpush3.bf16.msra.mxu0 %v16653_v58  ;;  %v16699_v58 = vld [vmem:[%s23174_s4 + $0x3e8] sm:$0xff]  }
 0x7ab   : > { %15838 = vmatprep.subr.bf16.mxu0 %v23510_v7 }
 0x7ac   : > { %15815 = vmatpush3.bf16.msra.mxu1 %v16654_v43 }
 0x7ad   : > { %15816 = vmatprep.subr.bf16.mxu1 %v23510_v7 }
 0x7ae   : > { %15839 = vmatpush3.bf16.msra.mxu0 %v16655_v3 }
 0x7af   : > { %15840 = vmatprep.subr.bf16.mxu0 %v23510_v7 }
 0x7b0   : > { %15817 = vmatpush3.bf16.msra.mxu1 %v16656_v56 }
 0x7b1   : > { %15818 = vmatprep.subr.bf16.mxu1 %v23510_v7 }
 0x7b2   : > { %15841 = vmatpush3.bf16.msra.mxu0 %v16657_v53  ;;  %v16700_v53 = vld [vmem:[%s23174_s4 + $0x3b0] sm:$0xff]  }
 0x7b3   : > { %15842 = vmatprep.subr.bf16.mxu0 %v23510_v7 }
 0x7b4   : > { %15819 = vmatpush3.bf16.msra.mxu1 %v16658_v32  ;;  %v16701_v32 = vld [vmem:[%s23174_s4 + $0x3e0] sm:$0xff]  }
 0x7b5   : > { %15820 = vmatprep.subr.bf16.mxu1 %v23510_v7 }
 0x7b6   : > { %15843 = vmatpush3.bf16.msra.mxu0 %v16659_v61 }
 0x7b7   : > { %15844 = vmatprep.subr.bf16.mxu0 %v23510_v7 }
 0x7b8   : > { %15821 = vmatpush3.bf16.msra.mxu1 %v16660_v17  ;;  %v16702_v17 = vld [vmem:[%s23174_s4 + $0x3a8] sm:$0xff]  }
 0x7b9   : > { %15822 = vmatprep.subr.bf16.mxu1 %v23510_v7 }
 0x7ba   : > { %15845 = vmatpush3.bf16.msra.mxu0 %v16661_v23 }
 0x7bb   : > { %15870 = vmatprep.subr.bf16.mxu0 %v23510_v7 }
 0x7bc   : > { %15823 = vmatpush3.bf16.msra.mxu1 %v16662_v45  ;;  %v16703_v45 = vld [vmem:[%s23174_s4 + $0x3d8] sm:$0xff]  }
 0x7bd   : > { %15847 = vmatmul.mubr.bf16.vlgmr.msra.gmra.mxu0 %v9752_v36  ;;  %15824 = vmatprep.subr.bf16.mxu1 %v23510_v7  ;;  %v16705_v36 = vld [vmem:[%s23174_s4 + $0x3d0] sm:$0xff]  }
 0x7be   : > { %15871 = vmatpush3.bf16.msra.mxu0 %v16663_v49  ;;  %15886 = vmatprep.mubr.msk.bf16.mxu0 %vm16815_vm0, %v23510_v7  ;;  %v16704_v49 = vld [vmem:[%s23174_s4 + $0x3a0] sm:$0xff]  }
 0x7bf   : > { %15872 = vmatprep.subr.bf16.mxu0 %v23510_v7 }
 0x7c0   : > { %15825 = vmatpush3.bf16.msra.mxu1 %v16664_v4  ;;  %v16706_v4 = vld [vmem:[%s23174_s4 + $0x398] sm:$0xff]  }
 0x7c1   : > { %15850 = vmatprep.subr.bf16.mxu1 %v23510_v7 }
 0x7c2   : > { %15873 = vmatpush3.bf16.msra.mxu0 %v16665_v60  ;;  %v16707_v60 = vld [vmem:[%s23174_s4 + $0x3c8] sm:$0xff]  }
 0x7c3   : > { %15827 = vmatmul.mubr.bf16.vlgmr.msra.gmra.mxu1 %v9644_v34  ;;  %15874 = vmatprep.subr.bf16.mxu0 %v23510_v7  ;;  %v16709_v34 = vld [vmem:[%s23174_s4 + $0x3c0] sm:$0xff]  }
 0x7c4   : > { %15851 = vmatpush3.bf16.msra.mxu1 %v16666_v16  ;;  %15866 = vmatprep.mubr.msk.bf16.mxu1 %vm16815_vm0, %v23510_v7  ;;  %v16708_v16 = vld [vmem:[%s23174_s4 + $0x390] sm:$0xff]  }
 0x7c5   : > { %15852 = vmatprep.subr.bf16.mxu1 %v23510_v7 }
 0x7c6   : > { %15875 = vmatpush3.bf16.msra.mxu0 %v16667_v31  ;;  %v16710_v31 = vld [vmem:[%s23174_s4 + $0x388] sm:$0xff]  }
 0x7c7   : > { %15876 = vmatprep.subr.bf16.mxu0 %v23510_v7 }
 0x7c8   : > { %15853 = vmatpush3.bf16.msra.mxu1 %v16668_v50  ;;  %v16711_v50 = vld [vmem:[%s23174_s4 + $0x478] sm:$0xff]  }
 0x7c9   : > { %15854 = vmatprep.subr.bf16.mxu1 %v23510_v7 }
 0x7ca   : > { %15877 = vmatpush3.bf16.msra.mxu0 %v16669_v55  ;;  %v10402_v55 = vrot.slane %v22351_v1, 2 }
 0x7cb   : > { %15878 = vmatprep.subr.bf16.mxu0 %v23510_v7 }
 0x7cc   : > { %15855 = vmatpush3.bf16.msra.mxu1 %v16670_v2  ;;  %v16712_v2 = vld [vmem:[%s23174_s4 + $0x380] sm:$0xff]  }
 0x7cd   : > { %15856 = vmatprep.subr.bf16.mxu1 %v23510_v7 }
 0x7ce   : > { %15879 = vmatpush3.bf16.msra.mxu0 %v16671_v18 }
 0x7cf   : > { %15880 = vmatprep.subr.bf16.mxu0 %v23510_v7 }
 0x7d0   : > { %15857 = vmatpush3.bf16.msra.mxu1 %v16672_v24  ;;  %v16713_v24 = vld [vmem:[%s23174_s4 + $0x470] sm:$0xff]  }
 0x7d1   : > { %15858 = vmatprep.subr.bf16.mxu1 %v23510_v7 }
 0x7d2   : > { %15881 = vmatpush3.bf16.msra.mxu0 %v16673_v42 }
 0x7d3   : > { %15882 = vmatprep.subr.bf16.mxu0 %v23510_v7 }
 0x7d4   : > { %15859 = vmatpush3.bf16.msra.mxu1 %v16674_v29  ;;  %v16714_v29 = vld [vmem:[%s23174_s4 + $0x438] sm:$0xff]  }
 0x7d5   : > { %15860 = vmatprep.subr.bf16.mxu1 %v23510_v7 }
 0x7d6   : > { %15883 = vmatpush3.bf16.msra.mxu0 %v16675_v51 }
 0x7d7   : > { %15884 = vmatprep.subr.bf16.mxu0 %v23510_v7 }
 0x7d8   : > { %15861 = vmatpush3.bf16.msra.mxu1 %v16676_v41  ;;  %v10276_v41 = vpack.c.bf16 %v22286_v12, %v22286_v12 }
 0x7d9   : > { %15862 = vmatprep.subr.bf16.mxu1 %v23510_v7 }
 0x7da   : > { %15885 = vmatpush3.bf16.msra.mxu0 %v16677_v9  ;;  %v16715_v9 = vld [vmem:[%s23174_s4 + $0x468] sm:$0xff]  }
 0x7db   : > { %15910 = vmatprep.subr.bf16.mxu0 %v23510_v7 }
 0x7dc   : > { %15863 = vmatpush3.bf16.msra.mxu1 %v16678_v27 }
 0x7dd   : > { %15887 = vmatmul.mubr.bf16.vlgmr.msra.gmra.mxu0 %v9969_v38  ;;  %15864 = vmatprep.subr.bf16.mxu1 %v23510_v7 }
 0x7de   : > { %15911 = vmatpush3.bf16.msra.mxu0 %v16679_v52  ;;  %15926 = vmatprep.mubr.msk.bf16.mxu0 %vm16815_vm0, %v23510_v7 }
 0x7df   : > { %15912 = vmatprep.subr.bf16.mxu0 %v23510_v7 }
 0x7e0   : > { %15865 = vmatpush3.bf16.msra.mxu1 %v16680_v8  ;;  %v16716_v8 = vld [vmem:[%s23174_s4 + $0x430] sm:$0xff]  }
 0x7e1   : > { %15890 = vmatprep.subr.bf16.mxu1 %v23510_v7 }
 0x7e2   : > { %15913 = vmatpush3.bf16.msra.mxu0 %v16681_v6  ;;  %v16717_v6 = vld [vmem:[%s23174_s4 + $0x460] sm:$0xff]  }
 0x7e3   : > { %15867 = vmatmul.mubr.bf16.vlgmr.msra.gmra.mxu1 %v9843_v37  ;;  %15914 = vmatprep.subr.bf16.mxu0 %v23510_v7 }
 0x7e4   : > { %15891 = vmatpush3.bf16.msra.mxu1 %v16682_v40  ;;  %15906 = vmatprep.mubr.msk.bf16.mxu1 %vm16815_vm0, %v23510_v7 }
 0x7e5   : > { %15892 = vmatprep.subr.bf16.mxu1 %v23510_v7 }
 0x7e6   : > { %15915 = vmatpush3.bf16.msra.mxu0 %v16683_v11  ;;  %v16718_v11 = vld [vmem:[%s23174_s4 + $0x428] sm:$0xff]  }
 0x7e7   : > { %15916 = vmatprep.subr.bf16.mxu0 %v23510_v7 }
 0x7e8   : > { %15893 = vmatpush3.bf16.msra.mxu1 %v16684_v5 }
 0x7e9   : > { %15894 = vmatprep.subr.bf16.mxu1 %v23510_v7 }
 0x7ea   : > { %15917 = vmatpush3.bf16.msra.mxu0 %v16685_v44  ;;  %v16719_v44 = vld [vmem:[%s23174_s4 + $0x458] sm:$0xff]  }
 0x7eb   : > { %15918 = vmatprep.subr.bf16.mxu0 %v23510_v7 }
 0x7ec   : > { %15895 = vmatpush3.bf16.msra.mxu1 %v16686_v0  ;;  %v16720_v0 = vld [vmem:[%s23174_s4 + $0x420] sm:$0xff]  }
 0x7ed   : > { %15896 = vmatprep.subr.bf16.mxu1 %v23510_v7 }
 0x7ee   : > { %15919 = vmatpush3.bf16.msra.mxu0 %v16687_v26  ;;  %v16721_v26 = vld [vmem:[%s23174_s4 + $0x450] sm:$0xff]  }
 0x7ef   : > { %15920 = vmatprep.subr.bf16.mxu0 %v23510_v7 }
 0x7f0   : > { %15897 = vmatpush3.bf16.msra.mxu1 %v16688_v22  ;;  %v16722_v22 = vld [vmem:[%s23174_s4 + $0x418] sm:$0xff]  }
 0x7f1   : > { %15898 = vmatprep.subr.bf16.mxu1 %v23510_v7 }
 0x7f2   : > { %15921 = vmatpush3.bf16.msra.mxu0 %v16689_v20  ;;  %v16723_v20 = vld [vmem:[%s23174_s4 + $0x448] sm:$0xff]  }
 0x7f3   : > { %15922 = vmatprep.subr.bf16.mxu0 %v23510_v7 }
 0x7f4   : > { %15899 = vmatpush3.bf16.msra.mxu1 %v16690_v48  ;;  %v16724_v48 = vld [vmem:[%s23174_s4 + $0x410] sm:$0xff]  }
 0x7f5   : > { %15900 = vmatprep.subr.bf16.mxu1 %v23510_v7 }
 0x7f6   : > { %15923 = vmatpush3.bf16.msra.mxu0 %v16691_v13  ;;  %v16725_v13 = vld [vmem:[%s23174_s4 + $0x440] sm:$0xff]  }
 0x7f7   : > { %15924 = vmatprep.subr.bf16.mxu0 %v23510_v7 }
 0x7f8   : > { %15901 = vmatpush3.bf16.msra.mxu1 %v16692_v33  ;;  %v16726_v33 = vld [vmem:[%s23174_s4 + $0x408] sm:$0xff]  }
 0x7f9   : > { %15902 = vmatprep.subr.bf16.mxu1 %v23510_v7 }
 0x7fa   : > { %15925 = vmatpush3.bf16.msra.mxu0 %v16693_v35  ;;  %v16727_v35 = vld [vmem:[%s23174_s4 + $0x4f8] sm:$0xff]  }
 0x7fb   : > { %15950 = vmatprep.subr.bf16.mxu0 %v23510_v7 }
 0x7fc   : > { %15903 = vmatpush3.bf16.msra.mxu1 %v16694_v62  ;;  %v10601_v62 = vpack.c.bf16 %v22343_v25, %v22343_v25 }
 0x7fd   : > { %15927 = vmatmul.mubr.bf16.vlgmr.msra.gmra.mxu0 %v10185_v10  ;;  %v8971_v21 = vpop.f32.mrf.mxu0  ;;  %15904 = vmatprep.subr.bf16.mxu1 %v23510_v7 }
 0x7fe   : > { %15951 = vmatpush3.bf16.msra.mxu0 %v16695_v14  ;;  %15966 = vmatprep.mubr.msk.bf16.mxu0 %vm16815_vm0, %v23510_v7  ;;  %v16728_v14 = vld [vmem:[%s23174_s4 + $0x400] sm:$0xff]  }
 0x7ff   : > { %v15688_v28 = vpop.f32.mrf.mxu0  ;;  %15952 = vmatprep.subr.bf16.mxu0 %v23510_v7 }
 0x800   : > { %15905 = vmatpush3.bf16.msra.mxu1 %v16696_v59  ;;  %v16729_v59 = vld [vmem:[%s23174_s4 + $0x4f0] sm:$0xff]   ;;  %v10510_v28 = vrot.slane %v22351_v1, 3 }
 0x801   : > { %v8974_v46 = vpop.f32.mrf.mxu0  ;;  %15930 = vmatprep.subr.bf16.mxu1 %v23510_v7 }
 0x802   : > { %15953 = vmatpush3.bf16.msra.mxu0 %v16697_v30 }
 0x803   : > { %15907 = vmatmul.mubr.bf16.vlgmr.msra.gmra.mxu1 %v10077_v19  ;;  %v8883_v43 = vpop.f32.mrf.mxu1  ;;  %v15689_v3 = vpop.f32.mrf.mxu0  ;;  %15954 = vmatprep.subr.bf16.mxu0 %v23510_v7 }
 0x804   : > { %v22712_v56 = vadd.f32 %v8971_v21, %v8883_v43  ;;  %15931 = vmatpush3.bf16.msra.mxu1 %v16698_v57  ;;  %15946 = vmatprep.mubr.msk.bf16.mxu1 %vm16815_vm0, %v23510_v7  ;;  %v16730_v21 = vld [vmem:[%s23174_s4 + $0x4b8] sm:$0xff]   ;;  %v16731_v57 = vld [vmem:[%s23174_s4 + $0x4e8] sm:$0xff]   ;;  %v16732_v43 = vld [vmem:[%s23174_s4 + $0x4b0] sm:$0xff]  }
 0x805   : > { %v15668_v63 = vpop.f32.mrf.mxu1  ;;  %15932 = vmatprep.subr.bf16.mxu1 %v23510_v7  ;;  %v16733_v3 = vld [vmem:[%s23174_s4 + $0x4e0] sm:$0xff]  }
 0x806   : > { %15955 = vmatpush3.bf16.msra.mxu0 %v16699_v58  ;;  %v16734_v63 = vld [vmem:[%s23174_s4 + $0x4a8] sm:$0xff]  }
 0x807   : > { %v8886_v61 = vpop.f32.mrf.mxu1  ;;  %15956 = vmatprep.subr.bf16.mxu0 %v23510_v7 }
 0x808   : > { %15933 = vmatpush3.bf16.msra.mxu1 %v16700_v53  ;;  %v16735_v61 = vld [vmem:[%s23174_s4 + $0x4d8] sm:$0xff]  }
 0x809   : > { %v15669_v23 = vpop.f32.mrf.mxu1  ;;  %15934 = vmatprep.subr.bf16.mxu1 %v23510_v7 }
 0x80a   : > { %15957 = vmatpush3.bf16.msra.mxu0 %v16701_v32  ;;  %v16737_v23 = vld [vmem:[%s23174_s4 + $0x4d0] sm:$0xff]  }
 0x80b   : > { %15958 = vmatprep.subr.bf16.mxu0 %v23510_v7 }
 0x80c   : > { %15935 = vmatpush3.bf16.msra.mxu1 %v16702_v17  ;;  %v16736_v17 = vld [vmem:[%s23174_s4 + $0x4a0] sm:$0xff]  }
 0x80d   : > { %15936 = vmatprep.subr.bf16.mxu1 %v23510_v7 }
 0x80e   : > { %15959 = vmatpush3.bf16.msra.mxu0 %v16703_v45  ;;  %v16738_v45 = vld [vmem:[%s23174_s4 + $0x498] sm:$0xff]  }
 0x80f   : > { %15960 = vmatprep.subr.bf16.mxu0 %v23510_v7 }
 0x810   : > { %15937 = vmatpush3.bf16.msra.mxu1 %v16704_v49  ;;  %v16739_v49 = vld [vmem:[%s23174_s4 + $0x4c8] sm:$0xff]  }
 0x811   : > { %15938 = vmatprep.subr.bf16.mxu1 %v23510_v7 }
 0x812   : > { %15961 = vmatpush3.bf16.msra.mxu0 %v16705_v36  ;;  %v16740_v36 = vld [vmem:[%s23174_s4 + $0x490] sm:$0xff]  }
 0x813   : > { %15962 = vmatprep.subr.bf16.mxu0 %v23510_v7 }
 0x814   : > { %15939 = vmatpush3.bf16.msra.mxu1 %v16706_v4  ;;  %v16741_v4 = vld [vmem:[%s23174_s4 + $0x4c0] sm:$0xff]  }
 0x815   : > { %15940 = vmatprep.subr.bf16.mxu1 %v23510_v7 }
 0x816   : > { %15963 = vmatpush3.bf16.msra.mxu0 %v16707_v60  ;;  %v16742_v60 = vld [vmem:[%s23174_s4 + $0x488] sm:$0xff]  }
 0x817   : > { %15964 = vmatprep.subr.bf16.mxu0 %v23510_v7 }
 0x818   : > { %15941 = vmatpush3.bf16.msra.mxu1 %v16708_v16  ;;  %v16743_v16 = vld [vmem:[%s23174_s4 + $0x578] sm:$0xff]  }
 0x819   : > { %15942 = vmatprep.subr.bf16.mxu1 %v23510_v7 }
 0x81a   : > { %15965 = vmatpush3.bf16.msra.mxu0 %v16709_v34  ;;  %v10835_v34 = vrot.slane %v22365_v39, 2 }
 0x81b   : > { %15990 = vmatprep.subr.bf16.mxu0 %v23510_v7 }
 0x81c   : > { %15943 = vmatpush3.bf16.msra.mxu1 %v16710_v31  ;;  %v16744_v31 = vld [vmem:[%s23174_s4 + $0x480] sm:$0xff]  }
 0x81d   : > { %v9186_v18 = vpop.f32.mrf.mxu0  ;;  %15967 = vmatmul.mubr.bf16.vlgmr.msra.gmra.mxu0 %v10402_v55  ;;  %15944 = vmatprep.subr.bf16.mxu1 %v23510_v7  ;;  %v16745_v55 = vld [vmem:[%s23174_s4 + $0x570] sm:$0xff]  }
 0x81e   : > { %15991 = vmatpush3.bf16.msra.mxu0 %v16711_v50  ;;  %16006 = vmatprep.mubr.msk.bf16.mxu0 %vm16815_vm0, %v23510_v7 }
 0x81f   : > { %v15728_v42 = vpop.f32.mrf.mxu0  ;;  %15992 = vmatprep.subr.bf16.mxu0 %v23510_v7 }
 0x820   : > { %15945 = vmatpush3.bf16.msra.mxu1 %v16712_v2  ;;  %v10727_v42 = vrot.slane %v22365_v39, 1 }
 0x821   : > { %v9189_v51 = vpop.f32.mrf.mxu0  ;;  %15970 = vmatprep.subr.bf16.mxu1 %v23510_v7 }
 0x822   : > { %15993 = vmatpush3.bf16.msra.mxu0 %v16713_v24 }
 0x823   : > { %v9078_v27 = vpop.f32.mrf.mxu1  ;;  %v15729_v52 = vpop.f32.mrf.mxu0  ;;  %15947 = vmatmul.mubr.bf16.vlgmr.msra.gmra.mxu1 %v10276_v41  ;;  %15994 = vmatprep.subr.bf16.mxu0 %v23510_v7 }
 0x824   : > { %v9084_v38 = vadd.f32 %v9078_v27, %v22712_v56  ;;  %15971 = vmatpush3.bf16.msra.mxu1 %v16714_v29  ;;  %15986 = vmatprep.mubr.msk.bf16.mxu1 %vm16815_vm0, %v23510_v7  ;;  %v16747_v29 = vld [vmem:[%s23174_s4 + $0x568] sm:$0xff]   ;;  %v16748_v27 = vld [vmem:[%s23174_s4 + $0x530] sm:$0xff]   ;;  %v16749_v52 = vld [vmem:[%s23174_s4 + $0x560] sm:$0xff]  }
 0x825   : > { %v15708_v12 = vpop.f32.mrf.mxu1  ;;  %15972 = vmatprep.subr.bf16.mxu1 %v23510_v7 }
 0x826   : > { %15995 = vmatpush3.bf16.msra.mxu0 %v16715_v9  ;;  %v9192_v40 = vadd.f32 %v9186_v18, %v9084_v38  ;;  %v16746_v18 = vld [vmem:[%s23174_s4 + $0x538] sm:$0xff]   ;;  %v16750_v12 = vld [vmem:[%s23174_s4 + $0x528] sm:$0xff]  }
 0x827   : > { %v9081_v37 = vpop.f32.mrf.mxu1  ;;  %15996 = vmatprep.subr.bf16.mxu0 %v23510_v7 }
 0x828   : > { %15973 = vmatpush3.bf16.msra.mxu1 %v16716_v8  ;;  %v16752_v37 = vld [vmem:[%s23174_s4 + $0x520] sm:$0xff]  }
 0x829   : > { %v15709_v5 = vpop.f32.mrf.mxu1  ;;  %15974 = vmatprep.subr.bf16.mxu1 %v23510_v7 }
 0x82a   : > { %15997 = vmatpush3.bf16.msra.mxu0 %v16717_v6  ;;  %v16754_v5 = vld [vmem:[%s23174_s4 + $0x518] sm:$0xff]  }
 0x82b   : > { %15998 = vmatprep.subr.bf16.mxu0 %v23510_v7 }
 0x82c   : > { %15975 = vmatpush3.bf16.msra.mxu1 %v16718_v11  ;;  %v16753_v11 = vld [vmem:[%s23174_s4 + $0x550] sm:$0xff]  }
 0x82d   : > { %15976 = vmatprep.subr.bf16.mxu1 %v23510_v7 }
 0x82e   : > { %15999 = vmatpush3.bf16.msra.mxu0 %v16719_v44  ;;  %v16755_v44 = vld [vmem:[%s23174_s4 + $0x548] sm:$0xff]  }
 0x82f   : > { %16000 = vmatprep.subr.bf16.mxu0 %v23510_v7 }
 0x830   : > { %15977 = vmatpush3.bf16.msra.mxu1 %v16720_v0  ;;  %v16756_v0 = vld [vmem:[%s23174_s4 + $0x510] sm:$0xff]  }
 0x831   : > { %15978 = vmatprep.subr.bf16.mxu1 %v23510_v7 }
 0x832   : > { %16001 = vmatpush3.bf16.msra.mxu0 %v16721_v26  ;;  %v16757_v26 = vld [vmem:[%s23174_s4 + $0x540] sm:$0xff]  }
 0x833   : > { %16002 = vmatprep.subr.bf16.mxu0 %v23510_v7 }
 0x834   : > { %15979 = vmatpush3.bf16.msra.mxu1 %v16722_v22  ;;  %v16758_v22 = vld [vmem:[%s23174_s4 + $0x508] sm:$0xff]  }
 0x835   : > { %15980 = vmatprep.subr.bf16.mxu1 %v23510_v7 }
 0x836   : > { %16003 = vmatpush3.bf16.msra.mxu0 %v16723_v20  ;;  %v16759_v20 = vld [vmem:[%s23174_s4 + $0x5f8] sm:$0xff]  }
 0x837   : > { %16004 = vmatprep.subr.bf16.mxu0 %v23510_v7 }
 0x838   : > { %15981 = vmatpush3.bf16.msra.mxu1 %v16724_v48  ;;  %v11052_v48 = vrot.slane %v22390_v47, 1 }
 0x839   : > { %15982 = vmatprep.subr.bf16.mxu1 %v23510_v7 }
 0x83a   : > { %16005 = vmatpush3.bf16.msra.mxu0 %v16725_v13  ;;  %v16760_v13 = vld [vmem:[%s23174_s4 + $0x500] sm:$0xff]  }
 0x83b   : > { %16030 = vmatprep.subr.bf16.mxu0 %v23510_v7 }
 0x83c   : > { %15983 = vmatpush3.bf16.msra.mxu1 %v16726_v33 }
 0x83d   : > { %v9403_v10 = vpop.f32.mrf.mxu0  ;;  %16007 = vmatmul.mubr.bf16.vlgmr.msra.gmra.mxu0 %v10601_v62  ;;  %15984 = vmatprep.subr.bf16.mxu1 %v23510_v7 }
 0x83e   : > { %16031 = vmatpush3.bf16.msra.mxu0 %v16727_v35  ;;  %16046 = vmatprep.mubr.msk.bf16.mxu0 %vm16815_vm0, %v23510_v7  ;;  %v16761_v35 = vld [vmem:[%s23174_s4 + $0x5f0] sm:$0xff]  }
 0x83f   : > { %v15768_v25 = vpop.f32.mrf.mxu0  ;;  %16032 = vmatprep.subr.bf16.mxu0 %v23510_v7 }
 0x840   : > { %15985 = vmatpush3.bf16.msra.mxu1 %v16728_v14  ;;  %v16762_v14 = vld [vmem:[%s23174_s4 + $0x5b8] sm:$0xff]   ;;  %v16763_v25 = vld [vmem:[%s23174_s4 + $0x5e8] sm:$0xff]  }
 0x841   : > { %v9406_v30 = vpop.f32.mrf.mxu0  ;;  %16010 = vmatprep.subr.bf16.mxu1 %v23510_v7 }
 0x842   : > { %16033 = vmatpush3.bf16.msra.mxu0 %v16729_v59  ;;  %v10926_v59 = vpack.c.bf16 %v22380_v15, %v22380_v15 }
 0x843   : > { %v9293_v46 = vpop.f32.mrf.mxu1  ;;  %v15769_v19 = vpop.f32.mrf.mxu0  ;;  %15987 = vmatmul.mubr.bf16.vlgmr.msra.gmra.mxu1 %v10510_v28  ;;  %16034 = vmatprep.subr.bf16.mxu0 %v23510_v7 }
 0x844   : > { %v9299_v58 = vadd.f32 %v9293_v46, %v9192_v40  ;;  %16011 = vmatpush3.bf16.msra.mxu1 %v16730_v21  ;;  %16026 = vmatprep.mubr.msk.bf16.mxu1 %vm16815_vm0, %v23510_v7  ;;  %v16751_v40 = vld [vmem:[%s23174_s4 + $0x558] sm:$0xff]   ;;  %v16765_v46 = vld [vmem:[%s23174_s4 + $0x5e0] sm:$0xff]  }
 0x845   : > { %v15748_v1 = vpop.f32.mrf.mxu1  ;;  %16012 = vmatprep.subr.bf16.mxu1 %v23510_v7 }
 0x846   : > { %16035 = vmatpush3.bf16.msra.mxu0 %v16731_v57  ;;  %v9409_v56 = vadd.f32 %v9403_v10, %v9299_v58  ;;  %v16764_v57 = vld [vmem:[%s23174_s4 + $0x5b0] sm:$0xff]  }
 0x847   : > { %v9296_v53 = vpop.f32.mrf.mxu1  ;;  %16036 = vmatprep.subr.bf16.mxu0 %v23510_v7 }
 0x848   : > { %16013 = vmatpush3.bf16.msra.mxu1 %v16732_v43  ;;  %v16766_v43 = vld [vmem:[%s23174_s4 + $0x5a8] sm:$0xff]   ;;  %v16769_v53 = vld [vmem:[%s23174_s4 + $0x5d0] sm:$0xff]  }
 0x849   : > { %v15749_v32 = vpop.f32.mrf.mxu1  ;;  %16014 = vmatprep.subr.bf16.mxu1 %v23510_v7 }
 0x84a   : > { %16037 = vmatpush3.bf16.msra.mxu0 %v16733_v3  ;;  %v16767_v3 = vld [vmem:[%s23174_s4 + $0x5d8] sm:$0xff]   ;;  %v16771_v32 = vld [vmem:[%s23174_s4 + $0x5c8] sm:$0xff]  }
 0x84b   : > { %16038 = vmatprep.subr.bf16.mxu0 %v23510_v7 }
 0x84c   : > { %16015 = vmatpush3.bf16.msra.mxu1 %v16734_v63  ;;  %v16770_v63 = vld [vmem:[%s23174_s4 + $0x598] sm:$0xff]  }
 0x84d   : > { %16016 = vmatprep.subr.bf16.mxu1 %v23510_v7 }
 0x84e   : > { %16039 = vmatpush3.bf16.msra.mxu0 %v16735_v61  ;;  %v16772_v61 = vld [vmem:[%s23174_s4 + $0x590] sm:$0xff]  }
 0x84f   : > { %16040 = vmatprep.subr.bf16.mxu0 %v23510_v7 }
 0x850   : > { %16017 = vmatpush3.bf16.msra.mxu1 %v16736_v17  ;;  %v16773_v17 = vld [vmem:[%s23174_s4 + $0x5c0] sm:$0xff]  }
 0x851   : > { %16018 = vmatprep.subr.bf16.mxu1 %v23510_v7 }
 0x852   : > { %16041 = vmatpush3.bf16.msra.mxu0 %v16737_v23  ;;  %v16774_v23 = vld [vmem:[%s23174_s4 + $0x588] sm:$0xff]  }
 0x853   : > { %16042 = vmatprep.subr.bf16.mxu0 %v23510_v7 }
 0x854   : > { %16019 = vmatpush3.bf16.msra.mxu1 %v16738_v45  ;;  %v11268_v45 = vrot.slane %v22390_v47, 3 }
 0x855   : > { %16020 = vmatprep.subr.bf16.mxu1 %v23510_v7 }
 0x856   : > { %16043 = vmatpush3.bf16.msra.mxu0 %v16739_v49  ;;  %v16775_v49 = vld [vmem:[%s23174_s4 + $0x580] sm:$0xff]  }
 0x857   : > { %16044 = vmatprep.subr.bf16.mxu0 %v23510_v7 }
 0x858   : > { %16021 = vmatpush3.bf16.msra.mxu1 %v16740_v36 }
 0x859   : > { %16022 = vmatprep.subr.bf16.mxu1 %v23510_v7 }
 0x85a   : > { %16045 = vmatpush3.bf16.msra.mxu0 %v16741_v4 }
 0x85b   : > { %16070 = vmatprep.subr.bf16.mxu0 %v23510_v7 }
 0x85c   : > { %16023 = vmatpush3.bf16.msra.mxu1 %v16742_v60  ;;  %v16776_v60 = vld [vmem:[%s23174_s4 + $0x638] sm:$0xff]  }
 0x85d   : > { %v9618_v50 = vpop.f32.mrf.mxu0  ;;  %16047 = vmatmul.mubr.bf16.vlgmr.msra.gmra.mxu0 %v10835_v34  ;;  %16024 = vmatprep.subr.bf16.mxu1 %v23510_v7  ;;  %v11160_v34 = vrot.slane %v22390_v47, 2  ;;  %v16778_v47 = vld [vmem:[%s23174_s4 + $0x628] sm:$0xff]  }
 0x85e   : > { %16071 = vmatpush3.bf16.msra.mxu0 %v16743_v16  ;;  %16086 = vmatprep.mubr.msk.bf16.mxu0 %vm16815_vm0, %v23510_v7 }
 0x85f   : > { %v15808_v2 = vpop.f32.mrf.mxu0  ;;  %16072 = vmatprep.subr.bf16.mxu0 %v23510_v7 }
 0x860   : > { %16025 = vmatpush3.bf16.msra.mxu1 %v16744_v31  ;;  %v16777_v2 = vld [vmem:[%s23174_s4 + $0x630] sm:$0xff]  }
 0x861   : > { %v9621_v24 = vpop.f32.mrf.mxu0  ;;  %16050 = vmatprep.subr.bf16.mxu1 %v23510_v7 }
 0x862   : > { %16073 = vmatpush3.bf16.msra.mxu0 %v16745_v55 }
 0x863   : > { %v9511_v51 = vpop.f32.mrf.mxu1  ;;  %v15809_v41 = vpop.f32.mrf.mxu0  ;;  %16027 = vmatmul.mubr.bf16.vlgmr.msra.gmra.mxu1 %v10727_v42  ;;  %16074 = vmatprep.subr.bf16.mxu0 %v23510_v7 }
 0x864   : > { %v9517_v9 = vadd.f32 %v9511_v51, %v9409_v56  ;;  %16051 = vmatpush3.bf16.msra.mxu1 %v16746_v18  ;;  %16066 = vmatprep.mubr.msk.bf16.mxu1 %vm16815_vm0, %v23510_v7  ;;  %v16768_v56 = vld [vmem:[%s23174_s4 + $0x5a0] sm:$0xff]   ;;  %v16780_v41 = vld [vmem:[%s23174_s4 + $0x618] sm:$0xff]  }
 0x865   : > { %v15788_v39 = vpop.f32.mrf.mxu1  ;;  %16052 = vmatprep.subr.bf16.mxu1 %v23510_v7  ;;  %v16779_v51 = vld [vmem:[%s23174_s4 + $0x620] sm:$0xff]  }
 0x866   : > { %16075 = vmatpush3.bf16.msra.mxu0 %v16747_v29  ;;  %v9624_v38 = vadd.f32 %v9618_v50, %v9517_v9  ;;  %v16781_v9 = vld [vmem:[%s23174_s4 + $0x610] sm:$0xff]   ;;  %v16783_v39 = vld [vmem:[%s23174_s4 + $0x600] sm:$0xff]  }
 0x867   : > { %v9514_v8 = vpop.f32.mrf.mxu1  ;;  %16076 = vmatprep.subr.bf16.mxu0 %v23510_v7 }
 0x868   : > { %16053 = vmatpush3.bf16.msra.mxu1 %v16748_v27  ;;  %v16782_v27 = vld [vmem:[%s23174_s4 + $0x608] sm:$0xff]  }
 0x869   : > { %v15789_v6 = vpop.f32.mrf.mxu1  ;;  %16054 = vmatprep.subr.bf16.mxu1 %v23510_v7 }
 0x86a   : > { %16077 = vmatpush3.bf16.msra.mxu0 %v16749_v52 }
 0x86b   : > { %16078 = vmatprep.subr.bf16.mxu0 %v23510_v7 }
 0x86c   : > { %16055 = vmatpush3.bf16.msra.mxu1 %v16750_v12  ;;  %v11359_v12 = vpack.c.bf16 %v22382_v54, %v22382_v54 }
 0x86d   : > { %16056 = vmatprep.subr.bf16.mxu1 %v23510_v7 }
 0x86e   : > { %16079 = vmatpush3.bf16.msra.mxu0 %v16751_v40 }
 0x86f   : > { %16080 = vmatprep.subr.bf16.mxu0 %v23510_v7 }
 0x870   : > { %16057 = vmatpush3.bf16.msra.mxu1 %v16752_v37 }
 0x871   : > { %16058 = vmatprep.subr.bf16.mxu1 %v23510_v7 }
 0x872   : > { %16081 = vmatpush3.bf16.msra.mxu0 %v16753_v11 }
 0x873   : > { %16082 = vmatprep.subr.bf16.mxu0 %v23510_v7 }
 0x874   : > { %16059 = vmatpush3.bf16.msra.mxu1 %v16754_v5 }
 0x875   : > { %16060 = vmatprep.subr.bf16.mxu1 %v23510_v7 }
 0x876   : > { %16083 = vmatpush3.bf16.msra.mxu0 %v16755_v44 }
 0x877   : > { %16084 = vmatprep.subr.bf16.mxu0 %v23510_v7 }
 0x878   : > { %16061 = vmatpush3.bf16.msra.mxu1 %v16756_v0 }
 0x879   : > { %16062 = vmatprep.subr.bf16.mxu1 %v23510_v7 }
 0x87a   : > { %16085 = vmatpush3.bf16.msra.mxu0 %v16757_v26 }
 0x87b   : > { %16110 = vmatprep.subr.bf16.mxu0 %v23510_v7 }
 0x87c   : > { %16063 = vmatpush3.bf16.msra.mxu1 %v16758_v22 }
 0x87d   : > { %v9836_v33 = vpop.f32.mrf.mxu0  ;;  %16087 = vmatmul.mubr.bf16.vlgmr.msra.gmra.mxu0 %v11052_v48  ;;  %16064 = vmatprep.subr.bf16.mxu1 %v23510_v7 }
 0x87e   : > { %16111 = vmatpush3.bf16.msra.mxu0 %v16759_v20  ;;  %16126 = vmatprep.mubr.msk.bf16.mxu0 %vm16815_vm0, %v23510_v7 }
 0x87f   : > { %v15848_v62 = vpop.f32.mrf.mxu0  ;;  %16112 = vmatprep.subr.bf16.mxu0 %v23510_v7 }
 0x880   : > { %16065 = vmatpush3.bf16.msra.mxu1 %v16760_v13 }
 0x881   : > { %v9839_v10 = vpop.f32.mrf.mxu0  ;;  %16090 = vmatprep.subr.bf16.mxu1 %v23510_v7 }
 0x882   : > { %16113 = vmatpush3.bf16.msra.mxu0 %v16761_v35  ;;  %v16784_v10 = vld [vmem:[%s23175_s5 + $0x38] sm:$0xff]  }
 0x883   : > { %v9728_v21 = vpop.f32.mrf.mxu1  ;;  %v15849_v30 = vpop.f32.mrf.mxu0  ;;  %16067 = vmatmul.mubr.bf16.vlgmr.msra.gmra.mxu1 %v10926_v59  ;;  %16114 = vmatprep.subr.bf16.mxu0 %v23510_v7  ;;  %v16785_v59 = vld [vmem:[%s23175_s5 + $0x30] sm:$0xff]  }
 0x884   : > { %v9734_v28 = vadd.f32 %v9728_v21, %v9624_v38  ;;  %16091 = vmatpush3.bf16.msra.mxu1 %v16762_v14  ;;  %16106 = vmatprep.mubr.msk.bf16.mxu1 %vm16815_vm0, %v23510_v7  ;;  %v16787_v21 = vld [vmem:[%s23175_s5 + $0x20] sm:$0xff]   ;;  %v16788_v30 = vld [vmem:[%s23175_s5 + $0x18] sm:$0xff]  }
 0x885   : > { %v15828_v15 = vpop.f32.mrf.mxu1  ;;  %16092 = vmatprep.subr.bf16.mxu1 %v23510_v7 }
 0x886   : > { %16115 = vmatpush3.bf16.msra.mxu0 %v16763_v25  ;;  %v9842_v19 = vadd.f32 %v9836_v33, %v9734_v28  ;;  %v16786_v25 = vld [vmem:[%s23175_s5 + $0x28] sm:$0xff]   ;;  %v16789_v28 = vld [vmem:[%s23175_s5 + $0x10] sm:$0xff]  }
 0x887   : > { %v9731_v58 = vpop.f32.mrf.mxu1  ;;  %16116 = vmatprep.subr.bf16.mxu0 %v23510_v7 }
 0x888   : > { %16093 = vmatpush3.bf16.msra.mxu1 %v16764_v57 }
 0x889   : > { %v15829_v1 = vpop.f32.mrf.mxu1  ;;  %16094 = vmatprep.subr.bf16.mxu1 %v23510_v7 }
 0x88a   : > { %16117 = vmatpush3.bf16.msra.mxu0 %v16765_v46 }
 0x88b   : > { %16118 = vmatprep.subr.bf16.mxu0 %v23510_v7 }
 0x88c   : > { %16095 = vmatpush3.bf16.msra.mxu1 %v16766_v43 }
 0x88d   : > { %16096 = vmatprep.subr.bf16.mxu1 %v23510_v7 }
 0x88e   : > { %16119 = vmatpush3.bf16.msra.mxu0 %v16767_v3 }
 0x88f   : > { %16120 = vmatprep.subr.bf16.mxu0 %v23510_v7 }
 0x890   : > { %16097 = vmatpush3.bf16.msra.mxu1 %v16768_v56 }
 0x891   : > { %16098 = vmatprep.subr.bf16.mxu1 %v23510_v7 }
 0x892   : > { %16121 = vmatpush3.bf16.msra.mxu0 %v16769_v53 }
 0x893   : > { %16122 = vmatprep.subr.bf16.mxu0 %v23510_v7 }
 0x894   : > { %16099 = vmatpush3.bf16.msra.mxu1 %v16770_v63  ;;  %v16790_v63 = vld [vmem:[%s23175_s5 + $0x8] sm:$0xff]  }
 0x895   : > { %16100 = vmatprep.subr.bf16.mxu1 %v23510_v7 }
 0x896   : > { %16123 = vmatpush3.bf16.msra.mxu0 %v16771_v32  ;;  %v16791_v32 = vld [vmem:[%s23175_s5] sm:$0xff]  }
 0x897   : > { %16124 = vmatprep.subr.bf16.mxu0 %v23510_v7 }
 0x898   : > { %16101 = vmatpush3.bf16.msra.mxu1 %v16772_v61  ;;  %v16792_v61 = vld [vmem:[%s23176_s6 + $0x38] sm:$0xff]  }
 0x899   : > { %16102 = vmatprep.subr.bf16.mxu1 %v23510_v7 }
 0x89a   : > { %16125 = vmatpush3.bf16.msra.mxu0 %v16773_v17  ;;  %v16793_v17 = vld [vmem:[%s23176_s6 + $0x30] sm:$0xff]  }
 0x89b   : > { %16150 = vmatprep.subr.bf16.mxu0 %v23510_v7 }
 0x89c   : > { %16103 = vmatpush3.bf16.msra.mxu1 %v16774_v23  ;;  %v16794_v23 = vld [vmem:[%s23176_s6 + $0x28] sm:$0xff]  }
 0x89d   : > { %v10053_v36 = vpop.f32.mrf.mxu0  ;;  %16127 = vmatmul.mubr.bf16.vlgmr.msra.gmra.mxu0 %v11268_v45  ;;  %16104 = vmatprep.subr.bf16.mxu1 %v23510_v7  ;;  %v16795_v45 = vld [vmem:[%s23176_s6 + $0x20] sm:$0xff]  }
 0x89e   : > { %16166 = vmatprep.mubr.msk.bf16.mxu0 %vm16815_vm0, %v23510_v7  ;;  %16151 = vmatpush3.bf16.msra.mxu0 %v16784_v10  ;;  %v16798_v10 = vld [vmem:[%s23176_s6 + $0x8] sm:$0xff]  }
 0x89f   : > { %v15888_v4 = vpop.f32.mrf.mxu0  ;;  %16152 = vmatprep.subr.bf16.mxu0 %v23510_v7 }
 0x8a0   : > { %16105 = vmatpush3.bf16.msra.mxu1 %v16775_v49  ;;  %v16796_v49 = vld [vmem:[%s23176_s6 + $0x18] sm:$0xff]   ;;  %v16797_v4 = vld [vmem:[%s23176_s6 + $0x10] sm:$0xff]  }
 0x8a1   : > { %v10056_v16 = vpop.f32.mrf.mxu0  ;;  %16130 = vmatprep.subr.bf16.mxu1 %v23510_v7 }
 0x8a2   : > { %16153 = vmatpush3.bf16.msra.mxu0 %v16785_v59  ;;  %v16799_v59 = vld [vmem:[%s23176_s6] sm:$0xff]  }
 0x8a3   : > { %v9943_v31 = vpop.f32.mrf.mxu1  ;;  %v15889_v50 = vpop.f32.mrf.mxu0  ;;  %16107 = vmatmul.mubr.bf16.vlgmr.msra.gmra.mxu1 %v11160_v34  ;;  %16154 = vmatprep.subr.bf16.mxu0 %v23510_v7 }
 0x8a4   : > { %v9949_v55 = vadd.f32 %v9943_v31, %v9842_v19  ;;  %16131 = vmatpush3.bf16.msra.mxu1 %v16776_v60  ;;  %16146 = vmatprep.mubr.msk.bf16.mxu1 %vm16815_vm0, %v23510_v7 }
 0x8a5   : > { %v15868_v18 = vpop.f32.mrf.mxu1  ;;  %16132 = vmatprep.subr.bf16.mxu1 %v23510_v7 }
 0x8a6   : > { %v10059_v24 = vadd.f32 %v10053_v36, %v9949_v55  ;;  %16155 = vmatpush3.bf16.msra.mxu0 %v16786_v25  ;;  %v13082_v25 = vld [vmem:[%s23177_s7 + $0x3] ss:$0 sm:$0xff] }
 0x8a7   : > { %v9946_v42 = vpop.f32.mrf.mxu1  ;;  %16156 = vmatprep.subr.bf16.mxu0 %v23510_v7 }
 0x8a8   : > { %16133 = vmatpush3.bf16.msra.mxu1 %v16777_v2 }
 0x8a9   : > { %v15869_v29 = vpop.f32.mrf.mxu1  ;;  %16134 = vmatprep.subr.bf16.mxu1 %v23510_v7 }
 0x8aa   : > { %16157 = vmatpush3.bf16.msra.mxu0 %v16787_v21 }
 0x8ab   : > { %16158 = vmatprep.subr.bf16.mxu0 %v23510_v7 }
 0x8ac   : > { %16135 = vmatpush3.bf16.msra.mxu1 %v16778_v47 }
 0x8ad   : > { %16136 = vmatprep.subr.bf16.mxu1 %v23510_v7 }
 0x8ae   : > { %16159 = vmatpush3.bf16.msra.mxu0 %v16788_v30 }
 0x8af   : > { %16160 = vmatprep.subr.bf16.mxu0 %v23510_v7 }
 0x8b0   : > { %16137 = vmatpush3.bf16.msra.mxu1 %v16779_v51 }
 0x8b1   : > { %16138 = vmatprep.subr.bf16.mxu1 %v23510_v7 }
 0x8b2   : > { %16161 = vmatpush3.bf16.msra.mxu0 %v16789_v28 }
 0x8b3   : > { %16162 = vmatprep.subr.bf16.mxu0 %v23510_v7 }
 0x8b4   : > { %16139 = vmatpush3.bf16.msra.mxu1 %v16780_v41 }
 0x8b5   : > { %16140 = vmatprep.subr.bf16.mxu1 %v23510_v7 }
 0x8b6   : > { %16163 = vmatpush3.bf16.msra.mxu0 %v16790_v63 }
 0x8b7   : > { %16164 = vmatprep.subr.bf16.mxu0 %v23510_v7 }
 0x8b8   : > { %16141 = vmatpush3.bf16.msra.mxu1 %v16781_v9 }
 0x8b9   : > { %16142 = vmatprep.subr.bf16.mxu1 %v23510_v7 }
 0x8ba   : > { %16165 = vmatpush3.bf16.msra.mxu0 %v16791_v32 }
 0x8bc   : > { %16143 = vmatpush3.bf16.msra.mxu1 %v16782_v27 }
 0x8bd   : > { %v10269_v52 = vpop.f32.mrf.mxu0  ;;  %16144 = vmatprep.subr.bf16.mxu1 %v23510_v7 }
 0x8bf   : > { %v15928_v38 = vpop.f32.mrf.mxu0 }
 0x8c0   : > { %16145 = vmatpush3.bf16.msra.mxu1 %v16783_v39 }
 0x8c1   : > { %v10272_v8 = vpop.f32.mrf.mxu0  ;;  %16170 = vmatprep.subr.bf16.mxu1 %v23510_v7 }
 0x8c3   : > { %v10161_v6 = vpop.f32.mrf.mxu1  ;;  %v15929_v40 = vpop.f32.mrf.mxu0  ;;  %16147 = vmatmul.mubr.bf16.vlgmr.msra.gmra.mxu1 %v11359_v12 }
 0x8c4   : > { %v10167_v37 = vadd.f32 %v10161_v6, %v10059_v24  ;;  %16186 = vmatprep.mubr.msk.bf16.mxu1 %vm16815_vm0, %v23510_v7  ;;  %16171 = vmatpush3.bf16.msra.mxu1 %v16792_v61 }
 0x8c5   : > { %v15908_v11 = vpop.f32.mrf.mxu1  ;;  %16172 = vmatprep.subr.bf16.mxu1 %v23510_v7 }
 0x8c6   : > { %v10275_v5 = vadd.f32 %v10269_v52, %v10167_v37 }
 0x8c7   : > { %v10164_v44 = vpop.f32.mrf.mxu1 }
 0x8c8   : > { %16173 = vmatpush3.bf16.msra.mxu1 %v16793_v17 }
 0x8c9   : > { %v15909_v0 = vpop.f32.mrf.mxu1  ;;  %16174 = vmatprep.subr.bf16.mxu1 %v23510_v7 }
 0x8cc   : > { %16175 = vmatpush3.bf16.msra.mxu1 %v16794_v23 }
 0x8cd   : > { %16176 = vmatprep.subr.bf16.mxu1 %v23510_v7 }
 0x8d0   : > { %16177 = vmatpush3.bf16.msra.mxu1 %v16795_v45 }
 0x8d1   : > { %16178 = vmatprep.subr.bf16.mxu1 %v23510_v7 }
 0x8d4   : > { %16179 = vmatpush3.bf16.msra.mxu1 %v16796_v49 }
 0x8d5   : > { %16180 = vmatprep.subr.bf16.mxu1 %v23510_v7 }
 0x8d8   : > { %16181 = vmatpush3.bf16.msra.mxu1 %v16797_v4 }
 0x8d9   : > { %16182 = vmatprep.subr.bf16.mxu1 %v23510_v7 }
 0x8dc   : > { %16183 = vmatpush3.bf16.msra.mxu1 %v16798_v10 }
 0x8dd   : > { %v10486_v26 = vpop.f32.mrf.mxu0  ;;  %16184 = vmatprep.subr.bf16.mxu1 %v23510_v7 }
 0x8df   : > { %v15968_v22 = vpop.f32.mrf.mxu0 }
 0x8e0   : > { %v13081_v22 = vld [vmem:[%s23177_s7 + $0x2] ss:$0 sm:$0xff]  ;;  %16185 = vmatpush3.bf16.msra.mxu1 %v16799_v59 }
 0x8e1   : > { %v10489_v20 = vpop.f32.mrf.mxu0 }
 0x8e3   : > { %v10376_v48 = vpop.f32.mrf.mxu1  ;;  %v15969_v13 = vpop.f32.mrf.mxu0 }
 0x8e4   : > { %v10382_v33 = vadd.f32 %v10376_v48, %v10275_v5 }
 0x8e5   : > { %v15948_v54 = vpop.f32.mrf.mxu1 }
 0x8e6   : > { %v10492_v35 = vadd.f32 %v10486_v26, %v10382_v33 }
 0x8e7   : > { %v10379_v62 = vpop.f32.mrf.mxu1 }
 0x8e9   : > { %v15949_v14 = vpop.f32.mrf.mxu1 }
 0x8fd   : > { %v10701_v57 = vpop.f32.mrf.mxu0 }
 0x8ff   : > { %v16008_v15 = vpop.f32.mrf.mxu0 }
 0x901   : > { %v10704_v46 = vpop.f32.mrf.mxu0 }
 0x903   : > { %v10594_v19 = vpop.f32.mrf.mxu1  ;;  %v16009_v58 = vpop.f32.mrf.mxu0 }
 0x904   : > { %v10600_v43 = vadd.f32 %v10594_v19, %v10492_v35  ;;  %v11691_v58 = vlaneseq }
 0x905   : > { %v15988_v1 = vpop.f32.mrf.mxu1 }
 0x906   : > { %v10707_v3 = vadd.f32 %v10701_v57, %v10600_v43  ;;  %v11692_v43 = vand.u32 127, %v11691_v58  ;;  %v13091_v1 = vld [vmem:[%s23177_s7 + $0x4] ss:$0 sm:$0xff] }
 0x907   : > { %v10597_v56 = vpop.f32.mrf.mxu1 }
 0x908   : > { %vm11693_vm10 = vcmp.lt.s32.totalorder %v11692_v43, 10 }
 0x909   : > { %v15989_v53 = vpop.f32.mrf.mxu1 }
 0x91d   : > { %v10919_v36 = vpop.f32.mrf.mxu0 }
 0x91f   : > { %v16048_v60 = vpop.f32.mrf.mxu0 }
 0x921   : > { %v10922_v16 = vpop.f32.mrf.mxu0 }
 0x923   : > { %v10811_v34 = vpop.f32.mrf.mxu1  ;;  %v16049_v31 = vpop.f32.mrf.mxu0 }
 0x924   : > { %v10817_v50 = vadd.f32 %v10811_v34, %v10707_v3 }
 0x925   : > { %v16028_v55 = vpop.f32.mrf.mxu1 }
 0x926   : > { %v10925_v2 = vadd.f32 %v10919_v36, %v10817_v50 }
 0x927   : > { %v10814_v18 = vpop.f32.mrf.mxu1 }
 0x929   : > { %v16029_v24 = vpop.f32.mrf.mxu1 }
 0x93d   : > { %v11136_v42 = vpop.f32.mrf.mxu0 }
 0x93f   : > { %v16088_v47 = vpop.f32.mrf.mxu0 }
 0x941   : > { %v11139_v29 = vpop.f32.mrf.mxu0 }
 0x943   : > { %v11026_v51 = vpop.f32.mrf.mxu1  ;;  %v16089_v41 = vpop.f32.mrf.mxu0 }
 0x944   : > { %v11032_v9 = vadd.f32 %v11026_v51, %v10925_v2 }
 0x945   : > { %v16068_v27 = vpop.f32.mrf.mxu1 }
 0x946   : > { %v11142_v39 = vadd.f32 %v11136_v42, %v11032_v9 }
 0x947   : > { %v11029_v52 = vpop.f32.mrf.mxu1 }
 0x949   : > { %v16069_v38 = vpop.f32.mrf.mxu1 }
 0x95d   : > { %v11352_v8 = vpop.f32.mrf.mxu0 }
 0x95f   : > { %v16128_v12 = vpop.f32.mrf.mxu0 }
 0x961   : > { %v11355_v6 = vpop.f32.mrf.mxu0 }
 0x963   : > { %v11244_v40 = vpop.f32.mrf.mxu1  ;;  %v16129_v37 = vpop.f32.mrf.mxu0 }
 0x964   : > { %v11250_v0 = vadd.f32 %v11244_v40, %v11142_v39 }
 0x965   : > { %v16108_v11 = vpop.f32.mrf.mxu1 }
 0x966   : > { %v11358_v26 = vadd.f32 %v11352_v8, %v11250_v0 }
 0x967   : > { %v11247_v5 = vpop.f32.mrf.mxu1 }
 0x969   : > { %v16109_v44 = vpop.f32.mrf.mxu1 }
 0x983   : > { %v11459_v20 = vpop.f32.mrf.mxu1 }
 0x984   : > { %v11465_v48 = vadd.f32 %v11459_v20, %v11358_v26 }
 0x985   : > { %v16148_v13 = vpop.f32.mrf.mxu1 }
 0x986   : > { %v11470_v33 = vadd.f32 %v13081_v22, %v11465_v48 }
 0x987   : > { %v11462_v54 = vpop.f32.mrf.mxu1 }
 0x988   : > { %v11471_v35 = vmax.f32 %v11470_v33, 0.0 }
 0x989   : > { %v16149_v62 = vpop.f32.mrf.mxu1 }
 0x98a   : > { %v11472_v14 = vpack.c.bf16 %v11471_v35, %v11471_v35 }
 0x98c   : > { %16167 = vmatmul.mubr.bf16.vlgmr.msra.gmra.mxu0 %v11472_v14 }
 0xa4c   : > { %v11575_v21 = vpop.f32.mrf.mxu0 }
 0xa4d   : > { %v11576_v30 = vadd.f32 %v13082_v25, %v11575_v21 }
 0xa4e   : > { %v16168_v28 = vpop.f32.mrf.mxu0 }
 0xa4f   : > { %v11581_v57 = vmax.f32 %v11576_v30, 0.0 }
 0xa50   : > { %v11578_v15 = vpop.f32.mrf.mxu0 }
 0xa51   : > { %v11582_v46 = vpack.c.bf16 %v11581_v57, %v11581_v57 }
 0xa52   : > { %v16169_v19 = vpop.f32.mrf.mxu0 }
 0xa53   : > { %16187 = vmatmul.mubr.bf16.vlgmr.msra.gmra.mxu1 %v11582_v46 }
 0xb13   : > { %v11685_v7 = vpop.f32.mrf.mxu1 }
 0xb14   : > { %v11686_v3 = vadd.f32 %v13091_v1, %v11685_v7 }
 0xb15   : > { %v16188_v56 = vpop.f32.mrf.mxu1 }
 0xb16   : > { %v11694_v53 = vsel %vm11693_vm10, %v11686_v3, -1e+30 }
 0xb17   : > { %11695 = vmax.xlane.f32.xlu0 %v11694_v53  ;;  %v11688_v63 = vpop.f32.mrf.mxu1 }
 0xb19   : > { %v16189_v32 = vpop.f32.mrf.mxu1 }
 0xba0   : > { %v11696_v61 = vpop.xlane.xlu0 %11695 }
 0xba1   : > { %v11697_v17 = vsub.f32 %v11694_v53, %v11696_v61 }
 0xba3   : > { %v11698_v23 = vmul.f32 1.442695, %v11697_v17 }
 0xba5   : > { %16800 = vpow2.f32 %v11698_v23 }
 0xbb2   : > { %v16801_v45 = vpop.eup %16800 }
 0xbb3   : > { %11700 = vadd.xlane.f32.xlu0 %v16801_v45 }
 0xc3c   : > { %v11701_v49 = vpop.xlane.xlu0 %11700 }
 0xc3d   : > { %16802 = vlog2.f32 %v11701_v49 }
 0xc4a   : > { %v16803_v36 = vpop.eup %16802 }
 0xc4b   : > { %v11703_v4 = vmul.f32 0.6931472, %v16803_v36 }
 0xc4d   : > { %v11704_v60 = vadd.f32 %v11703_v4, %v11696_v61 }
 0xc4f   : > { %v11705_v16 = vsub.f32 %v11694_v53, %v11704_v60 }
 0xc51   : > { %11706 = vst [vmem:[%s303_s30] sm:$0xff] %v11705_v16 }
 0xc52 PF: > { %s18_s27 = sadd.s32 1, %s16812_s27  }
 0xc53   : > { %p15_p4 = scmp.ge.s32.totalorder %s18_s27, 4  }
 0xc55   :  { %17 = sbr.rel (!%p15_p4) target bundleno = 1 (0x1), region = 130 }

</bundles_post_ra>
